<compile_context>
chip_gen: v7x
topology: tpu7x:2x2x1
jax: 0.10.0
libtpu: 0.0.40
codegen_flags: <defaults>
</compile_context>

<pallas_src>
import jax
import jax.numpy as jnp
from jax import lax
from jax.experimental import pallas as pl
from jax.experimental.pallas import tpu as pltpu


# ----------------------------- fused Pallas kernel --------------------------
# Row layout conventions inside the kernel (Bt = batch tile):
#   h1s : (100*Bt, 128)  rows (q*10+t, b), lanes (parity blk, c)   [conv1 out]
#   acc2/h2s : (89*Bt, 64) rows (j2, b) with j2 = y2*10+x2 (x2==9 rows = garbage)
#   acc3/h3s : (67*Bt, 32) rows (j3, b) with j3 = y3*10+x3 (x3>6 rows = garbage)
# Garbage rows are never read by any valid downstream row, so they are ignored.

def _make_fused_kernel(Bt):
    f32 = jnp.float32
    bf16 = jnp.bfloat16
    M2 = 89 * Bt
    M3 = 67 * Bt

    def kernel(p1_ref, w1_ref, b1_ref, w2_ref, b2_ref, w3_ref, b3_ref,
               wfc_ref, bfc_ref, wc_ref, bc_ref,
               out_x_ref, out_v_ref,
               h1s, acc2, h2s, acc3, h3s):
        # ---- conv1 (k=8, s=4): one matmul per parity block (M = 100*Bt already
        # fills the MXU after batch tiling); results stream into the
        # blocks-in-lanes layout that makes conv2 a K=128 matmul.  Bias+ReLU in
        # f32, cast to bf16 only on store (v5e has no bf16 VPU).
        w1 = w1_ref[...]
        b1 = b1_ref[...]
        for blk in range(4):
            a = jnp.dot(p1_ref[0, blk], w1, preferred_element_type=f32)    # (100*Bt, 32)
            h1s[:, blk * 32:(blk + 1) * 32] = jnp.maximum(a + b1, 0.0).astype(bf16)

        # ---- conv2 (k=4, s=2): 4 accumulating slab matmuls, one per (u, v) tap
        # group (kh = 2u+p, kw = 2v+s); all 4 parity blocks' channels form K=128.
        # Source rows for output row j2 are just j2 + (u*10+v), so each tap group
        # is one contiguous (89*Bt, 128) slice of h1s.  Last group is fused with
        # the bias+ReLU epilogue to save one accumulator RMW pass.
        for g in range(4):
            u, v = g // 2, g % 2
            off = (u * 10 + v) * Bt
            d = jnp.dot(h1s[off:off + M2, :], w2_ref[g * 128:(g + 1) * 128, :],
                        preferred_element_type=f32)                        # (89*Bt, 64)
            if g == 0:
                acc2[...] = d
            elif g < 3:
                acc2[...] += d
            else:
                h2s[...] = jnp.maximum(acc2[...] + d + b2_ref[...], 0.0).astype(bf16)

        # ---- conv3 (k=3, s=1): 9 accumulating slab matmuls (K=64).  Source rows
        # for output row j3 are j3 + (kh*10+kw) -> contiguous (67*Bt, 64) slices.
        for tap in range(9):
            kh, kw = tap // 3, tap % 3
            off = (kh * 10 + kw) * Bt
            d = jnp.dot(h2s[off:off + M3, :], w3_ref[tap * 64:(tap + 1) * 64, :],
                        preferred_element_type=f32)                        # (67*Bt, 32)
            if tap == 0:
                acc3[...] = d
            elif tap < 8:
                acc3[...] += d
            else:
                h3s[...] = jnp.maximum(acc3[...] + d + b3_ref[...], 0.0).astype(bf16)

        # ---- fc: no flatten copies -- 49 accumulating (Bt,32)@(32,512) matmuls
        # read the conv3 scratch directly (fc weights pre-permuted to (y3,x3,c)
        # row order); the (Bt,512) f32 accumulator stays in vregs.
        accf = None
        for r in range(49):
            j3 = (r // 7) * 10 + (r % 7)
            d = jnp.dot(h3s[j3 * Bt:(j3 + 1) * Bt, :],
                        wfc_ref[r * 32:(r + 1) * 32, :],
                        preferred_element_type=f32)                        # (Bt, 512)
            accf = d if accf is None else accf + d
        y = jnp.maximum(accf + bfc_ref[...], 0.0)                          # (Bt, 512)
        out_x_ref[0] = y

        # ---- fused critic head, N padded to 128 for a lane-dense store.
        v = jnp.dot(y.astype(bf16), wc_ref[...], preferred_element_type=f32)
        out_v_ref[0] = v + bc_ref[...]                                     # (Bt, 128)

    return kernel


def _fused_policy_call(p1, prep, nt, Bt, C):
    K1 = C * 64

    # Advisory cost estimate so XLA schedules the custom call sensibly against
    # the wrapper-side patch-extraction pass.
    flops = 2 * nt * Bt * (400 * K1 * 32 + 81 * 512 * 64 + 49 * 576 * 32
                           + 1568 * 512 + 512 * 128)
    bytes_accessed = (int(p1.size) * 2
                      + sum(int(v.size) * v.dtype.itemsize for v in prep.values())
                      + nt * Bt * (512 + 128) * 4)

    # TODO(synk): mark the constant-index weight inputs single-buffered
    # (pipeline_mode=pl.Buffered(1)) once confirmed supported by the installed
    # Mosaic; skipped here to avoid a lowering risk (~2 MiB VMEM at stake).
    grid_spec = pltpu.PrefetchScalarGridSpec(
        num_scalar_prefetch=0,
        grid=(nt,),
        in_specs=[
            pl.BlockSpec((1, 4, 100 * Bt, K1), lambda t: (t, 0, 0, 0)),  # conv1 patches
            pl.BlockSpec((K1, 32), lambda t: (0, 0)),                    # w1 (bf16)
            pl.BlockSpec((1, 32), lambda t: (0, 0)),                     # b1
            pl.BlockSpec((512, 64), lambda t: (0, 0)),                   # w2 (tap groups)
            pl.BlockSpec((1, 64), lambda t: (0, 0)),                     # b2
            pl.BlockSpec((576, 32), lambda t: (0, 0)),                   # w3 (taps)
            pl.BlockSpec((1, 32), lambda t: (0, 0)),                     # b3
            pl.BlockSpec((1568, 512), lambda t: (0, 0)),                 # fc w
            pl.BlockSpec((1, 512), lambda t: (0, 0)),                    # fc b
            pl.BlockSpec((512, 128), lambda t: (0, 0)),                  # critic w (padded)
            pl.BlockSpec((1, 128), lambda t: (0, 0)),                    # critic b (padded)
        ],
        out_specs=[
            pl.BlockSpec((1, Bt, 512), lambda t: (t, 0, 0)),             # actor features
            pl.BlockSpec((1, Bt, 128), lambda t: (t, 0, 0)),             # value (lane 0)
        ],
        scratch_shapes=[
            pltpu.VMEM((100 * Bt, 128), jnp.bfloat16),   # conv1 out (parity in lanes)
            pltpu.VMEM((89 * Bt, 64), jnp.float32),      # conv2 f32 accumulator
            pltpu.VMEM((89 * Bt, 64), jnp.bfloat16),     # conv2 out
            pltpu.VMEM((67 * Bt, 32), jnp.float32),      # conv3 f32 accumulator
            pltpu.VMEM((67 * Bt, 32), jnp.bfloat16),     # conv3 out
        ],
    )

    return pl.pallas_call(
        _make_fused_kernel(Bt),
        out_shape=(jax.ShapeDtypeStruct((nt, Bt, 512), jnp.float32),
                   jax.ShapeDtypeStruct((nt, Bt, 128), jnp.float32)),
        grid_spec=grid_spec,
        compiler_params=pltpu.CompilerParams(
            dimension_semantics=("parallel",),           # batch tiles across TCs
            vmem_limit_bytes=32 * 1024 * 1024,           # safe on v5e/v6e/v7x
        ),
        cost_estimate=pl.CostEstimate(flops=flops, transcendentals=0,
                                      bytes_accessed=bytes_accessed),
    )(p1, prep["w1m"], prep["b1"], prep["w2m"], prep["b2"],
      prep["w3m"], prep["b3"], prep["wfc"], prep["bfc"],
      prep["wc"], prep["bc"])


# ----------------------------- parameter preparation ------------------------

def init_torch_params(key, num_inputs):
    # Deterministic synthetic init in PyTorch layouts (reference uses orthogonal
    # init + zero bias; here scaled normal weights + zero bias).
    ks = jax.random.split(key, 5)
    w = lambda k, shape, s=0.05: jax.random.normal(k, shape, jnp.float32) * s
    return {
        "c1_w": w(ks[0], (32, num_inputs, 8, 8)), "c1_b": jnp.zeros((32,), jnp.float32),
        "c2_w": w(ks[1], (64, 32, 4, 4)),         "c2_b": jnp.zeros((64,), jnp.float32),
        "c3_w": w(ks[2], (32, 64, 3, 3)),         "c3_b": jnp.zeros((32,), jnp.float32),
        "fc_w": w(ks[3], (512, 32 * 7 * 7)),      "fc_b": jnp.zeros((512,), jnp.float32),
        "critic_w": w(ks[4], (1, 512)),           "critic_b": jnp.zeros((1,), jnp.float32),
    }


def prepare_params(tp):
    """One-time conversion: matmul layouts, bf16, /255 folded into conv1,
    conv2 regrouped for the 4 tap-group (K=128) matmuls, fc/critic
    pre-transposed, critic output padded to 128 lanes."""
    C = tp["c1_w"].shape[1]
    # conv1: (C*64, 32), rows ordered (c_in, kh*8+kw), /255 folded in.
    w1m = (tp["c1_w"].reshape(32, C * 64) / 255.0).T.astype(jnp.bfloat16)
    # conv2: rows ordered (u, v, p, s, c_in) with kh = 2u+p, kw = 2v+s -> (512, 64)
    w2m = (tp["c2_w"].reshape(64, 32, 2, 2, 2, 2)     # (co, ci, u, p, v, s)
           .transpose(2, 4, 3, 5, 1, 0)               # (u, v, p, s, ci, co)
           .reshape(4 * 128, 64).astype(jnp.bfloat16))
    # conv3: rows ordered (kh, kw, c_in) -> (576, 32)
    w3m = tp["c3_w"].transpose(2, 3, 1, 0).reshape(9 * 64, 32).astype(jnp.bfloat16)
    # fc: rows ordered (y3, x3, c) to match torch's NCHW .view() via the kernel's
    # per-position read order -> (1568, 512)
    wfc = (tp["fc_w"].reshape(512, 32, 7, 7).transpose(2, 3, 1, 0)
           .reshape(7 * 7 * 32, 512).astype(jnp.bfloat16))
    wc = (jnp.zeros((512, 128), jnp.float32)
          .at[:, 0].set(tp["critic_w"][0, :]).astype(jnp.bfloat16))
    bc = jnp.zeros((1, 128), jnp.float32).at[0, 0].set(tp["critic_b"][0])
    return {
        "w1m": w1m, "b1": tp["c1_b"].reshape(1, 32).astype(jnp.float32),
        "w2m": w2m, "b2": tp["c2_b"].reshape(1, 64).astype(jnp.float32),
        "w3m": w3m, "b3": tp["c3_b"].reshape(1, 32).astype(jnp.float32),
        "wfc": wfc, "bfc": tp["fc_b"].reshape(1, 512).astype(jnp.float32),
        "wc": wc, "bc": bc,
    }


# ----------------------------- Policy base forward --------------------------

def _pick_bt(B):
    # Batch tile: big enough to fill the MXU / amortize per-step overhead, small
    # enough to keep >=2 grid steps (so both v7x TensorCores get work) and stay
    # far under the 32 MiB scoped-VMEM budget shared by v5e/v6e/v7x.
    # TODO(synk): make Bt generation-specific (v5e/v6e's 128 MiB VMEM allows 16-32).
    if B >= 64:
        return 16
    if B >= 16:
        return 8
    return max(1, B // 2)


def _conv1_patches(x_bf16, nt, Bt, C):
    # Stride-4 8x8 patch extraction (im2col) for conv1, emitted per batch tile in
    # (parity-block, block-row, block-col, batch) row order so the in-kernel
    # conv2 tap-group matmuls only need contiguous row slabs of the conv1 output.
    # TODO(synk): move this extraction in-kernel (reshape W=84 -> (21,4) so the
    # stride-4 column pick becomes static indexing) to remove the p1 HBM round trip.
    cols = [x_bf16[:, :, kh:kh + 80:4, kw:kw + 80:4]
            for kh in range(8) for kw in range(8)]        # 64 x (B, C, 20, 20)
    pat = jnp.stack(cols, axis=-1)                        # (B, C, 20, 20, 64)
    pat = pat.reshape(nt, Bt, C, 10, 2, 10, 2, 64)        # (t, b, C, q, p, tc, s, k)
    pat = pat.transpose(0, 4, 6, 3, 5, 1, 2, 7)           # (t, p, s, q, tc, b, C, k)
    return pat.reshape(nt, 4, 100 * Bt, C * 64)


@jax.jit
def policy_base_forward(prep, inputs, states, masks):
    """CNNBase.forward (no GRU): returns (value, actor_features, states)."""
    del masks  # only used when a GRU is present (recurrent_policy=False here)
    B, C, H, W = inputs.shape
    Bt = _pick_bt(B)
    nt = -(-B // Bt)
    Bp = nt * Bt

    # /255 is folded into the conv1 weights; cast to bf16 BEFORE the layout pass
    # so the wrapper-side im2col touches half the HBM bytes.
    x = inputs.astype(jnp.bfloat16)
    if Bp != B:
        x = jnp.pad(x, ((0, Bp - B), (0, 0), (0, 0), (0, 0)))

    p1 = _conv1_patches(x, nt, Bt, C)
    out_x, out_v = _fused_policy_call(p1, prep, nt, Bt, C)

    actor_features = out_x.reshape(Bp, 512)[:B]            # (B, 512)
    value = out_v.reshape(Bp, 128)[:B, :1]                 # (B, 1); lanes 1.. are pad
    return value, actor_features, states


# ----------------------------- plain-XLA reference --------------------------

def reference_forward(tp, inputs):
    x = inputs.astype(jnp.float32) / 255.0

    def conv(x, w, b, stride):
        y = lax.conv_general_dilated(
            x, w, window_strides=(stride, stride), padding="VALID",
            dimension_numbers=("NCHW", "OIHW", "NCHW"))
        return jnp.maximum(y + b[None, :, None, None], 0.0)

    x = conv(x, tp["c1_w"], tp["c1_b"], 4)
    x = conv(x, tp["c2_w"], tp["c2_b"], 2)
    x = conv(x, tp["c3_w"], tp["c3_b"], 1)
    x = x.reshape(x.shape[0], -1)
    x = jnp.maximum(x @ tp["fc_w"].T + tp["fc_b"], 0.0)
    v = x @ tp["critic_w"].T + tp["critic_b"]
    return v, x


# ----------------------------------- main -----------------------------------

if __name__ == "__main__":
    key = jax.random.PRNGKey(0)
    k_in, k_par = jax.random.split(key)

    C = 4
    torch_params = init_torch_params(k_par, num_inputs=C)
    prep = prepare_params(torch_params)

    # CNNBase's Linear(32*7*7, 512) pins the spatial size to 84x84 (Atari).
    # Exercise both tile paths: B=2 (Bt=1, 2 grid steps) and B=16 (Bt=8, 2 steps).
    for B in (2, 16):
        inputs = jax.random.uniform(jax.random.fold_in(k_in, B),
                                    (B, C, 84, 84), jnp.float32) * 255.0
        states = jnp.zeros((B, 1), jnp.float32)   # state_size == 1 (no GRU)
        masks = jnp.ones((B, 1), jnp.float32)

        value, actor_features, out_states = policy_base_forward(
            prep, inputs, states, masks)
        jax.block_until_ready((value, actor_features, out_states))

        assert value.shape == (B, 1)
        assert actor_features.shape == (B, 512)
        assert out_states.shape == (B, 1)

        # Numerical check vs. plain-XLA f32 reference (bf16 MXU inputs -> loose tol).
        ref_v, ref_x = reference_forward(torch_params, inputs)
        tol_x = 5e-2 + 5e-2 * float(jnp.max(jnp.abs(ref_x)))
        tol_v = 5e-2 + 5e-2 * float(jnp.max(jnp.abs(ref_v)))
        assert float(jnp.max(jnp.abs(actor_features - ref_x))) <= tol_x
        assert float(jnp.max(jnp.abs(value - ref_v))) <= tol_v

    # TODO(synk): Categorical/DiagGaussian dist heads (used in Policy.act) are
    # outside base.forward and are not implemented here; GRU path unused
    # (recurrent_policy=False).
    print("KERNEL_OK")
</pallas_src>

<mosaic_0001>
module attributes {stable_mosaic.version = 11 : i64} {
  func.func @kernel(%arg0: i32, %arg1: memref<1x4x100x256xbf16, #tpu.memory_space<vmem>>, %arg2: memref<256x32xbf16, #tpu.memory_space<vmem>>, %arg3: memref<1x32xf32, #tpu.memory_space<vmem>>, %arg4: memref<512x64xbf16, #tpu.memory_space<vmem>>, %arg5: memref<1x64xf32, #tpu.memory_space<vmem>>, %arg6: memref<576x32xbf16, #tpu.memory_space<vmem>>, %arg7: memref<1x32xf32, #tpu.memory_space<vmem>>, %arg8: memref<1568x512xbf16, #tpu.memory_space<vmem>>, %arg9: memref<1x512xf32, #tpu.memory_space<vmem>>, %arg10: memref<512x128xbf16, #tpu.memory_space<vmem>>, %arg11: memref<1x128xf32, #tpu.memory_space<vmem>>, %arg12: memref<1x1x512xf32, #tpu.memory_space<vmem>>, %arg13: memref<1x1x128xf32, #tpu.memory_space<vmem>>, %arg14: memref<100x128xbf16, #tpu.memory_space<vmem>>, %arg15: memref<89x64xf32, #tpu.memory_space<vmem>>, %arg16: memref<89x64xbf16, #tpu.memory_space<vmem>>, %arg17: memref<67x32xf32, #tpu.memory_space<vmem>>, %arg18: memref<67x32xbf16, #tpu.memory_space<vmem>>) attributes {dimension_semantics = [#tpu.dimension_semantics<parallel>], iteration_bounds = array<i64: 2>, scalar_prefetch = 0 : i64, scratch_operands = 5 : i64, tpu.core_type = #tpu.core_type<tc>, window_params = [{transform_indices = @transform_0, window_bounds = array<i64: 1, 4, 100, 256>}, {pipeline_mode = #tpu.pipeline_mode<synchronous>, transform_indices = @transform_1, window_bounds = array<i64: 256, 32>}, {pipeline_mode = #tpu.pipeline_mode<synchronous>, transform_indices = @transform_2, window_bounds = array<i64: 1, 32>}, {pipeline_mode = #tpu.pipeline_mode<synchronous>, transform_indices = @transform_3, window_bounds = array<i64: 512, 64>}, {pipeline_mode = #tpu.pipeline_mode<synchronous>, transform_indices = @transform_4, window_bounds = array<i64: 1, 64>}, {pipeline_mode = #tpu.pipeline_mode<synchronous>, transform_indices = @transform_5, window_bounds = array<i64: 576, 32>}, {pipeline_mode = #tpu.pipeline_mode<synchronous>, transform_indices = @transform_6, window_bounds = array<i64: 1, 32>}, {pipeline_mode = #tpu.pipeline_mode<synchronous>, transform_indices = @transform_7, window_bounds = array<i64: 1568, 512>}, {pipeline_mode = #tpu.pipeline_mode<synchronous>, transform_indices = @transform_8, window_bounds = array<i64: 1, 512>}, {pipeline_mode = #tpu.pipeline_mode<synchronous>, transform_indices = @transform_9, window_bounds = array<i64: 512, 128>}, {pipeline_mode = #tpu.pipeline_mode<synchronous>, transform_indices = @transform_10, window_bounds = array<i64: 1, 128>}, {transform_indices = @transform_11, window_bounds = array<i64: 1, 1, 512>}, {transform_indices = @transform_12, window_bounds = array<i64: 1, 1, 128>}]} {
    %c0 = arith.constant 0 : index
    %c0_0 = arith.constant 0 : index
    %0 = vector.load %arg2[%c0, %c0_0] : memref<256x32xbf16, #tpu.memory_space<vmem>>, vector<256x32xbf16>
    %c0_1 = arith.constant 0 : index
    %c0_2 = arith.constant 0 : index
    %1 = vector.load %arg3[%c0_1, %c0_2] : memref<1x32xf32, #tpu.memory_space<vmem>>, vector<1x32xf32>
    %c0_3 = arith.constant 0 : index
    %c0_4 = arith.constant 0 : index
    %c0_5 = arith.constant 0 : index
    %c0_6 = arith.constant 0 : index
    %2 = vector.load %arg1[%c0_3, %c0_4, %c0_5, %c0_6] : memref<1x4x100x256xbf16, #tpu.memory_space<vmem>>, vector<1x1x100x256xbf16>
    %3 = vector.shape_cast %2 : vector<1x1x100x256xbf16> to vector<100x256xbf16>
    %cst = arith.constant dense<0.000000e+00> : vector<100x32xf32>
    %4 = tpu.matmul %3, %0, %cst {dimension_numbers = #tpu.dot_dimension_numbers<[1], [0], [0], [1], [0, 0, 1, 1], [], []>} : vector<100x256xbf16>, vector<256x32xbf16>, vector<100x32xf32> -> vector<100x32xf32>
    %5 = vector.broadcast %1 : vector<1x32xf32> to vector<100x32xf32>
    %6 = arith.addf %4, %5 : vector<100x32xf32>
    %cst_7 = arith.constant 0.000000e+00 : f32
    %7 = vector.broadcast %cst_7 : f32 to vector<100x32xf32>
    %8 = arith.maximumf %6, %7 : vector<100x32xf32>
    %9 = arith.truncf %8 : vector<100x32xf32> to vector<100x32xbf16>
    %c0_8 = arith.constant 0 : index
    %c0_9 = arith.constant 0 : index
    %10 = vector.load %arg14[%c0_8, %c0_9] : memref<100x128xbf16, #tpu.memory_space<vmem>>, vector<100x32xbf16>
    tpu.vector_store %arg14[%c0_8, %c0_9], %9 {strides = array<i32>} : memref<100x128xbf16, #tpu.memory_space<vmem>>, vector<100x32xbf16>,
    %c0_10 = arith.constant 0 : index
    %c1 = arith.constant 1 : index
    %c0_11 = arith.constant 0 : index
    %c0_12 = arith.constant 0 : index
    %11 = vector.load %arg1[%c0_10, %c1, %c0_11, %c0_12] : memref<1x4x100x256xbf16, #tpu.memory_space<vmem>>, vector<1x1x100x256xbf16>
    %12 = vector.shape_cast %11 : vector<1x1x100x256xbf16> to vector<100x256xbf16>
    %cst_13 = arith.constant dense<0.000000e+00> : vector<100x32xf32>
    %13 = tpu.matmul %12, %0, %cst_13 {dimension_numbers = #tpu.dot_dimension_numbers<[1], [0], [0], [1], [0, 0, 1, 1], [], []>} : vector<100x256xbf16>, vector<256x32xbf16>, vector<100x32xf32> -> vector<100x32xf32>
    %14 = vector.broadcast %1 : vector<1x32xf32> to vector<100x32xf32>
    %15 = arith.addf %13, %14 : vector<100x32xf32>
    %cst_14 = arith.constant 0.000000e+00 : f32
    %16 = vector.broadcast %cst_14 : f32 to vector<100x32xf32>
    %17 = arith.maximumf %15, %16 : vector<100x32xf32>
    %18 = arith.truncf %17 : vector<100x32xf32> to vector<100x32xbf16>
    %c0_15 = arith.constant 0 : index
    %c32 = arith.constant 32 : index
    %19 = vector.load %arg14[%c0_15, %c32] : memref<100x128xbf16, #tpu.memory_space<vmem>>, vector<100x32xbf16>
    tpu.vector_store %arg14[%c0_15, %c32], %18 {strides = array<i32>} : memref<100x128xbf16, #tpu.memory_space<vmem>>, vector<100x32xbf16>,
    %c0_16 = arith.constant 0 : index
    %c2 = arith.constant 2 : index
    %c0_17 = arith.constant 0 : index
    %c0_18 = arith.constant 0 : index
    %20 = vector.load %arg1[%c0_16, %c2, %c0_17, %c0_18] : memref<1x4x100x256xbf16, #tpu.memory_space<vmem>>, vector<1x1x100x256xbf16>
    %21 = vector.shape_cast %20 : vector<1x1x100x256xbf16> to vector<100x256xbf16>
    %cst_19 = arith.constant dense<0.000000e+00> : vector<100x32xf32>
    %22 = tpu.matmul %21, %0, %cst_19 {dimension_numbers = #tpu.dot_dimension_numbers<[1], [0], [0], [1], [0, 0, 1, 1], [], []>} : vector<100x256xbf16>, vector<256x32xbf16>, vector<100x32xf32> -> vector<100x32xf32>
    %23 = vector.broadcast %1 : vector<1x32xf32> to vector<100x32xf32>
    %24 = arith.addf %22, %23 : vector<100x32xf32>
    %cst_20 = arith.constant 0.000000e+00 : f32
    %25 = vector.broadcast %cst_20 : f32 to vector<100x32xf32>
    %26 = arith.maximumf %24, %25 : vector<100x32xf32>
    %27 = arith.truncf %26 : vector<100x32xf32> to vector<100x32xbf16>
    %c0_21 = arith.constant 0 : index
    %c64 = arith.constant 64 : index
    %28 = vector.load %arg14[%c0_21, %c64] : memref<100x128xbf16, #tpu.memory_space<vmem>>, vector<100x32xbf16>
    tpu.vector_store %arg14[%c0_21, %c64], %27 {strides = array<i32>} : memref<100x128xbf16, #tpu.memory_space<vmem>>, vector<100x32xbf16>,
    %c0_22 = arith.constant 0 : index
    %c3 = arith.constant 3 : index
    %c0_23 = arith.constant 0 : index
    %c0_24 = arith.constant 0 : index
    %29 = vector.load %arg1[%c0_22, %c3, %c0_23, %c0_24] : memref<1x4x100x256xbf16, #tpu.memory_space<vmem>>, vector<1x1x100x256xbf16>
    %30 = vector.shape_cast %29 : vector<1x1x100x256xbf16> to vector<100x256xbf16>
    %cst_25 = arith.constant dense<0.000000e+00> : vector<100x32xf32>
    %31 = tpu.matmul %30, %0, %cst_25 {dimension_numbers = #tpu.dot_dimension_numbers<[1], [0], [0], [1], [0, 0, 1, 1], [], []>} : vector<100x256xbf16>, vector<256x32xbf16>, vector<100x32xf32> -> vector<100x32xf32>
    %32 = vector.broadcast %1 : vector<1x32xf32> to vector<100x32xf32>
    %33 = arith.addf %31, %32 : vector<100x32xf32>
    %cst_26 = arith.constant 0.000000e+00 : f32
    %34 = vector.broadcast %cst_26 : f32 to vector<100x32xf32>
    %35 = arith.maximumf %33, %34 : vector<100x32xf32>
    %36 = arith.truncf %35 : vector<100x32xf32> to vector<100x32xbf16>
    %c0_27 = arith.constant 0 : index
    %c96 = arith.constant 96 : index
    %37 = vector.load %arg14[%c0_27, %c96] : memref<100x128xbf16, #tpu.memory_space<vmem>>, vector<100x32xbf16>
    tpu.vector_store %arg14[%c0_27, %c96], %36 {strides = array<i32>} : memref<100x128xbf16, #tpu.memory_space<vmem>>, vector<100x32xbf16>,
    %c0_28 = arith.constant 0 : index
    %c0_29 = arith.constant 0 : index
    %38 = vector.load %arg14[%c0_28, %c0_29] : memref<100x128xbf16, #tpu.memory_space<vmem>>, vector<89x128xbf16>
    %c0_30 = arith.constant 0 : index
    %c0_31 = arith.constant 0 : index
    %39 = vector.load %arg4[%c0_30, %c0_31] : memref<512x64xbf16, #tpu.memory_space<vmem>>, vector<128x64xbf16>
    %cst_32 = arith.constant dense<0.000000e+00> : vector<89x64xf32>
    %40 = tpu.matmul %38, %39, %cst_32 {dimension_numbers = #tpu.dot_dimension_numbers<[1], [0], [0], [1], [0, 0, 1, 1], [], []>} : vector<89x128xbf16>, vector<128x64xbf16>, vector<89x64xf32> -> vector<89x64xf32>
    %c0_33 = arith.constant 0 : index
    %c0_34 = arith.constant 0 : index
    %41 = vector.load %arg15[%c0_33, %c0_34] : memref<89x64xf32, #tpu.memory_space<vmem>>, vector<89x64xf32>
    tpu.vector_store %arg15[%c0_33, %c0_34], %40 {strides = array<i32>} : memref<89x64xf32, #tpu.memory_space<vmem>>, vector<89x64xf32>,
    %c1_35 = arith.constant 1 : index
    %c0_36 = arith.constant 0 : index
    %42 = vector.load %arg14[%c1_35, %c0_36] : memref<100x128xbf16, #tpu.memory_space<vmem>>, vector<89x128xbf16>
    %c128 = arith.constant 128 : index
    %c0_37 = arith.constant 0 : index
    %43 = vector.load %arg4[%c128, %c0_37] : memref<512x64xbf16, #tpu.memory_space<vmem>>, vector<128x64xbf16>
    %cst_38 = arith.constant dense<0.000000e+00> : vector<89x64xf32>
    %44 = tpu.matmul %42, %43, %cst_38 {dimension_numbers = #tpu.dot_dimension_numbers<[1], [0], [0], [1], [0, 0, 1, 1], [], []>} : vector<89x128xbf16>, vector<128x64xbf16>, vector<89x64xf32> -> vector<89x64xf32>
    %c0_39 = arith.constant 0 : index
    %c0_40 = arith.constant 0 : index
    %45 = vector.load %arg15[%c0_39, %c0_40] : memref<89x64xf32, #tpu.memory_space<vmem>>, vector<89x64xf32>
    %46 = arith.addf %45, %44 : vector<89x64xf32>
    %c0_41 = arith.constant 0 : index
    %c0_42 = arith.constant 0 : index
    %47 = vector.load %arg15[%c0_41, %c0_42] : memref<89x64xf32, #tpu.memory_space<vmem>>, vector<89x64xf32>
    tpu.vector_store %arg15[%c0_41, %c0_42], %46 {strides = array<i32>} : memref<89x64xf32, #tpu.memory_space<vmem>>, vector<89x64xf32>,
    %c10 = arith.constant 10 : index
    %c0_43 = arith.constant 0 : index
    %48 = vector.load %arg14[%c10, %c0_43] : memref<100x128xbf16, #tpu.memory_space<vmem>>, vector<89x128xbf16>
    %c256 = arith.constant 256 : index
    %c0_44 = arith.constant 0 : index
    %49 = vector.load %arg4[%c256, %c0_44] : memref<512x64xbf16, #tpu.memory_space<vmem>>, vector<128x64xbf16>
    %cst_45 = arith.constant dense<0.000000e+00> : vector<89x64xf32>
    %50 = tpu.matmul %48, %49, %cst_45 {dimension_numbers = #tpu.dot_dimension_numbers<[1], [0], [0], [1], [0, 0, 1, 1], [], []>} : vector<89x128xbf16>, vector<128x64xbf16>, vector<89x64xf32> -> vector<89x64xf32>
    %c0_46 = arith.constant 0 : index
    %c0_47 = arith.constant 0 : index
    %51 = vector.load %arg15[%c0_46, %c0_47] : memref<89x64xf32, #tpu.memory_space<vmem>>, vector<89x64xf32>
    %52 = arith.addf %51, %50 : vector<89x64xf32>
    %c0_48 = arith.constant 0 : index
    %c0_49 = arith.constant 0 : index
    %53 = vector.load %arg15[%c0_48, %c0_49] : memref<89x64xf32, #tpu.memory_space<vmem>>, vector<89x64xf32>
    tpu.vector_store %arg15[%c0_48, %c0_49], %52 {strides = array<i32>} : memref<89x64xf32, #tpu.memory_space<vmem>>, vector<89x64xf32>,
    %c11 = arith.constant 11 : index
    %c0_50 = arith.constant 0 : index
    %54 = vector.load %arg14[%c11, %c0_50] : memref<100x128xbf16, #tpu.memory_space<vmem>>, vector<89x128xbf16>
    %c384 = arith.constant 384 : index
    %c0_51 = arith.constant 0 : index
    %55 = vector.load %arg4[%c384, %c0_51] : memref<512x64xbf16, #tpu.memory_space<vmem>>, vector<128x64xbf16>
    %cst_52 = arith.constant dense<0.000000e+00> : vector<89x64xf32>
    %56 = tpu.matmul %54, %55, %cst_52 {dimension_numbers = #tpu.dot_dimension_numbers<[1], [0], [0], [1], [0, 0, 1, 1], [], []>} : vector<89x128xbf16>, vector<128x64xbf16>, vector<89x64xf32> -> vector<89x64xf32>
    %c0_53 = arith.constant 0 : index
    %c0_54 = arith.constant 0 : index
    %57 = vector.load %arg15[%c0_53, %c0_54] : memref<89x64xf32, #tpu.memory_space<vmem>>, vector<89x64xf32>
    %58 = arith.addf %57, %56 : vector<89x64xf32>
    %c0_55 = arith.constant 0 : index
    %c0_56 = arith.constant 0 : index
    %59 = vector.load %arg5[%c0_55, %c0_56] : memref<1x64xf32, #tpu.memory_space<vmem>>, vector<1x64xf32>
    %60 = vector.broadcast %59 : vector<1x64xf32> to vector<89x64xf32>
    %61 = arith.addf %58, %60 : vector<89x64xf32>
    %cst_57 = arith.constant 0.000000e+00 : f32
    %62 = vector.broadcast %cst_57 : f32 to vector<89x64xf32>
    %63 = arith.maximumf %61, %62 : vector<89x64xf32>
    %64 = arith.truncf %63 : vector<89x64xf32> to vector<89x64xbf16>
    %c0_58 = arith.constant 0 : index
    %c0_59 = arith.constant 0 : index
    %65 = vector.load %arg16[%c0_58, %c0_59] : memref<89x64xbf16, #tpu.memory_space<vmem>>, vector<89x64xbf16>
    tpu.vector_store %arg16[%c0_58, %c0_59], %64 {strides = array<i32>} : memref<89x64xbf16, #tpu.memory_space<vmem>>, vector<89x64xbf16>,
    %c0_60 = arith.constant 0 : index
    %c0_61 = arith.constant 0 : index
    %66 = vector.load %arg16[%c0_60, %c0_61] : memref<89x64xbf16, #tpu.memory_space<vmem>>, vector<67x64xbf16>
    %c0_62 = arith.constant 0 : index
    %c0_63 = arith.constant 0 : index
    %67 = vector.load %arg6[%c0_62, %c0_63] : memref<576x32xbf16, #tpu.memory_space<vmem>>, vector<64x32xbf16>
    %cst_64 = arith.constant dense<0.000000e+00> : vector<67x32xf32>
    %68 = tpu.matmul %66, %67, %cst_64 {dimension_numbers = #tpu.dot_dimension_numbers<[1], [0], [0], [1], [0, 0, 1, 1], [], []>} : vector<67x64xbf16>, vector<64x32xbf16>, vector<67x32xf32> -> vector<67x32xf32>
    %c0_65 = arith.constant 0 : index
    %c0_66 = arith.constant 0 : index
    %69 = vector.load %arg17[%c0_65, %c0_66] : memref<67x32xf32, #tpu.memory_space<vmem>>, vector<67x32xf32>
    tpu.vector_store %arg17[%c0_65, %c0_66], %68 {strides = array<i32>} : memref<67x32xf32, #tpu.memory_space<vmem>>, vector<67x32xf32>,
    %c1_67 = arith.constant 1 : index
    %c0_68 = arith.constant 0 : index
    %70 = vector.load %arg16[%c1_67, %c0_68] : memref<89x64xbf16, #tpu.memory_space<vmem>>, vector<67x64xbf16>
    %c64_69 = arith.constant 64 : index
    %c0_70 = arith.constant 0 : index
    %71 = vector.load %arg6[%c64_69, %c0_70] : memref<576x32xbf16, #tpu.memory_space<vmem>>, vector<64x32xbf16>
    %cst_71 = arith.constant dense<0.000000e+00> : vector<67x32xf32>
    %72 = tpu.matmul %70, %71, %cst_71 {dimension_numbers = #tpu.dot_dimension_numbers<[1], [0], [0], [1], [0, 0, 1, 1], [], []>} : vector<67x64xbf16>, vector<64x32xbf16>, vector<67x32xf32> -> vector<67x32xf32>
    %c0_72 = arith.constant 0 : index
    %c0_73 = arith.constant 0 : index
    %73 = vector.load %arg17[%c0_72, %c0_73] : memref<67x32xf32, #tpu.memory_space<vmem>>, vector<67x32xf32>
    %74 = arith.addf %73, %72 : vector<67x32xf32>
    %c0_74 = arith.constant 0 : index
    %c0_75 = arith.constant 0 : index
    %75 = vector.load %arg17[%c0_74, %c0_75] : memref<67x32xf32, #tpu.memory_space<vmem>>, vector<67x32xf32>
    tpu.vector_store %arg17[%c0_74, %c0_75], %74 {strides = array<i32>} : memref<67x32xf32, #tpu.memory_space<vmem>>, vector<67x32xf32>,
    %c2_76 = arith.constant 2 : index
    %c0_77 = arith.constant 0 : index
    %76 = vector.load %arg16[%c2_76, %c0_77] : memref<89x64xbf16, #tpu.memory_space<vmem>>, vector<67x64xbf16>
    %c128_78 = arith.constant 128 : index
    %c0_79 = arith.constant 0 : index
    %77 = vector.load %arg6[%c128_78, %c0_79] : memref<576x32xbf16, #tpu.memory_space<vmem>>, vector<64x32xbf16>
    %cst_80 = arith.constant dense<0.000000e+00> : vector<67x32xf32>
    %78 = tpu.matmul %76, %77, %cst_80 {dimension_numbers = #tpu.dot_dimension_numbers<[1], [0], [0], [1], [0, 0, 1, 1], [], []>} : vector<67x64xbf16>, vector<64x32xbf16>, vector<67x32xf32> -> vector<67x32xf32>
    %c0_81 = arith.constant 0 : index
    %c0_82 = arith.constant 0 : index
    %79 = vector.load %arg17[%c0_81, %c0_82] : memref<67x32xf32, #tpu.memory_space<vmem>>, vector<67x32xf32>
    %80 = arith.addf %79, %78 : vector<67x32xf32>
    %c0_83 = arith.constant 0 : index
    %c0_84 = arith.constant 0 : index
    %81 = vector.load %arg17[%c0_83, %c0_84] : memref<67x32xf32, #tpu.memory_space<vmem>>, vector<67x32xf32>
    tpu.vector_store %arg17[%c0_83, %c0_84], %80 {strides = array<i32>} : memref<67x32xf32, #tpu.memory_space<vmem>>, vector<67x32xf32>,
    %c10_85 = arith.constant 10 : index
    %c0_86 = arith.constant 0 : index
    %82 = vector.load %arg16[%c10_85, %c0_86] : memref<89x64xbf16, #tpu.memory_space<vmem>>, vector<67x64xbf16>
    %c192 = arith.constant 192 : index
    %c0_87 = arith.constant 0 : index
    %83 = vector.load %arg6[%c192, %c0_87] : memref<576x32xbf16, #tpu.memory_space<vmem>>, vector<64x32xbf16>
    %cst_88 = arith.constant dense<0.000000e+00> : vector<67x32xf32>
    %84 = tpu.matmul %82, %83, %cst_88 {dimension_numbers = #tpu.dot_dimension_numbers<[1], [0], [0], [1], [0, 0, 1, 1], [], []>} : vector<67x64xbf16>, vector<64x32xbf16>, vector<67x32xf32> -> vector<67x32xf32>
    %c0_89 = arith.constant 0 : index
    %c0_90 = arith.constant 0 : index
    %85 = vector.load %arg17[%c0_89, %c0_90] : memref<67x32xf32, #tpu.memory_space<vmem>>, vector<67x32xf32>
    %86 = arith.addf %85, %84 : vector<67x32xf32>
    %c0_91 = arith.constant 0 : index
    %c0_92 = arith.constant 0 : index
    %87 = vector.load %arg17[%c0_91, %c0_92] : memref<67x32xf32, #tpu.memory_space<vmem>>, vector<67x32xf32>
    tpu.vector_store %arg17[%c0_91, %c0_92], %86 {strides = array<i32>} : memref<67x32xf32, #tpu.memory_space<vmem>>, vector<67x32xf32>,
    %c11_93 = arith.constant 11 : index
    %c0_94 = arith.constant 0 : index
    %88 = vector.load %arg16[%c11_93, %c0_94] : memref<89x64xbf16, #tpu.memory_space<vmem>>, vector<67x64xbf16>
    %c256_95 = arith.constant 256 : index
    %c0_96 = arith.constant 0 : index
    %89 = vector.load %arg6[%c256_95, %c0_96] : memref<576x32xbf16, #tpu.memory_space<vmem>>, vector<64x32xbf16>
    %cst_97 = arith.constant dense<0.000000e+00> : vector<67x32xf32>
    %90 = tpu.matmul %88, %89, %cst_97 {dimension_numbers = #tpu.dot_dimension_numbers<[1], [0], [0], [1], [0, 0, 1, 1], [], []>} : vector<67x64xbf16>, vector<64x32xbf16>, vector<67x32xf32> -> vector<67x32xf32>
    %c0_98 = arith.constant 0 : index
    %c0_99 = arith.constant 0 : index
    %91 = vector.load %arg17[%c0_98, %c0_99] : memref<67x32xf32, #tpu.memory_space<vmem>>, vector<67x32xf32>
    %92 = arith.addf %91, %90 : vector<67x32xf32>
    %c0_100 = arith.constant 0 : index
    %c0_101 = arith.constant 0 : index
    %93 = vector.load %arg17[%c0_100, %c0_101] : memref<67x32xf32, #tpu.memory_space<vmem>>, vector<67x32xf32>
    tpu.vector_store %arg17[%c0_100, %c0_101], %92 {strides = array<i32>} : memref<67x32xf32, #tpu.memory_space<vmem>>, vector<67x32xf32>,
    %c12 = arith.constant 12 : index
    %c0_102 = arith.constant 0 : index
    %94 = vector.load %arg16[%c12, %c0_102] : memref<89x64xbf16, #tpu.memory_space<vmem>>, vector<67x64xbf16>
    %c320 = arith.constant 320 : index
    %c0_103 = arith.constant 0 : index
    %95 = vector.load %arg6[%c320, %c0_103] : memref<576x32xbf16, #tpu.memory_space<vmem>>, vector<64x32xbf16>
    %cst_104 = arith.constant dense<0.000000e+00> : vector<67x32xf32>
    %96 = tpu.matmul %94, %95, %cst_104 {dimension_numbers = #tpu.dot_dimension_numbers<[1], [0], [0], [1], [0, 0, 1, 1], [], []>} : vector<67x64xbf16>, vector<64x32xbf16>, vector<67x32xf32> -> vector<67x32xf32>
    %c0_105 = arith.constant 0 : index
    %c0_106 = arith.constant 0 : index
    %97 = vector.load %arg17[%c0_105, %c0_106] : memref<67x32xf32, #tpu.memory_space<vmem>>, vector<67x32xf32>
    %98 = arith.addf %97, %96 : vector<67x32xf32>
    %c0_107 = arith.constant 0 : index
    %c0_108 = arith.constant 0 : index
    %99 = vector.load %arg17[%c0_107, %c0_108] : memref<67x32xf32, #tpu.memory_space<vmem>>, vector<67x32xf32>
    tpu.vector_store %arg17[%c0_107, %c0_108], %98 {strides = array<i32>} : memref<67x32xf32, #tpu.memory_space<vmem>>, vector<67x32xf32>,
    %c20 = arith.constant 20 : index
    %c0_109 = arith.constant 0 : index
    %100 = vector.load %arg16[%c20, %c0_109] : memref<89x64xbf16, #tpu.memory_space<vmem>>, vector<67x64xbf16>
    %c384_110 = arith.constant 384 : index
    %c0_111 = arith.constant 0 : index
    %101 = vector.load %arg6[%c384_110, %c0_111] : memref<576x32xbf16, #tpu.memory_space<vmem>>, vector<64x32xbf16>
    %cst_112 = arith.constant dense<0.000000e+00> : vector<67x32xf32>
    %102 = tpu.matmul %100, %101, %cst_112 {dimension_numbers = #tpu.dot_dimension_numbers<[1], [0], [0], [1], [0, 0, 1, 1], [], []>} : vector<67x64xbf16>, vector<64x32xbf16>, vector<67x32xf32> -> vector<67x32xf32>
    %c0_113 = arith.constant 0 : index
    %c0_114 = arith.constant 0 : index
    %103 = vector.load %arg17[%c0_113, %c0_114] : memref<67x32xf32, #tpu.memory_space<vmem>>, vector<67x32xf32>
    %104 = arith.addf %103, %102 : vector<67x32xf32>
    %c0_115 = arith.constant 0 : index
    %c0_116 = arith.constant 0 : index
    %105 = vector.load %arg17[%c0_115, %c0_116] : memref<67x32xf32, #tpu.memory_space<vmem>>, vector<67x32xf32>
    tpu.vector_store %arg17[%c0_115, %c0_116], %104 {strides = array<i32>} : memref<67x32xf32, #tpu.memory_space<vmem>>, vector<67x32xf32>,
    %c21 = arith.constant 21 : index
    %c0_117 = arith.constant 0 : index
    %106 = vector.load %arg16[%c21, %c0_117] : memref<89x64xbf16, #tpu.memory_space<vmem>>, vector<67x64xbf16>
    %c448 = arith.constant 448 : index
    %c0_118 = arith.constant 0 : index
    %107 = vector.load %arg6[%c448, %c0_118] : memref<576x32xbf16, #tpu.memory_space<vmem>>, vector<64x32xbf16>
    %cst_119 = arith.constant dense<0.000000e+00> : vector<67x32xf32>
    %108 = tpu.matmul %106, %107, %cst_119 {dimension_numbers = #tpu.dot_dimension_numbers<[1], [0], [0], [1], [0, 0, 1, 1], [], []>} : vector<67x64xbf16>, vector<64x32xbf16>, vector<67x32xf32> -> vector<67x32xf32>
    %c0_120 = arith.constant 0 : index
    %c0_121 = arith.constant 0 : index
    %109 = vector.load %arg17[%c0_120, %c0_121] : memref<67x32xf32, #tpu.memory_space<vmem>>, vector<67x32xf32>
    %110 = arith.addf %109, %108 : vector<67x32xf32>
    %c0_122 = arith.constant 0 : index
    %c0_123 = arith.constant 0 : index
    %111 = vector.load %arg17[%c0_122, %c0_123] : memref<67x32xf32, #tpu.memory_space<vmem>>, vector<67x32xf32>
    tpu.vector_store %arg17[%c0_122, %c0_123], %110 {strides = array<i32>} : memref<67x32xf32, #tpu.memory_space<vmem>>, vector<67x32xf32>,
    %c22 = arith.constant 22 : index
    %c0_124 = arith.constant 0 : index
    %112 = vector.load %arg16[%c22, %c0_124] : memref<89x64xbf16, #tpu.memory_space<vmem>>, vector<67x64xbf16>
    %c512 = arith.constant 512 : index
    %c0_125 = arith.constant 0 : index
    %113 = vector.load %arg6[%c512, %c0_125] : memref<576x32xbf16, #tpu.memory_space<vmem>>, vector<64x32xbf16>
    %cst_126 = arith.constant dense<0.000000e+00> : vector<67x32xf32>
    %114 = tpu.matmul %112, %113, %cst_126 {dimension_numbers = #tpu.dot_dimension_numbers<[1], [0], [0], [1], [0, 0, 1, 1], [], []>} : vector<67x64xbf16>, vector<64x32xbf16>, vector<67x32xf32> -> vector<67x32xf32>
    %c0_127 = arith.constant 0 : index
    %c0_128 = arith.constant 0 : index
    %115 = vector.load %arg17[%c0_127, %c0_128] : memref<67x32xf32, #tpu.memory_space<vmem>>, vector<67x32xf32>
    %116 = arith.addf %115, %114 : vector<67x32xf32>
    %c0_129 = arith.constant 0 : index
    %c0_130 = arith.constant 0 : index
    %117 = vector.load %arg7[%c0_129, %c0_130] : memref<1x32xf32, #tpu.memory_space<vmem>>, vector<1x32xf32>
    %118 = vector.broadcast %117 : vector<1x32xf32> to vector<67x32xf32>
    %119 = arith.addf %116, %118 : vector<67x32xf32>
    %cst_131 = arith.constant 0.000000e+00 : f32
    %120 = vector.broadcast %cst_131 : f32 to vector<67x32xf32>
    %121 = arith.maximumf %119, %120 : vector<67x32xf32>
    %122 = arith.truncf %121 : vector<67x32xf32> to vector<67x32xbf16>
    %c0_132 = arith.constant 0 : index
    %c0_133 = arith.constant 0 : index
    %123 = vector.load %arg18[%c0_132, %c0_133] : memref<67x32xbf16, #tpu.memory_space<vmem>>, vector<67x32xbf16>
    tpu.vector_store %arg18[%c0_132, %c0_133], %122 {strides = array<i32>} : memref<67x32xbf16, #tpu.memory_space<vmem>>, vector<67x32xbf16>,
    %c0_134 = arith.constant 0 : index
    %c0_135 = arith.constant 0 : index
    %124 = vector.load %arg18[%c0_134, %c0_135] : memref<67x32xbf16, #tpu.memory_space<vmem>>, vector<1x32xbf16>
    %c0_136 = arith.constant 0 : index
    %c0_137 = arith.constant 0 : index
    %125 = vector.load %arg8[%c0_136, %c0_137] : memref<1568x512xbf16, #tpu.memory_space<vmem>>, vector<32x512xbf16>
    %cst_138 = arith.constant dense<0.000000e+00> : vector<1x512xf32>
    %126 = tpu.matmul %124, %125, %cst_138 {dimension_numbers = #tpu.dot_dimension_numbers<[1], [0], [0], [1], [0, 0, 1, 1], [], []>} : vector<1x32xbf16>, vector<32x512xbf16>, vector<1x512xf32> -> vector<1x512xf32>
    %c1_139 = arith.constant 1 : index
    %c0_140 = arith.constant 0 : index
    %127 = vector.load %arg18[%c1_139, %c0_140] : memref<67x32xbf16, #tpu.memory_space<vmem>>, vector<1x32xbf16>
    %c32_141 = arith.constant 32 : index
    %c0_142 = arith.constant 0 : index
    %128 = vector.load %arg8[%c32_141, %c0_142] : memref<1568x512xbf16, #tpu.memory_space<vmem>>, vector<32x512xbf16>
    %cst_143 = arith.constant dense<0.000000e+00> : vector<1x512xf32>
    %129 = tpu.matmul %127, %128, %cst_143 {dimension_numbers = #tpu.dot_dimension_numbers<[1], [0], [0], [1], [0, 0, 1, 1], [], []>} : vector<1x32xbf16>, vector<32x512xbf16>, vector<1x512xf32> -> vector<1x512xf32>
    %130 = arith.addf %126, %129 : vector<1x512xf32>
    %c2_144 = arith.constant 2 : index
    %c0_145 = arith.constant 0 : index
    %131 = vector.load %arg18[%c2_144, %c0_145] : memref<67x32xbf16, #tpu.memory_space<vmem>>, vector<1x32xbf16>
    %c64_146 = arith.constant 64 : index
    %c0_147 = arith.constant 0 : index
    %132 = vector.load %arg8[%c64_146, %c0_147] : memref<1568x512xbf16, #tpu.memory_space<vmem>>, vector<32x512xbf16>
    %cst_148 = arith.constant dense<0.000000e+00> : vector<1x512xf32>
    %133 = tpu.matmul %131, %132, %cst_148 {dimension_numbers = #tpu.dot_dimension_numbers<[1], [0], [0], [1], [0, 0, 1, 1], [], []>} : vector<1x32xbf16>, vector<32x512xbf16>, vector<1x512xf32> -> vector<1x512xf32>
    %134 = arith.addf %130, %133 : vector<1x512xf32>
    %c3_149 = arith.constant 3 : index
    %c0_150 = arith.constant 0 : index
    %135 = vector.load %arg18[%c3_149, %c0_150] : memref<67x32xbf16, #tpu.memory_space<vmem>>, vector<1x32xbf16>
    %c96_151 = arith.constant 96 : index
    %c0_152 = arith.constant 0 : index
    %136 = vector.load %arg8[%c96_151, %c0_152] : memref<1568x512xbf16, #tpu.memory_space<vmem>>, vector<32x512xbf16>
    %cst_153 = arith.constant dense<0.000000e+00> : vector<1x512xf32>
    %137 = tpu.matmul %135, %136, %cst_153 {dimension_numbers = #tpu.dot_dimension_numbers<[1], [0], [0], [1], [0, 0, 1, 1], [], []>} : vector<1x32xbf16>, vector<32x512xbf16>, vector<1x512xf32> -> vector<1x512xf32>
    %138 = arith.addf %134, %137 : vector<1x512xf32>
    %c4 = arith.constant 4 : index
    %c0_154 = arith.constant 0 : index
    %139 = vector.load %arg18[%c4, %c0_154] : memref<67x32xbf16, #tpu.memory_space<vmem>>, vector<1x32xbf16>
    %c128_155 = arith.constant 128 : index
    %c0_156 = arith.constant 0 : index
    %140 = vector.load %arg8[%c128_155, %c0_156] : memref<1568x512xbf16, #tpu.memory_space<vmem>>, vector<32x512xbf16>
    %cst_157 = arith.constant dense<0.000000e+00> : vector<1x512xf32>
    %141 = tpu.matmul %139, %140, %cst_157 {dimension_numbers = #tpu.dot_dimension_numbers<[1], [0], [0], [1], [0, 0, 1, 1], [], []>} : vector<1x32xbf16>, vector<32x512xbf16>, vector<1x512xf32> -> vector<1x512xf32>
    %142 = arith.addf %138, %141 : vector<1x512xf32>
    %c5 = arith.constant 5 : index
    %c0_158 = arith.constant 0 : index
    %143 = vector.load %arg18[%c5, %c0_158] : memref<67x32xbf16, #tpu.memory_space<vmem>>, vector<1x32xbf16>
    %c160 = arith.constant 160 : index
    %c0_159 = arith.constant 0 : index
    %144 = vector.load %arg8[%c160, %c0_159] : memref<1568x512xbf16, #tpu.memory_space<vmem>>, vector<32x512xbf16>
    %cst_160 = arith.constant dense<0.000000e+00> : vector<1x512xf32>
    %145 = tpu.matmul %143, %144, %cst_160 {dimension_numbers = #tpu.dot_dimension_numbers<[1], [0], [0], [1], [0, 0, 1, 1], [], []>} : vector<1x32xbf16>, vector<32x512xbf16>, vector<1x512xf32> -> vector<1x512xf32>
    %146 = arith.addf %142, %145 : vector<1x512xf32>
    %c6 = arith.constant 6 : index
    %c0_161 = arith.constant 0 : index
    %147 = vector.load %arg18[%c6, %c0_161] : memref<67x32xbf16, #tpu.memory_space<vmem>>, vector<1x32xbf16>
    %c192_162 = arith.constant 192 : index
    %c0_163 = arith.constant 0 : index
    %148 = vector.load %arg8[%c192_162, %c0_163] : memref<1568x512xbf16, #tpu.memory_space<vmem>>, vector<32x512xbf16>
    %cst_164 = arith.constant dense<0.000000e+00> : vector<1x512xf32>
    %149 = tpu.matmul %147, %148, %cst_164 {dimension_numbers = #tpu.dot_dimension_numbers<[1], [0], [0], [1], [0, 0, 1, 1], [], []>} : vector<1x32xbf16>, vector<32x512xbf16>, vector<1x512xf32> -> vector<1x512xf32>
    %150 = arith.addf %146, %149 : vector<1x512xf32>
    %c10_165 = arith.constant 10 : index
    %c0_166 = arith.constant 0 : index
    %151 = vector.load %arg18[%c10_165, %c0_166] : memref<67x32xbf16, #tpu.memory_space<vmem>>, vector<1x32xbf16>
    %c224 = arith.constant 224 : index
    %c0_167 = arith.constant 0 : index
    %152 = vector.load %arg8[%c224, %c0_167] : memref<1568x512xbf16, #tpu.memory_space<vmem>>, vector<32x512xbf16>
    %cst_168 = arith.constant dense<0.000000e+00> : vector<1x512xf32>
    %153 = tpu.matmul %151, %152, %cst_168 {dimension_numbers = #tpu.dot_dimension_numbers<[1], [0], [0], [1], [0, 0, 1, 1], [], []>} : vector<1x32xbf16>, vector<32x512xbf16>, vector<1x512xf32> -> vector<1x512xf32>
    %154 = arith.addf %150, %153 : vector<1x512xf32>
    %c11_169 = arith.constant 11 : index
    %c0_170 = arith.constant 0 : index
    %155 = vector.load %arg18[%c11_169, %c0_170] : memref<67x32xbf16, #tpu.memory_space<vmem>>, vector<1x32xbf16>
    %c256_171 = arith.constant 256 : index
    %c0_172 = arith.constant 0 : index
    %156 = vector.load %arg8[%c256_171, %c0_172] : memref<1568x512xbf16, #tpu.memory_space<vmem>>, vector<32x512xbf16>
    %cst_173 = arith.constant dense<0.000000e+00> : vector<1x512xf32>
    %157 = tpu.matmul %155, %156, %cst_173 {dimension_numbers = #tpu.dot_dimension_numbers<[1], [0], [0], [1], [0, 0, 1, 1], [], []>} : vector<1x32xbf16>, vector<32x512xbf16>, vector<1x512xf32> -> vector<1x512xf32>
    %158 = arith.addf %154, %157 : vector<1x512xf32>
    %c12_174 = arith.constant 12 : index
    %c0_175 = arith.constant 0 : index
    %159 = vector.load %arg18[%c12_174, %c0_175] : memref<67x32xbf16, #tpu.memory_space<vmem>>, vector<1x32xbf16>
    %c288 = arith.constant 288 : index
    %c0_176 = arith.constant 0 : index
    %160 = vector.load %arg8[%c288, %c0_176] : memref<1568x512xbf16, #tpu.memory_space<vmem>>, vector<32x512xbf16>
    %cst_177 = arith.constant dense<0.000000e+00> : vector<1x512xf32>
    %161 = tpu.matmul %159, %160, %cst_177 {dimension_numbers = #tpu.dot_dimension_numbers<[1], [0], [0], [1], [0, 0, 1, 1], [], []>} : vector<1x32xbf16>, vector<32x512xbf16>, vector<1x512xf32> -> vector<1x512xf32>
    %162 = arith.addf %158, %161 : vector<1x512xf32>
    %c13 = arith.constant 13 : index
    %c0_178 = arith.constant 0 : index
    %163 = vector.load %arg18[%c13, %c0_178] : memref<67x32xbf16, #tpu.memory_space<vmem>>, vector<1x32xbf16>
    %c320_179 = arith.constant 320 : index
    %c0_180 = arith.constant 0 : index
    %164 = vector.load %arg8[%c320_179, %c0_180] : memref<1568x512xbf16, #tpu.memory_space<vmem>>, vector<32x512xbf16>
    %cst_181 = arith.constant dense<0.000000e+00> : vector<1x512xf32>
    %165 = tpu.matmul %163, %164, %cst_181 {dimension_numbers = #tpu.dot_dimension_numbers<[1], [0], [0], [1], [0, 0, 1, 1], [], []>} : vector<1x32xbf16>, vector<32x512xbf16>, vector<1x512xf32> -> vector<1x512xf32>
    %166 = arith.addf %162, %165 : vector<1x512xf32>
    %c14 = arith.constant 14 : index
    %c0_182 = arith.constant 0 : index
    %167 = vector.load %arg18[%c14, %c0_182] : memref<67x32xbf16, #tpu.memory_space<vmem>>, vector<1x32xbf16>
    %c352 = arith.constant 352 : index
    %c0_183 = arith.constant 0 : index
    %168 = vector.load %arg8[%c352, %c0_183] : memref<1568x512xbf16, #tpu.memory_space<vmem>>, vector<32x512xbf16>
    %cst_184 = arith.constant dense<0.000000e+00> : vector<1x512xf32>
    %169 = tpu.matmul %167, %168, %cst_184 {dimension_numbers = #tpu.dot_dimension_numbers<[1], [0], [0], [1], [0, 0, 1, 1], [], []>} : vector<1x32xbf16>, vector<32x512xbf16>, vector<1x512xf32> -> vector<1x512xf32>
    %170 = arith.addf %166, %169 : vector<1x512xf32>
    %c15 = arith.constant 15 : index
    %c0_185 = arith.constant 0 : index
    %171 = vector.load %arg18[%c15, %c0_185] : memref<67x32xbf16, #tpu.memory_space<vmem>>, vector<1x32xbf16>
    %c384_186 = arith.constant 384 : index
    %c0_187 = arith.constant 0 : index
    %172 = vector.load %arg8[%c384_186, %c0_187] : memref<1568x512xbf16, #tpu.memory_space<vmem>>, vector<32x512xbf16>
    %cst_188 = arith.constant dense<0.000000e+00> : vector<1x512xf32>
    %173 = tpu.matmul %171, %172, %cst_188 {dimension_numbers = #tpu.dot_dimension_numbers<[1], [0], [0], [1], [0, 0, 1, 1], [], []>} : vector<1x32xbf16>, vector<32x512xbf16>, vector<1x512xf32> -> vector<1x512xf32>
    %174 = arith.addf %170, %173 : vector<1x512xf32>
    %c16 = arith.constant 16 : index
    %c0_189 = arith.constant 0 : index
    %175 = vector.load %arg18[%c16, %c0_189] : memref<67x32xbf16, #tpu.memory_space<vmem>>, vector<1x32xbf16>
    %c416 = arith.constant 416 : index
    %c0_190 = arith.constant 0 : index
    %176 = vector.load %arg8[%c416, %c0_190] : memref<1568x512xbf16, #tpu.memory_space<vmem>>, vector<32x512xbf16>
    %cst_191 = arith.constant dense<0.000000e+00> : vector<1x512xf32>
    %177 = tpu.matmul %175, %176, %cst_191 {dimension_numbers = #tpu.dot_dimension_numbers<[1], [0], [0], [1], [0, 0, 1, 1], [], []>} : vector<1x32xbf16>, vector<32x512xbf16>, vector<1x512xf32> -> vector<1x512xf32>
    %178 = arith.addf %174, %177 : vector<1x512xf32>
    %c20_192 = arith.constant 20 : index
    %c0_193 = arith.constant 0 : index
    %179 = vector.load %arg18[%c20_192, %c0_193] : memref<67x32xbf16, #tpu.memory_space<vmem>>, vector<1x32xbf16>
    %c448_194 = arith.constant 448 : index
    %c0_195 = arith.constant 0 : index
    %180 = vector.load %arg8[%c448_194, %c0_195] : memref<1568x512xbf16, #tpu.memory_space<vmem>>, vector<32x512xbf16>
    %cst_196 = arith.constant dense<0.000000e+00> : vector<1x512xf32>
    %181 = tpu.matmul %179, %180, %cst_196 {dimension_numbers = #tpu.dot_dimension_numbers<[1], [0], [0], [1], [0, 0, 1, 1], [], []>} : vector<1x32xbf16>, vector<32x512xbf16>, vector<1x512xf32> -> vector<1x512xf32>
    %182 = arith.addf %178, %181 : vector<1x512xf32>
    %c21_197 = arith.constant 21 : index
    %c0_198 = arith.constant 0 : index
    %183 = vector.load %arg18[%c21_197, %c0_198] : memref<67x32xbf16, #tpu.memory_space<vmem>>, vector<1x32xbf16>
    %c480 = arith.constant 480 : index
    %c0_199 = arith.constant 0 : index
    %184 = vector.load %arg8[%c480, %c0_199] : memref<1568x512xbf16, #tpu.memory_space<vmem>>, vector<32x512xbf16>
    %cst_200 = arith.constant dense<0.000000e+00> : vector<1x512xf32>
    %185 = tpu.matmul %183, %184, %cst_200 {dimension_numbers = #tpu.dot_dimension_numbers<[1], [0], [0], [1], [0, 0, 1, 1], [], []>} : vector<1x32xbf16>, vector<32x512xbf16>, vector<1x512xf32> -> vector<1x512xf32>
    %186 = arith.addf %182, %185 : vector<1x512xf32>
    %c22_201 = arith.constant 22 : index
    %c0_202 = arith.constant 0 : index
    %187 = vector.load %arg18[%c22_201, %c0_202] : memref<67x32xbf16, #tpu.memory_space<vmem>>, vector<1x32xbf16>
    %c512_203 = arith.constant 512 : index
    %c0_204 = arith.constant 0 : index
    %188 = vector.load %arg8[%c512_203, %c0_204] : memref<1568x512xbf16, #tpu.memory_space<vmem>>, vector<32x512xbf16>
    %cst_205 = arith.constant dense<0.000000e+00> : vector<1x512xf32>
    %189 = tpu.matmul %187, %188, %cst_205 {dimension_numbers = #tpu.dot_dimension_numbers<[1], [0], [0], [1], [0, 0, 1, 1], [], []>} : vector<1x32xbf16>, vector<32x512xbf16>, vector<1x512xf32> -> vector<1x512xf32>
    %190 = arith.addf %186, %189 : vector<1x512xf32>
    %c23 = arith.constant 23 : index
    %c0_206 = arith.constant 0 : index
    %191 = vector.load %arg18[%c23, %c0_206] : memref<67x32xbf16, #tpu.memory_space<vmem>>, vector<1x32xbf16>
    %c544 = arith.constant 544 : index
    %c0_207 = arith.constant 0 : index
    %192 = vector.load %arg8[%c544, %c0_207] : memref<1568x512xbf16, #tpu.memory_space<vmem>>, vector<32x512xbf16>
    %cst_208 = arith.constant dense<0.000000e+00> : vector<1x512xf32>
    %193 = tpu.matmul %191, %192, %cst_208 {dimension_numbers = #tpu.dot_dimension_numbers<[1], [0], [0], [1], [0, 0, 1, 1], [], []>} : vector<1x32xbf16>, vector<32x512xbf16>, vector<1x512xf32> -> vector<1x512xf32>
    %194 = arith.addf %190, %193 : vector<1x512xf32>
    %c24 = arith.constant 24 : index
    %c0_209 = arith.constant 0 : index
    %195 = vector.load %arg18[%c24, %c0_209] : memref<67x32xbf16, #tpu.memory_space<vmem>>, vector<1x32xbf16>
    %c576 = arith.constant 576 : index
    %c0_210 = arith.constant 0 : index
    %196 = vector.load %arg8[%c576, %c0_210] : memref<1568x512xbf16, #tpu.memory_space<vmem>>, vector<32x512xbf16>
    %cst_211 = arith.constant dense<0.000000e+00> : vector<1x512xf32>
    %197 = tpu.matmul %195, %196, %cst_211 {dimension_numbers = #tpu.dot_dimension_numbers<[1], [0], [0], [1], [0, 0, 1, 1], [], []>} : vector<1x32xbf16>, vector<32x512xbf16>, vector<1x512xf32> -> vector<1x512xf32>
    %198 = arith.addf %194, %197 : vector<1x512xf32>
    %c25 = arith.constant 25 : index
    %c0_212 = arith.constant 0 : index
    %199 = vector.load %arg18[%c25, %c0_212] : memref<67x32xbf16, #tpu.memory_space<vmem>>, vector<1x32xbf16>
    %c608 = arith.constant 608 : index
    %c0_213 = arith.constant 0 : index
    %200 = vector.load %arg8[%c608, %c0_213] : memref<1568x512xbf16, #tpu.memory_space<vmem>>, vector<32x512xbf16>
    %cst_214 = arith.constant dense<0.000000e+00> : vector<1x512xf32>
    %201 = tpu.matmul %199, %200, %cst_214 {dimension_numbers = #tpu.dot_dimension_numbers<[1], [0], [0], [1], [0, 0, 1, 1], [], []>} : vector<1x32xbf16>, vector<32x512xbf16>, vector<1x512xf32> -> vector<1x512xf32>
    %202 = arith.addf %198, %201 : vector<1x512xf32>
    %c26 = arith.constant 26 : index
    %c0_215 = arith.constant 0 : index
    %203 = vector.load %arg18[%c26, %c0_215] : memref<67x32xbf16, #tpu.memory_space<vmem>>, vector<1x32xbf16>
    %c640 = arith.constant 640 : index
    %c0_216 = arith.constant 0 : index
    %204 = vector.load %arg8[%c640, %c0_216] : memref<1568x512xbf16, #tpu.memory_space<vmem>>, vector<32x512xbf16>
    %cst_217 = arith.constant dense<0.000000e+00> : vector<1x512xf32>
    %205 = tpu.matmul %203, %204, %cst_217 {dimension_numbers = #tpu.dot_dimension_numbers<[1], [0], [0], [1], [0, 0, 1, 1], [], []>} : vector<1x32xbf16>, vector<32x512xbf16>, vector<1x512xf32> -> vector<1x512xf32>
    %206 = arith.addf %202, %205 : vector<1x512xf32>
    %c30 = arith.constant 30 : index
    %c0_218 = arith.constant 0 : index
    %207 = vector.load %arg18[%c30, %c0_218] : memref<67x32xbf16, #tpu.memory_space<vmem>>, vector<1x32xbf16>
    %c672 = arith.constant 672 : index
    %c0_219 = arith.constant 0 : index
    %208 = vector.load %arg8[%c672, %c0_219] : memref<1568x512xbf16, #tpu.memory_space<vmem>>, vector<32x512xbf16>
    %cst_220 = arith.constant dense<0.000000e+00> : vector<1x512xf32>
    %209 = tpu.matmul %207, %208, %cst_220 {dimension_numbers = #tpu.dot_dimension_numbers<[1], [0], [0], [1], [0, 0, 1, 1], [], []>} : vector<1x32xbf16>, vector<32x512xbf16>, vector<1x512xf32> -> vector<1x512xf32>
    %210 = arith.addf %206, %209 : vector<1x512xf32>
    %c31 = arith.constant 31 : index
    %c0_221 = arith.constant 0 : index
    %211 = vector.load %arg18[%c31, %c0_221] : memref<67x32xbf16, #tpu.memory_space<vmem>>, vector<1x32xbf16>
    %c704 = arith.constant 704 : index
    %c0_222 = arith.constant 0 : index
    %212 = vector.load %arg8[%c704, %c0_222] : memref<1568x512xbf16, #tpu.memory_space<vmem>>, vector<32x512xbf16>
    %cst_223 = arith.constant dense<0.000000e+00> : vector<1x512xf32>
    %213 = tpu.matmul %211, %212, %cst_223 {dimension_numbers = #tpu.dot_dimension_numbers<[1], [0], [0], [1], [0, 0, 1, 1], [], []>} : vector<1x32xbf16>, vector<32x512xbf16>, vector<1x512xf32> -> vector<1x512xf32>
    %214 = arith.addf %210, %213 : vector<1x512xf32>
    %c32_224 = arith.constant 32 : index
    %c0_225 = arith.constant 0 : index
    %215 = vector.load %arg18[%c32_224, %c0_225] : memref<67x32xbf16, #tpu.memory_space<vmem>>, vector<1x32xbf16>
    %c736 = arith.constant 736 : index
    %c0_226 = arith.constant 0 : index
    %216 = vector.load %arg8[%c736, %c0_226] : memref<1568x512xbf16, #tpu.memory_space<vmem>>, vector<32x512xbf16>
    %cst_227 = arith.constant dense<0.000000e+00> : vector<1x512xf32>
    %217 = tpu.matmul %215, %216, %cst_227 {dimension_numbers = #tpu.dot_dimension_numbers<[1], [0], [0], [1], [0, 0, 1, 1], [], []>} : vector<1x32xbf16>, vector<32x512xbf16>, vector<1x512xf32> -> vector<1x512xf32>
    %218 = arith.addf %214, %217 : vector<1x512xf32>
    %c33 = arith.constant 33 : index
    %c0_228 = arith.constant 0 : index
    %219 = vector.load %arg18[%c33, %c0_228] : memref<67x32xbf16, #tpu.memory_space<vmem>>, vector<1x32xbf16>
    %c768 = arith.constant 768 : index
    %c0_229 = arith.constant 0 : index
    %220 = vector.load %arg8[%c768, %c0_229] : memref<1568x512xbf16, #tpu.memory_space<vmem>>, vector<32x512xbf16>
    %cst_230 = arith.constant dense<0.000000e+00> : vector<1x512xf32>
    %221 = tpu.matmul %219, %220, %cst_230 {dimension_numbers = #tpu.dot_dimension_numbers<[1], [0], [0], [1], [0, 0, 1, 1], [], []>} : vector<1x32xbf16>, vector<32x512xbf16>, vector<1x512xf32> -> vector<1x512xf32>
    %222 = arith.addf %218, %221 : vector<1x512xf32>
    %c34 = arith.constant 34 : index
    %c0_231 = arith.constant 0 : index
    %223 = vector.load %arg18[%c34, %c0_231] : memref<67x32xbf16, #tpu.memory_space<vmem>>, vector<1x32xbf16>
    %c800 = arith.constant 800 : index
    %c0_232 = arith.constant 0 : index
    %224 = vector.load %arg8[%c800, %c0_232] : memref<1568x512xbf16, #tpu.memory_space<vmem>>, vector<32x512xbf16>
    %cst_233 = arith.constant dense<0.000000e+00> : vector<1x512xf32>
    %225 = tpu.matmul %223, %224, %cst_233 {dimension_numbers = #tpu.dot_dimension_numbers<[1], [0], [0], [1], [0, 0, 1, 1], [], []>} : vector<1x32xbf16>, vector<32x512xbf16>, vector<1x512xf32> -> vector<1x512xf32>
    %226 = arith.addf %222, %225 : vector<1x512xf32>
    %c35 = arith.constant 35 : index
    %c0_234 = arith.constant 0 : index
    %227 = vector.load %arg18[%c35, %c0_234] : memref<67x32xbf16, #tpu.memory_space<vmem>>, vector<1x32xbf16>
    %c832 = arith.constant 832 : index
    %c0_235 = arith.constant 0 : index
    %228 = vector.load %arg8[%c832, %c0_235] : memref<1568x512xbf16, #tpu.memory_space<vmem>>, vector<32x512xbf16>
    %cst_236 = arith.constant dense<0.000000e+00> : vector<1x512xf32>
    %229 = tpu.matmul %227, %228, %cst_236 {dimension_numbers = #tpu.dot_dimension_numbers<[1], [0], [0], [1], [0, 0, 1, 1], [], []>} : vector<1x32xbf16>, vector<32x512xbf16>, vector<1x512xf32> -> vector<1x512xf32>
    %230 = arith.addf %226, %229 : vector<1x512xf32>
    %c36 = arith.constant 36 : index
    %c0_237 = arith.constant 0 : index
    %231 = vector.load %arg18[%c36, %c0_237] : memref<67x32xbf16, #tpu.memory_space<vmem>>, vector<1x32xbf16>
    %c864 = arith.constant 864 : index
    %c0_238 = arith.constant 0 : index
    %232 = vector.load %arg8[%c864, %c0_238] : memref<1568x512xbf16, #tpu.memory_space<vmem>>, vector<32x512xbf16>
    %cst_239 = arith.constant dense<0.000000e+00> : vector<1x512xf32>
    %233 = tpu.matmul %231, %232, %cst_239 {dimension_numbers = #tpu.dot_dimension_numbers<[1], [0], [0], [1], [0, 0, 1, 1], [], []>} : vector<1x32xbf16>, vector<32x512xbf16>, vector<1x512xf32> -> vector<1x512xf32>
    %234 = arith.addf %230, %233 : vector<1x512xf32>
    %c40 = arith.constant 40 : index
    %c0_240 = arith.constant 0 : index
    %235 = vector.load %arg18[%c40, %c0_240] : memref<67x32xbf16, #tpu.memory_space<vmem>>, vector<1x32xbf16>
    %c896 = arith.constant 896 : index
    %c0_241 = arith.constant 0 : index
    %236 = vector.load %arg8[%c896, %c0_241] : memref<1568x512xbf16, #tpu.memory_space<vmem>>, vector<32x512xbf16>
    %cst_242 = arith.constant dense<0.000000e+00> : vector<1x512xf32>
    %237 = tpu.matmul %235, %236, %cst_242 {dimension_numbers = #tpu.dot_dimension_numbers<[1], [0], [0], [1], [0, 0, 1, 1], [], []>} : vector<1x32xbf16>, vector<32x512xbf16>, vector<1x512xf32> -> vector<1x512xf32>
    %238 = arith.addf %234, %237 : vector<1x512xf32>
    %c41 = arith.constant 41 : index
    %c0_243 = arith.constant 0 : index
    %239 = vector.load %arg18[%c41, %c0_243] : memref<67x32xbf16, #tpu.memory_space<vmem>>, vector<1x32xbf16>
    %c928 = arith.constant 928 : index
    %c0_244 = arith.constant 0 : index
    %240 = vector.load %arg8[%c928, %c0_244] : memref<1568x512xbf16, #tpu.memory_space<vmem>>, vector<32x512xbf16>
    %cst_245 = arith.constant dense<0.000000e+00> : vector<1x512xf32>
    %241 = tpu.matmul %239, %240, %cst_245 {dimension_numbers = #tpu.dot_dimension_numbers<[1], [0], [0], [1], [0, 0, 1, 1], [], []>} : vector<1x32xbf16>, vector<32x512xbf16>, vector<1x512xf32> -> vector<1x512xf32>
    %242 = arith.addf %238, %241 : vector<1x512xf32>
    %c42 = arith.constant 42 : index
    %c0_246 = arith.constant 0 : index
    %243 = vector.load %arg18[%c42, %c0_246] : memref<67x32xbf16, #tpu.memory_space<vmem>>, vector<1x32xbf16>
    %c960 = arith.constant 960 : index
    %c0_247 = arith.constant 0 : index
    %244 = vector.load %arg8[%c960, %c0_247] : memref<1568x512xbf16, #tpu.memory_space<vmem>>, vector<32x512xbf16>
    %cst_248 = arith.constant dense<0.000000e+00> : vector<1x512xf32>
    %245 = tpu.matmul %243, %244, %cst_248 {dimension_numbers = #tpu.dot_dimension_numbers<[1], [0], [0], [1], [0, 0, 1, 1], [], []>} : vector<1x32xbf16>, vector<32x512xbf16>, vector<1x512xf32> -> vector<1x512xf32>
    %246 = arith.addf %242, %245 : vector<1x512xf32>
    %c43 = arith.constant 43 : index
    %c0_249 = arith.constant 0 : index
    %247 = vector.load %arg18[%c43, %c0_249] : memref<67x32xbf16, #tpu.memory_space<vmem>>, vector<1x32xbf16>
    %c992 = arith.constant 992 : index
    %c0_250 = arith.constant 0 : index
    %248 = vector.load %arg8[%c992, %c0_250] : memref<1568x512xbf16, #tpu.memory_space<vmem>>, vector<32x512xbf16>
    %cst_251 = arith.constant dense<0.000000e+00> : vector<1x512xf32>
    %249 = tpu.matmul %247, %248, %cst_251 {dimension_numbers = #tpu.dot_dimension_numbers<[1], [0], [0], [1], [0, 0, 1, 1], [], []>} : vector<1x32xbf16>, vector<32x512xbf16>, vector<1x512xf32> -> vector<1x512xf32>
    %250 = arith.addf %246, %249 : vector<1x512xf32>
    %c44 = arith.constant 44 : index
    %c0_252 = arith.constant 0 : index
    %251 = vector.load %arg18[%c44, %c0_252] : memref<67x32xbf16, #tpu.memory_space<vmem>>, vector<1x32xbf16>
    %c1024 = arith.constant 1024 : index
    %c0_253 = arith.constant 0 : index
    %252 = vector.load %arg8[%c1024, %c0_253] : memref<1568x512xbf16, #tpu.memory_space<vmem>>, vector<32x512xbf16>
    %cst_254 = arith.constant dense<0.000000e+00> : vector<1x512xf32>
    %253 = tpu.matmul %251, %252, %cst_254 {dimension_numbers = #tpu.dot_dimension_numbers<[1], [0], [0], [1], [0, 0, 1, 1], [], []>} : vector<1x32xbf16>, vector<32x512xbf16>, vector<1x512xf32> -> vector<1x512xf32>
    %254 = arith.addf %250, %253 : vector<1x512xf32>
    %c45 = arith.constant 45 : index
    %c0_255 = arith.constant 0 : index
    %255 = vector.load %arg18[%c45, %c0_255] : memref<67x32xbf16, #tpu.memory_space<vmem>>, vector<1x32xbf16>
    %c1056 = arith.constant 1056 : index
    %c0_256 = arith.constant 0 : index
    %256 = vector.load %arg8[%c1056, %c0_256] : memref<1568x512xbf16, #tpu.memory_space<vmem>>, vector<32x512xbf16>
    %cst_257 = arith.constant dense<0.000000e+00> : vector<1x512xf32>
    %257 = tpu.matmul %255, %256, %cst_257 {dimension_numbers = #tpu.dot_dimension_numbers<[1], [0], [0], [1], [0, 0, 1, 1], [], []>} : vector<1x32xbf16>, vector<32x512xbf16>, vector<1x512xf32> -> vector<1x512xf32>
    %258 = arith.addf %254, %257 : vector<1x512xf32>
    %c46 = arith.constant 46 : index
    %c0_258 = arith.constant 0 : index
    %259 = vector.load %arg18[%c46, %c0_258] : memref<67x32xbf16, #tpu.memory_space<vmem>>, vector<1x32xbf16>
    %c1088 = arith.constant 1088 : index
    %c0_259 = arith.constant 0 : index
    %260 = vector.load %arg8[%c1088, %c0_259] : memref<1568x512xbf16, #tpu.memory_space<vmem>>, vector<32x512xbf16>
    %cst_260 = arith.constant dense<0.000000e+00> : vector<1x512xf32>
    %261 = tpu.matmul %259, %260, %cst_260 {dimension_numbers = #tpu.dot_dimension_numbers<[1], [0], [0], [1], [0, 0, 1, 1], [], []>} : vector<1x32xbf16>, vector<32x512xbf16>, vector<1x512xf32> -> vector<1x512xf32>
    %262 = arith.addf %258, %261 : vector<1x512xf32>
    %c50 = arith.constant 50 : index
    %c0_261 = arith.constant 0 : index
    %263 = vector.load %arg18[%c50, %c0_261] : memref<67x32xbf16, #tpu.memory_space<vmem>>, vector<1x32xbf16>
    %c1120 = arith.constant 1120 : index
    %c0_262 = arith.constant 0 : index
    %264 = vector.load %arg8[%c1120, %c0_262] : memref<1568x512xbf16, #tpu.memory_space<vmem>>, vector<32x512xbf16>
    %cst_263 = arith.constant dense<0.000000e+00> : vector<1x512xf32>
    %265 = tpu.matmul %263, %264, %cst_263 {dimension_numbers = #tpu.dot_dimension_numbers<[1], [0], [0], [1], [0, 0, 1, 1], [], []>} : vector<1x32xbf16>, vector<32x512xbf16>, vector<1x512xf32> -> vector<1x512xf32>
    %266 = arith.addf %262, %265 : vector<1x512xf32>
    %c51 = arith.constant 51 : index
    %c0_264 = arith.constant 0 : index
    %267 = vector.load %arg18[%c51, %c0_264] : memref<67x32xbf16, #tpu.memory_space<vmem>>, vector<1x32xbf16>
    %c1152 = arith.constant 1152 : index
    %c0_265 = arith.constant 0 : index
    %268 = vector.load %arg8[%c1152, %c0_265] : memref<1568x512xbf16, #tpu.memory_space<vmem>>, vector<32x512xbf16>
    %cst_266 = arith.constant dense<0.000000e+00> : vector<1x512xf32>
    %269 = tpu.matmul %267, %268, %cst_266 {dimension_numbers = #tpu.dot_dimension_numbers<[1], [0], [0], [1], [0, 0, 1, 1], [], []>} : vector<1x32xbf16>, vector<32x512xbf16>, vector<1x512xf32> -> vector<1x512xf32>
    %270 = arith.addf %266, %269 : vector<1x512xf32>
    %c52 = arith.constant 52 : index
    %c0_267 = arith.constant 0 : index
    %271 = vector.load %arg18[%c52, %c0_267] : memref<67x32xbf16, #tpu.memory_space<vmem>>, vector<1x32xbf16>
    %c1184 = arith.constant 1184 : index
    %c0_268 = arith.constant 0 : index
    %272 = vector.load %arg8[%c1184, %c0_268] : memref<1568x512xbf16, #tpu.memory_space<vmem>>, vector<32x512xbf16>
    %cst_269 = arith.constant dense<0.000000e+00> : vector<1x512xf32>
    %273 = tpu.matmul %271, %272, %cst_269 {dimension_numbers = #tpu.dot_dimension_numbers<[1], [0], [0], [1], [0, 0, 1, 1], [], []>} : vector<1x32xbf16>, vector<32x512xbf16>, vector<1x512xf32> -> vector<1x512xf32>
    %274 = arith.addf %270, %273 : vector<1x512xf32>
    %c53 = arith.constant 53 : index
    %c0_270 = arith.constant 0 : index
    %275 = vector.load %arg18[%c53, %c0_270] : memref<67x32xbf16, #tpu.memory_space<vmem>>, vector<1x32xbf16>
    %c1216 = arith.constant 1216 : index
    %c0_271 = arith.constant 0 : index
    %276 = vector.load %arg8[%c1216, %c0_271] : memref<1568x512xbf16, #tpu.memory_space<vmem>>, vector<32x512xbf16>
    %cst_272 = arith.constant dense<0.000000e+00> : vector<1x512xf32>
    %277 = tpu.matmul %275, %276, %cst_272 {dimension_numbers = #tpu.dot_dimension_numbers<[1], [0], [0], [1], [0, 0, 1, 1], [], []>} : vector<1x32xbf16>, vector<32x512xbf16>, vector<1x512xf32> -> vector<1x512xf32>
    %278 = arith.addf %274, %277 : vector<1x512xf32>
    %c54 = arith.constant 54 : index
    %c0_273 = arith.constant 0 : index
    %279 = vector.load %arg18[%c54, %c0_273] : memref<67x32xbf16, #tpu.memory_space<vmem>>, vector<1x32xbf16>
    %c1248 = arith.constant 1248 : index
    %c0_274 = arith.constant 0 : index
    %280 = vector.load %arg8[%c1248, %c0_274] : memref<1568x512xbf16, #tpu.memory_space<vmem>>, vector<32x512xbf16>
    %cst_275 = arith.constant dense<0.000000e+00> : vector<1x512xf32>
    %281 = tpu.matmul %279, %280, %cst_275 {dimension_numbers = #tpu.dot_dimension_numbers<[1], [0], [0], [1], [0, 0, 1, 1], [], []>} : vector<1x32xbf16>, vector<32x512xbf16>, vector<1x512xf32> -> vector<1x512xf32>
    %282 = arith.addf %278, %281 : vector<1x512xf32>
    %c55 = arith.constant 55 : index
    %c0_276 = arith.constant 0 : index
    %283 = vector.load %arg18[%c55, %c0_276] : memref<67x32xbf16, #tpu.memory_space<vmem>>, vector<1x32xbf16>
    %c1280 = arith.constant 1280 : index
    %c0_277 = arith.constant 0 : index
    %284 = vector.load %arg8[%c1280, %c0_277] : memref<1568x512xbf16, #tpu.memory_space<vmem>>, vector<32x512xbf16>
    %cst_278 = arith.constant dense<0.000000e+00> : vector<1x512xf32>
    %285 = tpu.matmul %283, %284, %cst_278 {dimension_numbers = #tpu.dot_dimension_numbers<[1], [0], [0], [1], [0, 0, 1, 1], [], []>} : vector<1x32xbf16>, vector<32x512xbf16>, vector<1x512xf32> -> vector<1x512xf32>
    %286 = arith.addf %282, %285 : vector<1x512xf32>
    %c56 = arith.constant 56 : index
    %c0_279 = arith.constant 0 : index
    %287 = vector.load %arg18[%c56, %c0_279] : memref<67x32xbf16, #tpu.memory_space<vmem>>, vector<1x32xbf16>
    %c1312 = arith.constant 1312 : index
    %c0_280 = arith.constant 0 : index
    %288 = vector.load %arg8[%c1312, %c0_280] : memref<1568x512xbf16, #tpu.memory_space<vmem>>, vector<32x512xbf16>
    %cst_281 = arith.constant dense<0.000000e+00> : vector<1x512xf32>
    %289 = tpu.matmul %287, %288, %cst_281 {dimension_numbers = #tpu.dot_dimension_numbers<[1], [0], [0], [1], [0, 0, 1, 1], [], []>} : vector<1x32xbf16>, vector<32x512xbf16>, vector<1x512xf32> -> vector<1x512xf32>
    %290 = arith.addf %286, %289 : vector<1x512xf32>
    %c60 = arith.constant 60 : index
    %c0_282 = arith.constant 0 : index
    %291 = vector.load %arg18[%c60, %c0_282] : memref<67x32xbf16, #tpu.memory_space<vmem>>, vector<1x32xbf16>
    %c1344 = arith.constant 1344 : index
    %c0_283 = arith.constant 0 : index
    %292 = vector.load %arg8[%c1344, %c0_283] : memref<1568x512xbf16, #tpu.memory_space<vmem>>, vector<32x512xbf16>
    %cst_284 = arith.constant dense<0.000000e+00> : vector<1x512xf32>
    %293 = tpu.matmul %291, %292, %cst_284 {dimension_numbers = #tpu.dot_dimension_numbers<[1], [0], [0], [1], [0, 0, 1, 1], [], []>} : vector<1x32xbf16>, vector<32x512xbf16>, vector<1x512xf32> -> vector<1x512xf32>
    %294 = arith.addf %290, %293 : vector<1x512xf32>
    %c61 = arith.constant 61 : index
    %c0_285 = arith.constant 0 : index
    %295 = vector.load %arg18[%c61, %c0_285] : memref<67x32xbf16, #tpu.memory_space<vmem>>, vector<1x32xbf16>
    %c1376 = arith.constant 1376 : index
    %c0_286 = arith.constant 0 : index
    %296 = vector.load %arg8[%c1376, %c0_286] : memref<1568x512xbf16, #tpu.memory_space<vmem>>, vector<32x512xbf16>
    %cst_287 = arith.constant dense<0.000000e+00> : vector<1x512xf32>
    %297 = tpu.matmul %295, %296, %cst_287 {dimension_numbers = #tpu.dot_dimension_numbers<[1], [0], [0], [1], [0, 0, 1, 1], [], []>} : vector<1x32xbf16>, vector<32x512xbf16>, vector<1x512xf32> -> vector<1x512xf32>
    %298 = arith.addf %294, %297 : vector<1x512xf32>
    %c62 = arith.constant 62 : index
    %c0_288 = arith.constant 0 : index
    %299 = vector.load %arg18[%c62, %c0_288] : memref<67x32xbf16, #tpu.memory_space<vmem>>, vector<1x32xbf16>
    %c1408 = arith.constant 1408 : index
    %c0_289 = arith.constant 0 : index
    %300 = vector.load %arg8[%c1408, %c0_289] : memref<1568x512xbf16, #tpu.memory_space<vmem>>, vector<32x512xbf16>
    %cst_290 = arith.constant dense<0.000000e+00> : vector<1x512xf32>
    %301 = tpu.matmul %299, %300, %cst_290 {dimension_numbers = #tpu.dot_dimension_numbers<[1], [0], [0], [1], [0, 0, 1, 1], [], []>} : vector<1x32xbf16>, vector<32x512xbf16>, vector<1x512xf32> -> vector<1x512xf32>
    %302 = arith.addf %298, %301 : vector<1x512xf32>
    %c63 = arith.constant 63 : index
    %c0_291 = arith.constant 0 : index
    %303 = vector.load %arg18[%c63, %c0_291] : memref<67x32xbf16, #tpu.memory_space<vmem>>, vector<1x32xbf16>
    %c1440 = arith.constant 1440 : index
    %c0_292 = arith.constant 0 : index
    %304 = vector.load %arg8[%c1440, %c0_292] : memref<1568x512xbf16, #tpu.memory_space<vmem>>, vector<32x512xbf16>
    %cst_293 = arith.constant dense<0.000000e+00> : vector<1x512xf32>
    %305 = tpu.matmul %303, %304, %cst_293 {dimension_numbers = #tpu.dot_dimension_numbers<[1], [0], [0], [1], [0, 0, 1, 1], [], []>} : vector<1x32xbf16>, vector<32x512xbf16>, vector<1x512xf32> -> vector<1x512xf32>
    %306 = arith.addf %302, %305 : vector<1x512xf32>
    %c64_294 = arith.constant 64 : index
    %c0_295 = arith.constant 0 : index
    %307 = vector.load %arg18[%c64_294, %c0_295] : memref<67x32xbf16, #tpu.memory_space<vmem>>, vector<1x32xbf16>
    %c1472 = arith.constant 1472 : index
    %c0_296 = arith.constant 0 : index
    %308 = vector.load %arg8[%c1472, %c0_296] : memref<1568x512xbf16, #tpu.memory_space<vmem>>, vector<32x512xbf16>
    %cst_297 = arith.constant dense<0.000000e+00> : vector<1x512xf32>
    %309 = tpu.matmul %307, %308, %cst_297 {dimension_numbers = #tpu.dot_dimension_numbers<[1], [0], [0], [1], [0, 0, 1, 1], [], []>} : vector<1x32xbf16>, vector<32x512xbf16>, vector<1x512xf32> -> vector<1x512xf32>
    %310 = arith.addf %306, %309 : vector<1x512xf32>
    %c65 = arith.constant 65 : index
    %c0_298 = arith.constant 0 : index
    %311 = vector.load %arg18[%c65, %c0_298] : memref<67x32xbf16, #tpu.memory_space<vmem>>, vector<1x32xbf16>
    %c1504 = arith.constant 1504 : index
    %c0_299 = arith.constant 0 : index
    %312 = vector.load %arg8[%c1504, %c0_299] : memref<1568x512xbf16, #tpu.memory_space<vmem>>, vector<32x512xbf16>
    %cst_300 = arith.constant dense<0.000000e+00> : vector<1x512xf32>
    %313 = tpu.matmul %311, %312, %cst_300 {dimension_numbers = #tpu.dot_dimension_numbers<[1], [0], [0], [1], [0, 0, 1, 1], [], []>} : vector<1x32xbf16>, vector<32x512xbf16>, vector<1x512xf32> -> vector<1x512xf32>
    %314 = arith.addf %310, %313 : vector<1x512xf32>
    %c66 = arith.constant 66 : index
    %c0_301 = arith.constant 0 : index
    %315 = vector.load %arg18[%c66, %c0_301] : memref<67x32xbf16, #tpu.memory_space<vmem>>, vector<1x32xbf16>
    %c1536 = arith.constant 1536 : index
    %c0_302 = arith.constant 0 : index
    %316 = vector.load %arg8[%c1536, %c0_302] : memref<1568x512xbf16, #tpu.memory_space<vmem>>, vector<32x512xbf16>
    %cst_303 = arith.constant dense<0.000000e+00> : vector<1x512xf32>
    %317 = tpu.matmul %315, %316, %cst_303 {dimension_numbers = #tpu.dot_dimension_numbers<[1], [0], [0], [1], [0, 0, 1, 1], [], []>} : vector<1x32xbf16>, vector<32x512xbf16>, vector<1x512xf32> -> vector<1x512xf32>
    %318 = arith.addf %314, %317 : vector<1x512xf32>
    %c0_304 = arith.constant 0 : index
    %c0_305 = arith.constant 0 : index
    %319 = vector.load %arg9[%c0_304, %c0_305] : memref<1x512xf32, #tpu.memory_space<vmem>>, vector<1x512xf32>
    %320 = arith.addf %318, %319 : vector<1x512xf32>
    %cst_306 = arith.constant 0.000000e+00 : f32
    %321 = vector.broadcast %cst_306 : f32 to vector<1x512xf32>
    %322 = arith.maximumf %320, %321 : vector<1x512xf32>
    %c0_307 = arith.constant 0 : index
    %c0_308 = arith.constant 0 : index
    %c0_309 = arith.constant 0 : index
    %323 = vector.load %arg12[%c0_307, %c0_308, %c0_309] : memref<1x1x512xf32, #tpu.memory_space<vmem>>, vector<1x1x512xf32>
    %324 = vector.shape_cast %323 : vector<1x1x512xf32> to vector<1x512xf32>
    %325 = vector.shape_cast %322 : vector<1x512xf32> to vector<1x1x512xf32>
    tpu.vector_store %arg12[%c0_307, %c0_308, %c0_309], %325 {strides = array<i32>} : memref<1x1x512xf32, #tpu.memory_space<vmem>>, vector<1x1x512xf32>,
    %326 = arith.truncf %322 : vector<1x512xf32> to vector<1x512xbf16>
    %c0_310 = arith.constant 0 : index
    %c0_311 = arith.constant 0 : index
    %327 = vector.load %arg10[%c0_310, %c0_311] : memref<512x128xbf16, #tpu.memory_space<vmem>>, vector<512x128xbf16>
    %cst_312 = arith.constant dense<0.000000e+00> : vector<1x128xf32>
    %328 = tpu.matmul %326, %327, %cst_312 {dimension_numbers = #tpu.dot_dimension_numbers<[1], [0], [0], [1], [0, 0, 1, 1], [], []>} : vector<1x512xbf16>, vector<512x128xbf16>, vector<1x128xf32> -> vector<1x128xf32>
    %c0_313 = arith.constant 0 : index
    %c0_314 = arith.constant 0 : index
    %329 = vector.load %arg11[%c0_313, %c0_314] : memref<1x128xf32, #tpu.memory_space<vmem>>, vector<1x128xf32>
    %330 = arith.addf %328, %329 : vector<1x128xf32>
    %c0_315 = arith.constant 0 : index
    %c0_316 = arith.constant 0 : index
    %c0_317 = arith.constant 0 : index
    %331 = vector.load %arg13[%c0_315, %c0_316, %c0_317] : memref<1x1x128xf32, #tpu.memory_space<vmem>>, vector<1x1x128xf32>
    %332 = vector.shape_cast %331 : vector<1x1x128xf32> to vector<1x128xf32>
    %333 = vector.shape_cast %330 : vector<1x128xf32> to vector<1x1x128xf32>
    tpu.vector_store %arg13[%c0_315, %c0_316, %c0_317], %333 {strides = array<i32>} : memref<1x1x128xf32, #tpu.memory_space<vmem>>, vector<1x1x128xf32>,
    return
  }
  func.func @transform_0(%arg0: i32) -> (i32, i32, i32, i32) {
    %c0_i32 = arith.constant 0 : i32
    %c0_i32_0 = arith.constant 0 : i32
    %c0_i32_1 = arith.constant 0 : i32
    %c0_i32_2 = arith.constant 0 : i32
    return %arg0, %c0_i32, %c0_i32_0, %c0_i32_1 : i32, i32, i32, i32
  }
  func.func @transform_1(%arg0: i32) -> (i32, i32) {
    %c0_i32 = arith.constant 0 : i32
    %c0_i32_0 = arith.constant 0 : i32
    %c0_i32_1 = arith.constant 0 : i32
    return %c0_i32, %c0_i32_0 : i32, i32
  }
  func.func @transform_2(%arg0: i32) -> (i32, i32) {
    %c0_i32 = arith.constant 0 : i32
    %c0_i32_0 = arith.constant 0 : i32
    %c0_i32_1 = arith.constant 0 : i32
    return %c0_i32, %c0_i32_0 : i32, i32
  }
  func.func @transform_3(%arg0: i32) -> (i32, i32) {
    %c0_i32 = arith.constant 0 : i32
    %c0_i32_0 = arith.constant 0 : i32
    %c0_i32_1 = arith.constant 0 : i32
    return %c0_i32, %c0_i32_0 : i32, i32
  }
  func.func @transform_4(%arg0: i32) -> (i32, i32) {
    %c0_i32 = arith.constant 0 : i32
    %c0_i32_0 = arith.constant 0 : i32
    %c0_i32_1 = arith.constant 0 : i32
    return %c0_i32, %c0_i32_0 : i32, i32
  }
  func.func @transform_5(%arg0: i32) -> (i32, i32) {
    %c0_i32 = arith.constant 0 : i32
    %c0_i32_0 = arith.constant 0 : i32
    %c0_i32_1 = arith.constant 0 : i32
    return %c0_i32, %c0_i32_0 : i32, i32
  }
  func.func @transform_6(%arg0: i32) -> (i32, i32) {
    %c0_i32 = arith.constant 0 : i32
    %c0_i32_0 = arith.constant 0 : i32
    %c0_i32_1 = arith.constant 0 : i32
    return %c0_i32, %c0_i32_0 : i32, i32
  }
  func.func @transform_7(%arg0: i32) -> (i32, i32) {
    %c0_i32 = arith.constant 0 : i32
    %c0_i32_0 = arith.constant 0 : i32
    %c0_i32_1 = arith.constant 0 : i32
    return %c0_i32, %c0_i32_0 : i32, i32
  }
  func.func @transform_8(%arg0: i32) -> (i32, i32) {
    %c0_i32 = arith.constant 0 : i32
    %c0_i32_0 = arith.constant 0 : i32
    %c0_i32_1 = arith.constant 0 : i32
    return %c0_i32, %c0_i32_0 : i32, i32
  }
  func.func @transform_9(%arg0: i32) -> (i32, i32) {
    %c0_i32 = arith.constant 0 : i32
    %c0_i32_0 = arith.constant 0 : i32
    %c0_i32_1 = arith.constant 0 : i32
    return %c0_i32, %c0_i32_0 : i32, i32
  }
  func.func @transform_10(%arg0: i32) -> (i32, i32) {
    %c0_i32 = arith.constant 0 : i32
    %c0_i32_0 = arith.constant 0 : i32
    %c0_i32_1 = arith.constant 0 : i32
    return %c0_i32, %c0_i32_0 : i32, i32
  }
  func.func @transform_11(%arg0: i32) -> (i32, i32, i32) {
    %c0_i32 = arith.constant 0 : i32
    %c0_i32_0 = arith.constant 0 : i32
    %c0_i32_1 = arith.constant 0 : i32
    return %arg0, %c0_i32, %c0_i32_0 : i32, i32, i32
  }
  func.func @transform_12(%arg0: i32) -> (i32, i32, i32) {
    %c0_i32 = arith.constant 0 : i32
    %c0_i32_0 = arith.constant 0 : i32
    %c0_i32_1 = arith.constant 0 : i32
    return %arg0, %c0_i32, %c0_i32_0 : i32, i32, i32
  }
}

</mosaic_0001>

<bundles_post_ra>
// kernel: policy_base_forward.1
= control target key start
LH: loop header
LB: loop body
LE: loop exit
PB: predicated region body
PF: predicated region fallthrough
CT: control target
= control target key end

     0   :  { %s14704_s21 = smov 0   ;;  %s17476_s0 = inlined_call_operand.vmem [shape: bf16[2,4,100,256], index: 0, kind: input, shape index: {}]   ;;  %s17477_s1 = inlined_call_operand.vmem [shape: bf16[256,32], index: 1, kind: input, shape index: {}]   ;;  %s17478_s2 = inlined_call_operand.vmem [shape: f32[1,32], index: 2, kind: input, shape index: {}]   ;;  %s17479_s3 = inlined_call_operand.vmem [shape: bf16[512,64], index: 3, kind: input, shape index: {}]   ;;  %s17480_s4 = inlined_call_operand.vmem [shape: f32[1,64], index: 4, kind: input, shape index: {}]   ;;  %s17481_s5 = inlined_call_operand.vmem [shape: bf16[576,32], index: 5, kind: input, shape index: {}]   ;;  %s17482_s6 = inlined_call_operand.vmem [shape: f32[1,32], index: 6, kind: input, shape index: {}]   ;;  %s17483_s7 = inlined_call_operand.vmem [shape: bf16[1568,512], index: 7, kind: input, shape index: {}]   ;;  %s17484_s8 = inlined_call_operand.vmem [shape: f32[1,512], index: 8, kind: input, shape index: {}]   ;;  %s17485_s9 = inlined_call_operand.vmem [shape: bf16[512,128], index: 9, kind: input, shape index: {}]   ;;  %s17486_s10 = inlined_call_operand.vmem [shape: f32[1,128], index: 10, kind: input, shape index: {}]   ;;  %s17487_s11 = inlined_call_operand.vmem [shape: f32[2,1,512], index: 11, kind: output, shape index: {0}]   ;;  %s17488_s12 = inlined_call_operand.vmem [shape: f32[2,1,128], index: 12, kind: output, shape index: {1}]  }
   0x1 LB: > { %s11953_s22 = sadd.s32 4294967295, %s14630_s21   ;;  %p11957_p0 = scmp.ge.s32.totalorder %s14630_s21, 1  ;;  %s14630_s21 = sphi %s14704_s21, %s23_s21  }
   0x2   : > { %p365_p1 = scmp.lt.s32.totalorder %s14630_s21, 3 }
   0x4   : > { %p366_p2 = pnand %p11957_p0, %p365_p1 }
   0x5   : > { %v13745_v0 = vld [vmem:[%s17477_s1 + $0x40] sm:$0xff] (!%p366_p2)   ;;  %v14723_v2 = vld [vmem:[%s17477_s1 + $0x48] sm:$0xff] (!%p366_p2)   ;;  %p409_p3 = scmp.lt.s32.totalorder (!%p366_p2), %s11953_s22, 1  ;;  %v14737_v4 = vld [vmem:[%s17477_s1 + $0x50] sm:$0xff] (!%p366_p2)   ;;  %vm791_vm0 = vcmask (!%p366_p2), 257024   ;;  %vm804_vm1 = vcmask (!%p366_p2), 254976  }
   0x6   : > { %369 = sbr.rel (%p366_p2) target bundleno = 1970 (0x7b2), region = 64  ;;  %v14718_v1 = vld [vmem:[%s17477_s1] sm:$0xff] (!%p366_p2)   ;;  %12952 = vmatprep.subr.bf16.mxu0 (!%p366_p2), %v13745_v0  ;;  %13010 = vmatprep.subr.bf16.mxu1 (!%p366_p2), %v13745_v0  ;;  %v14730_v3 = vld [vmem:[%s17477_s1 + $0x8] sm:$0xff] (!%p366_p2)   ;;  %v14746_v5 = vld [vmem:[%s17477_s1 + $0x10] sm:$0xff] (!%p366_p2)   ;;  %s14633_s17 = smov (!%p366_p2), 64   ;;  %vm1067_vm2 = vcmask (!%p366_p2), 519424  }
   0x7   : > { %12953 = vmatpush3.bf16.msra.mxu0 (!%p366_p2), %v14718_v1  ;;  %13011 = vmatpush3.bf16.msra.mxu1 (!%p366_p2), %v14718_v1  ;;  %v14753_v6 = vld [vmem:[%s17477_s1 + $0x58] sm:$0xff] (!%p366_p2)   ;;  %v14768_v8 = vld [vmem:[%s17477_s1 + $0x60] sm:$0xff] (!%p366_p2)   ;;  %v14787_v10 = vld [vmem:[%s17477_s1 + $0x68] sm:$0xff] (!%p366_p2)   ;;  %s14634_s24 = smov (!%p366_p2), 96   ;;  %vm1343_vm3 = vcmask (!%p366_p2), 781824   ;;  %vm1619_vm4 = vcmask (!%p366_p2), 1044224  }
   0x8   : > { %12954 = vmatprep.subr.bf16.mxu0 (!%p366_p2), %v14723_v2  ;;  %13012 = vmatprep.subr.bf16.mxu1 (!%p366_p2), %v14723_v2  ;;  %v14761_v7 = vld [vmem:[%s17477_s1 + $0x18] sm:$0xff] (!%p366_p2)   ;;  %v14780_v9 = vld [vmem:[%s17477_s1 + $0x20] sm:$0xff] (!%p366_p2)   ;;  %v14796_v13 = vld [vmem:[%s17477_s1 + $0x28] sm:$0xff] (!%p366_p2)   ;;  %vm1899_vm5 = vsmask.f32 (!%p366_p2), 7424  ;;  %vm1080_vm6 = vcmask (!%p366_p2), 517376  }
   0x9   : > { %v14803_v14 = vld [vmem:[%s17477_s1 + $0x70] sm:$0xff] (!%p366_p2)   ;;  %v14817_v16 = vld [vmem:[%s17477_s1 + $0x78] sm:$0xff] (!%p366_p2)   ;;  %vm1356_vm7 = vcmask (!%p366_p2), 779776   ;;  %vm1632_vm8 = vcmask (!%p366_p2), 1042176   ;;  %vm2176_vm9 = vcmask (!%p366_p2), 1046528   ;;  %vm14636_vm11 = vmmov (!%p366_p2), 0  }
   0xa   : > { %v14810_v15 = vld [vmem:[%s17477_s1 + $0x30] sm:$0xff] (!%p366_p2)   ;;  %v14824_v17 = vld [vmem:[%s17477_s1 + $0x38] sm:$0xff] (!%p366_p2)   ;;  %vm2417_vm10 = vsmask.f32 (!%p366_p2), 6400  ;;  %vm1827_vm12 = vcmask (!%p366_p2), 523264   ;;  %vm1839_vm13 = vcmask (!%p366_p2), 516096  }
   0xb   : > { %12955 = vmatpush3.bf16.msra.mxu0 (!%p366_p2), %v14730_v3  ;;  %13013 = vmatpush3.bf16.msra.mxu1 (!%p366_p2), %v14730_v3  ;;  %vm2709_vm14 = vcmask (!%p366_p2), 519168   ;;  %vm2722_vm15 = vsmask.f32 (!%p366_p2), 256 }
   0xc   : > { %12956 = vmatprep.subr.bf16.mxu0 (!%p366_p2), %v14737_v4  ;;  %13014 = vmatprep.subr.bf16.mxu1 (!%p366_p2), %v14737_v4 }
   0xd   : > { %s17494_s22 = smov (!%p409_p3, %s11953_s22), 1 }
   0xe   : > { %s13729_s19 = smul.u32 416, %s17494_s22  ;;  %s11959_s14 = sshll.u32 %s17494_s22, 2 }
   0xf   : > { %12957 = vmatpush3.bf16.msra.mxu0 %v14746_v5  ;;  %13015 = vmatpush3.bf16.msra.mxu1 %v14746_v5  ;;  %s417_s18 = scalar_lea.vmem %s17487_s11, %s11959_s14  ;;  %s420_s23 = scalar_lea.vmem %s17488_s12, %s17494_s22 }
  0x10   : > { %12958 = vmatprep.subr.bf16.mxu0 %v14753_v6  ;;  %13016 = vmatprep.subr.bf16.mxu1 %v14753_v6  ;;  %s14773_s28 = scalar_lea.vmem %s17476_s0, %s13729_s19 }
  0x11   : > { %v13763_v11 = vld [vmem:[%s14773_s28 + $0x4] ss:$8 sps:$4 sm:$0xff]   ;;  %v13761_v18 = vld [vmem:[%s14773_s28] ss:$8 sps:$4 sm:$0xff]   ;;  %v13767_v20 = vld [vmem:[%s14773_s28 + $0x14] ss:$8 sps:$4 sm:$0xff]  }
  0x12   : > { %v13766_v12 = vld [vmem:[%s14773_s28 + $0x6c] ss:$8 sps:$4 sm:$0xff]   ;;  %669 = vmatprep.mubr.bf16.mxu0 %v13763_v11  ;;  %v13764_v19 = vld [vmem:[%s14773_s28 + $0x68] ss:$8 sps:$4 sm:$0xff]   ;;  %v13769_v21 = vld [vmem:[%s14773_s28 + $0x7c] ss:$8 sps:$4 sm:$0xff]  }
  0x13   : > { %12959 = vmatpush3.bf16.msra.mxu0 %v14761_v7  ;;  %13017 = vmatpush3.bf16.msra.mxu1 %v14761_v7  ;;  %v13771_v22 = vld [vmem:[%s14773_s28 + $0x10] ss:$8 sps:$4 sm:$0xff]   ;;  %v13773_v24 = vld [vmem:[%s14773_s28 + $0x24] ss:$8 sps:$4 sm:$0xff]   ;;  %v13775_v26 = vld [vmem:[%s14773_s28 + $0x20] ss:$8 sps:$4 sm:$0xff]  }
  0x14   : > { %12960 = vmatprep.subr.bf16.mxu0 %v14768_v8  ;;  %13018 = vmatprep.subr.bf16.mxu1 %v14768_v8  ;;  %v13772_v23 = vld [vmem:[%s14773_s28 + $0x78] ss:$8 sps:$4 sm:$0xff]   ;;  %v13776_v25 = vld [vmem:[%s14773_s28 + $0x8c] ss:$8 sps:$4 sm:$0xff]   ;;  %v13778_v27 = vld [vmem:[%s14773_s28 + $0x88] ss:$8 sps:$4 sm:$0xff]  }
  0x15   : > { %919 = vmatprep.mubr.bf16.mxu1 %v13766_v12  ;;  %v13779_v28 = vld [vmem:[%s14773_s28 + $0x34] ss:$8 sps:$4 sm:$0xff]   ;;  %v13781_v30 = vld [vmem:[%s14773_s28 + $0x30] ss:$8 sps:$4 sm:$0xff]   ;;  %v13785_v32 = vld [vmem:[%s14773_s28 + $0x44] ss:$8 sps:$4 sm:$0xff]  }
  0x16   : > { %v13782_v29 = vld [vmem:[%s14773_s28 + $0x9c] ss:$8 sps:$4 sm:$0xff]   ;;  %v13784_v31 = vld [vmem:[%s14773_s28 + $0x98] ss:$8 sps:$4 sm:$0xff]   ;;  %v13788_v33 = vld [vmem:[%s14773_s28 + $0xac] ss:$8 sps:$4 sm:$0xff]  }
  0x17   : > { %12961 = vmatpush3.bf16.msra.mxu0 %v14780_v9  ;;  %13019 = vmatpush3.bf16.msra.mxu1 %v14780_v9  ;;  %v13787_v34 = vld [vmem:[%s14773_s28 + $0x40] ss:$8 sps:$4 sm:$0xff]   ;;  %v13791_v36 = vld [vmem:[%s14773_s28 + $0x54] ss:$8 sps:$4 sm:$0xff]   ;;  %v13793_v40 = vld [vmem:[%s14773_s28 + $0x50] ss:$8 sps:$4 sm:$0xff]  }
  0x18   : > { %12962 = vmatprep.subr.bf16.mxu0 %v14787_v10  ;;  %13020 = vmatprep.subr.bf16.mxu1 %v14787_v10  ;;  %v13790_v35 = vld [vmem:[%s14773_s28 + $0xa8] ss:$8 sps:$4 sm:$0xff]   ;;  %v13794_v37 = vld [vmem:[%s14773_s28 + $0xbc] ss:$8 sps:$4 sm:$0xff]   ;;  %v13796_v41 = vld [vmem:[%s14773_s28 + $0xb8] ss:$8 sps:$4 sm:$0xff]  }
  0x19   : > { %v467_v38 = vld [vmem:[%s14773_s28 + $0x60] sm:$0x33]  ;;  %v12016_v39 = vld [vmem:[%s14773_s28 + $0xc8] sm:$0x33]  ;;  %v13803_v44 = vld [vmem:[%s14773_s28 + $0xd4] ss:$8 sps:$4 sm:$0xff]  }
  0x1a   : > { %v11974_v42 = vcombine.high %v467_v38, %v467_v38  ;;  %v12030_v43 = vcombine.high %v12016_v39, %v12016_v39  ;;  %v13806_v45 = vld [vmem:[%s14773_s28 + $0x13c] ss:$8 sps:$4 sm:$0xff]   ;;  %v11973_v46 = vcombine.low %v467_v38, %v467_v38  ;;  %v12029_v47 = vcombine.low %v12016_v39, %v12016_v39  ;;  %v13801_v48 = vld [vmem:[%s14773_s28 + $0xd0] ss:$8 sps:$4 sm:$0xff]   ;;  %v13810_v51 = vld [vmem:[%s14773_s28 + $0x14c] ss:$8 sps:$4 sm:$0xff]  }
  0x1b   : > { %12963 = vmatpush3.bf16.msra.mxu0 %v14796_v13  ;;  %13021 = vmatpush3.bf16.msra.mxu1 %v14796_v13  ;;  %v13804_v49 = vld [vmem:[%s14773_s28 + $0x138] ss:$8 sps:$4 sm:$0xff]   ;;  %v13807_v50 = vld [vmem:[%s14773_s28 + $0xe4] ss:$8 sps:$4 sm:$0xff]   ;;  %v13812_v53 = vld [vmem:[%s14773_s28 + $0x148] ss:$8 sps:$4 sm:$0xff]  }
  0x1c   : > { %12964 = vmatprep.subr.bf16.mxu0 %v14803_v14  ;;  %13022 = vmatprep.subr.bf16.mxu1 %v14803_v14  ;;  %v13809_v52 = vld [vmem:[%s14773_s28 + $0xe0] ss:$8 sps:$4 sm:$0xff]   ;;  %v13813_v54 = vld [vmem:[%s14773_s28 + $0xf4] ss:$8 sps:$4 sm:$0xff]   ;;  %v13815_v56 = vld [vmem:[%s14773_s28 + $0xf0] ss:$8 sps:$4 sm:$0xff]  }
  0x1d   : > { %v13816_v55 = vld [vmem:[%s14773_s28 + $0x15c] ss:$8 sps:$4 sm:$0xff]   ;;  %v13818_v57 = vld [vmem:[%s14773_s28 + $0x158] ss:$8 sps:$4 sm:$0xff]   ;;  %v13822_v59 = vld [vmem:[%s14773_s28 + $0x16c] ss:$8 sps:$4 sm:$0xff]  }
  0x1e   : > { %v13819_v58 = vld [vmem:[%s14773_s28 + $0x104] ss:$8 sps:$4 sm:$0xff]   ;;  %v13821_v60 = vld [vmem:[%s14773_s28 + $0x100] ss:$8 sps:$4 sm:$0xff]   ;;  %v13825_v62 = vld [vmem:[%s14773_s28 + $0x114] ss:$8 sps:$4 sm:$0xff]  }
  0x1f   : > { %12965 = vmatpush3.bf16.msra.mxu0 %v14810_v15  ;;  %13023 = vmatpush3.bf16.msra.mxu1 %v14810_v15  ;;  %v13824_v61 = vld [vmem:[%s14773_s28 + $0x168] ss:$8 sps:$4 sm:$0xff]   ;;  %v13828_v63 = vld [vmem:[%s14773_s28 + $0x17c] ss:$8 sps:$4 sm:$0xff]   ;;  %v14913_v12 = vld [vmem:[%s17478_s2] ss:$0 sm:$0xff] }
  0x20   : > { %12966 = vmatprep.subr.bf16.mxu0 %v14817_v16  ;;  %13024 = vmatprep.subr.bf16.mxu1 %v14817_v16 }
  0x23   : > { %12967 = vmatpush3.bf16.msra.mxu0 %v14824_v17  ;;  %13025 = vmatpush3.bf16.msra.mxu1 %v14824_v17 }
  0x24   : > { %13068 = vmatprep.subr.bf16.mxu0 %v13745_v0  ;;  %13126 = vmatprep.subr.bf16.mxu1 %v13745_v0  ;;  %v13827_v0 = vld [vmem:[%s14773_s28 + $0x110] ss:$8 sps:$4 sm:$0xff]  }
  0x26   : > { %670 = vmatmul.mubr.bf16.vlgmr.msra.gmra.mrb[0].mxu0 %v13761_v18  ;;  %920 = vmatmul.mubr.bf16.vlgmr.msra.gmra.mrb[0].mxu1 %v13764_v19 }
  0x27   : > { %13069 = vmatpush3.bf16.msra.mxu0 %v14718_v1  ;;  %13127 = vmatpush3.bf16.msra.mxu1 %v14718_v1  ;;  %v13830_v1 = vld [vmem:[%s14773_s28 + $0x178] ss:$8 sps:$4 sm:$0xff]  }
  0x28   : > { %677 = vmatprep.mubr.bf16.mxu0 %v13767_v20  ;;  %927 = vmatprep.mubr.bf16.mxu1 %v13769_v21 }
  0x29   : > { %13070 = vmatprep.subr.bf16.mxu0 %v14723_v2  ;;  %13128 = vmatprep.subr.bf16.mxu1 %v14723_v2  ;;  %v13831_v2 = vld [vmem:[%s14773_s28 + $0x124] ss:$8 sps:$4 sm:$0xff]  }
  0x2b   : > { %13071 = vmatpush3.bf16.msra.mxu0 %v14730_v3  ;;  %13129 = vmatpush3.bf16.msra.mxu1 %v14730_v3  ;;  %v13834_v3 = vld [vmem:[%s14773_s28 + $0x18c] ss:$8 sps:$4 sm:$0xff]  }
  0x2c   : > { %13072 = vmatprep.subr.bf16.mxu0 %v14737_v4  ;;  %13130 = vmatprep.subr.bf16.mxu1 %v14737_v4  ;;  %v12056_v4 = vld [vmem:[%s14773_s28 + $0x130] sm:$0x33] }
  0x2e   : > { %678 = vmatmul.mubr.bf16.gmra.mrb[4].mxu0 %v13771_v22  ;;  %928 = vmatmul.mubr.bf16.gmra.mrb[4].mxu1 %v13772_v23 }
  0x2f   : > { %685 = vmatprep.mubr.bf16.mxu0 %v13773_v24  ;;  %13073 = vmatpush3.bf16.msra.mxu0 %v14746_v5 }
  0x30   : > { %935 = vmatprep.mubr.bf16.mxu1 %v13776_v25  ;;  %13131 = vmatpush3.bf16.msra.mxu1 %v14746_v5  ;;  %v12096_v5 = vld [vmem:[%s14773_s28 + $0x198] sm:$0x33] }
  0x31   : > { %13074 = vmatprep.subr.bf16.mxu0 %v14753_v6  ;;  %13132 = vmatprep.subr.bf16.mxu1 %v14753_v6  ;;  %v13833_v6 = vld [vmem:[%s14773_s28 + $0x120] ss:$8 sps:$4 sm:$0xff]   ;;  %v12109_v11 = vcombine.low %v12096_v5, %v12096_v5 }
  0x33   : > { %13075 = vmatpush3.bf16.msra.mxu0 %v14761_v7 }
  0x34   : > { %13133 = vmatpush3.bf16.msra.mxu1 %v14761_v7  ;;  %13076 = vmatprep.subr.bf16.mxu0 %v14768_v8  ;;  %v13836_v7 = vld [vmem:[%s14773_s28 + $0x188] ss:$8 sps:$4 sm:$0xff]   ;;  %s14632_s28 = smov 32  }
  0x35   : > { %13134 = vmatprep.subr.bf16.mxu1 %v14768_v8  ;;  %v12070_v8 = vcombine.high %v12056_v4, %v12056_v4 }
  0x36   : > { %686 = vmatmul.mubr.bf16.gmra.mrb[8].mxu0 %v13775_v26  ;;  %936 = vmatmul.mubr.bf16.gmra.mrb[8].mxu1 %v13778_v27 }
  0x37   : > { %693 = vmatprep.mubr.bf16.mxu0 %v13779_v28  ;;  %943 = vmatprep.mubr.bf16.mxu1 %v13782_v29 }
  0x38   : > { %13077 = vmatpush3.bf16.msra.mxu0 %v14780_v9  ;;  %13135 = vmatpush3.bf16.msra.mxu1 %v14780_v9  ;;  %v12110_v9 = vcombine.high %v12096_v5, %v12096_v5 }
  0x39   : > { %13078 = vmatprep.subr.bf16.mxu0 %v14787_v10  ;;  %13136 = vmatprep.subr.bf16.mxu1 %v14787_v10  ;;  %v12069_v10 = vcombine.low %v12056_v4, %v12056_v4 }
  0x3c   : > { %13079 = vmatpush3.bf16.msra.mxu0 %v14796_v13  ;;  %13137 = vmatpush3.bf16.msra.mxu1 %v14796_v13 }
  0x3d   : > { %13080 = vmatprep.subr.bf16.mxu0 %v14803_v14  ;;  %13138 = vmatprep.subr.bf16.mxu1 %v14803_v14 }
  0x3e   : > { %694 = vmatmul.mubr.bf16.gmra.mrb[12].mxu0 %v13781_v30  ;;  %944 = vmatmul.mubr.bf16.gmra.mrb[12].mxu1 %v13784_v31 }
  0x3f   : > { %701 = vmatprep.mubr.bf16.mxu0 %v13785_v32  ;;  %951 = vmatprep.mubr.bf16.mxu1 %v13788_v33 }
  0x40   : > { %13081 = vmatpush3.bf16.msra.mxu0 %v14810_v15  ;;  %13139 = vmatpush3.bf16.msra.mxu1 %v14810_v15 }
  0x41   : > { %13082 = vmatprep.subr.bf16.mxu0 %v14817_v16  ;;  %13140 = vmatprep.subr.bf16.mxu1 %v14817_v16 }
  0x44   : > { %13083 = vmatpush3.bf16.msra.mxu0 %v14824_v17  ;;  %13141 = vmatpush3.bf16.msra.mxu1 %v14824_v17 }
  0x46   : > { %702 = vmatmul.mubr.bf16.gmra.mrb[16].mxu0 %v13787_v34  ;;  %952 = vmatmul.mubr.bf16.gmra.mrb[16].mxu1 %v13790_v35 }
  0x47   : > { %709 = vmatprep.mubr.bf16.mxu0 %v13791_v36  ;;  %959 = vmatprep.mubr.bf16.mxu1 %v13794_v37 }
  0x4e   : > { %710 = vmatmul.mubr.bf16.gmra.mrb[20].mxu0 %v13793_v40  ;;  %960 = vmatmul.mubr.bf16.gmra.mrb[20].mxu1 %v13796_v41 }
  0x4f   : > { %717 = vmatprep.mubr.bf16.mxu0 %v11974_v42  ;;  %967 = vmatprep.mubr.bf16.mxu1 %v12030_v43 }
  0x56   : > { %718 = vmatmul.mubr.bf16.gmra.mrb[24].mxu0 %v11973_v46  ;;  %968 = vmatmul.mubr.bf16.gmra.mrb[24].mxu1 %v12029_v47 }
  0x57   : > { %1195 = vmatprep.mubr.bf16.mxu0 %v13803_v44  ;;  %1471 = vmatprep.mubr.bf16.mxu1 %v13806_v45 }
  0x5e   : > { %1196 = vmatmul.mubr.bf16.vlgmr.msra.gmra.mrb[28].mxu0 %v13801_v48  ;;  %1472 = vmatmul.mubr.bf16.vlgmr.msra.gmra.mrb[28].mxu1 %v13804_v49 }
  0x5f   : > { %1203 = vmatprep.mubr.bf16.mxu0 %v13807_v50  ;;  %1479 = vmatprep.mubr.bf16.mxu1 %v13810_v51 }
  0x66   : > { %1204 = vmatmul.mubr.bf16.gmra.mrb[32].mxu0 %v13809_v52  ;;  %1480 = vmatmul.mubr.bf16.gmra.mrb[32].mxu1 %v13812_v53 }
  0x67   : > { %1211 = vmatprep.mubr.bf16.mxu0 %v13813_v54  ;;  %1487 = vmatprep.mubr.bf16.mxu1 %v13816_v55 }
  0x6e   : > { %1212 = vmatmul.mubr.bf16.gmra.mrb[36].mxu0 %v13815_v56  ;;  %1488 = vmatmul.mubr.bf16.gmra.mrb[36].mxu1 %v13818_v57 }
  0x6f   : > { %1219 = vmatprep.mubr.bf16.mxu0 %v13819_v58  ;;  %1495 = vmatprep.mubr.bf16.mxu1 %v13822_v59 }
  0x76   : > { %1220 = vmatmul.mubr.bf16.gmra.mrb[40].mxu0 %v13821_v60  ;;  %1496 = vmatmul.mubr.bf16.gmra.mrb[40].mxu1 %v13824_v61 }
  0x77   : > { %1227 = vmatprep.mubr.bf16.mxu0 %v13825_v62  ;;  %1503 = vmatprep.mubr.bf16.mxu1 %v13828_v63 }
  0x7e   : > { %1228 = vmatmul.mubr.bf16.gmra.mrb[44].mxu0 %v13827_v0  ;;  %1504 = vmatmul.mubr.bf16.gmra.mrb[44].mxu1 %v13830_v1 }
  0x7f   : > { %1235 = vmatprep.mubr.bf16.mxu0 %v13831_v2  ;;  %1511 = vmatprep.mubr.bf16.mxu1 %v13834_v3 }
  0x86   : > { %1236 = vmatmul.mubr.bf16.gmra.mrb[48].mxu0 %v13833_v6  ;;  %1512 = vmatmul.mubr.bf16.gmra.mrb[48].mxu1 %v13836_v7 }
  0x87   : > { %1243 = vmatprep.mubr.bf16.mxu0 %v12070_v8  ;;  %1519 = vmatprep.mubr.bf16.mxu1 %v12110_v9 }
  0x8e   : > { %1244 = vmatmul.mubr.bf16.gmra.mrb[52].mxu0 %v12069_v10  ;;  %1520 = vmatmul.mubr.bf16.gmra.mrb[52].mxu1 %v12109_v11 }
  0xf9   : > { %v12968_v13 = vpop.f32.mrb[0].mxu0  ;;  %v13026_v14 = vpop.f32.mrb[0].mxu1 }
  0xfa   : > { %v12969_v15 = vpop.f32.mrb[1].mxu0  ;;  %v13027_v16 = vpop.f32.mrb[1].mxu1 }
  0xfb   : > { %v12970_v17 = vadd.f32 %v12969_v15, %v12968_v13  ;;  %v13028_v18 = vadd.f32 %v13027_v16, %v13026_v14  ;;  %v12971_v19 = vpop.f32.mrb[2].mxu0  ;;  %v13029_v20 = vpop.f32.mrb[2].mxu1  ;;  %v13841_v16 = vld [vmem:[%s17479_s3] sm:$0xff]  }
  0xfc   : > { %v12972_v21 = vpop.f32.mrb[3].mxu0  ;;  %v13030_v22 = vpop.f32.mrb[3].mxu1  ;;  %13365 = vmatprep.subr.bf16.mxu0 %v13841_v16 }
  0xfd   : > { %v672_v23 = vadd.f32 %v12970_v17, %v14913_v12  ;;  %v12973_v24 = vadd.f32 %v12972_v21, %v12971_v19  ;;  %v13031_v25 = vadd.f32 %v13030_v22, %v13029_v20  ;;  %v922_v26 = vadd.f32 %v13028_v18, %v14913_v12  ;;  %13366 = vmatpush3.bf16.msra.mxu0 %v13841_v16 }
  0xff   : > { %v725_v27 = vmax.f32 %v672_v23, 0.0  ;;  %v675_v28 = vadd.f32 %v12973_v24, %v14913_v12  ;;  %v975_v29 = vmax.f32 %v922_v26, 0.0  ;;  %v925_v30 = vadd.f32 %v13031_v25, %v14913_v12 }
 0x101   : > { %v726_v31 = vmax.f32 %v675_v28, 0.0  ;;  %v12974_v32 = vpop.f32.mrb[4].mxu0  ;;  %v13032_v33 = vpop.f32.mrb[4].mxu1  ;;  %v12892_v34 = vpack.c.bf16 %v975_v29, %v975_v29  ;;  %v976_v35 = vmax.f32 %v925_v30, 0.0  ;;  %v12879_v36 = vpack.c.bf16 %v725_v27, %v725_v27 }
 0x102   : > { %v12975_v37 = vpop.f32.mrb[5].mxu0  ;;  %v13033_v38 = vpop.f32.mrb[5].mxu1 }
 0x103   : > { %v12976_v39 = vadd.f32 %v12975_v37, %v12974_v32  ;;  %v13034_v40 = vadd.f32 %v13033_v38, %v13032_v33  ;;  %1028 = vrot.lane.b32.xlu0 %v12892_v34, %s14632_s28  ;;  %v12977_v41 = vpop.f32.mrb[6].mxu0  ;;  %v13035_v42 = vpop.f32.mrb[6].mxu1  ;;  %v12893_v43 = vpack.c.bf16 %v976_v35, %v976_v35  ;;  %792 = vst.msk [vmem:[#allocation2] sm:$0xf] %vm791_vm0, %v12879_v36 }
 0x104   : > { %v12880_v44 = vpack.c.bf16 %v726_v31, %v726_v31  ;;  %v12978_v45 = vpop.f32.mrb[7].mxu0  ;;  %v13036_v46 = vpop.f32.mrb[7].mxu1 }
 0x105   : > { %v680_v47 = vadd.f32 %v12976_v39, %v14913_v12  ;;  %v12979_v48 = vadd.f32 %v12978_v45, %v12977_v41  ;;  %v13037_v49 = vadd.f32 %v13036_v46, %v13035_v42  ;;  %v930_v50 = vadd.f32 %v13034_v40, %v14913_v12  ;;  %v13842_v41 = vld [vmem:[%s17479_s3 + $0x8] sm:$0xff]   ;;  %v13843_v42 = vld [vmem:[%s17479_s3 + $0x40] sm:$0xff]  }
 0x106   : > { %793 = vst.msk [vmem:[#allocation2 + $0x4] sm:$0xf] %vm791_vm0, %v12880_v44  ;;  %13367 = vmatprep.subr.bf16.mxu0 %v13842_v41  ;;  %13393 = vmatprep.subr.bf16.mxu1 %v13843_v42 }
 0x107   : > { %v727_v51 = vmax.f32 %v680_v47, 0.0  ;;  %v683_v52 = vadd.f32 %v12979_v48, %v14913_v12  ;;  %1030 = vrot.lane.b32.xlu0 %v12893_v43, %s14632_s28  ;;  %v977_v53 = vmax.f32 %v930_v50, 0.0  ;;  %v933_v54 = vadd.f32 %v13037_v49, %v14913_v12  ;;  %13368 = vmatpush3.bf16.msra.mxu0 %v13842_v41 }
 0x108   : > { %13394 = vmatpush3.bf16.msra.mxu1 %v13843_v42 }
 0x109   : > { %v728_v55 = vmax.f32 %v683_v52, 0.0  ;;  %v12980_v56 = vpop.f32.mrb[8].mxu0  ;;  %v13038_v57 = vpop.f32.mrb[8].mxu1  ;;  %v12894_v58 = vpack.c.bf16 %v977_v53, %v977_v53  ;;  %v978_v59 = vmax.f32 %v933_v54, 0.0  ;;  %v12881_v60 = vpack.c.bf16 %v727_v51, %v727_v51 }
 0x10a   : > { %v12981_v61 = vpop.f32.mrb[9].mxu0  ;;  %v13039_v62 = vpop.f32.mrb[9].mxu1 }
 0x10b   : > { %v12982_v63 = vadd.f32 %v12981_v61, %v12980_v56  ;;  %1032 = vrot.lane.b32.xlu1 %v12894_v58, %s14632_s28  ;;  %v12983_v0 = vpop.f32.mrb[10].mxu0  ;;  %v13040_v1 = vadd.f32 %v13039_v62, %v13038_v57  ;;  %v13041_v2 = vpop.f32.mrb[10].mxu1  ;;  %v12895_v3 = vpack.c.bf16 %v978_v59, %v978_v59  ;;  %794 = vst.msk [vmem:[#allocation2 + $0x8] sm:$0xf] %vm791_vm0, %v12881_v60 }
 0x10c   : > { %v12882_v4 = vpack.c.bf16 %v728_v55, %v728_v55  ;;  %v12984_v5 = vpop.f32.mrb[11].mxu0  ;;  %v13042_v6 = vpop.f32.mrb[11].mxu1 }
 0x10d   : > { %v688_v7 = vadd.f32 %v12982_v63, %v14913_v12  ;;  %v12985_v8 = vadd.f32 %v12984_v5, %v12983_v0  ;;  %v13043_v9 = vadd.f32 %v13042_v6, %v13041_v2  ;;  %v938_v10 = vadd.f32 %v13040_v1, %v14913_v12 }
 0x10e   : > { %795 = vst.msk [vmem:[#allocation2 + $0xc] sm:$0xf] %vm791_vm0, %v12882_v4  ;;  %v13845_v4 = vld [vmem:[%s17479_s3 + $0x48] sm:$0xff]  }
 0x10f   : > { %v729_v11 = vmax.f32 %v688_v7, 0.0  ;;  %v691_v13 = vadd.f32 %v12985_v8, %v14913_v12  ;;  %1034 = vrot.lane.b32.xlu1 %v12895_v3, %s14632_s28  ;;  %v941_v14 = vadd.f32 %v13043_v9, %v14913_v12  ;;  %v979_v15 = vmax.f32 %v938_v10, 0.0  ;;  %v13844_v3 = vld [vmem:[%s17479_s3 + $0x10] sm:$0xff]   ;;  %13395 = vmatprep.subr.bf16.mxu1 %v13845_v4 }
 0x110   : > { %13369 = vmatprep.subr.bf16.mxu0 %v13844_v3  ;;  %13396 = vmatpush3.bf16.msra.mxu1 %v13845_v4 }
 0x111   : > { %v730_v17 = vmax.f32 %v691_v13, 0.0  ;;  %v12986_v18 = vpop.f32.mrb[12].mxu0  ;;  %v13044_v19 = vpop.f32.mrb[12].mxu1  ;;  %v980_v20 = vmax.f32 %v941_v14, 0.0  ;;  %v12896_v21 = vpack.c.bf16 %v979_v15, %v979_v15  ;;  %v12883_v22 = vpack.c.bf16 %v729_v11, %v729_v11  ;;  %v13846_v14 = vld [vmem:[%s17479_s3 + $0x18] sm:$0xff]   ;;  %13370 = vmatpush3.bf16.msra.mxu0 %v13844_v3 }
 0x112   : > { %v12987_v23 = vpop.f32.mrb[13].mxu0  ;;  %v13045_v24 = vpop.f32.mrb[13].mxu1  ;;  %13371 = vmatprep.subr.bf16.mxu0 %v13846_v14 }
 0x113   : > { %v12988_v25 = vadd.f32 %v12987_v23, %v12986_v18  ;;  %v12989_v26 = vpop.f32.mrb[14].mxu0  ;;  %v13046_v27 = vadd.f32 %v13045_v24, %v13044_v19  ;;  %v13047_v28 = vpop.f32.mrb[14].mxu1  ;;  %v12897_v29 = vpack.c.bf16 %v980_v20, %v980_v20  ;;  %1036 = vrot.lane.b32.xlu0 %v12896_v21, %s14632_s28  ;;  %v12884_v30 = vpack.c.bf16 %v730_v17, %v730_v17 }
 0x114   : > { %796 = vst.msk [vmem:[#allocation2 + $0x10] sm:$0xf] %vm791_vm0, %v12883_v22  ;;  %v12990_v31 = vpop.f32.mrb[15].mxu0  ;;  %v13048_v32 = vpop.f32.mrb[15].mxu1 }
 0x115   : > { %v696_v33 = vadd.f32 %v12988_v25, %v14913_v12  ;;  %v12991_v34 = vadd.f32 %v12990_v31, %v12989_v26  ;;  %v13049_v35 = vadd.f32 %v13048_v32, %v13047_v28  ;;  %1038 = vrot.lane.b32.xlu1 %v12897_v29, %s14632_s28  ;;  %v946_v36 = vadd.f32 %v13046_v27, %v14913_v12 }
 0x116   : > { %797 = vst.msk [vmem:[#allocation2 + $0x14] sm:$0xf] %vm791_vm0, %v12884_v30  ;;  %13372 = vmatpush3.bf16.msra.mxu0 %v13846_v14 }
 0x117   : > { %v731_v37 = vmax.f32 %v696_v33, 0.0  ;;  %v699_v38 = vadd.f32 %v12991_v34, %v14913_v12  ;;  %v949_v39 = vadd.f32 %v13049_v35, %v14913_v12  ;;  %v981_v40 = vmax.f32 %v946_v36, 0.0 }
 0x119   : > { %v732_v43 = vmax.f32 %v699_v38, 0.0  ;;  %v12992_v44 = vpop.f32.mrb[16].mxu0  ;;  %v13050_v45 = vpop.f32.mrb[16].mxu1  ;;  %v982_v46 = vmax.f32 %v949_v39, 0.0  ;;  %v12898_v47 = vpack.c.bf16 %v981_v40, %v981_v40  ;;  %v12885_v48 = vpack.c.bf16 %v731_v37, %v731_v37 }
 0x11a   : > { %v12993_v49 = vpop.f32.mrb[17].mxu0  ;;  %v13051_v50 = vpop.f32.mrb[17].mxu1 }
 0x11b   : > { %v12994_v51 = vadd.f32 %v12993_v49, %v12992_v44  ;;  %v12995_v52 = vpop.f32.mrb[18].mxu0  ;;  %v13052_v53 = vadd.f32 %v13051_v50, %v13050_v45  ;;  %v13053_v54 = vpop.f32.mrb[18].mxu1  ;;  %v12899_v55 = vpack.c.bf16 %v982_v46, %v982_v46  ;;  %1040 = vrot.lane.b32.xlu0 %v12898_v47, %s14632_s28  ;;  %v12886_v56 = vpack.c.bf16 %v732_v43, %v732_v43 }
 0x11c   : > { %798 = vst.msk [vmem:[#allocation2 + $0x18] sm:$0xf] %vm791_vm0, %v12885_v48  ;;  %v12996_v57 = vpop.f32.mrb[19].mxu0  ;;  %v13054_v58 = vpop.f32.mrb[19].mxu1  ;;  %v13847_v48 = vld [vmem:[%s17479_s3 + $0x50] sm:$0xff]  }
 0x11d   : > { %v704_v59 = vadd.f32 %v12994_v51, %v14913_v12  ;;  %v12997_v60 = vadd.f32 %v12996_v57, %v12995_v52  ;;  %v13055_v61 = vadd.f32 %v13054_v58, %v13053_v54  ;;  %1042 = vrot.lane.b32.xlu1 %v12899_v55, %s14632_s28  ;;  %v954_v62 = vadd.f32 %v13052_v53, %v14913_v12  ;;  %v13848_v55 = vld [vmem:[%s17479_s3 + $0x20] sm:$0xff]  }
 0x11e   : > { %799 = vst.msk [vmem:[#allocation2 + $0x1c] sm:$0xf] %vm791_vm0, %v12886_v56  ;;  %13397 = vmatprep.subr.bf16.mxu1 %v13847_v48  ;;  %13373 = vmatprep.subr.bf16.mxu0 %v13848_v55 }
 0x11f   : > { %v733_v63 = vmax.f32 %v704_v59, 0.0  ;;  %v707_v0 = vadd.f32 %v12997_v60, %v14913_v12  ;;  %v957_v1 = vadd.f32 %v13055_v61, %v14913_v12  ;;  %v983_v2 = vmax.f32 %v954_v62, 0.0  ;;  %13398 = vmatpush3.bf16.msra.mxu1 %v13847_v48  ;;  %13374 = vmatpush3.bf16.msra.mxu0 %v13848_v55 }
 0x121   : > { %v734_v5 = vmax.f32 %v707_v0, 0.0  ;;  %v12998_v6 = vpop.f32.mrb[20].mxu0  ;;  %v13056_v7 = vpop.f32.mrb[20].mxu1  ;;  %v984_v8 = vmax.f32 %v957_v1, 0.0  ;;  %v12900_v9 = vpack.c.bf16 %v983_v2, %v983_v2  ;;  %v12887_v10 = vpack.c.bf16 %v733_v63, %v733_v63  ;;  %v13849_v2 = vld [vmem:[%s17479_s3 + $0x58] sm:$0xff]  }
 0x122   : > { %v12999_v11 = vpop.f32.mrb[21].mxu0  ;;  %v13057_v13 = vpop.f32.mrb[21].mxu1  ;;  %13399 = vmatprep.subr.bf16.mxu1 %v13849_v2 }
 0x123   : > { %v13000_v15 = vadd.f32 %v12999_v11, %v12998_v6  ;;  %v13001_v16 = vpop.f32.mrb[22].mxu0  ;;  %v13058_v17 = vadd.f32 %v13057_v13, %v13056_v7  ;;  %v13059_v18 = vpop.f32.mrb[22].mxu1  ;;  %v12901_v19 = vpack.c.bf16 %v984_v8, %v984_v8  ;;  %1044 = vrot.lane.b32.xlu0 %v12900_v9, %s14632_s28  ;;  %v12888_v20 = vpack.c.bf16 %v734_v5, %v734_v5  ;;  %v13850_v7 = vld [vmem:[%s17479_s3 + $0x28] sm:$0xff]  }
 0x124   : > { %800 = vst.msk [vmem:[#allocation2 + $0x20] sm:$0xf] %vm791_vm0, %v12887_v10  ;;  %v13002_v21 = vpop.f32.mrb[23].mxu0  ;;  %v13060_v22 = vpop.f32.mrb[23].mxu1  ;;  %13400 = vmatpush3.bf16.msra.mxu1 %v13849_v2  ;;  %13375 = vmatprep.subr.bf16.mxu0 %v13850_v7 }
 0x125   : > { %v712_v23 = vadd.f32 %v13000_v15, %v14913_v12  ;;  %v13003_v24 = vadd.f32 %v13002_v21, %v13001_v16  ;;  %v13061_v25 = vadd.f32 %v13060_v22, %v13059_v18  ;;  %1046 = vrot.lane.b32.xlu1 %v12901_v19, %s14632_s28  ;;  %v962_v26 = vadd.f32 %v13058_v17, %v14913_v12  ;;  %v13852_v22 = vld [vmem:[%s17479_s3 + $0x30] sm:$0xff]  }
 0x126   : > { %801 = vst.msk [vmem:[#allocation2 + $0x24] sm:$0xf] %vm791_vm0, %v12888_v20  ;;  %13376 = vmatpush3.bf16.msra.mxu0 %v13850_v7 }
 0x127   : > { %v735_v27 = vmax.f32 %v712_v23, 0.0  ;;  %v715_v28 = vadd.f32 %v13003_v24, %v14913_v12  ;;  %v965_v29 = vadd.f32 %v13061_v25, %v14913_v12  ;;  %v985_v30 = vmax.f32 %v962_v26, 0.0  ;;  %v13851_v25 = vld [vmem:[%s17479_s3 + $0x60] sm:$0xff]   ;;  %13377 = vmatprep.subr.bf16.mxu0 %v13852_v22 }
 0x128   : > { %13401 = vmatprep.subr.bf16.mxu1 %v13851_v25 }
 0x129   : > { %v736_v31 = vmax.f32 %v715_v28, 0.0  ;;  %v13004_v32 = vpop.f32.mrb[24].mxu0  ;;  %v13062_v33 = vpop.f32.mrb[24].mxu1  ;;  %v986_v34 = vmax.f32 %v965_v29, 0.0  ;;  %v12902_v35 = vpack.c.bf16 %v985_v30, %v985_v30  ;;  %v12889_v36 = vpack.c.bf16 %v735_v27, %v735_v27  ;;  %13402 = vmatpush3.bf16.msra.mxu1 %v13851_v25 }
 0x12a   : > { %v13005_v37 = vpop.f32.mrb[25].mxu0  ;;  %v13063_v38 = vpop.f32.mrb[25].mxu1  ;;  %13378 = vmatpush3.bf16.msra.mxu0 %v13852_v22 }
 0x12b   : > { %v13006_v39 = vadd.f32 %v13005_v37, %v13004_v32  ;;  %v13007_v40 = vpop.f32.mrb[26].mxu0  ;;  %v14977_v41 = vadd.f32 %v13063_v38, %v13062_v33  ;;  %v13065_v42 = vpop.f32.mrb[26].mxu1  ;;  %v12903_v43 = vpack.c.bf16 %v986_v34, %v986_v34  ;;  %1048 = vrot.lane.b32.xlu0 %v12902_v35, %s14632_s28  ;;  %v12890_v44 = vpack.c.bf16 %v736_v31, %v736_v31  ;;  %v13854_v35 = vld [vmem:[%s17479_s3 + $0x38] sm:$0xff]  }
 0x12c   : > { %802 = vst.msk [vmem:[#allocation2 + $0x28] sm:$0xf] %vm791_vm0, %v12889_v36  ;;  %v13008_v45 = vpop.f32.mrb[27].mxu0  ;;  %v13066_v46 = vpop.f32.mrb[27].mxu1  ;;  %13379 = vmatprep.subr.bf16.mxu0 %v13854_v35 }
 0x12d   : > { %v720_v47 = vadd.f32 %v13006_v39, %v14913_v12  ;;  %1050 = vrot.lane.b32.xlu1 %v12903_v43, %s14632_s28  ;;  %803 = vst.msk [vmem:[#allocation2 + $0x2c] sm:$0xf] %vm791_vm0, %v12890_v44 }
 0x12e   : > { %13380 = vmatpush3.bf16.msra.mxu0 %v13854_v35 }
 0x12f   : > { %v737_v49 = vmax.f32 %v720_v47, 0.0 }
 0x131   : > { %v13084_v50 = vpop.f32.mrb[28].mxu0  ;;  %v13142_v51 = vpop.f32.mrb[28].mxu1  ;;  %v12891_v52 = vpack.c.bf16 %v737_v49, %v737_v49 }
 0x132   : > { %v13085_v53 = vpop.f32.mrb[29].mxu0  ;;  %v13143_v54 = vpop.f32.mrb[29].mxu1 }
 0x133   : > { %v13086_v56 = vadd.f32 %v13085_v53, %v13084_v50  ;;  %v13087_v57 = vpop.f32.mrb[30].mxu0  ;;  %v13144_v58 = vadd.f32 %v13143_v54, %v13142_v51  ;;  %v13145_v59 = vpop.f32.mrb[30].mxu1  ;;  %805 = vst.msk [vmem:[#allocation2 + $0x30] sm:$0x3] %vm804_vm1, %v12891_v52  ;;  %v13855_v52 = vld [vmem:[%s17479_s3 + $0x68] sm:$0xff]  }
 0x134   : > { %v13088_v60 = vpop.f32.mrb[31].mxu0  ;;  %v13146_v61 = vpop.f32.mrb[31].mxu1  ;;  %13403 = vmatprep.subr.bf16.mxu1 %v13855_v52 }
 0x135   : > { %v13089_v62 = vadd.f32 %v13088_v60, %v13087_v57  ;;  %v13147_v63 = vadd.f32 %v13146_v61, %v13145_v59  ;;  %v1198_v0 = vadd.f32 %v13086_v56, %v14913_v12  ;;  %v1474_v1 = vadd.f32 %v13144_v58, %v14913_v12  ;;  %13404 = vmatpush3.bf16.msra.mxu1 %v13855_v52 }
 0x137   : > { %v1251_v3 = vmax.f32 %v1198_v0, 0.0  ;;  %v1201_v4 = vadd.f32 %v13089_v62, %v14913_v12  ;;  %v1527_v5 = vmax.f32 %v1474_v1, 0.0  ;;  %v1477_v6 = vadd.f32 %v13147_v63, %v14913_v12  ;;  %v13857_v62 = vld [vmem:[%s17479_s3 + $0x70] sm:$0xff]  }
 0x138   : > { %13405 = vmatprep.subr.bf16.mxu1 %v13857_v62 }
 0x139   : > { %v13090_v8 = vpop.f32.mrb[32].mxu0  ;;  %v13148_v9 = vpop.f32.mrb[32].mxu1  ;;  %v12905_v10 = vpack.c.bf16 %v1251_v3, %v1251_v3  ;;  %v1252_v11 = vmax.f32 %v1201_v4, 0.0  ;;  %v1528_v15 = vmax.f32 %v1477_v6, 0.0  ;;  %v12918_v21 = vpack.c.bf16 %v1527_v5, %v1527_v5  ;;  %13406 = vmatpush3.bf16.msra.mxu1 %v13857_v62 }
 0x13a   : > { %v13091_v13 = vpop.f32.mrb[33].mxu0  ;;  %v13149_v14 = vpop.f32.mrb[33].mxu1 }
 0x13b   : > { %v13092_v16 = vadd.f32 %v13091_v13, %v13090_v8  ;;  %v13093_v17 = vpop.f32.mrb[34].mxu0  ;;  %1304 = vrot.lane.b32.xlu0 %v12905_v10, %s14633_s17  ;;  %v13150_v18 = vadd.f32 %v13149_v14, %v13148_v9  ;;  %v13151_v19 = vpop.f32.mrb[34].mxu1  ;;  %v12906_v20 = vpack.c.bf16 %v1252_v11, %v1252_v11  ;;  %v12919_v30 = vpack.c.bf16 %v1528_v15, %v1528_v15  ;;  %v15036_v15 = vld [vmem:[%s17479_s3 + $0x80] sm:$0xff]  }
 0x13c   : > { %v13094_v23 = vpop.f32.mrb[35].mxu0  ;;  %v13152_v24 = vpop.f32.mrb[35].mxu1  ;;  %13421 = vmatprep.subr.bf16.mxu0 %v15036_v15 }
 0x13d   : > { %v13095_v26 = vadd.f32 %v13094_v23, %v13093_v17  ;;  %1306 = vrot.lane.b32.xlu1 %v12906_v20, %s14633_s17  ;;  %v13153_v27 = vadd.f32 %v13152_v24, %v13151_v19  ;;  %v1206_v28 = vadd.f32 %v13092_v16, %v14913_v12  ;;  %v1482_v29 = vadd.f32 %v13150_v18, %v14913_v12  ;;  %v13862_v20 = vld [vmem:[%s17479_s3 + $0x78] sm:$0xff]  }
 0x13e   : > { %13407 = vmatprep.subr.bf16.mxu1 %v13862_v20 }
 0x13f   : > { %1580 = vrot.lane.b32.xlu0 %v12918_v21, %s14634_s24  ;;  %v1253_v31 = vmax.f32 %v1206_v28, 0.0  ;;  %v1209_v32 = vadd.f32 %v13095_v26, %v14913_v12  ;;  %v1529_v33 = vmax.f32 %v1482_v29, 0.0  ;;  %v1485_v34 = vadd.f32 %v13153_v27, %v14913_v12  ;;  %13408 = vmatpush3.bf16.msra.mxu1 %v13862_v20 }
 0x141   : > { %v13096_v36 = vpop.f32.mrb[36].mxu0  ;;  %1582 = vrot.lane.b32.xlu1 %v12919_v30, %s14634_s24  ;;  %v13154_v37 = vpop.f32.mrb[36].mxu1  ;;  %v12907_v38 = vpack.c.bf16 %v1253_v31, %v1253_v31  ;;  %v1254_v39 = vmax.f32 %v1209_v32, 0.0  ;;  %v1530_v43 = vmax.f32 %v1485_v34, 0.0  ;;  %v12920_v49 = vpack.c.bf16 %v1529_v33, %v1529_v33  ;;  %v15052_v33 = vld [vmem:[%s17479_s3 + $0xc0] sm:$0xff]  }
 0x142   : > { %v13097_v40 = vpop.f32.mrb[37].mxu0  ;;  %v13155_v42 = vpop.f32.mrb[37].mxu1  ;;  %13449 = vmatprep.subr.bf16.mxu1 %v15052_v33 }
 0x143   : > { %v13098_v44 = vadd.f32 %v13097_v40, %v13096_v36  ;;  %v13099_v45 = vpop.f32.mrb[38].mxu0  ;;  %1308 = vrot.lane.b32.xlu0 %v12907_v38, %s14633_s17  ;;  %v13156_v46 = vadd.f32 %v13155_v42, %v13154_v37  ;;  %v13157_v47 = vpop.f32.mrb[38].mxu1  ;;  %v12908_v48 = vpack.c.bf16 %v1254_v39, %v1254_v39  ;;  %v12921_v57 = vpack.c.bf16 %v1530_v43, %v1530_v43 }
 0x144   : > { %v13100_v50 = vpop.f32.mrb[39].mxu0  ;;  %v13158_v51 = vpop.f32.mrb[39].mxu1 }
 0x145   : > { %v13101_v53 = vadd.f32 %v13100_v50, %v13099_v45  ;;  %1310 = vrot.lane.b32.xlu1 %v12908_v48, %s14633_s17  ;;  %v13159_v54 = vadd.f32 %v13158_v51, %v13157_v47  ;;  %v1214_v55 = vadd.f32 %v13098_v44, %v14913_v12  ;;  %v1490_v56 = vadd.f32 %v13156_v46, %v14913_v12 }
 0x147   : > { %1584 = vrot.lane.b32.xlu0 %v12920_v49, %s14634_s24  ;;  %v1255_v58 = vmax.f32 %v1214_v55, 0.0  ;;  %v1217_v59 = vadd.f32 %v13101_v53, %v14913_v12  ;;  %v1531_v60 = vmax.f32 %v1490_v56, 0.0  ;;  %v1493_v61 = vadd.f32 %v13159_v54, %v14913_v12 }
 0x149   : > { %v13102_v63 = vpop.f32.mrb[40].mxu0  ;;  %1586 = vrot.lane.b32.xlu1 %v12921_v57, %s14634_s24  ;;  %v13160_v0 = vpop.f32.mrb[40].mxu1  ;;  %v12909_v1 = vpack.c.bf16 %v1255_v58, %v1255_v58  ;;  %v1256_v2 = vmax.f32 %v1217_v59, 0.0  ;;  %v1532_v5 = vmax.f32 %v1493_v61, 0.0  ;;  %v12922_v11 = vpack.c.bf16 %v1531_v60, %v1531_v60 }
 0x14a   : > { %v13103_v3 = vpop.f32.mrb[41].mxu0  ;;  %v13161_v4 = vpop.f32.mrb[41].mxu1 }
 0x14b   : > { %v13104_v6 = vadd.f32 %v13103_v3, %v13102_v63  ;;  %v13105_v7 = vpop.f32.mrb[42].mxu0  ;;  %1312 = vrot.lane.b32.xlu0 %v12909_v1, %s14633_s17  ;;  %v13162_v8 = vadd.f32 %v13161_v4, %v13160_v0  ;;  %v13163_v9 = vpop.f32.mrb[42].mxu1  ;;  %v12910_v10 = vpack.c.bf16 %v1256_v2, %v1256_v2  ;;  %v12923_v21 = vpack.c.bf16 %v1532_v5, %v1532_v5 }
 0x14c   : > { %v13106_v13 = vpop.f32.mrb[43].mxu0  ;;  %v13164_v14 = vpop.f32.mrb[43].mxu1 }
 0x14d   : > { %v13107_v16 = vadd.f32 %v13106_v13, %v13105_v7  ;;  %1314 = vrot.lane.b32.xlu1 %v12910_v10, %s14633_s17  ;;  %v13165_v17 = vadd.f32 %v13164_v14, %v13163_v9  ;;  %v1222_v18 = vadd.f32 %v13104_v6, %v14913_v12  ;;  %v1498_v19 = vadd.f32 %v13162_v8, %v14913_v12 }
 0x14f   : > { %1588 = vrot.lane.b32.xlu0 %v12922_v11, %s14634_s24  ;;  %v1257_v22 = vmax.f32 %v1222_v18, 0.0  ;;  %v1225_v23 = vadd.f32 %v13107_v16, %v14913_v12  ;;  %v1533_v24 = vmax.f32 %v1498_v19, 0.0  ;;  %v1501_v25 = vadd.f32 %v13165_v17, %v14913_v12 }
 0x150   : > { %v970_v18 = vadd.f32 %v14977_v41, %v14913_v12 }
 0x151   : > { %v13108_v26 = vpop.f32.mrb[44].mxu0  ;;  %1590 = vrot.lane.b32.xlu1 %v12923_v21, %s14634_s24  ;;  %v13166_v27 = vpop.f32.mrb[44].mxu1  ;;  %v12911_v28 = vpack.c.bf16 %v1257_v22, %v1257_v22  ;;  %v1258_v29 = vmax.f32 %v1225_v23, 0.0  ;;  %v1534_v32 = vmax.f32 %v1501_v25, 0.0  ;;  %v12924_v39 = vpack.c.bf16 %v1533_v24, %v1533_v24 }
 0x152   : > { %v13109_v30 = vpop.f32.mrb[45].mxu0  ;;  %v13167_v31 = vpop.f32.mrb[45].mxu1 }
 0x153   : > { %v13110_v34 = vadd.f32 %v13109_v30, %v13108_v26  ;;  %v13111_v35 = vpop.f32.mrb[46].mxu0  ;;  %1316 = vrot.lane.b32.xlu0 %v12911_v28, %s14633_s17  ;;  %v13168_v36 = vadd.f32 %v13167_v31, %v13166_v27  ;;  %v13169_v37 = vpop.f32.mrb[46].mxu1  ;;  %v12912_v38 = vpack.c.bf16 %v1258_v29, %v1258_v29  ;;  %v12925_v47 = vpack.c.bf16 %v1534_v32, %v1534_v32 }
 0x154   : > { %v13112_v40 = vpop.f32.mrb[47].mxu0  ;;  %v13170_v42 = vpop.f32.mrb[47].mxu1  ;;  %v987_v30 = vmax.f32 %v970_v18, 0.0 }
 0x155   : > { %v13113_v43 = vadd.f32 %v13112_v40, %v13111_v35  ;;  %1318 = vrot.lane.b32.xlu1 %v12912_v38, %s14633_s17  ;;  %v13171_v44 = vadd.f32 %v13170_v42, %v13169_v37  ;;  %v1230_v45 = vadd.f32 %v13110_v34, %v14913_v12  ;;  %v1506_v46 = vadd.f32 %v13168_v36, %v14913_v12 }
 0x156   : > { %v12904_v36 = vpack.c.bf16 %v987_v30, %v987_v30  ;;  %v13875_v30 = vld [vmem:[%s17479_s3 + $0xa8] sm:$0xff]  }
 0x157   : > { %1592 = vrot.lane.b32.xlu0 %v12924_v39, %s14634_s24  ;;  %v1259_v48 = vmax.f32 %v1230_v45, 0.0  ;;  %v1233_v49 = vadd.f32 %v13113_v43, %v14913_v12  ;;  %v1535_v50 = vmax.f32 %v1506_v46, 0.0  ;;  %v1509_v51 = vadd.f32 %v13171_v44, %v14913_v12 }
 0x159   : > { %v13114_v52 = vpop.f32.mrb[48].mxu0  ;;  %1594 = vrot.lane.b32.xlu1 %v12925_v47, %s14634_s24  ;;  %v13172_v53 = vpop.f32.mrb[48].mxu1  ;;  %v12913_v54 = vpack.c.bf16 %v1259_v48, %v1259_v48  ;;  %v1260_v55 = vmax.f32 %v1233_v49, 0.0  ;;  %v1536_v58 = vmax.f32 %v1509_v51, 0.0  ;;  %v12926_v0 = vpack.c.bf16 %v1535_v50, %v1535_v50 }
 0x15a   : > { %v13115_v56 = vpop.f32.mrb[49].mxu0  ;;  %v13173_v57 = vpop.f32.mrb[49].mxu1 }
 0x15b   : > { %v13116_v59 = vadd.f32 %v13115_v56, %v13114_v52  ;;  %v13117_v60 = vpop.f32.mrb[50].mxu0  ;;  %1320 = vrot.lane.b32.xlu0 %v12913_v54, %s14633_s17  ;;  %v13174_v61 = vadd.f32 %v13173_v57, %v13172_v53  ;;  %v13175_v62 = vpop.f32.mrb[50].mxu1  ;;  %v12914_v63 = vpack.c.bf16 %v1260_v55, %v1260_v55  ;;  %v12927_v7 = vpack.c.bf16 %v1536_v58, %v1536_v58 }
 0x15c   : > { %v13118_v1 = vpop.f32.mrb[51].mxu0  ;;  %v13176_v2 = vpop.f32.mrb[51].mxu1 }
 0x15d   : > { %v13119_v3 = vadd.f32 %v13118_v1, %v13117_v60  ;;  %1322 = vrot.lane.b32.xlu1 %v12914_v63, %s14633_s17  ;;  %v13177_v4 = vadd.f32 %v13176_v2, %v13175_v62  ;;  %v1238_v5 = vadd.f32 %v13116_v59, %v14913_v12  ;;  %v1514_v6 = vadd.f32 %v13174_v61, %v14913_v12  ;;  %v13863_v1 = vld [vmem:[%s17479_s3 + $0x88] sm:$0xff]  }
 0x15f   : > { %1596 = vrot.lane.b32.xlu0 %v12926_v0, %s14634_s24  ;;  %v1261_v8 = vmax.f32 %v1238_v5, 0.0  ;;  %v1241_v9 = vadd.f32 %v13119_v3, %v14913_v12  ;;  %v1537_v10 = vmax.f32 %v1514_v6, 0.0  ;;  %v1517_v11 = vadd.f32 %v13177_v4, %v14913_v12 }
 0x161   : > { %1598 = vrot.lane.b32.xlu1 %v12927_v7, %s14634_s24  ;;  %v12915_v13 = vpack.c.bf16 %v1261_v8, %v1261_v8  ;;  %v13120_v14 = vpop.f32.mrb[52].mxu0  ;;  %v13178_v16 = vpop.f32.mrb[52].mxu1  ;;  %v1262_v17 = vmax.f32 %v1241_v9, 0.0  ;;  %v12928_v21 = vpack.c.bf16 %v1537_v10, %v1537_v10  ;;  %v1538_v25 = vmax.f32 %v1517_v11, 0.0  ;;  %v13867_v10 = vld [vmem:[%s17479_s3 + $0x90] sm:$0xff]  }
 0x162   : > { %v13121_v19 = vpop.f32.mrb[53].mxu0  ;;  %v13179_v20 = vpop.f32.mrb[53].mxu1 }
 0x163   : > { %1324 = vrot.lane.b32.xlu0 %v12915_v13, %s14633_s17  ;;  %v13122_v22 = vadd.f32 %v13121_v19, %v13120_v14  ;;  %v12916_v23 = vpack.c.bf16 %v1262_v17, %v1262_v17  ;;  %v13180_v24 = vadd.f32 %v13179_v20, %v13178_v16  ;;  %v13123_v26 = vpop.f32.mrb[54].mxu0  ;;  %v13181_v27 = vpop.f32.mrb[54].mxu1  ;;  %v12929_v32 = vpack.c.bf16 %v1538_v25, %v1538_v25 }
 0x164   : > { %v13124_v28 = vpop.f32.mrb[55].mxu0  ;;  %v13182_v29 = vpop.f32.mrb[55].mxu1  ;;  %v13868_v27 = vld [vmem:[%s17479_s3 + $0xc8] sm:$0xff]  }
 0x165   : > { %1326 = vrot.lane.b32.xlu1 %v12916_v23, %s14633_s17  ;;  %v1246_v31 = vadd.f32 %v13122_v22, %v14913_v12  ;;  %v1522_v41 = vadd.f32 %v13180_v24, %v14913_v12  ;;  %v13873_v24 = vld [vmem:[%s17479_s3 + $0xa0] sm:$0xff]  }
 0x167   : > { %1600 = vrot.lane.b32.xlu0 %v12928_v21, %s14634_s24  ;;  %v1263_v34 = vmax.f32 %v1246_v31, 0.0  ;;  %v1539_v35 = vmax.f32 %v1522_v41, 0.0 }
 0x169   : > { %1602 = vrot.lane.b32.xlu1 %v12929_v32, %s14634_s24  ;;  %v12917_v37 = vpack.c.bf16 %v1263_v34, %v1263_v34  ;;  %v12930_v38 = vpack.c.bf16 %v1539_v35, %v1539_v35  ;;  %v13871_v35 = vld [vmem:[%s17479_s3 + $0xd0] sm:$0xff]  }
 0x16b   : > { %1052 = vrot.lane.b32.xlu0 %v12904_v36, %s14632_s28 }
 0x16d   : > { %1328 = vrot.lane.b32.xlu1 %v12917_v37, %s14633_s17 }
 0x16f   : > { %1604 = vrot.lane.b32.xlu0 %v12930_v38, %s14634_s24 }
 0x175   : > { %v1029_v39 = vpop.permute.xlu0 %1028 }
 0x176   : > { %1068 = vst.msk [vmem:[#allocation2] sm:$0xf] %vm1067_vm2, %v1029_v39  ;;  %v13879_v39 = vld [vmem:[%s17479_s3 + $0xb0] sm:$0xff]  }
 0x179   : > { %v1031_v12 = vpop.permute.xlu0 %1030 }
 0x17a   : > { %1069 = vst.msk [vmem:[#allocation2 + $0x4] sm:$0xf] %vm1067_vm2, %v1031_v12 }
 0x17d   : > { %v1033_v40 = vpop.permute.xlu1 %1032 }
 0x17e   : > { %1070 = vst.msk [vmem:[#allocation2 + $0x8] sm:$0xf] %vm1067_vm2, %v1033_v40  ;;  %v13874_v40 = vld [vmem:[%s17479_s3 + $0xd8] sm:$0xff]  }
 0x181   : > { %v1035_v42 = vpop.permute.xlu1 %1034 }
 0x182   : > { %1071 = vst.msk [vmem:[#allocation2 + $0xc] sm:$0xf] %vm1067_vm2, %v1035_v42 }
 0x185   : > { %v1037_v43 = vpop.permute.xlu0 %1036 }
 0x186   : > { %1072 = vst.msk [vmem:[#allocation2 + $0x10] sm:$0xf] %vm1067_vm2, %v1037_v43 }
 0x187   : > { %v1039_v44 = vpop.permute.xlu1 %1038 }
 0x188   : > { %1073 = vst.msk [vmem:[#allocation2 + $0x14] sm:$0xf] %vm1067_vm2, %v1039_v44  ;;  %v13883_v44 = vld [vmem:[%s17479_s3 + $0xb8] sm:$0xff]  }
 0x18d   : > { %v1041_v45 = vpop.permute.xlu0 %1040 }
 0x18e   : > { %1074 = vst.msk [vmem:[#allocation2 + $0x18] sm:$0xf] %vm1067_vm2, %v1041_v45 }
 0x18f   : > { %v1043_v46 = vpop.permute.xlu1 %1042 }
 0x190   : > { %1075 = vst.msk [vmem:[#allocation2 + $0x1c] sm:$0xf] %vm1067_vm2, %v1043_v46 }
 0x195   : > { %v1045_v47 = vpop.permute.xlu0 %1044 }
 0x196   : > { %1076 = vst.msk [vmem:[#allocation2 + $0x20] sm:$0xf] %vm1067_vm2, %v1045_v47 }
 0x197   : > { %v1047_v48 = vpop.permute.xlu1 %1046 }
 0x198   : > { %1077 = vst.msk [vmem:[#allocation2 + $0x24] sm:$0xf] %vm1067_vm2, %v1047_v48 }
 0x19d   : > { %v1049_v49 = vpop.permute.xlu0 %1048 }
 0x19e   : > { %1078 = vst.msk [vmem:[#allocation2 + $0x28] sm:$0xf] %vm1067_vm2, %v1049_v49 }
 0x19f   : > { %v1051_v50 = vpop.permute.xlu1 %1050 }
 0x1a0   : > { %1079 = vst.msk [vmem:[#allocation2 + $0x2c] sm:$0xf] %vm1067_vm2, %v1051_v50  ;;  %vm15291_vm2 = vmand %vm1839_vm13, %vm2722_vm15 }
 0x1ad   : > { %v1305_v51 = vpop.permute.xlu0 %1304 }
 0x1ae   : > { %1344 = vst.msk [vmem:[#allocation2] sm:$0xf] %vm1343_vm3, %v1305_v51 }
 0x1af   : > { %v1307_v52 = vpop.permute.xlu1 %1306 }
 0x1b0   : > { %1345 = vst.msk [vmem:[#allocation2 + $0x4] sm:$0xf] %vm1343_vm3, %v1307_v52 }
 0x1b1   : > { %v1581_v53 = vpop.permute.xlu0 %1580 }
 0x1b2   : > { %1620 = vst.msk [vmem:[#allocation2] sm:$0xf] %vm1619_vm4, %v1581_v53  ;;  %v13877_v53 = vld [vmem:[%s17479_s3 + $0xe0] sm:$0xff]  }
 0x1b3   : > { %v1583_v54 = vpop.permute.xlu1 %1582 }
 0x1b4   : > { %1621 = vst.msk [vmem:[#allocation2 + $0x4] sm:$0xf] %vm1619_vm4, %v1583_v54 }
 0x1b5   : > { %v1309_v55 = vpop.permute.xlu0 %1308 }
 0x1b6   : > { %1346 = vst.msk [vmem:[#allocation2 + $0x8] sm:$0xf] %vm1343_vm3, %v1309_v55 }
 0x1b7   : > { %v1311_v56 = vpop.permute.xlu1 %1310 }
 0x1b8   : > { %1347 = vst.msk [vmem:[#allocation2 + $0xc] sm:$0xf] %vm1343_vm3, %v1311_v56 }
 0x1b9   : > { %v1585_v57 = vpop.permute.xlu0 %1584 }
 0x1ba   : > { %1622 = vst.msk [vmem:[#allocation2 + $0x8] sm:$0xf] %vm1619_vm4, %v1585_v57 }
 0x1bb   : > { %v1587_v58 = vpop.permute.xlu1 %1586  ;;  %v13853_v59 = vld [vmem:[#allocation2] sm:$0xff]  }
 0x1bc   : > { %1623 = vst.msk [vmem:[#allocation2 + $0xc] sm:$0xf] %vm1619_vm4, %v1587_v58  ;;  %v13858_v60 = vld [vmem:[#allocation2] sm:$0xff]   ;;  %13381 = vmatprep.mubr.bf16.mxu0 %v13853_v59 }
 0x1bd   : > { %v1313_v61 = vpop.permute.xlu0 %1312  ;;  %v1903_v63 = vshll.u32 %v13858_v60, 16  ;;  %v1901_v7 = vshrl.u32 %v13858_v60, 16 }
 0x1be   : > { %1348 = vst.msk [vmem:[#allocation2 + $0x10] sm:$0xf] %vm1343_vm3, %v1313_v61 }
 0x1bf   : > { %v1315_v62 = vpop.permute.xlu1 %1314  ;;  %v1905_v5 = vrot.slane %v1903_v63, 1 }
 0x1c0   : > { %1349 = vst.msk [vmem:[#allocation2 + $0x14] sm:$0xf] %vm1343_vm3, %v1315_v62 }
 0x1c1   : > { %v1589_v0 = vpop.permute.xlu0 %1588  ;;  %v1906_v11 = vor.u32 %v1905_v5, %v1901_v7  ;;  %v13880_v43 = vld [vmem:[#allocation2 + $0x4] sm:$0xfe]  }
 0x1c2   : > { %1624 = vst.msk [vmem:[#allocation2 + $0x10] sm:$0xf] %vm1619_vm4, %v1589_v0  ;;  %v13886_v46 = vld [vmem:[#allocation2 + $0x4] sm:$0xfe]   ;;  %v2177_v59 = vrot.slane %v13880_v43, 1 }
 0x1c3   : > { %v1591_v2 = vpop.permute.xlu1 %1590  ;;  %v13856_v3 = vld [vmem:[#allocation2 + $0x8] sm:$0xff]   ;;  %v2419_v60 = vshrl.u32 %v13886_v46, 16 }
 0x1c4   : > { %1625 = vst.msk [vmem:[#allocation2 + $0x14] sm:$0xf] %vm1619_vm4, %v1591_v2  ;;  %v13859_v4 = vld [vmem:[#allocation2 + $0x8] sm:$0xff]   ;;  %13382 = vmatmul.mubr.bf16.vlgmr.msra.gmra.mrb[56].mxu0 %v13856_v3 }
 0x1c5   : > { %v1317_v6 = vpop.permute.xlu0 %1316  ;;  %v1908_v8 = vshll.u32 %v13859_v4, 16  ;;  %13422 = vmatpush3.bf16.msra.mxu0 %v15036_v15  ;;  %v13869_v15 = vld [vmem:[%s17479_s3 + $0x98] sm:$0xff]   ;;  %v1912_v21 = vshrl.u32 %v13859_v4, 16  ;;  %v13882_v0 = vld [vmem:[%s17479_s3 + $0xe8] sm:$0xff]  }
 0x1c6   : > { %1350 = vst.msk [vmem:[#allocation2 + $0x18] sm:$0xf] %vm1343_vm3, %v1317_v6  ;;  %13423 = vmatprep.subr.bf16.mxu0 %v13863_v1 }
 0x1c7   : > { %v1319_v9 = vpop.permute.xlu1 %1318  ;;  %v1910_v13 = vrot.slane %v1908_v8, 1 }
 0x1c8   : > { %1351 = vst.msk [vmem:[#allocation2 + $0x1c] sm:$0xf] %vm1343_vm3, %v1319_v9 }
 0x1c9   : > { %v1593_v14 = vpop.permute.xlu0 %1592  ;;  %v1911_v16 = vsel %vm1899_vm5, %v1906_v11, %v1910_v13  ;;  %13424 = vmatpush3.bf16.msra.mxu0 %v13863_v1  ;;  %v1914_v25 = vor.u32 %v1912_v21, %v1910_v13  ;;  %v13887_v47 = vld [vmem:[#allocation2 + $0xc] sm:$0xff]   ;;  %v2422_v1 = vshll.u32 %v13886_v46, 16 }
 0x1ca   : > { %1626 = vst.msk [vmem:[#allocation2 + $0x18] sm:$0xf] %vm1619_vm4, %v1593_v14  ;;  %13409 = vmatprep.mubr.bf16.mxu1 %v1911_v16  ;;  %13425 = vmatprep.subr.bf16.mxu0 %v13867_v10  ;;  %v15153_v51 = vld [vmem:[#allocation2 + $0xc] sm:$0xff]   ;;  %v2427_v56 = vshrl.u32 %v13887_v47, 16  ;;  %v2430_v57 = vshll.u32 %v13887_v47, 16 }
 0x1cb   : > { %v1595_v17 = vpop.permute.xlu1 %1594  ;;  %v13860_v18 = vld [vmem:[#allocation2 + $0x10] sm:$0xff]   ;;  %v2178_v63 = vrot.slane %v15153_v51, 1 }
 0x1cc   : > { %1627 = vst.msk [vmem:[#allocation2 + $0x1c] sm:$0xf] %vm1619_vm4, %v1595_v17  ;;  %v13864_v19 = vld [vmem:[#allocation2 + $0x10] sm:$0xff]   ;;  %13385 = vmatprep.mubr.bf16.mxu0 %v13860_v18  ;;  %v2429_v4 = vrot.slane %v2427_v56, 1  ;;  %v2432_v5 = vrot.slane %v2430_v57, 2  ;;  %v2424_v17 = vrot.slane %v2422_v1, 2 }
 0x1cd   : > { %v1321_v20 = vpop.permute.xlu0 %1320  ;;  %v1916_v22 = vshll.u32 %v13864_v19, 16  ;;  %13426 = vmatpush3.bf16.msra.mxu0 %v13867_v10  ;;  %v1920_v36 = vshrl.u32 %v13864_v19, 16  ;;  %v2179_v10 = vsel %vm2176_vm9, %v2177_v59, %v2178_v63  ;;  %v13885_v11 = vld [vmem:[%s17479_s3 + $0xf0] sm:$0xff]   ;;  %v13898_v1 = vld [vmem:[%s17481_s5 + $0x8] sm:$0xff]  }
 0x1ce   : > { %1352 = vst.msk [vmem:[#allocation2 + $0x20] sm:$0xf] %vm1343_vm3, %v1321_v20  ;;  %13427 = vmatprep.subr.bf16.mxu0 %v13869_v15  ;;  %v2433_v19 = vor.u32 %v2432_v5, %v2429_v4  ;;  %v13902_v4 = vld [vmem:[%s17481_s5 + $0x28] sm:$0xff]   ;;  %v13901_v5 = vld [vmem:[%s17481_s5 + $0x18] sm:$0xff]  }
 0x1cf   : > { %v1323_v23 = vpop.permute.xlu1 %1322  ;;  %v1918_v26 = vrot.slane %v1916_v22, 1 }
 0x1d0   : > { %1353 = vst.msk [vmem:[#allocation2 + $0x24] sm:$0xf] %vm1343_vm3, %v1323_v23 }
 0x1d1   : > { %v1597_v28 = vpop.permute.xlu0 %1596  ;;  %v1919_v29 = vsel %vm1899_vm5, %v1914_v25, %v1918_v26  ;;  %13428 = vmatpush3.bf16.msra.mxu0 %v13869_v15  ;;  %v13891_v6 = vld [vmem:[#allocation2 + $0x14] sm:$0xff]   ;;  %v2421_v15 = vrot.slane %v2419_v60, 1 }
 0x1d2   : > { %1628 = vst.msk [vmem:[#allocation2 + $0x20] sm:$0xf] %vm1619_vm4, %v1597_v28  ;;  %13410 = vmatmul.mubr.bf16.vlgmr.msra.gmra.mrb[56].mxu1 %v1919_v29  ;;  %13429 = vmatprep.subr.bf16.mxu0 %v13873_v24  ;;  %v13888_v13 = vld [vmem:[#allocation2 + $0x14] sm:$0xff]   ;;  %v2436_v20 = vshrl.u32 %v13891_v6, 16  ;;  %v2439_v21 = vshll.u32 %v13891_v6, 16 }
 0x1d3   : > { %v1599_v31 = vpop.permute.xlu1 %1598  ;;  %v13866_v41 = vld [vmem:[#allocation2 + $0x18] sm:$0xff]   ;;  %13450 = vmatpush3.bf16.msra.mxu1 %v15052_v33  ;;  %v1922_v33 = vor.u32 %v1920_v36, %v1918_v26  ;;  %v13904_v6 = vld [vmem:[%s17481_s5 + $0x30] sm:$0xff]  }
 0x1d4   : > { %1629 = vst.msk [vmem:[#allocation2 + $0x24] sm:$0xf] %vm1619_vm4, %v1599_v31  ;;  %v13870_v32 = vld [vmem:[#allocation2 + $0x18] sm:$0xff]   ;;  %13386 = vmatmul.mubr.bf16.gmra.mrb[60].mxu0 %v13866_v41  ;;  %13451 = vmatprep.subr.bf16.mxu1 %v13868_v27 }
 0x1d5   : > { %v1325_v34 = vpop.permute.xlu0 %1324  ;;  %v1924_v37 = vshll.u32 %v13870_v32, 16  ;;  %13430 = vmatpush3.bf16.msra.mxu0 %v13873_v24  ;;  %v1928_v54 = vshrl.u32 %v13870_v32, 16  ;;  %v13890_v41 = vld [vmem:[%s17479_s3 + $0xf8] sm:$0xff]   ;;  %v2438_v32 = vrot.slane %v2436_v20, 1 }
 0x1d6   : > { %1354 = vst.msk [vmem:[#allocation2 + $0x28] sm:$0xf] %vm1343_vm3, %v1325_v34  ;;  %13431 = vmatprep.subr.bf16.mxu0 %v13875_v30  ;;  %v2441_v34 = vrot.slane %v2439_v21, 2 }
 0x1d7   : > { %v1327_v38 = vpop.permute.xlu1 %1326  ;;  %13452 = vmatpush3.bf16.msra.mxu1 %v13868_v27  ;;  %v1926_v12 = vrot.slane %v1924_v37, 1  ;;  %v2180_v27 = vrot.slane %v13888_v13, 1 }
 0x1d8   : > { %1355 = vst.msk [vmem:[#allocation2 + $0x2c] sm:$0xf] %vm1343_vm3, %v1327_v38  ;;  %13453 = vmatprep.subr.bf16.mxu1 %v13871_v35  ;;  %v2442_v43 = vor.u32 %v2441_v34, %v2438_v32  ;;  %vm3742_vm3 = vcmask 1045504  }
 0x1d9   : > { %v1601_v42 = vpop.permute.xlu0 %1600  ;;  %v1927_v45 = vsel %vm1899_vm5, %v1922_v33, %v1926_v12  ;;  %13432 = vmatpush3.bf16.msra.mxu0 %v13875_v30  ;;  %v1930_v61 = vor.u32 %v1928_v54, %v1926_v12  ;;  %v13892_v7 = vld [vmem:[#allocation2 + $0x1c] sm:$0xff]   ;;  %v2425_v30 = vor.u32 %v2424_v17, %v2421_v15  ;;  %v2181_v33 = vsel %vm2176_vm9, %v2178_v63, %v2180_v27 }
 0x1da   : > { %1630 = vst.msk [vmem:[#allocation2 + $0x28] sm:$0xf] %vm1619_vm4, %v1601_v42  ;;  %13413 = vmatprep.mubr.bf16.mxu1 %v1927_v45  ;;  %13433 = vmatprep.subr.bf16.mxu0 %v13879_v39  ;;  %v13889_v18 = vld [vmem:[#allocation2 + $0x1c] sm:$0xff]   ;;  %v2445_v22 = vshrl.u32 %v13892_v7, 16  ;;  %v2448_v26 = vshll.u32 %v13892_v7, 16  ;;  %v2443_v51 = vsel %vm2417_vm10, %v2433_v19, %v2442_v43 }
 0x1db   : > { %v1603_v48 = vpop.permute.xlu1 %1602  ;;  %v13872_v49 = vld [vmem:[#allocation2 + $0x20] sm:$0xff]   ;;  %13454 = vmatpush3.bf16.msra.mxu1 %v13871_v35  ;;  %v2182_v31 = vrot.slane %v13889_v18, 1  ;;  %v2434_v36 = vsel %vm2417_vm10, %v2425_v30, %v2433_v19  ;;  %v13906_v7 = vld [vmem:[%s17481_s5 + $0x38] sm:$0xff]  }
 0x1dc   : > { %1631 = vst.msk [vmem:[#allocation2 + $0x2c] sm:$0xf] %vm1619_vm4, %v1603_v48  ;;  %v13876_v50 = vld [vmem:[#allocation2 + $0x20] sm:$0xff]   ;;  %13389 = vmatprep.mubr.bf16.mxu0 %v13872_v49  ;;  %13455 = vmatprep.subr.bf16.mxu1 %v13874_v40  ;;  %v2447_v37 = vrot.slane %v2445_v22, 1  ;;  %v2450_v38 = vrot.slane %v2448_v26, 2 }
 0x1dd   : > { %v1053_v52 = vpop.permute.xlu0 %1052  ;;  %v1932_v55 = vshll.u32 %v13876_v50, 16  ;;  %13434 = vmatpush3.bf16.msra.mxu0 %v13879_v39  ;;  %v1936_v14 = vshrl.u32 %v13876_v50, 16  ;;  %v13897_v63 = vld [vmem:[%s17481_s5] sm:$0xff]   ;;  %vm4117_vm4 = vsmask.f32 5376 }
 0x1de   : > { %1081 = vst.msk [vmem:[#allocation2 + $0x30] sm:$0x3] %vm1080_vm6, %v1053_v52  ;;  %13435 = vmatprep.subr.bf16.mxu0 %v13883_v44  ;;  %v2451_v46 = vor.u32 %v2450_v38, %v2447_v37  ;;  %vm2878_vm6 = vcmask 261120  }
 0x1df   : > { %v1329_v58 = vpop.permute.xlu1 %1328  ;;  %13456 = vmatpush3.bf16.msra.mxu1 %v13874_v40  ;;  %v1934_v62 = vrot.slane %v1932_v55, 1  ;;  %v2183_v40 = vsel %vm2176_vm9, %v2180_v27, %v2182_v31 }
 0x1e0   : > { %1357 = vst.msk [vmem:[#allocation2 + $0x30] sm:$0x3] %vm1356_vm7, %v1329_v58  ;;  %13457 = vmatprep.subr.bf16.mxu1 %v13877_v53  ;;  %v2452_v54 = vsel %vm2417_vm10, %v2442_v43, %v2451_v46  ;;  %vm2887_vm7 = vcmask 256000  }
 0x1e1   : > { %v1605_v2 = vpop.permute.xlu0 %1604  ;;  %v1935_v3 = vsel %vm1899_vm5, %v1930_v61, %v1934_v62  ;;  %13436 = vmatpush3.bf16.msra.mxu0 %v13883_v44  ;;  %v1938_v23 = vor.u32 %v1936_v14, %v1934_v62  ;;  %v13895_v35 = vld [vmem:[#allocation2 + $0x24] sm:$0xff]  }
 0x1e2   : > { %1633 = vst.msk [vmem:[#allocation2 + $0x30] sm:$0x3] %vm1632_vm8, %v1605_v2  ;;  %13414 = vmatmul.mubr.bf16.gmra.mrb[60].mxu1 %v1935_v3  ;;  %v13893_v12 = vld [vmem:[#allocation2 + $0x24] sm:$0xff]   ;;  %v2454_v44 = vshrl.u32 %v13895_v35, 16  ;;  %v2457_v45 = vshll.u32 %v13895_v35, 16  ;;  %v13899_v3 = vld [vmem:[%s17481_s5 + $0x10] sm:$0xff]  }
 0x1e3   : > { %v13878_v8 = vld [vmem:[#allocation2 + $0x28] sm:$0x1f]   ;;  %13458 = vmatpush3.bf16.msra.mxu1 %v13877_v53  ;;  %v2184_v49 = vrot.slane %v13893_v12, 1  ;;  %v13900_v2 = vld [vmem:[%s17481_s5 + $0x20] sm:$0xff]   ;;  %vm4553_vm8 = vsmask.f32 1280 }
 0x1e4   : > { %v13884_v9 = vld [vmem:[#allocation2 + $0x28] sm:$0x1f]   ;;  %13390 = vmatmul.mubr.bf16.gmra.mrb[64].mxu0 %v13878_v8  ;;  %13459 = vmatprep.subr.bf16.mxu1 %v13882_v0  ;;  %v2456_v52 = vrot.slane %v2454_v44, 1  ;;  %v2459_v53 = vrot.slane %v2457_v45, 2 }
 0x1e5   : > { %13437 = vmatprep.mubr.bf16.mxu0 %v2179_v10  ;;  %v1940_v16 = vshll.u32 %v13884_v9, 16  ;;  %v1944_v25 = vshrl.u32 %v13884_v9, 16  ;;  %v2185_v57 = vsel %vm2176_vm9, %v2182_v31, %v2184_v49 }
 0x1e6   : > { %v2460_v59 = vor.u32 %v2459_v53, %v2456_v52 }
 0x1e7   : > { %13460 = vmatpush3.bf16.msra.mxu1 %v13882_v0  ;;  %v1942_v24 = vrot.slane %v1940_v16, 1  ;;  %v14635_v0 = vmov 0.0  }
 0x1e8   : > { %13461 = vmatprep.subr.bf16.mxu1 %v13885_v11  ;;  %v2461_v61 = vsel %vm2417_vm10, %v2451_v46, %v2460_v59  ;;  %13477 = vmatprep.subr.bf16.mxu0 %v14635_v0 }
 0x1e9   : > { %v1943_v28 = vsel %vm1899_vm5, %v1938_v23, %v1942_v24  ;;  %v1946_v29 = vor.u32 %v1944_v25, %v1942_v24  ;;  %v13896_v39 = vld [vmem:[#allocation2 + $0x2c] sm:$0x3f]  }
 0x1ea   : > { %13417 = vmatprep.mubr.bf16.mxu1 %v1943_v28  ;;  %v13894_v42 = vld [vmem:[#allocation2 + $0x2c] sm:$0x3f]   ;;  %v2463_v47 = vshrl.u32 %v13896_v39, 16  ;;  %v2466_v48 = vshll.u32 %v13896_v39, 16 }
 0x1eb   : > { %13418 = vmatmul.mubr.bf16.gmra.mrb[64].mxu1 %v1946_v29  ;;  %v2186_v50 = vrot.slane %v13894_v42, 1 }
 0x1ec   : > { %13462 = vmatpush3.bf16.msra.mxu1 %v13885_v11  ;;  %13465 = vmatprep.mubr.bf16.mxu1 %v2434_v36  ;;  %v2465_v55 = vrot.slane %v2463_v47, 1  ;;  %v2468_v56 = vrot.slane %v2466_v48, 2 }
 0x1ed   : > { %13438 = vmatmul.mubr.bf16.vlgmr.msra.gmra.mrb[68].mxu0 %v2181_v33  ;;  %13463 = vmatprep.subr.bf16.mxu1 %v13890_v41  ;;  %v2187_v58 = vsel %vm2176_vm9, %v2184_v49, %v2186_v50 }
 0x1ee   : > { %13441 = vmatprep.mubr.bf16.mxu0 %v2183_v40  ;;  %v2469_v60 = vor.u32 %v2468_v56, %v2465_v55  ;;  %13478 = vmatpush3.bf16.msra.mxu0 %v13897_v63 }
 0x1ef   : > { %13479 = vmatprep.subr.bf16.mxu0 %v14635_v0 }
 0x1f0   : > { %13464 = vmatpush3.bf16.msra.mxu1 %v13890_v41  ;;  %v2470_v62 = vsel %vm2417_vm10, %v2460_v59, %v2469_v60 }
 0x1f1   : > { %13505 = vmatprep.subr.bf16.mxu1 %v14635_v0 }
 0x1f2   : > { %13480 = vmatpush3.bf16.msra.mxu0 %v13898_v1 }
 0x1f3   : > { %13466 = vmatmul.mubr.bf16.vlgmr.msra.gmra.mrb[68].mxu1 %v2443_v51  ;;  %13481 = vmatprep.subr.bf16.mxu0 %v14635_v0 }
 0x1f4   : > { %13469 = vmatprep.mubr.bf16.mxu1 %v2452_v54  ;;  %13506 = vmatpush3.bf16.msra.mxu1 %v13900_v2 }
 0x1f5   : > { %13442 = vmatmul.mubr.bf16.gmra.mrb[72].mxu0 %v2185_v57  ;;  %13507 = vmatprep.subr.bf16.mxu1 %v14635_v0 }
 0x1f6   : > { %13445 = vmatprep.mubr.bf16.mxu0 %v2187_v58  ;;  %13482 = vmatpush3.bf16.msra.mxu0 %v13899_v3 }
 0x1f7   : > { %13483 = vmatprep.subr.bf16.mxu0 %v14635_v0 }
 0x1f8   : > { %13508 = vmatpush3.bf16.msra.mxu1 %v13902_v4 }
 0x1f9   : > { %13509 = vmatprep.subr.bf16.mxu1 %v14635_v0 }
 0x1fa   : > { %13484 = vmatpush3.bf16.msra.mxu0 %v13901_v5 }
 0x1fb   : > { %13470 = vmatmul.mubr.bf16.gmra.mrb[72].mxu1 %v2461_v61  ;;  %13533 = vmatprep.subr.bf16.mxu0 %v14635_v0 }
 0x1fc   : > { %13473 = vmatprep.mubr.bf16.mxu1 %v2470_v62  ;;  %13510 = vmatpush3.bf16.msra.mxu1 %v13904_v6 }
 0x1fd   : > { %13446 = vmatmul.mubr.bf16.gmra.mrb[76].mxu0 %v2186_v50  ;;  %13511 = vmatprep.subr.bf16.mxu1 %v14635_v0 }
 0x1fe   : > { %13485 = vmatprep.mubr.msk.bf16.mxu0 %vm14636_vm11, %v14635_v0 }
 0x200   : > { %13512 = vmatpush3.bf16.msra.mxu1 %v13906_v7 }
 0x201   : > { %13561 = vmatprep.subr.bf16.mxu1 %v14635_v0 }
 0x203   : > { %13474 = vmatmul.mubr.bf16.gmra.mrb[76].mxu1 %v2469_v60 }
 0x204   : > { %13513 = vmatprep.mubr.msk.bf16.mxu1 %vm14636_vm11, %v14635_v0 }
 0x297   : > { %v13383_v8 = vpop.f32.mrb[56].mxu0 }
 0x298   : > { %1830 = vst.msk [vmem:[#allocation3 + $0x10] sm:$0xff] %vm1827_vm12, %v13383_v8  ;;  %v1780_v9 = vpop.f32.mrb[57].mxu0 }
 0x299   : > { %1828 = vst.msk [vmem:[#allocation3] sm:$0xff] %vm1827_vm12, %v1780_v9  ;;  %v13384_v10 = vpop.f32.mrb[58].mxu0 }
 0x29a   : > { %1831 = vst.msk [vmem:[#allocation3 + $0x18] sm:$0xff] %vm1827_vm12, %v13384_v10  ;;  %v1783_v11 = vpop.f32.mrb[59].mxu0 }
 0x29b   : > { %1829 = vst.msk [vmem:[#allocation3 + $0x8] sm:$0xff] %vm1827_vm12, %v1783_v11 }
 0x29f   : > { %v2084_v14 = vld [vmem:[#allocation3 + $0x10] sm:$0xff] }
 0x2a0   : > { %v2082_v17 = vld [vmem:[#allocation3] sm:$0xff] }
 0x2a1   : > { %v2085_v20 = vld [vmem:[#allocation3 + $0x18] sm:$0xff] }
 0x2a2   : > { %v2083_v24 = vld [vmem:[#allocation3 + $0x8] sm:$0xff] }
 0x2a5   : > { %v13411_v13 = vpop.f32.mrb[56].mxu1 }
 0x2a6   : > { %v2096_v16 = vadd.f32 %v13411_v13, %v2084_v14  ;;  %v2035_v15 = vpop.f32.mrb[57].mxu1 }
 0x2a7   : > { %v2094_v18 = vadd.f32 %v2082_v17, %v2035_v15  ;;  %v13412_v19 = vpop.f32.mrb[58].mxu1  ;;  %v13387_v21 = vpop.f32.mrb[60].mxu0  ;;  %v15249_v15 = vld [vmem:[%s17480_s4] ss:$0 sm:$0xff] }
 0x2a8   : > { %2108 = vst.msk [vmem:[#allocation3 + $0x10] sm:$0xff] %vm1827_vm12, %v2096_v16  ;;  %v2097_v22 = vadd.f32 %v13412_v19, %v2085_v20  ;;  %1834 = vst.msk [vmem:[#allocation3 + $0x30] sm:$0xff] %vm1827_vm12, %v13387_v21  ;;  %v2038_v23 = vpop.f32.mrb[59].mxu1  ;;  %v1796_v25 = vpop.f32.mrb[61].mxu0 }
 0x2a9   : > { %2106 = vst.msk [vmem:[#allocation3] sm:$0xff] %vm1827_vm12, %v2094_v18  ;;  %v2095_v26 = vadd.f32 %v2083_v24, %v2038_v23  ;;  %1832 = vst.msk [vmem:[#allocation3 + $0x20] sm:$0xff] %vm1827_vm12, %v1796_v25  ;;  %v13388_v27 = vpop.f32.mrb[62].mxu0 }
 0x2aa   : > { %2109 = vst.msk [vmem:[#allocation3 + $0x18] sm:$0xff] %vm1827_vm12, %v2097_v22  ;;  %1835 = vst.msk [vmem:[#allocation3 + $0x38] sm:$0xff] %vm1827_vm12, %v13388_v27  ;;  %v1799_v28 = vpop.f32.mrb[63].mxu0 }
 0x2ab   : > { %2107 = vst.msk [vmem:[#allocation3 + $0x8] sm:$0xff] %vm1827_vm12, %v2095_v26  ;;  %1833 = vst.msk [vmem:[#allocation3 + $0x28] sm:$0xff] %vm1827_vm12, %v1799_v28 }
 0x2af   : > { %v2088_v30 = vld [vmem:[#allocation3 + $0x30] sm:$0xff] }
 0x2b0   : > { %v2086_v32 = vld [vmem:[#allocation3 + $0x20] sm:$0xff]  ;;  %v2325_v51 = vld [vmem:[#allocation3 + $0x10] sm:$0xff] }
 0x2b1   : > { %v2089_v36 = vld [vmem:[#allocation3 + $0x38] sm:$0xff]  ;;  %v2323_v57 = vld [vmem:[#allocation3] sm:$0xff] }
 0x2b2   : > { %v2087_v33 = vld [vmem:[#allocation3 + $0x28] sm:$0xff]  ;;  %v2326_v62 = vld [vmem:[#allocation3 + $0x18] sm:$0xff] }
 0x2b3   : > { %v2324_v3 = vld [vmem:[#allocation3 + $0x8] sm:$0xff] }
 0x2b5   : > { %v13415_v29 = vpop.f32.mrb[60].mxu1 }
 0x2b6   : > { %v2100_v31 = vadd.f32 %v13415_v29, %v2088_v30  ;;  %v2051_v41 = vpop.f32.mrb[61].mxu1 }
 0x2b7   : > { %v2098_v34 = vadd.f32 %v2086_v32, %v2051_v41  ;;  %v13416_v35 = vpop.f32.mrb[62].mxu1  ;;  %v13391_v37 = vpop.f32.mrb[64].mxu0 }
 0x2b8   : > { %2112 = vst.msk [vmem:[#allocation3 + $0x30] sm:$0xff] %vm1827_vm12, %v2100_v31  ;;  %v2101_v38 = vadd.f32 %v13416_v35, %v2089_v36  ;;  %1838 = vst.msk [vmem:[#allocation3 + $0x50] sm:$0xff] %vm1827_vm12, %v13391_v37  ;;  %v2054_v39 = vpop.f32.mrb[63].mxu1  ;;  %v1812_v12 = vpop.f32.mrb[65].mxu0 }
 0x2b9   : > { %2110 = vst.msk [vmem:[#allocation3 + $0x20] sm:$0xff] %vm1827_vm12, %v2098_v34  ;;  %v2099_v40 = vadd.f32 %v2087_v33, %v2054_v39  ;;  %1836 = vst.msk [vmem:[#allocation3 + $0x40] sm:$0xff] %vm1827_vm12, %v1812_v12  ;;  %v13392_v42 = vpop.f32.mrb[66].mxu0 }
 0x2ba   : > { %2113 = vst.msk [vmem:[#allocation3 + $0x38] sm:$0xff] %vm1827_vm12, %v2101_v38  ;;  %v1815_v43 = vpop.f32.mrb[67].mxu0 }
 0x2bb   : > { %1840 = vst.msk [vmem:[#allocation3 + $0x58] sm:$0x1] %vm1839_vm13, %v13392_v42 }
 0x2bc   : > { %2111 = vst.msk [vmem:[#allocation3 + $0x28] sm:$0xff] %vm1827_vm12, %v2099_v40  ;;  %1837 = vst.msk [vmem:[#allocation3 + $0x48] sm:$0xff] %vm1827_vm12, %v1815_v43 }
 0x2be   : > { %v13419_v44 = vpop.f32.mrb[64].mxu1 }
 0x2bf   : > { %v2092_v45 = vld [vmem:[#allocation3 + $0x50] sm:$0xff]  ;;  %v2067_v46 = vpop.f32.mrb[65].mxu1 }
 0x2c0   : > { %v2104_v47 = vadd.f32 %v13419_v44, %v2092_v45  ;;  %v2090_v48 = vld [vmem:[#allocation3 + $0x40] sm:$0xff]  ;;  %v13420_v49 = vpop.f32.mrb[66].mxu1  ;;  %v13439_v50 = vpop.f32.mrb[68].mxu0  ;;  %v2329_v8 = vld [vmem:[#allocation3 + $0x30] sm:$0xff] }
 0x2c1   : > { %v2102_v52 = vadd.f32 %v2090_v48, %v2067_v46  ;;  %v2337_v54 = vadd.f32 %v13439_v50, %v2325_v51  ;;  %v2070_v55 = vpop.f32.mrb[67].mxu1  ;;  %v2276_v56 = vpop.f32.mrb[69].mxu0  ;;  %v2327_v13 = vld [vmem:[#allocation3 + $0x20] sm:$0xff]  ;;  %v2330_v19 = vld [vmem:[#allocation3 + $0x38] sm:$0xff] }
 0x2c2   : > { %v2093_v53 = vld [vmem:[#allocation3 + $0x58] sm:$0x1]  ;;  %2116 = vst.msk [vmem:[#allocation3 + $0x50] sm:$0xff] %vm1827_vm12, %v2104_v47  ;;  %v2335_v60 = vadd.f32 %v2323_v57, %v2276_v56  ;;  %v13440_v61 = vpop.f32.mrb[70].mxu0 }
 0x2c3   : > { %v2105_v58 = vadd.f32 %v13420_v49, %v2093_v53  ;;  %v2091_v59 = vld [vmem:[#allocation3 + $0x48] sm:$0xff]  ;;  %2114 = vst.msk [vmem:[#allocation3 + $0x40] sm:$0xff] %vm1827_vm12, %v2102_v52  ;;  %2349 = vst.msk [vmem:[#allocation3 + $0x10] sm:$0xff] %vm1827_vm12, %v2337_v54  ;;  %v2338_v1 = vadd.f32 %v13440_v61, %v2326_v62  ;;  %v2279_v2 = vpop.f32.mrb[71].mxu0 }
 0x2c4   : > { %v2103_v63 = vadd.f32 %v2091_v59, %v2070_v55  ;;  %2347 = vst.msk [vmem:[#allocation3] sm:$0xff] %vm1827_vm12, %v2335_v60  ;;  %v2336_v4 = vadd.f32 %v2324_v3, %v2279_v2  ;;  %v2328_v24 = vld [vmem:[#allocation3 + $0x28] sm:$0xff] }
 0x2c5   : > { %2117 = vst.msk [vmem:[#allocation3 + $0x58] sm:$0x1] %vm1839_vm13, %v2105_v58 }
 0x2c6   : > { %2115 = vst.msk [vmem:[#allocation3 + $0x48] sm:$0xff] %vm1827_vm12, %v2103_v63  ;;  %2350 = vst.msk [vmem:[#allocation3 + $0x18] sm:$0xff] %vm1827_vm12, %v2338_v1  ;;  %v13467_v5 = vpop.f32.mrb[68].mxu1 }
 0x2c7   : > { %2348 = vst.msk [vmem:[#allocation3 + $0x8] sm:$0xff] %vm1827_vm12, %v2336_v4  ;;  %v2559_v6 = vpop.f32.mrb[69].mxu1 }
 0x2c8   : > { %v13443_v7 = vpop.f32.mrb[72].mxu0  ;;  %v13468_v9 = vpop.f32.mrb[70].mxu1 }
 0x2c9   : > { %v2341_v10 = vadd.f32 %v13443_v7, %v2329_v8  ;;  %v2292_v11 = vpop.f32.mrb[73].mxu0  ;;  %v2562_v14 = vpop.f32.mrb[71].mxu1  ;;  %v2333_v33 = vld [vmem:[#allocation3 + $0x50] sm:$0xff] }
 0x2ca   : > { %v2608_v16 = vld [vmem:[#allocation3 + $0x10] sm:$0xff]  ;;  %v2339_v17 = vadd.f32 %v2327_v13, %v2292_v11  ;;  %v13444_v18 = vpop.f32.mrb[74].mxu0  ;;  %v2331_v45 = vld [vmem:[#allocation3 + $0x40] sm:$0xff] }
 0x2cb   : > { %v2620_v20 = vadd.f32 %v13467_v5, %v2608_v16  ;;  %v2606_v21 = vld [vmem:[#allocation3] sm:$0xff]  ;;  %2353 = vst.msk [vmem:[#allocation3 + $0x30] sm:$0xff] %vm1827_vm12, %v2341_v10  ;;  %v2342_v22 = vadd.f32 %v13444_v18, %v2330_v19  ;;  %v2295_v23 = vpop.f32.mrb[75].mxu0 }
 0x2cc   : > { %v2618_v25 = vadd.f32 %v2606_v21, %v2559_v6  ;;  %2351 = vst.msk [vmem:[#allocation3 + $0x20] sm:$0xff] %vm1827_vm12, %v2339_v17  ;;  %v2340_v27 = vadd.f32 %v2328_v24, %v2295_v23  ;;  %v2334_v52 = vld [vmem:[#allocation3 + $0x58] sm:$0x1] }
 0x2cd   : > { %v2609_v26 = vld [vmem:[#allocation3 + $0x18] sm:$0xff]  ;;  %v2639_v28 = vadd.f32 %v15249_v15, %v2620_v20  ;;  %2354 = vst.msk [vmem:[#allocation3 + $0x38] sm:$0xff] %vm1827_vm12, %v2342_v22  ;;  %v2332_v58 = vld [vmem:[#allocation3 + $0x48] sm:$0xff] }
 0x2ce   : > { %v2621_v29 = vadd.f32 %v13468_v9, %v2609_v26  ;;  %v2607_v30 = vld [vmem:[#allocation3 + $0x8] sm:$0xff]  ;;  %v2637_v31 = vadd.f32 %v15249_v15, %v2618_v25  ;;  %2352 = vst.msk [vmem:[#allocation3 + $0x28] sm:$0xff] %vm1827_vm12, %v2340_v27  ;;  %v13471_v32 = vpop.f32.mrb[72].mxu1 }
 0x2cf   : > { %v2619_v41 = vadd.f32 %v2607_v30, %v2562_v14  ;;  %v2651_v34 = vmax.f32 %v2639_v28, 0.0  ;;  %v2575_v36 = vpop.f32.mrb[73].mxu1  ;;  %v13905_v20 = vld [vmem:[%s17481_s5 + $0x40] sm:$0xff]  }
 0x2d0   : > { %v2640_v35 = vadd.f32 %v15249_v15, %v2621_v29  ;;  %v2649_v37 = vmax.f32 %v2637_v31, 0.0  ;;  %v13447_v39 = vpop.f32.mrb[76].mxu0  ;;  %v13472_v12 = vpop.f32.mrb[74].mxu1 }
 0x2d1   : > { %v2638_v38 = vadd.f32 %v15249_v15, %v2619_v41  ;;  %v12933_v40 = vpack.c.bf16 %v2651_v34, %v2651_v34  ;;  %v2345_v43 = vadd.f32 %v13447_v39, %v2333_v33  ;;  %v2308_v44 = vpop.f32.mrb[77].mxu0  ;;  %v2578_v46 = vpop.f32.mrb[75].mxu1 }
 0x2d2   : > { %v2652_v42 = vmax.f32 %v2640_v35, 0.0  ;;  %v12931_v47 = vpack.c.bf16 %v2649_v37, %v2649_v37  ;;  %v2612_v49 = vld [vmem:[#allocation3 + $0x30] sm:$0xff]  ;;  %v2343_v50 = vadd.f32 %v2331_v45, %v2308_v44  ;;  %v13448_v51 = vpop.f32.mrb[78].mxu0  ;;  %v13941_v45 = vld [vmem:[%s17481_s5 + $0xb0] sm:$0xff]  }
 0x2d3   : > { %v2650_v48 = vmax.f32 %v2638_v38, 0.0  ;;  %2712 = vst.msk [vmem:[#allocation4 + $0x8] sm:$0xf] %vm2709_vm14, %v12933_v40  ;;  %v2624_v54 = vadd.f32 %v13471_v32, %v2612_v49  ;;  %v2610_v55 = vld [vmem:[#allocation3 + $0x20] sm:$0xff]  ;;  %v2346_v56 = vadd.f32 %v13448_v51, %v2334_v52  ;;  %v2311_v57 = vpop.f32.mrb[79].mxu0  ;;  %v13910_v40 = vld [vmem:[%s17481_s5 + $0x48] sm:$0xff]  }
 0x2d4   : > { %v12934_v53 = vpack.c.bf16 %v2652_v42, %v2652_v42  ;;  %2357 = vst.msk [vmem:[#allocation3 + $0x50] sm:$0xff] %vm1827_vm12, %v2345_v43  ;;  %v2622_v60 = vadd.f32 %v2610_v55, %v2575_v36  ;;  %v2613_v61 = vld [vmem:[#allocation3 + $0x38] sm:$0xff]  ;;  %2355 = vst.msk [vmem:[#allocation3 + $0x40] sm:$0xff] %vm1827_vm12, %v2343_v50  ;;  %v2344_v62 = vadd.f32 %v2332_v58, %v2311_v57  ;;  %v2724_v38 = vld [vmem:[#allocation4 + $0x2c] sm:$0x1] }
 0x2d5   : > { %2710 = vst.msk [vmem:[#allocation4] sm:$0xf] %vm2709_vm14, %v12931_v47  ;;  %v12932_v59 = vpack.c.bf16 %v2650_v48, %v2650_v48  ;;  %v2643_v63 = vadd.f32 %v15249_v15, %v2624_v54  ;;  %v2625_v1 = vadd.f32 %v13472_v12, %v2613_v61  ;;  %v2611_v2 = vld [vmem:[#allocation3 + $0x28] sm:$0xff]  ;;  %v13913_v49 = vld [vmem:[%s17481_s5 + $0x50] sm:$0xff]  }
 0x2d6   : > { %2713 = vst.msk [vmem:[#allocation4 + $0xc] sm:$0xf] %vm2709_vm14, %v12934_v53  ;;  %v2641_v3 = vadd.f32 %v15249_v15, %v2622_v60  ;;  %v2623_v4 = vadd.f32 %v2611_v2, %v2578_v46  ;;  %v13475_v5 = vpop.f32.mrb[76].mxu1  ;;  %v13918_v50 = vld [vmem:[%s17481_s5 + $0x60] sm:$0xff]   ;;  %v13920_v60 = vld [vmem:[%s17481_s5 + $0x68] sm:$0xff]   ;;  %v13923_v2 = vld [vmem:[%s17481_s5 + $0x70] sm:$0xff]  }
 0x2d7   : > { %2358 = vst.msk [vmem:[#allocation3 + $0x58] sm:$0x1] %vm1839_vm13, %v2346_v56  ;;  %v2655_v6 = vmax.f32 %v2643_v63, 0.0  ;;  %v2644_v7 = vadd.f32 %v15249_v15, %v2625_v1  ;;  %v2591_v8 = vpop.f32.mrb[77].mxu1 }
 0x2d8   : > { %2711 = vst.msk [vmem:[#allocation4 + $0x4] sm:$0xf] %vm2709_vm14, %v12932_v59  ;;  %v2653_v9 = vmax.f32 %v2641_v3, 0.0  ;;  %v2642_v10 = vadd.f32 %v15249_v15, %v2623_v4  ;;  %v13476_v11 = vpop.f32.mrb[78].mxu1  ;;  %v13917_v59 = vld [vmem:[%s17481_s5 + $0x58] sm:$0xff]  }
 0x2d9   : > { %2356 = vst.msk [vmem:[#allocation3 + $0x48] sm:$0xff] %vm1827_vm12, %v2344_v62  ;;  %v12937_v13 = vpack.c.bf16 %v2655_v6, %v2655_v6  ;;  %v2656_v14 = vmax.f32 %v2644_v7, 0.0  ;;  %v2594_v16 = vpop.f32.mrb[79].mxu1 }
 0x2da   : > { %v12935_v17 = vpack.c.bf16 %v2653_v9, %v2653_v9  ;;  %v2654_v18 = vmax.f32 %v2642_v10, 0.0 }
 0x2db   : > { %v2616_v19 = vld [vmem:[#allocation3 + $0x50] sm:$0xff]  ;;  %2716 = vst.msk [vmem:[#allocation4 + $0x18] sm:$0xf] %vm2709_vm14, %v12937_v13  ;;  %v12938_v21 = vpack.c.bf16 %v2656_v14, %v2656_v14  ;;  %v2614_v23 = vld [vmem:[#allocation3 + $0x40] sm:$0xff] }
 0x2dc   : > { %v2628_v22 = vadd.f32 %v13475_v5, %v2616_v19  ;;  %2714 = vst.msk [vmem:[#allocation4 + $0x10] sm:$0xf] %vm2709_vm14, %v12935_v17  ;;  %v12936_v24 = vpack.c.bf16 %v2654_v18, %v2654_v18  ;;  %v2626_v25 = vadd.f32 %v2614_v23, %v2591_v8  ;;  %v13925_v8 = vld [vmem:[%s17481_s5 + $0x78] sm:$0xff]  }
 0x2dd   : > { %v13908_v27 = vld [vmem:[#allocation4 + $0x8] sm:$0xff]   ;;  %2717 = vst.msk [vmem:[#allocation4 + $0x1c] sm:$0xf] %vm2709_vm14, %v12938_v21 }
 0x2de   : > { %v2617_v26 = vld [vmem:[#allocation3 + $0x58] sm:$0x1]  ;;  %v2647_v28 = vadd.f32 %v15249_v15, %v2628_v22  ;;  %2715 = vst.msk [vmem:[#allocation4 + $0x14] sm:$0xf] %vm2709_vm14, %v12936_v24  ;;  %v2645_v41 = vadd.f32 %v15249_v15, %v2626_v25  ;;  %v2937_v12 = vshll.u32 %v13908_v27, 16  ;;  %v13909_v54 = vld [vmem:[#allocation4 + $0x8] sm:$0xff]  }
 0x2df   : > { %v2629_v29 = vadd.f32 %v13476_v11, %v2617_v26  ;;  %v13903_v31 = vld [vmem:[#allocation4] sm:$0xff]   ;;  %v2941_v61 = vshrl.u32 %v13908_v27, 16  ;;  %v13924_v26 = vld [vmem:[%s17481_s5 + $0x80] sm:$0xff]  }
 0x2e0   : > { %v2615_v30 = vld [vmem:[#allocation3 + $0x48] sm:$0xff]  ;;  %v13907_v34 = vld [vmem:[#allocation4] sm:$0xff]   ;;  %v2659_v35 = vmax.f32 %v2647_v28, 0.0  ;;  %13486 = vmatmul.mubr.msk.bf16.vlgmr.msra.gmra.mrb[80].mxu0 %vm1827_vm12, %v13903_v31  ;;  %v2657_v37 = vmax.f32 %v2645_v41, 0.0  ;;  %v2939_v53 = vrot.slane %v2937_v12, 1  ;;  %v13929_v41 = vld [vmem:[%s17481_s5 + $0x88] sm:$0xff]  }
 0x2e1   : > { %v2627_v32 = vadd.f32 %v2615_v30, %v2594_v16  ;;  %v2648_v36 = vadd.f32 %v15249_v15, %v2629_v29  ;;  %13534 = vmatpush3.bf16.msra.mxu0 %v13905_v20  ;;  %13489 = vmatprep.mubr.msk.bf16.mxu0 %vm14636_vm11, %v14635_v0  ;;  %v2932_v33 = vshll.u32 %v13907_v34, 16  ;;  %v2930_v44 = vshrl.u32 %v13907_v34, 16  ;;  %v13922_v20 = vld [vmem:[#allocation4 + $0x8] sm:$0xff]   ;;  %v13921_v22 = vld [vmem:[#allocation4] sm:$0xfe]  }
 0x2e2   : > { %v12941_v42 = vpack.c.bf16 %v2659_v35, %v2659_v35  ;;  %13535 = vmatprep.subr.bf16.mxu0 %v14635_v0  ;;  %v2943_v63 = vor.u32 %v2941_v61, %v2939_v53  ;;  %v3146_v24 = vrot.slane %v13921_v22, 1  ;;  %v3147_v25 = vrot.slane %v13922_v20, 1  ;;  %v13926_v31 = vld [vmem:[#allocation4 + $0x4] sm:$0xfe]  }
 0x2e3   : > { %v2646_v39 = vadd.f32 %v15249_v15, %v2627_v32  ;;  %v2660_v43 = vmax.f32 %v2648_v36, 0.0  ;;  %v12939_v15 = vpack.c.bf16 %v2657_v37, %v2657_v37  ;;  %v2934_v47 = vrot.slane %v2932_v33, 1  ;;  %v13927_v29 = vld [vmem:[#allocation4 + $0xc] sm:$0xff]   ;;  %v13932_v36 = vld [vmem:[%s17481_s5 + $0x90] sm:$0xff]  }
 0x2e4   : > { %2720 = vst.msk [vmem:[#allocation4 + $0x28] sm:$0xf] %vm2709_vm14, %v12941_v42  ;;  %v13914_v1 = vld [vmem:[#allocation4 + $0x18] sm:$0xff]   ;;  %v3148_v28 = vsel %vm2176_vm9, %v3146_v24, %v3147_v25  ;;  %v3334_v32 = vrot.slane %v13927_v29, 1  ;;  %v3333_v35 = vrot.slane %v13926_v31, 1  ;;  %v13937_v37 = vld [vmem:[%s17481_s5 + $0xa0] sm:$0xff]  }
 0x2e5   : > { %v2658_v46 = vmax.f32 %v2646_v39, 0.0  ;;  %v12942_v48 = vpack.c.bf16 %v2660_v43, %v2660_v43  ;;  %2718 = vst.msk [vmem:[#allocation4 + $0x20] sm:$0xf] %vm2709_vm14, %v12939_v15  ;;  %v2935_v52 = vor.u32 %v2934_v47, %v2930_v44  ;;  %13536 = vmatpush3.bf16.msra.mxu0 %v13910_v40  ;;  %v13911_v56 = vld [vmem:[#allocation4 + $0x10] sm:$0xff]   ;;  %v2953_v6 = vshll.u32 %v13914_v1, 16  ;;  %v13915_v11 = vld [vmem:[#allocation4 + $0x18] sm:$0xff]  }
 0x2e6   : > { %13537 = vmatprep.subr.bf16.mxu0 %v14635_v0  ;;  %v2945_v58 = vshll.u32 %v13911_v56, 16  ;;  %v13912_v3 = vld [vmem:[#allocation4 + $0x10] sm:$0xff]   ;;  %v2949_v5 = vshrl.u32 %v13911_v56, 16  ;;  %v2957_v16 = vshrl.u32 %v13914_v1, 16  ;;  %v13931_v12 = vld [vmem:[#allocation4 + $0x18] sm:$0xff]   ;;  %v13936_v40 = vld [vmem:[%s17481_s5 + $0x98] sm:$0xff]  }
 0x2e7   : > { %v12940_v51 = vpack.c.bf16 %v2658_v46, %v2658_v46  ;;  %v2725_v55 = vsel %vm15291_vm2, %v12942_v48, %v2724_v38  ;;  %v2940_v57 = vsel %vm1899_vm5, %v2935_v52, %v2939_v53  ;;  %v2955_v10 = vrot.slane %v2953_v6, 1  ;;  %v13928_v30 = vld [vmem:[#allocation4 + $0x10] sm:$0xff]   ;;  %v13939_v56 = vld [vmem:[#allocation4 + $0x4] sm:$0xfe]   ;;  %v13950_v24 = vld [vmem:[%s17481_s5 + $0xd0] sm:$0xff]  }
 0x2e8   : > { %2726 = vst [vmem:[#allocation4 + $0x2c] sm:$0x1] %v2725_v55  ;;  %13514 = vmatmul.mubr.msk.bf16.vlgmr.msra.gmra.mrb[80].mxu1 %vm1827_vm12, %v2940_v57  ;;  %13490 = vmatmul.mubr.msk.bf16.gmra.mrb[84].mxu0 %vm1827_vm12, %v13909_v54  ;;  %v2947_v62 = vrot.slane %v2945_v58, 1  ;;  %v3149_v34 = vrot.slane %v13928_v30, 1  ;;  %v3335_v38 = vsel %vm2176_vm9, %v3333_v35, %v3334_v32  ;;  %v13930_v33 = vld [vmem:[#allocation4 + $0x14] sm:$0xff]   ;;  %v3151_v44 = vrot.slane %v13931_v12, 1 }
 0x2e9   : > { %2719 = vst.msk [vmem:[#allocation4 + $0x24] sm:$0xf] %vm2709_vm14, %v12940_v51  ;;  %13517 = vmatprep.mubr.msk.bf16.mxu1 %vm14636_vm11, %v14635_v0  ;;  %13493 = vmatprep.mubr.msk.bf16.mxu0 %vm14636_vm11, %v14635_v0  ;;  %v2959_v18 = vor.u32 %v2957_v16, %v2955_v10  ;;  %v13938_v42 = vld [vmem:[%s17481_s5 + $0xa8] sm:$0xff]   ;;  %v3336_v43 = vrot.slane %v13930_v33, 1  ;;  %v13940_v55 = vld [vmem:[#allocation4 + $0xc] sm:$0xff]   ;;  %v3524_v61 = vshll.u32 %v13939_v56, 16 }
 0x2ea   : > { %13538 = vmatpush3.bf16.msra.mxu0 %v13913_v49  ;;  %13562 = vmatpush3.bf16.msra.mxu1 %v13918_v50  ;;  %v2948_v4 = vsel %vm1899_vm5, %v2943_v63, %v2947_v62  ;;  %v2951_v9 = vor.u32 %v2949_v5, %v2947_v62  ;;  %v3150_v39 = vsel %vm2176_vm9, %v3147_v25, %v3149_v34  ;;  %v13943_v49 = vld [vmem:[%s17481_s5 + $0xb8] sm:$0xff]   ;;  %v3529_v58 = vshrl.u32 %v13940_v55, 16  ;;  %v13955_v25 = vld [vmem:[%s17481_s5 + $0xe0] sm:$0xff]  }
 0x2eb   : > { %13539 = vmatprep.subr.bf16.mxu0 %v14635_v0  ;;  %13563 = vmatprep.subr.bf16.mxu1 %v14635_v0  ;;  %v3337_v15 = vsel %vm2176_vm9, %v3334_v32, %v3336_v43  ;;  %v3152_v46 = vsel %vm2176_vm9, %v3149_v34, %v3151_v44  ;;  %v13956_v32 = vld [vmem:[%s17481_s5 + $0xe8] sm:$0xff]  }
 0x2ec   : > { %v13916_v7 = vld [vmem:[#allocation4 + $0x20] ss:$0 sps:$4 sm:$0x33]   ;;  %v2956_v13 = vsel %vm1899_vm5, %v2951_v9, %v2955_v10  ;;  %v3531_v63 = vrot.slane %v3529_v58, 1  ;;  %v13942_v9 = vld [vmem:[%s17481_s5 + $0xc0] sm:$0xff]  }
 0x2ed   : > { %v2961_v14 = vshll.u32 %v13916_v7, 16  ;;  %v13919_v19 = vld [vmem:[#allocation4 + $0x20] ss:$0 sps:$4 sm:$0x33]   ;;  %v2965_v23 = vshrl.u32 %v13916_v7, 16  ;;  %v13960_v58 = vld [vmem:[%s17481_s5 + $0x100] sm:$0xff]  }
 0x2ee   : > { %13540 = vmatpush3.bf16.msra.mxu0 %v13917_v59  ;;  %13564 = vmatpush3.bf16.msra.mxu1 %v13920_v60  ;;  %v13933_v47 = vld [vmem:[#allocation4 + $0x1c] sm:$0xff]   ;;  %v3532_v59 = vshll.u32 %v13940_v55, 16  ;;  %v3521_v60 = vshrl.u32 %v13939_v56, 16 }
 0x2ef   : > { %13565 = vmatprep.subr.bf16.mxu1 %v14635_v0  ;;  %13589 = vmatprep.subr.bf16.mxu0 %v14635_v0  ;;  %v2963_v17 = vrot.slane %v2961_v14, 1  ;;  %v13934_v48 = vld [vmem:[#allocation4 + $0x20] ss:$0 sps:$4 sm:$0x77]   ;;  %v3338_v50 = vrot.slane %v13933_v47, 1 }
 0x2f0   : > { %13518 = vmatmul.mubr.msk.bf16.gmra.mrb[84].mxu1 %vm1827_vm12, %v2948_v4  ;;  %13494 = vmatmul.mubr.msk.bf16.gmra.mrb[88].mxu0 %vm1827_vm12, %v13912_v3  ;;  %v3153_v51 = vrot.slane %v13934_v48, 1  ;;  %v13935_v54 = vld [vmem:[#allocation4 + $0x24] ss:$0 sps:$4 sm:$0x77]   ;;  %v3534_v1 = vrot.slane %v3532_v59, 2  ;;  %v3523_v3 = vrot.slane %v3521_v60, 1 }
 0x2f1   : > { %13521 = vmatprep.mubr.msk.bf16.mxu1 %vm14636_vm11, %v14635_v0  ;;  %13497 = vmatprep.mubr.msk.bf16.mxu0 %vm14636_vm11, %v14635_v0  ;;  %v2964_v21 = vsel %vm1899_vm5, %v2959_v18, %v2963_v17  ;;  %v2967_v27 = vor.u32 %v2965_v23, %v2963_v17  ;;  %v3339_v52 = vsel %vm2176_vm9, %v3336_v43, %v3338_v50  ;;  %v3340_v57 = vrot.slane %v13935_v54, 1  ;;  %v13949_v16 = vld [vmem:[#allocation4 + $0x1c] sm:$0xff]   ;;  %v13944_v17 = vld [vmem:[#allocation4 + $0x4] sm:$0xfc]   ;;  %v13947_v18 = vld [vmem:[%s17481_s5 + $0xc8] sm:$0xff]  }
 0x2f2   : > { %13566 = vmatpush3.bf16.msra.mxu1 %v13923_v2  ;;  %v3154_v53 = vsel %vm2176_vm9, %v3151_v44, %v3153_v51  ;;  %v13946_v2 = vld [vmem:[#allocation4 + $0x14] sm:$0xff]   ;;  %v3526_v4 = vrot.slane %v3524_v61, 2  ;;  %v3535_v5 = vor.u32 %v3534_v1, %v3531_v63  ;;  %v3550_v22 = vshll.u32 %v13949_v16, 16  ;;  %v13952_v31 = vld [vmem:[#allocation4 + $0x24] ss:$0 sps:$4 sm:$0x77]  }
 0x2f3   : > { %13567 = vmatprep.subr.bf16.mxu1 %v14635_v0  ;;  %v3341_v62 = vsel %vm2176_vm9, %v3338_v50, %v3340_v57  ;;  %v3538_v6 = vshrl.u32 %v13946_v2, 16  ;;  %v3541_v7 = vshll.u32 %v13946_v2, 16  ;;  %v3743_v23 = vrot.slane %v13944_v17, 2  ;;  %v13951_v12 = vld [vmem:[#allocation4 + $0x1c] sm:$0xff]   ;;  %v13961_v43 = vld [vmem:[%s17481_s5 + $0xf8] sm:$0xff]   ;;  %v13958_v50 = vld [vmem:[#allocation4 + $0x10] sm:$0xff]  }
 0x2f4   : > { %v3552_v30 = vrot.slane %v3550_v22, 2  ;;  %v3748_v44 = vrot.slane %v13951_v12, 2  ;;  %v13953_v47 = vld [vmem:[#allocation4 + $0x24] ss:$0 sps:$4 sm:$0xff]   ;;  %v3931_v54 = vrot.slane %v13958_v50, 2  ;;  %v13964_v1 = vld [vmem:[#allocation4 + $0x18] sm:$0xff]  }
 0x2f5   : > { %v3543_v14 = vrot.slane %v3541_v7, 2  ;;  %v3750_v48 = vrot.slane %v13953_v47, 2  ;;  %v13966_v2 = vld [vmem:[#allocation4 + $0x18] sm:$0xff]   ;;  %v3933_v7 = vrot.slane %v13964_v1, 2  ;;  %v13974_v12 = vld [vmem:[#allocation4 + $0x10] sm:$0xff]   ;;  %vm4343_vm5 = vcmask 1044480  }
 0x2f6   : > { %13568 = vmatpush3.bf16.msra.mxu1 %v13925_v8  ;;  %v3527_v8 = vor.u32 %v3526_v4, %v3523_v3  ;;  %v13976_v47 = vld [vmem:[#allocation4 + $0x20] sm:$0xff]   ;;  %v13977_v50 = vld [vmem:[#allocation4 + $0x28] sm:$0x1f]  }
 0x2f7   : > { %13617 = vmatprep.subr.bf16.mxu1 %v14635_v0 }
 0x2f8   : > { %13522 = vmatmul.mubr.msk.bf16.gmra.mrb[88].mxu1 %vm1827_vm12, %v2956_v13  ;;  %13498 = vmatmul.mubr.msk.bf16.gmra.mrb[92].mxu0 %vm1827_vm12, %v13915_v11  ;;  %v3536_v10 = vsel %vm2417_vm10, %v3527_v8, %v3535_v5  ;;  %v13945_v11 = vld [vmem:[#allocation4 + $0xc] sm:$0xff]   ;;  %v3540_v13 = vrot.slane %v3538_v6, 1  ;;  %v4136_v8 = vshrl.u32 %v13966_v2, 16 }
 0x2f9   : > { %13525 = vmatprep.mubr.msk.bf16.mxu1 %vm14636_vm11, %v14635_v0  ;;  %13501 = vmatprep.mubr.msk.bf16.mxu0 %vm14636_vm11, %v14635_v0 }
 0x2fa   : > { %v3544_v20 = vor.u32 %v3543_v14, %v3540_v13  ;;  %v3934_v14 = vsel %vm3742_vm3, %v3931_v54, %v3933_v7 }
 0x300   : > { %13526 = vmatmul.mubr.msk.bf16.gmra.mrb[92].mxu1 %vm1827_vm12, %v2964_v21  ;;  %13502 = vmatmul.mubr.msk.bf16.gmra.mrb[96].mxu0 %vm1827_vm12, %v13919_v19  ;;  %v3744_v19 = vrot.slane %v13945_v11, 2  ;;  %v3547_v21 = vshrl.u32 %v13949_v16, 16  ;;  %v13968_v11 = vld [vmem:[%s17481_s5 + $0x110] sm:$0xff]   ;;  %v4138_v16 = vrot.slane %v4136_v8, 2 }
 0x301   : > { %13529 = vmatprep.mubr.msk.bf16.mxu1 %vm14636_vm11, %v14635_v0  ;;  %13541 = vmatprep.mubr.msk.bf16.mxu0 %vm14636_vm11, %v14635_v0 }
 0x302   : > { %v3549_v29 = vrot.slane %v3547_v21, 1 }
 0x304   : > { %v3553_v35 = vor.u32 %v3552_v30, %v3549_v29  ;;  %v13970_v29 = vld [vmem:[#allocation4 + $0x28] ss:$0 sps:$4 sm:$0xff]  }
 0x305   : > { %v13971_v30 = vld [vmem:[#allocation4 + $0x28] ss:$0 sps:$4 sm:$0xff]  }
 0x306   : > { %v3554_v33 = vsel %vm2417_vm10, %v3544_v20, %v3553_v35 }
 0x308   : > { %13530 = vmatmul.mubr.msk.bf16.gmra.mrb[96].mxu1 %vm1827_vm12, %v2967_v27  ;;  %13542 = vmatmul.mubr.msk.bf16.vlgmr.msra.gmra.mrb[100].mxu0 %vm1827_vm12, %v3148_v28  ;;  %v3545_v27 = vsel %vm2417_vm10, %v3535_v5, %v3544_v20  ;;  %v13948_v28 = vld [vmem:[#allocation4 + $0x14] sm:$0xff]   ;;  %v13972_v20 = vld [vmem:[%s17481_s5 + $0x118] sm:$0xff]  }
 0x309   : > { %13590 = vmatpush3.bf16.msra.mxu0 %v13924_v26  ;;  %13569 = vmatprep.mubr.msk.bf16.mxu1 %vm14636_vm11, %v14635_v0  ;;  %v3745_v26 = vsel %vm3742_vm3, %v3743_v23, %v3744_v19  ;;  %v3746_v34 = vrot.slane %v13948_v28, 2  ;;  %v13965_v5 = vld [vmem:[%s17481_s5 + $0x108] sm:$0xff]  }
 0x30a   : > { %13545 = vmatprep.mubr.msk.bf16.mxu0 %vm14636_vm11, %v14635_v0  ;;  %13591 = vmatprep.subr.bf16.mxu0 %v14635_v0 }
 0x30d   : > { %13592 = vmatpush3.bf16.msra.mxu0 %v13929_v41  ;;  %v13954_v41 = vld [vmem:[%s17481_s5 + $0xd8] sm:$0xff]  }
 0x30e   : > { %13593 = vmatprep.subr.bf16.mxu0 %v14635_v0 }
 0x310   : > { %13570 = vmatmul.mubr.msk.bf16.vlgmr.msra.gmra.mrb[100].mxu1 %vm1827_vm12, %v3335_v38  ;;  %13546 = vmatmul.mubr.msk.bf16.gmra.mrb[104].mxu0 %vm1827_vm12, %v3150_v39  ;;  %v13959_v38 = vld [vmem:[%s17481_s5 + $0xf0] sm:$0xff]   ;;  %v3747_v39 = vsel %vm3742_vm3, %v3744_v19, %v3746_v34 }
 0x311   : > { %13573 = vmatprep.mubr.msk.bf16.mxu1 %vm14636_vm11, %v14635_v0  ;;  %13549 = vmatprep.mubr.msk.bf16.mxu0 %vm14636_vm11, %v14635_v0  ;;  %v13969_v19 = vld [vmem:[#allocation4 + $0x20] sm:$0xff]  }
 0x312   : > { %13594 = vmatpush3.bf16.msra.mxu0 %v13932_v36  ;;  %13618 = vmatpush3.bf16.msra.mxu1 %v13937_v37  ;;  %v3556_v36 = vshrl.u32 %v13952_v31, 16  ;;  %v3559_v37 = vshll.u32 %v13952_v31, 16  ;;  %v4145_v23 = vshrl.u32 %v13969_v19, 16 }
 0x313   : > { %13595 = vmatprep.subr.bf16.mxu0 %v14635_v0  ;;  %13619 = vmatprep.subr.bf16.mxu1 %v14635_v0 }
 0x316   : > { %13596 = vmatpush3.bf16.msra.mxu0 %v13936_v40  ;;  %13620 = vmatpush3.bf16.msra.mxu1 %v13938_v42  ;;  %v3558_v40 = vrot.slane %v3556_v36, 1  ;;  %v3561_v42 = vrot.slane %v3559_v37, 2 }
 0x317   : > { %13621 = vmatprep.subr.bf16.mxu1 %v14635_v0  ;;  %13645 = vmatprep.subr.bf16.mxu0 %v14635_v0 }
 0x318   : > { %13574 = vmatmul.mubr.msk.bf16.gmra.mrb[104].mxu1 %vm1827_vm12, %v3337_v15  ;;  %13550 = vmatmul.mubr.msk.bf16.gmra.mrb[108].mxu0 %vm1827_vm12, %v3152_v46  ;;  %v3749_v15 = vsel %vm3742_vm3, %v3746_v34, %v3748_v44  ;;  %v4157_v34 = vshll.u32 %v13971_v30, 16 }
 0x319   : > { %13577 = vmatprep.mubr.msk.bf16.mxu1 %vm14636_vm11, %v14635_v0  ;;  %13553 = vmatprep.mubr.msk.bf16.mxu0 %vm14636_vm11, %v14635_v0 }
 0x31a   : > { %13622 = vmatpush3.bf16.msra.mxu1 %v13941_v45  ;;  %v3562_v45 = vor.u32 %v3561_v42, %v3558_v40  ;;  %v13973_v40 = vld [vmem:[#allocation4 + $0x8] sm:$0xf8]   ;;  %v4345_v42 = vrot.slane %v13974_v12, 3 }
 0x31b   : > { %13623 = vmatprep.subr.bf16.mxu1 %v14635_v0 }
 0x31c   : > { %v3563_v46 = vsel %vm2417_vm10, %v3553_v35, %v3562_v45 }
 0x31e   : > { %13624 = vmatpush3.bf16.msra.mxu1 %v13943_v49  ;;  %v3751_v49 = vsel %vm3742_vm3, %v3748_v44, %v3750_v48 }
 0x31f   : > { %13673 = vmatprep.subr.bf16.mxu1 %v14635_v0 }
 0x320   : > { %13578 = vmatmul.mubr.msk.bf16.gmra.mrb[108].mxu1 %vm1827_vm12, %v3339_v52  ;;  %13554 = vmatmul.mubr.msk.bf16.gmra.mrb[112].mxu0 %vm1827_vm12, %v3154_v53  ;;  %v13957_v52 = vld [vmem:[#allocation4 + $0x8] sm:$0xfc]  }
 0x321   : > { %13581 = vmatprep.mubr.msk.bf16.mxu1 %vm14636_vm11, %v14635_v0  ;;  %13557 = vmatprep.mubr.msk.bf16.mxu0 %vm14636_vm11, %v14635_v0  ;;  %v13962_v53 = vld [vmem:[#allocation4 + $0x8] sm:$0xfc]  }
 0x322   : > { %v4119_v59 = vshrl.u32 %v13962_v53, 16  ;;  %v4122_v60 = vshll.u32 %v13962_v53, 16 }
 0x324   : > { %v4121_v3 = vrot.slane %v4119_v59, 2  ;;  %v4124_v4 = vrot.slane %v4122_v60, 3 }
 0x328   : > { %13582 = vmatmul.mubr.msk.bf16.gmra.mrb[112].mxu1 %vm1827_vm12, %v3341_v62  ;;  %13558 = vmatmul.mubr.msk.bf16.gmra.mrb[116].mxu0 %vm1827_vm12, %v3153_v51  ;;  %v13963_v51 = vld [vmem:[#allocation4 + $0x10] sm:$0xff]  }
 0x329   : > { %13585 = vmatprep.mubr.msk.bf16.mxu1 %vm14636_vm11, %v14635_v0  ;;  %13597 = vmatprep.mubr.msk.bf16.mxu0 %vm14636_vm11, %v14635_v0  ;;  %v4127_v55 = vshrl.u32 %v13963_v51, 16  ;;  %v4130_v56 = vshll.u32 %v13963_v51, 16  ;;  %v4351_v51 = vrot.slane %v13977_v50, 3 }
 0x32b   : > { %v4129_v62 = vrot.slane %v4127_v55, 2  ;;  %v4132_v63 = vrot.slane %v4130_v56, 3 }
 0x32d   : > { %v4133_v6 = vor.u32 %v4132_v63, %v4129_v62 }
 0x330   : > { %13586 = vmatmul.mubr.msk.bf16.gmra.mrb[116].mxu1 %vm1827_vm12, %v3340_v57  ;;  %13598 = vmatmul.mubr.msk.bf16.vlgmr.msra.gmra.mrb[120].mxu0 %vm1827_vm12, %v3536_v10  ;;  %v3930_v57 = vrot.slane %v13957_v52, 2  ;;  %v4125_v10 = vor.u32 %v4124_v4, %v4121_v3 }
 0x331   : > { %13646 = vmatpush3.bf16.msra.mxu0 %v13942_v9  ;;  %13625 = vmatprep.mubr.msk.bf16.mxu1 %vm14636_vm11, %v14635_v0  ;;  %v4139_v9 = vshll.u32 %v13966_v2, 16 }
 0x332   : > { %13601 = vmatprep.mubr.msk.bf16.mxu0 %vm14636_vm11, %v14635_v0  ;;  %13647 = vmatprep.subr.bf16.mxu0 %v14635_v0  ;;  %v3932_v61 = vsel %vm3742_vm3, %v3930_v57, %v3931_v54  ;;  %v4134_v13 = vsel %vm4117_vm4, %v4125_v10, %v4133_v6 }
 0x333   : > { %v4141_v17 = vrot.slane %v4139_v9, 3 }
 0x335   : > { %13648 = vmatpush3.bf16.msra.mxu0 %v13947_v18  ;;  %v13967_v18 = vld [vmem:[#allocation4 + $0x20] sm:$0xff]   ;;  %v4142_v21 = vor.u32 %v4141_v17, %v4138_v16 }
 0x336   : > { %13649 = vmatprep.subr.bf16.mxu0 %v14635_v0  ;;  %v3935_v22 = vrot.slane %v13967_v18, 2 }
 0x338   : > { %13626 = vmatmul.mubr.msk.bf16.vlgmr.msra.gmra.mrb[120].mxu1 %vm1827_vm12, %v3745_v26  ;;  %13602 = vmatmul.mubr.msk.bf16.gmra.mrb[124].mxu0 %vm1827_vm12, %v3545_v27  ;;  %v3936_v26 = vsel %vm3742_vm3, %v3933_v7, %v3935_v22  ;;  %v4147_v27 = vrot.slane %v4145_v23, 2 }
 0x339   : > { %13629 = vmatprep.mubr.msk.bf16.mxu1 %vm14636_vm11, %v14635_v0  ;;  %13605 = vmatprep.mubr.msk.bf16.mxu0 %vm14636_vm11, %v14635_v0 }
 0x33a   : > { %13650 = vmatpush3.bf16.msra.mxu0 %v13950_v24  ;;  %13674 = vmatpush3.bf16.msra.mxu1 %v13955_v25  ;;  %v4148_v24 = vshll.u32 %v13969_v19, 16  ;;  %v4143_v25 = vsel %vm4117_vm4, %v4133_v6, %v4142_v21  ;;  %v13980_v6 = vld [vmem:[%s17483_s7 + $0x44] ss:$16 sps:$4 sm:$0xff]  }
 0x33b   : > { %13651 = vmatprep.subr.bf16.mxu0 %v14635_v0  ;;  %13675 = vmatprep.subr.bf16.mxu1 %v14635_v0 }
 0x33c   : > { %v4150_v28 = vrot.slane %v4148_v24, 3 }
 0x33e   : > { %13652 = vmatpush3.bf16.msra.mxu0 %v13954_v41  ;;  %13676 = vmatpush3.bf16.msra.mxu1 %v13956_v32  ;;  %v4151_v31 = vor.u32 %v4150_v28, %v4147_v27  ;;  %v3937_v41 = vrot.slane %v13970_v29, 2  ;;  %v4154_v32 = vshrl.u32 %v13971_v30, 16 }
 0x33f   : > { %13677 = vmatprep.subr.bf16.mxu1 %v14635_v0  ;;  %13701 = vmatprep.subr.bf16.mxu0 %v14635_v0 }
 0x340   : > { %13630 = vmatmul.mubr.msk.bf16.gmra.mrb[124].mxu1 %vm1827_vm12, %v3747_v39  ;;  %13606 = vmatmul.mubr.msk.bf16.gmra.mrb[128].mxu0 %vm1827_vm12, %v3554_v33  ;;  %v4152_v35 = vsel %vm4117_vm4, %v4142_v21, %v4151_v31  ;;  %v3938_v36 = vsel %vm3742_vm3, %v3935_v22, %v3937_v41  ;;  %v4156_v37 = vrot.slane %v4154_v32, 2 }
 0x341   : > { %13633 = vmatprep.mubr.msk.bf16.mxu1 %vm14636_vm11, %v14635_v0  ;;  %13609 = vmatprep.mubr.msk.bf16.mxu0 %vm14636_vm11, %v14635_v0 }
 0x342   : > { %13678 = vmatpush3.bf16.msra.mxu1 %v13959_v38  ;;  %v4159_v38 = vrot.slane %v4157_v34, 3 }
 0x343   : > { %13679 = vmatprep.subr.bf16.mxu1 %v14635_v0 }
 0x344   : > { %v4160_v39 = vor.u32 %v4159_v38, %v4156_v37 }
 0x346   : > { %13680 = vmatpush3.bf16.msra.mxu1 %v13961_v43  ;;  %v4161_v33 = vsel %vm4117_vm4, %v4151_v31, %v4160_v39  ;;  %v4344_v43 = vrot.slane %v13973_v40, 3 }
 0x347   : > { %4624 = vmatprep.subr.bf16.mxu1 %v13980_v6 }
 0x348   : > { %13634 = vmatmul.mubr.msk.bf16.gmra.mrb[128].mxu1 %vm1827_vm12, %v3749_v15  ;;  %13610 = vmatmul.mubr.msk.bf16.gmra.mrb[132].mxu0 %vm1827_vm12, %v3563_v46  ;;  %v4346_v44 = vsel %vm4343_vm5, %v4344_v43, %v4345_v42 }
 0x349   : > { %13637 = vmatprep.mubr.msk.bf16.mxu1 %vm14636_vm11, %v14635_v0  ;;  %13613 = vmatprep.mubr.msk.bf16.mxu0 %vm14636_vm11, %v14635_v0 }
 0x350   : > { %13638 = vmatmul.mubr.msk.bf16.gmra.mrb[132].mxu1 %vm1827_vm12, %v3751_v49  ;;  %13614 = vmatmul.mubr.msk.bf16.gmra.mrb[136].mxu0 %vm1827_vm12, %v3562_v45  ;;  %v13975_v45 = vld [vmem:[#allocation4 + $0x18] sm:$0xff]  }
 0x351   : > { %13641 = vmatprep.mubr.msk.bf16.mxu1 %vm14636_vm11, %v14635_v0  ;;  %13653 = vmatprep.mubr.msk.bf16.mxu0 %vm14636_vm11, %v14635_v0  ;;  %v4347_v15 = vrot.slane %v13975_v45, 3 }
 0x353   : > { %v4348_v46 = vsel %vm4343_vm5, %v4345_v42, %v4347_v15 }
 0x358   : > { %13642 = vmatmul.mubr.msk.bf16.gmra.mrb[136].mxu1 %vm1827_vm12, %v3750_v48  ;;  %13654 = vmatmul.mubr.msk.bf16.vlgmr.msra.gmra.mrb[140].mxu0 %vm1827_vm12, %v3932_v61  ;;  %v4349_v48 = vrot.slane %v13976_v47, 3 }
 0x359   : > { %13702 = vmatpush3.bf16.msra.mxu0 %v13960_v58  ;;  %13681 = vmatprep.mubr.msk.bf16.mxu1 %vm14636_vm11, %v14635_v0 }
 0x35a   : > { %13657 = vmatprep.mubr.msk.bf16.mxu0 %vm14636_vm11, %v14635_v0  ;;  %13703 = vmatprep.subr.bf16.mxu0 %v14635_v0  ;;  %v4350_v49 = vsel %vm4343_vm5, %v4347_v15, %v4349_v48  ;;  %v4352_v52 = vsel %vm4343_vm5, %v4349_v48, %v4351_v51 }
 0x35d   : > { %13704 = vmatpush3.bf16.msra.mxu0 %v13965_v5  ;;  %v13978_v5 = vld [vmem:[%s17483_s7 + $0x40] ss:$16 sps:$4 sm:$0xff]  }
 0x35e   : > { %13705 = vmatprep.subr.bf16.mxu0 %v14635_v0 }
 0x360   : > { %13682 = vmatmul.mubr.msk.bf16.vlgmr.msra.gmra.mrb[140].mxu1 %vm1827_vm12, %v4134_v13  ;;  %13658 = vmatmul.mubr.msk.bf16.gmra.mrb[144].mxu0 %vm1827_vm12, %v3934_v14 }
 0x361   : > { %13685 = vmatprep.mubr.msk.bf16.mxu1 %vm14636_vm11, %v14635_v0  ;;  %13661 = vmatprep.mubr.msk.bf16.mxu0 %vm14636_vm11, %v14635_v0 }
 0x362   : > { %13706 = vmatpush3.bf16.msra.mxu0 %v13968_v11  ;;  %4625 = vmatpush1.bf16.msra.mxu1 %v13978_v5 }
 0x363   : > { %13707 = vmatprep.subr.bf16.mxu0 %v14635_v0 }
 0x366   : > { %13708 = vmatpush3.bf16.msra.mxu0 %v13972_v20 }
 0x368   : > { %13686 = vmatmul.mubr.msk.bf16.gmra.mrb[144].mxu1 %vm1827_vm12, %v4143_v25  ;;  %13662 = vmatmul.mubr.msk.bf16.gmra.mrb[148].mxu0 %vm1827_vm12, %v3936_v26 }
 0x369   : > { %13689 = vmatprep.mubr.msk.bf16.mxu1 %vm14636_vm11, %v14635_v0  ;;  %13665 = vmatprep.mubr.msk.bf16.mxu0 %vm14636_vm11, %v14635_v0 }
 0x370   : > { %13690 = vmatmul.mubr.msk.bf16.gmra.mrb[148].mxu1 %vm1827_vm12, %v4152_v35  ;;  %13666 = vmatmul.mubr.msk.bf16.gmra.mrb[152].mxu0 %vm1827_vm12, %v3938_v36 }
 0x371   : > { %13693 = vmatprep.mubr.msk.bf16.mxu1 %vm14636_vm11, %v14635_v0  ;;  %13669 = vmatprep.mubr.msk.bf16.mxu0 %vm14636_vm11, %v14635_v0 }
 0x378   : > { %13694 = vmatmul.mubr.msk.bf16.gmra.mrb[152].mxu1 %vm1827_vm12, %v4161_v33  ;;  %13670 = vmatmul.mubr.msk.bf16.gmra.mrb[156].mxu0 %vm1827_vm12, %v3937_v41 }
 0x379   : > { %13697 = vmatprep.mubr.msk.bf16.mxu1 %vm14636_vm11, %v14635_v0  ;;  %13709 = vmatprep.mubr.msk.bf16.mxu0 %vm14636_vm11, %v14635_v0 }
 0x380   : > { %13698 = vmatmul.mubr.msk.bf16.gmra.mrb[156].mxu1 %vm1827_vm12, %v4160_v39  ;;  %13710 = vmatmul.mubr.msk.bf16.vlgmr.msra.gmra.mrb[160].mxu0 %vm1827_vm12, %v4346_v44 }
 0x381   : > { %13713 = vmatprep.mubr.msk.bf16.mxu0 %vm14636_vm11, %v14635_v0 }
 0x388   : > { %13714 = vmatmul.mubr.msk.bf16.gmra.mrb[164].mxu0 %vm1827_vm12, %v4348_v46 }
 0x389   : > { %13717 = vmatprep.mubr.msk.bf16.mxu0 %vm14636_vm11, %v14635_v0 }
 0x390   : > { %13718 = vmatmul.mubr.msk.bf16.gmra.mrb[168].mxu0 %vm1827_vm12, %v4350_v49 }
 0x391   : > { %13721 = vmatprep.mubr.msk.bf16.mxu0 %vm14636_vm11, %v14635_v0 }
 0x398   : > { %13722 = vmatmul.mubr.msk.bf16.gmra.mrb[172].mxu0 %vm1827_vm12, %v4352_v52  ;;  %v13983_v52 = vld [vmem:[%s17483_s7 + $0x64] ss:$16 sps:$4 sm:$0xff]  }
 0x399   : > { %13725 = vmatprep.mubr.msk.bf16.mxu0 %vm14636_vm11, %v14635_v0  ;;  %4626 = vmatprep.subr.bf16.mxu1 %v13983_v52 }
 0x3a0   : > { %13726 = vmatmul.mubr.msk.bf16.gmra.mrb[176].mxu0 %vm1827_vm12, %v4351_v51  ;;  %v13981_v51 = vld [vmem:[%s17483_s7 + $0x60] ss:$16 sps:$4 sm:$0xff]  }
 0x3a1   : > { %4627 = vmatpush1.bf16.msra.mxu1 %v13981_v51 }
 0x3b3   : > { %v2840_v53 = vpop.f32.mrb[80].mxu0 }
 0x3b4   : > { %2879 = vst.msk [vmem:[#allocation5] sm:$0xff] %vm2878_vm6, %v2840_v53  ;;  %v13487_v54 = vpop.f32.mrb[81].mxu0 }
 0x3b5   : > { %v2843_v55 = vpop.f32.mrb[82].mxu0 }
 0x3b6   : > { %2880 = vst.msk [vmem:[#allocation5 + $0x8] sm:$0xff] %vm2878_vm6, %v2843_v55  ;;  %v13488_v56 = vpop.f32.mrb[83].mxu0 }
 0x3bb   : > { %v3041_v57 = vpop.f32.mrb[80].mxu1  ;;  %v3079_v58 = vld [vmem:[#allocation5] sm:$0xff]  ;;  %v2848_v59 = vpop.f32.mrb[84].mxu0 }
 0x3bc   : > { %v3088_v60 = vadd.f32 %v3079_v58, %v3041_v57  ;;  %2881 = vst.msk [vmem:[#allocation5 + $0x10] sm:$0xff] %vm2878_vm6, %v2848_v59  ;;  %v13515_v61 = vpop.f32.mrb[81].mxu1  ;;  %v13491_v62 = vpop.f32.mrb[85].mxu0 }
 0x3bd   : > { %v3044_v0 = vpop.f32.mrb[82].mxu1  ;;  %v3080_v63 = vld [vmem:[#allocation5 + $0x8] sm:$0xff]  ;;  %v2851_v1 = vpop.f32.mrb[86].mxu0 }
 0x3be   : > { %3097 = vst.msk [vmem:[#allocation5] sm:$0xff] %vm2878_vm6, %v3088_v60  ;;  %v3089_v2 = vadd.f32 %v3080_v63, %v3044_v0  ;;  %2882 = vst.msk [vmem:[#allocation5 + $0x18] sm:$0xff] %vm2878_vm6, %v2851_v1  ;;  %v13516_v3 = vpop.f32.mrb[83].mxu1  ;;  %v13492_v4 = vpop.f32.mrb[87].mxu0 }
 0x3c0   : > { %3098 = vst.msk [vmem:[#allocation5 + $0x8] sm:$0xff] %vm2878_vm6, %v3089_v2 }
 0x3c3   : > { %v3049_v7 = vpop.f32.mrb[84].mxu1  ;;  %v3081_v8 = vld [vmem:[#allocation5 + $0x10] sm:$0xff]  ;;  %v2856_v9 = vpop.f32.mrb[88].mxu0 }
 0x3c4   : > { %v3090_v10 = vadd.f32 %v3081_v8, %v3049_v7  ;;  %2883 = vst.msk [vmem:[#allocation5 + $0x20] sm:$0xff] %vm2878_vm6, %v2856_v9  ;;  %v13519_v11 = vpop.f32.mrb[85].mxu1  ;;  %v13495_v13 = vpop.f32.mrb[89].mxu0 }
 0x3c5   : > { %v3052_v14 = vpop.f32.mrb[86].mxu1  ;;  %v3082_v16 = vld [vmem:[#allocation5 + $0x18] sm:$0xff]  ;;  %v2859_v17 = vpop.f32.mrb[90].mxu0  ;;  %v3266_v46 = vld [vmem:[#allocation5] sm:$0xff] }
 0x3c6   : > { %3099 = vst.msk [vmem:[#allocation5 + $0x10] sm:$0xff] %vm2878_vm6, %v3090_v10  ;;  %v3091_v18 = vadd.f32 %v3082_v16, %v3052_v14  ;;  %2884 = vst.msk [vmem:[#allocation5 + $0x28] sm:$0xff] %vm2878_vm6, %v2859_v17  ;;  %v13520_v19 = vpop.f32.mrb[87].mxu1  ;;  %v13496_v20 = vpop.f32.mrb[91].mxu0 }
 0x3c7   : > { %v3267_v55 = vld [vmem:[#allocation5 + $0x8] sm:$0xff] }
 0x3c8   : > { %3100 = vst.msk [vmem:[#allocation5 + $0x18] sm:$0xff] %vm2878_vm6, %v3091_v18 }
 0x3cb   : > { %v3057_v21 = vpop.f32.mrb[88].mxu1  ;;  %v3083_v22 = vld [vmem:[#allocation5 + $0x20] sm:$0xff]  ;;  %v2864_v23 = vpop.f32.mrb[92].mxu0 }
 0x3cc   : > { %v3092_v24 = vadd.f32 %v3083_v22, %v3057_v21  ;;  %2885 = vst.msk [vmem:[#allocation5 + $0x30] sm:$0xff] %vm2878_vm6, %v2864_v23  ;;  %v13523_v25 = vpop.f32.mrb[89].mxu1  ;;  %v13499_v26 = vpop.f32.mrb[93].mxu0 }
 0x3cd   : > { %v3060_v27 = vpop.f32.mrb[90].mxu1  ;;  %v3084_v28 = vld [vmem:[#allocation5 + $0x28] sm:$0xff]  ;;  %v2867_v29 = vpop.f32.mrb[94].mxu0  ;;  %v3268_v61 = vld [vmem:[#allocation5 + $0x10] sm:$0xff] }
 0x3ce   : > { %3101 = vst.msk [vmem:[#allocation5 + $0x20] sm:$0xff] %vm2878_vm6, %v3092_v24  ;;  %v3093_v30 = vadd.f32 %v3084_v28, %v3060_v27  ;;  %2886 = vst.msk [vmem:[#allocation5 + $0x38] sm:$0xff] %vm2878_vm6, %v2867_v29  ;;  %v13524_v31 = vpop.f32.mrb[91].mxu1  ;;  %v13500_v41 = vpop.f32.mrb[95].mxu0  ;;  %v13985_v28 = vld [vmem:[%s17483_s7 + $0x88] ss:$16 sps:$4 sm:$0xff]  }
 0x3cf   : > { %v3269_v4 = vld [vmem:[#allocation5 + $0x18] sm:$0xff] }
 0x3d0   : > { %3102 = vst.msk [vmem:[#allocation5 + $0x28] sm:$0xff] %vm2878_vm6, %v3093_v30  ;;  %v13987_v30 = vld [vmem:[%s17483_s7 + $0x8c] ss:$16 sps:$4 sm:$0xff]  }
 0x3d1   : > { %4928 = vmatprep.subr.bf16.mxu0 %v13987_v30 }
 0x3d2   : > { %4929 = vmatpush1.bf16.msra.mxu0 %v13985_v28 }
 0x3d3   : > { %v3065_v32 = vpop.f32.mrb[92].mxu1  ;;  %v3085_v34 = vld [vmem:[#allocation5 + $0x30] sm:$0xff]  ;;  %v2872_v35 = vpop.f32.mrb[96].mxu0 }
 0x3d4   : > { %v3094_v36 = vadd.f32 %v3085_v34, %v3065_v32  ;;  %2888 = vst.msk [vmem:[#allocation5 + $0x40] sm:$0x7] %vm2887_vm7, %v2872_v35  ;;  %v13527_v37 = vpop.f32.mrb[93].mxu1  ;;  %v13503_v38 = vpop.f32.mrb[97].mxu0 }
 0x3d5   : > { %v3068_v39 = vpop.f32.mrb[94].mxu1  ;;  %v3086_v33 = vld [vmem:[#allocation5 + $0x38] sm:$0xff]  ;;  %v2875_v12 = vpop.f32.mrb[98].mxu0  ;;  %v3270_v14 = vld [vmem:[#allocation5 + $0x20] sm:$0xff] }
 0x3d6   : > { %3103 = vst.msk [vmem:[#allocation5 + $0x30] sm:$0xff] %vm2878_vm6, %v3094_v36  ;;  %v3095_v40 = vadd.f32 %v3086_v33, %v3068_v39  ;;  %v13528_v42 = vpop.f32.mrb[95].mxu1  ;;  %v13504_v43 = vpop.f32.mrb[99].mxu0 }
 0x3d7   : > { %v3271_v22 = vld [vmem:[#allocation5 + $0x28] sm:$0xff] }
 0x3d8   : > { %3104 = vst.msk [vmem:[#allocation5 + $0x38] sm:$0xff] %vm2878_vm6, %v3095_v40 }
 0x3db   : > { %v3073_v44 = vpop.f32.mrb[96].mxu1  ;;  %v3087_v45 = vld [vmem:[#allocation5 + $0x40] sm:$0x7]  ;;  %v3228_v15 = vpop.f32.mrb[100].mxu0 }
 0x3dc   : > { %v3096_v47 = vadd.f32 %v3087_v45, %v3073_v44  ;;  %v13531_v48 = vpop.f32.mrb[97].mxu1  ;;  %v3275_v49 = vadd.f32 %v3266_v46, %v3228_v15  ;;  %v13543_v50 = vpop.f32.mrb[101].mxu0  ;;  %v13990_v44 = vld [vmem:[%s17483_s7 + $0xa8] ss:$16 sps:$4 sm:$0xff]   ;;  %v13992_v45 = vld [vmem:[%s17483_s7 + $0xac] ss:$16 sps:$4 sm:$0xff]  }
 0x3dd   : > { %v3076_v53 = vpop.f32.mrb[98].mxu1  ;;  %v3231_v54 = vpop.f32.mrb[102].mxu0  ;;  %v3272_v32 = vld [vmem:[#allocation5 + $0x30] sm:$0xff]  ;;  %4930 = vmatprep.subr.bf16.mxu0 %v13992_v45  ;;  %v14637_v48 = vmov 0  }
 0x3de   : > { %3105 = vst.msk [vmem:[#allocation5 + $0x40] sm:$0x7] %vm2887_vm7, %v3096_v47  ;;  %v13532_v56 = vpop.f32.mrb[99].mxu1  ;;  %v3276_v57 = vadd.f32 %v3267_v55, %v3231_v54  ;;  %v13544_v58 = vpop.f32.mrb[103].mxu0  ;;  %4931 = vmatpush1.bf16.msra.mxu0 %v13990_v44  ;;  %v13999_v47 = vld [vmem:[%s17483_s7 + $0x4c] ss:$16 sps:$4 sm:$0xff]   ;;  %4656 = vmatprep.mubr.bf16.mxu1 %v14637_v48 }
 0x3df   : > { %3284 = vst.msk [vmem:[#allocation5] sm:$0xff] %vm2878_vm6, %v3275_v49  ;;  %v3273_v33 = vld [vmem:[#allocation5 + $0x38] sm:$0xff]  ;;  %4960 = vmatprep.mubr.bf16.mxu0 %v14637_v48  ;;  %4665 = vmatprep.subr.bf16.mxu1 %v13999_v47 }
 0x3e0   : > { %3285 = vst.msk [vmem:[#allocation5 + $0x8] sm:$0xff] %vm2878_vm6, %v3276_v57  ;;  %v14003_v49 = vld [vmem:[%s17483_s7 + $0xcc] ss:$16 sps:$4 sm:$0xff]  }
 0x3e1   : > { %5069 = vmatprep.subr.bf16.mxu0 %v14003_v49 }
 0x3e3   : > { %v3415_v59 = vpop.f32.mrb[100].mxu1  ;;  %v3236_v60 = vpop.f32.mrb[104].mxu0 }
 0x3e4   : > { %v3277_v62 = vadd.f32 %v3268_v61, %v3236_v60  ;;  %v13571_v0 = vpop.f32.mrb[101].mxu1  ;;  %v13547_v63 = vpop.f32.mrb[105].mxu0 }
 0x3e5   : > { %v3418_v2 = vpop.f32.mrb[102].mxu1  ;;  %v3239_v3 = vpop.f32.mrb[106].mxu0  ;;  %v3274_v52 = vld [vmem:[#allocation5 + $0x40] sm:$0x7] }
 0x3e6   : > { %v3453_v1 = vld [vmem:[#allocation5] sm:$0xff]  ;;  %3286 = vst.msk [vmem:[#allocation5 + $0x10] sm:$0xff] %vm2878_vm6, %v3277_v62  ;;  %v3278_v6 = vadd.f32 %v3269_v4, %v3239_v3  ;;  %v13572_v7 = vpop.f32.mrb[103].mxu1  ;;  %v13548_v8 = vpop.f32.mrb[107].mxu0 }
 0x3e7   : > { %v3462_v5 = vadd.f32 %v3453_v1, %v3415_v59  ;;  %v3454_v9 = vld [vmem:[#allocation5 + $0x8] sm:$0xff] }
 0x3e8   : > { %v3463_v10 = vadd.f32 %v3454_v9, %v3418_v2  ;;  %3287 = vst.msk [vmem:[#allocation5 + $0x18] sm:$0xff] %vm2878_vm6, %v3278_v6 }
 0x3e9   : > { %3471 = vst.msk [vmem:[#allocation5] sm:$0xff] %vm2878_vm6, %v3462_v5 }
 0x3ea   : > { %3472 = vst.msk [vmem:[#allocation5 + $0x8] sm:$0xff] %vm2878_vm6, %v3463_v10 }
 0x3eb   : > { %v3423_v11 = vpop.f32.mrb[104].mxu1  ;;  %v3244_v13 = vpop.f32.mrb[108].mxu0 }
 0x3ec   : > { %v3279_v16 = vadd.f32 %v3270_v14, %v3244_v13  ;;  %v13575_v17 = vpop.f32.mrb[105].mxu1  ;;  %v13551_v18 = vpop.f32.mrb[109].mxu0 }
 0x3ed   : > { %v3455_v19 = vld [vmem:[#allocation5 + $0x10] sm:$0xff]  ;;  %v3426_v20 = vpop.f32.mrb[106].mxu1  ;;  %v3247_v21 = vpop.f32.mrb[110].mxu0 }
 0x3ee   : > { %v3464_v23 = vadd.f32 %v3455_v19, %v3423_v11  ;;  %3288 = vst.msk [vmem:[#allocation5 + $0x20] sm:$0xff] %vm2878_vm6, %v3279_v16  ;;  %v3280_v24 = vadd.f32 %v3271_v22, %v3247_v21  ;;  %v13576_v25 = vpop.f32.mrb[107].mxu1  ;;  %v13552_v26 = vpop.f32.mrb[111].mxu0 }
 0x3ef   : > { %v3456_v27 = vld [vmem:[#allocation5 + $0x18] sm:$0xff] }
 0x3f0   : > { %3473 = vst.msk [vmem:[#allocation5 + $0x10] sm:$0xff] %vm2878_vm6, %v3464_v23  ;;  %v3465_v29 = vadd.f32 %v3456_v27, %v3426_v20  ;;  %3289 = vst.msk [vmem:[#allocation5 + $0x28] sm:$0xff] %vm2878_vm6, %v3280_v24  ;;  %v3675_v2 = vld [vmem:[#allocation5] sm:$0xff] }
 0x3f1   : > { %v3676_v9 = vld [vmem:[#allocation5 + $0x8] sm:$0xff] }
 0x3f2   : > { %3474 = vst.msk [vmem:[#allocation5 + $0x18] sm:$0xff] %vm2878_vm6, %v3465_v29 }
 0x3f3   : > { %v3431_v31 = vpop.f32.mrb[108].mxu1  ;;  %v3252_v41 = vpop.f32.mrb[112].mxu0 }
 0x3f4   : > { %v3281_v34 = vadd.f32 %v3272_v32, %v3252_v41  ;;  %v13579_v35 = vpop.f32.mrb[109].mxu1  ;;  %v13555_v36 = vpop.f32.mrb[113].mxu0 }
 0x3f5   : > { %v3457_v37 = vld [vmem:[#allocation5 + $0x20] sm:$0xff]  ;;  %v3434_v38 = vpop.f32.mrb[110].mxu1  ;;  %v3255_v39 = vpop.f32.mrb[114].mxu0 }
 0x3f6   : > { %v3466_v12 = vadd.f32 %v3457_v37, %v3431_v31  ;;  %3290 = vst.msk [vmem:[#allocation5 + $0x30] sm:$0xff] %vm2878_vm6, %v3281_v34  ;;  %v3282_v40 = vadd.f32 %v3273_v33, %v3255_v39  ;;  %v13580_v42 = vpop.f32.mrb[111].mxu1  ;;  %v13556_v43 = vpop.f32.mrb[115].mxu0 }
 0x3f7   : > { %v3458_v15 = vld [vmem:[#allocation5 + $0x28] sm:$0xff]  ;;  %v3677_v18 = vld [vmem:[#allocation5 + $0x10] sm:$0xff] }
 0x3f8   : > { %3475 = vst.msk [vmem:[#allocation5 + $0x20] sm:$0xff] %vm2878_vm6, %v3466_v12  ;;  %v3467_v46 = vadd.f32 %v3458_v15, %v3434_v38  ;;  %3291 = vst.msk [vmem:[#allocation5 + $0x38] sm:$0xff] %vm2878_vm6, %v3282_v40 }
 0x3f9   : > { %v3678_v25 = vld [vmem:[#allocation5 + $0x18] sm:$0xff] }
 0x3fa   : > { %3476 = vst.msk [vmem:[#allocation5 + $0x28] sm:$0xff] %vm2878_vm6, %v3467_v46 }
 0x3fb   : > { %v3439_v50 = vpop.f32.mrb[112].mxu1  ;;  %v3260_v51 = vpop.f32.mrb[116].mxu0 }
 0x3fc   : > { %v3283_v53 = vadd.f32 %v3274_v52, %v3260_v51  ;;  %v13583_v54 = vpop.f32.mrb[113].mxu1  ;;  %v13559_v55 = vpop.f32.mrb[117].mxu0 }
 0x3fd   : > { %v3459_v56 = vld [vmem:[#allocation5 + $0x30] sm:$0xff]  ;;  %v3442_v57 = vpop.f32.mrb[114].mxu1  ;;  %v3263_v58 = vpop.f32.mrb[118].mxu0 }
 0x3fe   : > { %v3468_v59 = vadd.f32 %v3459_v56, %v3439_v50  ;;  %3292 = vst.msk [vmem:[#allocation5 + $0x40] sm:$0x7] %vm2887_vm7, %v3283_v53  ;;  %v13584_v60 = vpop.f32.mrb[115].mxu1  ;;  %v13560_v61 = vpop.f32.mrb[119].mxu0 }
 0x3ff   : > { %v3460_v62 = vld [vmem:[#allocation5 + $0x38] sm:$0xff]  ;;  %v3679_v34 = vld [vmem:[#allocation5 + $0x20] sm:$0xff] }
 0x400   : > { %3477 = vst.msk [vmem:[#allocation5 + $0x30] sm:$0xff] %vm2878_vm6, %v3468_v59  ;;  %v3469_v0 = vadd.f32 %v3460_v62, %v3442_v57 }
 0x401   : > { %v3680_v12 = vld [vmem:[#allocation5 + $0x28] sm:$0xff] }
 0x402   : > { %3478 = vst.msk [vmem:[#allocation5 + $0x38] sm:$0xff] %vm2878_vm6, %v3469_v0 }
 0x403   : > { %v3447_v63 = vpop.f32.mrb[116].mxu1  ;;  %v3637_v1 = vpop.f32.mrb[120].mxu0 }
 0x404   : > { %v13587_v3 = vpop.f32.mrb[117].mxu1  ;;  %v3684_v4 = vadd.f32 %v3675_v2, %v3637_v1  ;;  %v13599_v5 = vpop.f32.mrb[121].mxu0 }
 0x405   : > { %v3461_v6 = vld [vmem:[#allocation5 + $0x40] sm:$0x7]  ;;  %v3450_v7 = vpop.f32.mrb[118].mxu1  ;;  %v3640_v8 = vpop.f32.mrb[122].mxu0 }
 0x406   : > { %v3470_v10 = vadd.f32 %v3461_v6, %v3447_v63  ;;  %3693 = vst.msk [vmem:[#allocation5] sm:$0xff] %vm2878_vm6, %v3684_v4  ;;  %v13588_v11 = vpop.f32.mrb[119].mxu1  ;;  %v3685_v13 = vadd.f32 %v3676_v9, %v3640_v8  ;;  %v13600_v14 = vpop.f32.mrb[123].mxu0 }
 0x407   : > { %v3681_v49 = vld [vmem:[#allocation5 + $0x30] sm:$0xff] }
 0x408   : > { %3479 = vst.msk [vmem:[#allocation5 + $0x40] sm:$0x7] %vm2887_vm7, %v3470_v10 }
 0x409   : > { %3694 = vst.msk [vmem:[#allocation5 + $0x8] sm:$0xff] %vm2878_vm6, %v3685_v13  ;;  %v3682_v56 = vld [vmem:[#allocation5 + $0x38] sm:$0xff] }
 0x40b   : > { %v3825_v16 = vpop.f32.mrb[120].mxu1  ;;  %v3645_v17 = vpop.f32.mrb[124].mxu0 }
 0x40c   : > { %v3686_v19 = vadd.f32 %v3677_v18, %v3645_v17  ;;  %v13627_v20 = vpop.f32.mrb[121].mxu1  ;;  %v13603_v21 = vpop.f32.mrb[125].mxu0 }
 0x40d   : > { %v3863_v22 = vld [vmem:[#allocation5] sm:$0xff]  ;;  %v3828_v23 = vpop.f32.mrb[122].mxu1  ;;  %v3648_v24 = vpop.f32.mrb[126].mxu0 }
 0x40e   : > { %v3872_v26 = vadd.f32 %v3863_v22, %v3825_v16  ;;  %3695 = vst.msk [vmem:[#allocation5 + $0x10] sm:$0xff] %vm2878_vm6, %v3686_v19  ;;  %v3687_v27 = vadd.f32 %v3678_v25, %v3648_v24  ;;  %v13628_v28 = vpop.f32.mrb[123].mxu1  ;;  %v13604_v29 = vpop.f32.mrb[127].mxu0 }
 0x40f   : > { %v3683_v1 = vld [vmem:[#allocation5 + $0x40] sm:$0x7] }
 0x410   : > { %v3864_v30 = vld [vmem:[#allocation5 + $0x8] sm:$0xff]  ;;  %3881 = vst.msk [vmem:[#allocation5] sm:$0xff] %vm2878_vm6, %v3872_v26  ;;  %3696 = vst.msk [vmem:[#allocation5 + $0x18] sm:$0xff] %vm2878_vm6, %v3687_v27 }
 0x411   : > { %v3873_v31 = vadd.f32 %v3864_v30, %v3828_v23 }
 0x413   : > { %3882 = vst.msk [vmem:[#allocation5 + $0x8] sm:$0xff] %vm2878_vm6, %v3873_v31  ;;  %v3833_v41 = vpop.f32.mrb[124].mxu1  ;;  %v3653_v32 = vpop.f32.mrb[128].mxu0 }
 0x414   : > { %v3688_v35 = vadd.f32 %v3679_v34, %v3653_v32  ;;  %v13631_v36 = vpop.f32.mrb[125].mxu1  ;;  %v13607_v37 = vpop.f32.mrb[129].mxu0 }
 0x415   : > { %v3865_v38 = vld [vmem:[#allocation5 + $0x10] sm:$0xff]  ;;  %v3836_v39 = vpop.f32.mrb[126].mxu1  ;;  %v3656_v33 = vpop.f32.mrb[130].mxu0 }
 0x416   : > { %v3874_v40 = vadd.f32 %v3865_v38, %v3833_v41  ;;  %3697 = vst.msk [vmem:[#allocation5 + $0x20] sm:$0xff] %vm2878_vm6, %v3688_v35  ;;  %v3689_v42 = vadd.f32 %v3680_v12, %v3656_v33  ;;  %v13632_v43 = vpop.f32.mrb[127].mxu1  ;;  %v13608_v44 = vpop.f32.mrb[131].mxu0 }
 0x417   : > { %v3866_v45 = vld [vmem:[#allocation5 + $0x18] sm:$0xff]  ;;  %v4050_v17 = vld [vmem:[#allocation5] sm:$0xff] }
 0x418   : > { %3883 = vst.msk [vmem:[#allocation5 + $0x10] sm:$0xff] %vm2878_vm6, %v3874_v40  ;;  %v3875_v15 = vadd.f32 %v3866_v45, %v3836_v39  ;;  %3698 = vst.msk [vmem:[#allocation5 + $0x28] sm:$0xff] %vm2878_vm6, %v3689_v42 }
 0x41a   : > { %3884 = vst.msk [vmem:[#allocation5 + $0x18] sm:$0xff] %vm2878_vm6, %v3875_v15  ;;  %v4051_v24 = vld [vmem:[#allocation5 + $0x8] sm:$0xff] }
 0x41b   : > { %v3841_v46 = vpop.f32.mrb[128].mxu1  ;;  %v3661_v47 = vpop.f32.mrb[132].mxu0 }
 0x41c   : > { %v3690_v50 = vadd.f32 %v3681_v49, %v3661_v47  ;;  %v13635_v51 = vpop.f32.mrb[129].mxu1  ;;  %v13611_v52 = vpop.f32.mrb[133].mxu0 }
 0x41d   : > { %v3867_v53 = vld [vmem:[#allocation5 + $0x20] sm:$0xff]  ;;  %v3844_v54 = vpop.f32.mrb[130].mxu1  ;;  %v3664_v55 = vpop.f32.mrb[134].mxu0 }
 0x41e   : > { %v3876_v57 = vadd.f32 %v3867_v53, %v3841_v46  ;;  %3699 = vst.msk [vmem:[#allocation5 + $0x30] sm:$0xff] %vm2878_vm6, %v3690_v50  ;;  %v3691_v58 = vadd.f32 %v3682_v56, %v3664_v55  ;;  %v13636_v59 = vpop.f32.mrb[131].mxu1  ;;  %v13612_v60 = vpop.f32.mrb[135].mxu0 }
 0x41f   : > { %v3868_v61 = vld [vmem:[#allocation5 + $0x28] sm:$0xff]  ;;  %v4052_v31 = vld [vmem:[#allocation5 + $0x10] sm:$0xff] }
 0x420   : > { %3885 = vst.msk [vmem:[#allocation5 + $0x20] sm:$0xff] %vm2878_vm6, %v3876_v57  ;;  %v3877_v62 = vadd.f32 %v3868_v61, %v3844_v54  ;;  %3700 = vst.msk [vmem:[#allocation5 + $0x38] sm:$0xff] %vm2878_vm6, %v3691_v58 }
 0x421   : > { %v4053_v38 = vld [vmem:[#allocation5 + $0x18] sm:$0xff] }
 0x422   : > { %3886 = vst.msk [vmem:[#allocation5 + $0x28] sm:$0xff] %vm2878_vm6, %v3877_v62 }
 0x423   : > { %v3849_v0 = vpop.f32.mrb[132].mxu1  ;;  %v3669_v63 = vpop.f32.mrb[136].mxu0 }
 0x424   : > { %v3692_v2 = vadd.f32 %v3683_v1, %v3669_v63  ;;  %v13639_v3 = vpop.f32.mrb[133].mxu1  ;;  %v13615_v4 = vpop.f32.mrb[137].mxu0 }
 0x425   : > { %v3869_v5 = vld [vmem:[#allocation5 + $0x30] sm:$0xff]  ;;  %v3852_v6 = vpop.f32.mrb[134].mxu1  ;;  %v3672_v7 = vpop.f32.mrb[138].mxu0 }
 0x426   : > { %v3878_v8 = vadd.f32 %v3869_v5, %v3849_v0  ;;  %3701 = vst.msk [vmem:[#allocation5 + $0x40] sm:$0x7] %vm2887_vm7, %v3692_v2  ;;  %v13640_v9 = vpop.f32.mrb[135].mxu1  ;;  %v13616_v10 = vpop.f32.mrb[139].mxu0 }
 0x427   : > { %v3870_v11 = vld [vmem:[#allocation5 + $0x38] sm:$0xff]  ;;  %v4054_v15 = vld [vmem:[#allocation5 + $0x20] sm:$0xff] }
 0x428   : > { %3887 = vst.msk [vmem:[#allocation5 + $0x30] sm:$0xff] %vm2878_vm6, %v3878_v8  ;;  %v3879_v13 = vadd.f32 %v3870_v11, %v3852_v6 }
 0x429   : > { %v4055_v53 = vld [vmem:[#allocation5 + $0x28] sm:$0xff] }
 0x42a   : > { %3888 = vst.msk [vmem:[#allocation5 + $0x38] sm:$0xff] %vm2878_vm6, %v3879_v13 }
 0x42b   : > { %v3857_v14 = vpop.f32.mrb[136].mxu1  ;;  %v4012_v16 = vpop.f32.mrb[140].mxu0 }
 0x42c   : > { %v13643_v18 = vpop.f32.mrb[137].mxu1  ;;  %v4059_v19 = vadd.f32 %v4050_v17, %v4012_v16  ;;  %v13655_v20 = vpop.f32.mrb[141].mxu0 }
 0x42d   : > { %v3871_v21 = vld [vmem:[#allocation5 + $0x40] sm:$0x7]  ;;  %v3860_v22 = vpop.f32.mrb[138].mxu1  ;;  %v4015_v23 = vpop.f32.mrb[142].mxu0 }
 0x42e   : > { %v3880_v25 = vadd.f32 %v3871_v21, %v3857_v14  ;;  %4068 = vst.msk [vmem:[#allocation5] sm:$0xff] %vm2878_vm6, %v4059_v19  ;;  %v13644_v26 = vpop.f32.mrb[139].mxu1  ;;  %v4060_v27 = vadd.f32 %v4051_v24, %v4015_v23  ;;  %v13656_v28 = vpop.f32.mrb[143].mxu0 }
 0x42f   : > { %v4056_v62 = vld [vmem:[#allocation5 + $0x30] sm:$0xff] }
 0x430   : > { %3889 = vst.msk [vmem:[#allocation5 + $0x40] sm:$0x7] %vm2887_vm7, %v3880_v25 }
 0x431   : > { %4069 = vst.msk [vmem:[#allocation5 + $0x8] sm:$0xff] %vm2878_vm6, %v4060_v27  ;;  %v4057_v5 = vld [vmem:[#allocation5 + $0x38] sm:$0xff] }
 0x433   : > { %v4235_v29 = vpop.f32.mrb[140].mxu1  ;;  %v4020_v30 = vpop.f32.mrb[144].mxu0 }
 0x434   : > { %v4061_v41 = vadd.f32 %v4052_v31, %v4020_v30  ;;  %v13683_v32 = vpop.f32.mrb[141].mxu1  ;;  %v13659_v34 = vpop.f32.mrb[145].mxu0  ;;  %v15669_v31 = vld [vmem:[%s17482_s6] ss:$0 sm:$0xff] }
 0x435   : > { %v4273_v35 = vld [vmem:[#allocation5] sm:$0xff]  ;;  %v4238_v36 = vpop.f32.mrb[142].mxu1  ;;  %v4023_v37 = vpop.f32.mrb[146].mxu0 }
 0x436   : > { %v4282_v39 = vadd.f32 %v4273_v35, %v4235_v29  ;;  %4070 = vst.msk [vmem:[#allocation5 + $0x10] sm:$0xff] %vm2878_vm6, %v4061_v41  ;;  %v4062_v33 = vadd.f32 %v4053_v38, %v4023_v37  ;;  %v13684_v12 = vpop.f32.mrb[143].mxu1  ;;  %v13660_v40 = vpop.f32.mrb[147].mxu0 }
 0x437   : > { %v4058_v16 = vld [vmem:[#allocation5 + $0x40] sm:$0x7] }
 0x438   : > { %v4274_v42 = vld [vmem:[#allocation5 + $0x8] sm:$0xff]  ;;  %4291 = vst.msk [vmem:[#allocation5] sm:$0xff] %vm2878_vm6, %v4282_v39  ;;  %4071 = vst.msk [vmem:[#allocation5 + $0x18] sm:$0xff] %vm2878_vm6, %v4062_v33 }
 0x439   : > { %v4283_v43 = vadd.f32 %v4274_v42, %v4238_v36 }
 0x43b   : > { %4292 = vst.msk [vmem:[#allocation5 + $0x8] sm:$0xff] %vm2878_vm6, %v4283_v43  ;;  %v4243_v44 = vpop.f32.mrb[144].mxu1  ;;  %v4028_v45 = vpop.f32.mrb[148].mxu0 }
 0x43c   : > { %v4063_v46 = vadd.f32 %v4054_v15, %v4028_v45  ;;  %v13687_v47 = vpop.f32.mrb[145].mxu1  ;;  %v13663_v49 = vpop.f32.mrb[149].mxu0 }
 0x43d   : > { %v4275_v50 = vld [vmem:[#allocation5 + $0x10] sm:$0xff]  ;;  %v4246_v51 = vpop.f32.mrb[146].mxu1  ;;  %v4031_v52 = vpop.f32.mrb[150].mxu0 }
 0x43e   : > { %v4284_v54 = vadd.f32 %v4275_v50, %v4243_v44  ;;  %4072 = vst.msk [vmem:[#allocation5 + $0x20] sm:$0xff] %vm2878_vm6, %v4063_v46  ;;  %v4064_v55 = vadd.f32 %v4055_v53, %v4031_v52  ;;  %v13688_v56 = vpop.f32.mrb[147].mxu1  ;;  %v13664_v57 = vpop.f32.mrb[151].mxu0 }
 0x43f   : > { %v4276_v58 = vld [vmem:[#allocation5 + $0x18] sm:$0xff]  ;;  %v4464_v30 = vld [vmem:[#allocation5] sm:$0xff] }
 0x440   : > { %4293 = vst.msk [vmem:[#allocation5 + $0x10] sm:$0xff] %vm2878_vm6, %v4284_v54  ;;  %v4285_v59 = vadd.f32 %v4276_v58, %v4246_v51  ;;  %4073 = vst.msk [vmem:[#allocation5 + $0x28] sm:$0xff] %vm2878_vm6, %v4064_v55 }
 0x442   : > { %4294 = vst.msk [vmem:[#allocation5 + $0x18] sm:$0xff] %vm2878_vm6, %v4285_v59  ;;  %v4465_v38 = vld [vmem:[#allocation5 + $0x8] sm:$0xff] }
 0x443   : > { %v4251_v60 = vpop.f32.mrb[148].mxu1  ;;  %v4036_v61 = vpop.f32.mrb[152].mxu0 }
 0x444   : > { %v4065_v0 = vadd.f32 %v4056_v62, %v4036_v61  ;;  %v13691_v63 = vpop.f32.mrb[149].mxu1  ;;  %v13667_v1 = vpop.f32.mrb[153].mxu0 }
 0x445   : > { %v4277_v2 = vld [vmem:[#allocation5 + $0x20] sm:$0xff]  ;;  %v4254_v3 = vpop.f32.mrb[150].mxu1  ;;  %v4039_v4 = vpop.f32.mrb[154].mxu0 }
 0x446   : > { %v4286_v6 = vadd.f32 %v4277_v2, %v4251_v60  ;;  %4074 = vst.msk [vmem:[#allocation5 + $0x30] sm:$0xff] %vm2878_vm6, %v4065_v0  ;;  %v4066_v7 = vadd.f32 %v4057_v5, %v4039_v4  ;;  %v13692_v8 = vpop.f32.mrb[151].mxu1  ;;  %v13668_v9 = vpop.f32.mrb[155].mxu0  ;;  %v13997_v63 = vld [vmem:[%s17483_s7 + $0x48] ss:$16 sps:$4 sm:$0xff]  }
 0x447   : > { %v4278_v10 = vld [vmem:[#allocation5 + $0x28] sm:$0xff]  ;;  %v4466_v47 = vld [vmem:[#allocation5 + $0x10] sm:$0xff] }
 0x448   : > { %4295 = vst.msk [vmem:[#allocation5 + $0x20] sm:$0xff] %vm2878_vm6, %v4286_v6  ;;  %v4287_v11 = vadd.f32 %v4278_v10, %v4254_v3  ;;  %4075 = vst.msk [vmem:[#allocation5 + $0x38] sm:$0xff] %vm2878_vm6, %v4066_v7  ;;  %v14001_v1 = vld [vmem:[%s17483_s7 + $0xc8] ss:$16 sps:$4 sm:$0xff]   ;;  %v14009_v9 = vld [vmem:[%s17483_s7 + $0x6c] ss:$16 sps:$4 sm:$0xff]  }
 0x449   : > { %v4467_v53 = vld [vmem:[#allocation5 + $0x18] sm:$0xff] }
 0x44a   : > { %4296 = vst.msk [vmem:[#allocation5 + $0x28] sm:$0xff] %vm2878_vm6, %v4287_v11 }
 0x44b   : > { %v4259_v13 = vpop.f32.mrb[152].mxu1  ;;  %v4044_v14 = vpop.f32.mrb[156].mxu0 }
 0x44c   : > { %v4067_v17 = vadd.f32 %v4058_v16, %v4044_v14  ;;  %v13695_v18 = vpop.f32.mrb[153].mxu1  ;;  %v13671_v19 = vpop.f32.mrb[157].mxu0 }
 0x44d   : > { %v4279_v20 = vld [vmem:[#allocation5 + $0x30] sm:$0xff]  ;;  %v4262_v21 = vpop.f32.mrb[154].mxu1  ;;  %v4047_v22 = vpop.f32.mrb[158].mxu0 }
 0x44e   : > { %v4288_v23 = vadd.f32 %v4279_v20, %v4259_v13  ;;  %4076 = vst.msk [vmem:[#allocation5 + $0x40] sm:$0x7] %vm2887_vm7, %v4067_v17  ;;  %v13696_v24 = vpop.f32.mrb[155].mxu1  ;;  %v13672_v25 = vpop.f32.mrb[159].mxu0  ;;  %v14012_v17 = vld [vmem:[%s17483_s7 + $0xec] ss:$16 sps:$4 sm:$0xff]  }
 0x44f   : > { %v4280_v26 = vld [vmem:[#allocation5 + $0x38] sm:$0xff]  ;;  %v4468_v62 = vld [vmem:[#allocation5 + $0x20] sm:$0xff] }
 0x450   : > { %4297 = vst.msk [vmem:[#allocation5 + $0x30] sm:$0xff] %vm2878_vm6, %v4288_v23  ;;  %v4289_v27 = vadd.f32 %v4280_v26, %v4262_v21  ;;  %v14007_v20 = vld [vmem:[%s17483_s7 + $0x68] ss:$16 sps:$4 sm:$0xff]   ;;  %v14017_v24 = vld [vmem:[%s17483_s7 + $0x4] ss:$16 sps:$4 sm:$0xff]  }
 0x451   : > { %v4469_v8 = vld [vmem:[#allocation5 + $0x28] sm:$0xff]  ;;  %v14010_v21 = vld [vmem:[%s17483_s7 + $0xe8] ss:$16 sps:$4 sm:$0xff]  }
 0x452   : > { %4298 = vst.msk [vmem:[#allocation5 + $0x38] sm:$0xff] %vm2878_vm6, %v4289_v27  ;;  %v14020_v26 = vld [vmem:[%s17483_s7 + $0x10c] ss:$16 sps:$4 sm:$0xff]  }
 0x453   : > { %v4267_v28 = vpop.f32.mrb[156].mxu1  ;;  %v4426_v29 = vpop.f32.mrb[160].mxu0 }
 0x454   : > { %v13699_v41 = vpop.f32.mrb[157].mxu1  ;;  %v4473_v32 = vadd.f32 %v4464_v30, %v4426_v29  ;;  %v13711_v34 = vpop.f32.mrb[161].mxu0 }
 0x455   : > { %v4281_v35 = vld [vmem:[#allocation5 + $0x40] sm:$0x7]  ;;  %v4270_v36 = vpop.f32.mrb[158].mxu1  ;;  %v4429_v37 = vpop.f32.mrb[162].mxu0 }
 0x456   : > { %v4290_v39 = vadd.f32 %v4281_v35, %v4267_v28  ;;  %v4489_v33 = vadd.f32 %v15669_v31, %v4473_v32  ;;  %v13700_v12 = vpop.f32.mrb[159].mxu1  ;;  %v4474_v40 = vadd.f32 %v4465_v38, %v4429_v37  ;;  %v13712_v42 = vpop.f32.mrb[163].mxu0  ;;  %v14015_v32 = vld [vmem:[%s17483_s7] ss:$16 sps:$4 sm:$0xff]   ;;  %v14018_v36 = vld [vmem:[%s17483_s7 + $0x108] ss:$16 sps:$4 sm:$0xff]  }
 0x457   : > { %v4470_v28 = vld [vmem:[#allocation5 + $0x30] sm:$0xff] }
 0x458   : > { %4299 = vst.msk [vmem:[#allocation5 + $0x40] sm:$0x7] %vm2887_vm7, %v4290_v39  ;;  %v4498_v43 = vmax.f32 %v4489_v33, 0.0  ;;  %v4490_v44 = vadd.f32 %v15669_v31, %v4474_v40  ;;  %v14023_v12 = vld [vmem:[%s17483_s7 + $0x24] ss:$16 sps:$4 sm:$0xff]  }
 0x459   : > { %v4471_v35 = vld [vmem:[#allocation5 + $0x38] sm:$0xff] }
 0x45a   : > { %v12943_v45 = vpack.c.bf16 %v4498_v43, %v4498_v43  ;;  %v4499_v15 = vmax.f32 %v4490_v44, 0.0  ;;  %v14026_v40 = vld [vmem:[%s17483_s7 + $0x12c] ss:$16 sps:$4 sm:$0xff]   ;;  %v14021_v44 = vld [vmem:[%s17483_s7 + $0x20] ss:$16 sps:$4 sm:$0xff]  }
 0x45b   : > { %v4434_v46 = vpop.f32.mrb[164].mxu0 }
 0x45c   : > { %4544 = vst.msk [vmem:[#allocation6] sm:$0xf] %vm791_vm0, %v12943_v45  ;;  %v12944_v49 = vpack.c.bf16 %v4499_v15, %v4499_v15  ;;  %v4475_v50 = vadd.f32 %v4466_v47, %v4434_v46  ;;  %v13715_v51 = vpop.f32.mrb[165].mxu0  ;;  %v14024_v45 = vld [vmem:[%s17483_s7 + $0x128] ss:$16 sps:$4 sm:$0xff]  }
 0x45d   : > { %v4437_v52 = vpop.f32.mrb[166].mxu0  ;;  %v14029_v15 = vld [vmem:[%s17483_s7 + $0xc] ss:$16 sps:$4 sm:$0xff]  }
 0x45e   : > { %4545 = vst.msk [vmem:[#allocation6 + $0x4] sm:$0xf] %vm791_vm0, %v12944_v49  ;;  %v4491_v54 = vadd.f32 %v15669_v31, %v4475_v50  ;;  %v4476_v55 = vadd.f32 %v4467_v53, %v4437_v52  ;;  %v13716_v56 = vpop.f32.mrb[167].mxu0  ;;  %v14033_v50 = vld [vmem:[%s17483_s7 + $0x14c] ss:$16 sps:$4 sm:$0xff]  }
 0x45f   : > { %v4472_v52 = vld [vmem:[#allocation5 + $0x40] sm:$0x7]  ;;  %v14027_v53 = vld [vmem:[%s17483_s7 + $0x8] ss:$16 sps:$4 sm:$0xff]  }
 0x460   : > { %v4500_v57 = vmax.f32 %v4491_v54, 0.0  ;;  %v4492_v58 = vadd.f32 %v15669_v31, %v4476_v55 }
 0x462   : > { %v12945_v59 = vpack.c.bf16 %v4500_v57, %v4500_v57  ;;  %v4501_v60 = vmax.f32 %v4492_v58, 0.0  ;;  %v14031_v57 = vld [vmem:[%s17483_s7 + $0x148] ss:$16 sps:$4 sm:$0xff]   ;;  %v14036_v58 = vld [vmem:[%s17483_s7 + $0x2c] ss:$16 sps:$4 sm:$0xff]  }
 0x463   : > { %v4442_v61 = vpop.f32.mrb[168].mxu0  ;;  %v15678_v0 = vld [vmem:[#allocation6] sm:$0x1] }
 0x464   : > { %4546 = vst.msk [vmem:[#allocation6 + $0x8] sm:$0xf] %vm791_vm0, %v12945_v59  ;;  %v12946_v2 = vpack.c.bf16 %v4501_v60, %v4501_v60  ;;  %v4477_v3 = vadd.f32 %v4468_v62, %v4442_v61  ;;  %v13719_v4 = vpop.f32.mrb[169].mxu0  ;;  %v12329_v5 = vcombine.low %v15678_v0, %v15678_v0  ;;  %v15689_v6 = vld [vmem:[#allocation6] ss:$0 sps:$4 sm:$0x22]  }
 0x465   : > { %v4445_v7 = vpop.f32.mrb[170].mxu0  ;;  %v4843_v16 = vrot.slane %v15689_v6, 1  ;;  %v4982_v25 = vshrl.u32 %v15689_v6, 16  ;;  %v15750_v49 = vld [vmem:[#allocation6] ss:$0 sps:$4 sm:$0x44]  }
 0x466   : > { %4547 = vst.msk [vmem:[#allocation6 + $0xc] sm:$0xf] %vm791_vm0, %v12946_v2  ;;  %v4493_v10 = vadd.f32 %v15669_v31, %v4477_v3  ;;  %v4478_v11 = vadd.f32 %v4469_v8, %v4445_v7  ;;  %v13720_v13 = vpop.f32.mrb[171].mxu0  ;;  %v4579_v14 = vshrl.u32 %v12329_v5, 16  ;;  %v5126_v60 = vrot.slane %v15750_v49, 2 }
 0x467   : > { %12360 = vmatmul.mubr.msk.bf16.vlgmr.msra.gmra.mrb[180].mxu0 %vm2878_vm6, %v4843_v16  ;;  %v15729_v33 = vrot.slane %v4982_v25, 1  ;;  %v14039_v61 = vld [vmem:[%s17483_s7 + $0x16c] ss:$16 sps:$4 sm:$0xff]   ;;  %v14034_v3 = vld [vmem:[%s17483_s7 + $0x28] ss:$16 sps:$4 sm:$0xff]   ;;  %v5265_v8 = vshrl.u32 %v15750_v49, 16 }
 0x468   : > { %v4502_v18 = vmax.f32 %v4493_v10, 0.0  ;;  %v4494_v19 = vadd.f32 %v15669_v31, %v4478_v11  ;;  %12338 = vmatmul.mubr.msk.bf16.vlgmr.msra.gmra.mrb[160].mxu1 %vm2878_vm6, %v4579_v14  ;;  %5070 = vmatpush1.bf16.msra.mxu0 %v14001_v1  ;;  %v14037_v4 = vld [vmem:[%s17483_s7 + $0x168] ss:$16 sps:$4 sm:$0xff]   ;;  %v14042_v7 = vld [vmem:[%s17483_s7 + $0x84] ss:$16 sps:$4 sm:$0xff]  }
 0x469   : > { %4666 = vmatpush1.bf16.msra.mxu1 %v13997_v63  ;;  %5071 = vmatprep.subr.bf16.mxu0 %v14012_v17  ;;  %v4555_v63 = vld [vmem:[#allocation6 + $0x20] sm:$0x3]  ;;  %v14040_v11 = vld [vmem:[%s17483_s7 + $0x80] ss:$16 sps:$4 sm:$0xff]   ;;  %v14043_v13 = vld [vmem:[%s17483_s7 + $0x188] ss:$16 sps:$4 sm:$0xff]  }
 0x46a   : > { %v12947_v22 = vpack.c.bf16 %v4502_v18, %v4502_v18  ;;  %v4503_v23 = vmax.f32 %v4494_v19, 0.0  ;;  %4667 = vmatprep.subr.bf16.mxu1 %v14009_v9  ;;  %4697 = vmatprep.mubr.bf16.mxu1 %v14637_v48  ;;  %v14045_v9 = vld [vmem:[%s17483_s7 + $0x18c] ss:$16 sps:$4 sm:$0xff]   ;;  %v14048_v17 = vld [vmem:[%s17483_s7 + $0xa4] ss:$16 sps:$4 sm:$0xff]  }
 0x46b   : > { %v4450_v27 = vpop.f32.mrb[172].mxu0  ;;  %5101 = vmatprep.mubr.bf16.mxu0 %v14637_v48  ;;  %v14051_v18 = vld [vmem:[%s17483_s7 + $0x1ac] ss:$16 sps:$4 sm:$0xff]   ;;  %v14046_v19 = vld [vmem:[%s17483_s7 + $0xa0] ss:$16 sps:$4 sm:$0xff]  }
 0x46c   : > { %4548 = vst.msk [vmem:[#allocation6 + $0x10] sm:$0xf] %vm791_vm0, %v12947_v22  ;;  %v12948_v29 = vpack.c.bf16 %v4503_v23, %v4503_v23  ;;  %v4479_v30 = vadd.f32 %v4470_v28, %v4450_v27  ;;  %v13723_v41 = vpop.f32.mrb[173].mxu0  ;;  %5072 = vmatpush1.bf16.msra.mxu0 %v14010_v21  ;;  %v14054_v21 = vld [vmem:[%s17483_s7 + $0xc4] ss:$16 sps:$4 sm:$0xff]  }
 0x46d   : > { %v4453_v34 = vpop.f32.mrb[174].mxu0  ;;  %4668 = vmatpush1.bf16.msra.mxu1 %v14007_v20  ;;  %5211 = vmatprep.subr.bf16.mxu0 %v14020_v26  ;;  %v14049_v20 = vld [vmem:[%s17483_s7 + $0x1a8] ss:$16 sps:$4 sm:$0xff]   ;;  %v14058_v22 = vld [vmem:[%s17483_s7 + $0x1cc] ss:$16 sps:$4 sm:$0xff]  }
 0x46e   : > { %4549 = vst.msk [vmem:[#allocation6 + $0x14] sm:$0xf] %vm791_vm0, %v12948_v29  ;;  %v4495_v37 = vadd.f32 %v15669_v31, %v4479_v30  ;;  %v4480_v38 = vadd.f32 %v4471_v35, %v4453_v34  ;;  %v13724_v39 = vpop.f32.mrb[175].mxu0  ;;  %4749 = vmatprep.subr.bf16.mxu1 %v14017_v24  ;;  %v14052_v23 = vld [vmem:[%s17483_s7 + $0xc0] ss:$16 sps:$4 sm:$0xff]  }
 0x46f   : > { %12370 = vmatmul.mubr.msk.bf16.vlgmr.msra.gmra.mrb[184].mxu0 %vm2878_vm6, %v15729_v33  ;;  %v14056_v24 = vld [vmem:[%s17483_s7 + $0x1c8] ss:$16 sps:$4 sm:$0xff]   ;;  %v14061_v25 = vld [vmem:[%s17483_s7 + $0xe4] ss:$16 sps:$4 sm:$0xff]   ;;  %v14064_v27 = vld [vmem:[%s17483_s7 + $0x1ec] ss:$16 sps:$4 sm:$0xff]  }
 0x470   : > { %v4504_v42 = vmax.f32 %v4495_v37, 0.0  ;;  %v4496_v43 = vadd.f32 %v15669_v31, %v4480_v38  ;;  %12339 = vmatmul.mubr.msk.bf16.vlgmr.msra.gmra.mrb[164].mxu1 %vm2878_vm6, %v4579_v14  ;;  %5212 = vmatpush1.bf16.msra.mxu0 %v14018_v36  ;;  %v15807_v14 = vrot.slane %v5265_v8, 2  ;;  %v14059_v28 = vld [vmem:[%s17483_s7 + $0xe0] ss:$16 sps:$4 sm:$0xff]   ;;  %v14062_v29 = vld [vmem:[%s17483_s7 + $0x1e8] ss:$16 sps:$4 sm:$0xff]  }
 0x471   : > { %4750 = vmatpush1.bf16.msra.mxu1 %v14015_v32  ;;  %5213 = vmatprep.subr.bf16.mxu0 %v14026_v40  ;;  %v14067_v6 = vld [vmem:[%s17483_s7 + $0x104] ss:$16 sps:$4 sm:$0xff]   ;;  %v14071_v30 = vld [vmem:[%s17483_s7 + $0x20c] ss:$16 sps:$4 sm:$0xff]   ;;  %v14065_v41 = vld [vmem:[%s17483_s7 + $0x100] ss:$16 sps:$4 sm:$0xff]  }
 0x472   : > { %v12949_v46 = vpack.c.bf16 %v4504_v42, %v4504_v42  ;;  %v4505_v47 = vmax.f32 %v4496_v43, 0.0  ;;  %4751 = vmatprep.subr.bf16.mxu1 %v14023_v12  ;;  %4781 = vmatprep.mubr.bf16.mxu1 %v14637_v48  ;;  %v14069_v32 = vld [vmem:[%s17483_s7 + $0x208] ss:$16 sps:$4 sm:$0xff]   ;;  %v14074_v35 = vld [vmem:[%s17483_s7 + $0x124] ss:$16 sps:$4 sm:$0xff]  }
 0x473   : > { %v4458_v51 = vpop.f32.mrb[176].mxu0  ;;  %5243 = vmatprep.mubr.bf16.mxu0 %v14637_v48  ;;  %v14077_v36 = vld [vmem:[%s17483_s7 + $0x22c] ss:$16 sps:$4 sm:$0xff]   ;;  %v14072_v37 = vld [vmem:[%s17483_s7 + $0x120] ss:$16 sps:$4 sm:$0xff]  }
 0x474   : > { %4550 = vst.msk [vmem:[#allocation6 + $0x18] sm:$0xf] %vm791_vm0, %v12949_v46  ;;  %v12950_v54 = vpack.c.bf16 %v4505_v47, %v4505_v47  ;;  %v4481_v55 = vadd.f32 %v4472_v52, %v4458_v51  ;;  %v13727_v56 = vpop.f32.mrb[177].mxu0  ;;  %5214 = vmatpush1.bf16.msra.mxu0 %v14024_v45  ;;  %v14075_v38 = vld [vmem:[%s17483_s7 + $0x228] ss:$16 sps:$4 sm:$0xff]  }
 0x475   : > { %4752 = vmatpush1.bf16.msra.mxu1 %v14021_v44  ;;  %5352 = vmatprep.subr.bf16.mxu0 %v14033_v50  ;;  %v4461_v1 = vpop.f32.mrb[178].mxu0  ;;  %v14080_v39 = vld [vmem:[%s17483_s7 + $0x144] ss:$16 sps:$4 sm:$0xff]   ;;  %v14083_v12 = vld [vmem:[%s17483_s7 + $0x24c] ss:$16 sps:$4 sm:$0xff]  }
 0x476   : > { %4551 = vst.msk [vmem:[#allocation6 + $0x1c] sm:$0xf] %vm791_vm0, %v12950_v54  ;;  %v4497_v59 = vadd.f32 %v15669_v31, %v4481_v55  ;;  %4790 = vmatprep.subr.bf16.mxu1 %v14029_v15  ;;  %vm15780_vm0 = vmand %vm804_vm1, %vm4553_vm8  ;;  %v13728_v2 = vpop.f32.mrb[179].mxu0  ;;  %v14078_v40 = vld [vmem:[%s17483_s7 + $0x140] ss:$16 sps:$4 sm:$0xff]  }
 0x477   : > { %12381 = vmatmul.mubr.msk.bf16.vlgmr.msra.gmra.mrb[188].mxu0 %vm2878_vm6, %v5126_v60  ;;  %v14081_v42 = vld [vmem:[%s17483_s7 + $0x248] ss:$16 sps:$4 sm:$0xff]   ;;  %v14086_v44 = vld [vmem:[%s17483_s7 + $0x164] ss:$16 sps:$4 sm:$0xff]   ;;  %v14089_v45 = vld [vmem:[%s17483_s7 + $0x26c] ss:$16 sps:$4 sm:$0xff]  }
 0x478   : > { %v4506_v62 = vmax.f32 %v4497_v59, 0.0  ;;  %12348 = vmatmul.mubr.msk.bf16.vlgmr.msra.gmra.mrb[168].mxu1 %vm2878_vm6, %v15678_v0  ;;  %5353 = vmatpush1.bf16.msra.mxu0 %v14031_v57  ;;  %v14084_v15 = vld [vmem:[%s17483_s7 + $0x160] ss:$16 sps:$4 sm:$0xff]   ;;  %v14087_v46 = vld [vmem:[%s17483_s7 + $0x268] ss:$16 sps:$4 sm:$0xff]  }
 0x479   : > { %4791 = vmatpush1.bf16.msra.mxu1 %v14027_v53  ;;  %5354 = vmatprep.subr.bf16.mxu0 %v14039_v61  ;;  %v14092_v47 = vld [vmem:[%s17483_s7 + $0x184] ss:$16 sps:$4 sm:$0xff]   ;;  %v15931_v49 = vld [vmem:[#allocation6 + $0x4] ss:$0 sps:$4 sm:$0x44]  }
 0x47a   : > { %v12951_v5 = vpack.c.bf16 %v4506_v62, %v4506_v62  ;;  %4792 = vmatprep.subr.bf16.mxu1 %v14036_v58  ;;  %4822 = vmatprep.mubr.bf16.mxu1 %v14637_v48  ;;  %v14096_v50 = vld [vmem:[%s17483_s7 + $0x28c] ss:$16 sps:$4 sm:$0xff]   ;;  %v14090_v51 = vld [vmem:[%s17483_s7 + $0x180] ss:$16 sps:$4 sm:$0xff]   ;;  %v14094_v52 = vld [vmem:[%s17483_s7 + $0x288] ss:$16 sps:$4 sm:$0xff]  }
 0x47b   : > { %5384 = vmatprep.mubr.bf16.mxu0 %v14637_v48  ;;  %v5834_v53 = vrot.slane %v15931_v49, 2  ;;  %v14099_v54 = vld [vmem:[%s17483_s7 + $0x1a4] ss:$16 sps:$4 sm:$0xff]   ;;  %v14102_v55 = vld [vmem:[%s17483_s7 + $0x2ac] ss:$16 sps:$4 sm:$0xff]   ;;  %v5973_v59 = vshrl.u32 %v15931_v49, 16 }
 0x47c   : > { %v4556_v10 = vsel %vm15780_vm0, %v12951_v5, %v4555_v63  ;;  %5355 = vmatpush1.bf16.msra.mxu0 %v14037_v4  ;;  %v14097_v56 = vld [vmem:[%s17483_s7 + $0x1a0] ss:$16 sps:$4 sm:$0xff]   ;;  %v14100_v57 = vld [vmem:[%s17483_s7 + $0x2a8] ss:$16 sps:$4 sm:$0xff]   ;;  %v14105_v58 = vld [vmem:[%s17483_s7 + $0x1c4] ss:$16 sps:$4 sm:$0xff]  }
 0x47d   : > { %4557 = vst [vmem:[#allocation6 + $0x20] sm:$0x3] %v4556_v10  ;;  %4793 = vmatpush1.bf16.msra.mxu1 %v14034_v3  ;;  %5494 = vmatprep.subr.bf16.mxu0 %v14045_v9  ;;  %v14103_v61 = vld [vmem:[%s17483_s7 + $0x1c0] ss:$16 sps:$4 sm:$0xff]   ;;  %v14106_v62 = vld [vmem:[%s17483_s7 + $0x2c8] ss:$16 sps:$4 sm:$0xff]  }
 0x47e   : > { %4887 = vmatprep.subr.bf16.mxu1 %v14042_v7  ;;  %v15977_v63 = vrot.slane %v5973_v59, 2  ;;  %v14111_v1 = vld [vmem:[%s17483_s7 + $0x1e4] ss:$16 sps:$4 sm:$0xff]   ;;  %v14114_v31 = vld [vmem:[%s17483_s7 + $0x2ec] ss:$16 sps:$4 sm:$0xff]  }
 0x47f   : > { %12391 = vmatmul.mubr.msk.bf16.vlgmr.msra.gmra.mrb[192].mxu0 %vm2878_vm6, %v15807_v14  ;;  %v14109_v2 = vld [vmem:[%s17483_s7 + $0x1e0] ss:$16 sps:$4 sm:$0xff]   ;;  %v14112_v3 = vld [vmem:[%s17483_s7 + $0x2e8] ss:$16 sps:$4 sm:$0xff]   ;;  %v14117_v4 = vld [vmem:[%s17483_s7 + $0x204] ss:$16 sps:$4 sm:$0xff]  }
 0x480   : > { %12349 = vmatmul.mubr.msk.bf16.vlgmr.msra.gmra.mrb[172].mxu1 %vm2878_vm6, %v15678_v0  ;;  %5495 = vmatpush1.bf16.msra.mxu0 %v14043_v13  ;;  %v15828_v0 = vld [vmem:[#allocation6] ss:$0 sps:$4 sm:$0x88]   ;;  %v15999_v5 = vld [vmem:[#allocation6 + $0x4] ss:$0 sps:$4 sm:$0x88]  }
 0x481   : > { %4888 = vmatpush1.bf16.msra.mxu1 %v14040_v11  ;;  %5496 = vmatprep.subr.bf16.mxu0 %v14051_v18  ;;  %v5409_v26 = vrot.slane %v15828_v0, 3  ;;  %v14121_v7 = vld [vmem:[%s17483_s7 + $0x30c] ss:$16 sps:$4 sm:$0xff]   ;;  %v14115_v8 = vld [vmem:[%s17483_s7 + $0x200] ss:$16 sps:$4 sm:$0xff]   ;;  %v6117_v10 = vrot.slane %v15999_v5, 3 }
 0x482   : > { %4889 = vmatprep.subr.bf16.mxu1 %v14048_v17  ;;  %4919 = vmatprep.mubr.bf16.mxu1 %v14637_v48  ;;  %v14119_v9 = vld [vmem:[%s17483_s7 + $0x308] ss:$16 sps:$4 sm:$0xff]   ;;  %v14124_v11 = vld [vmem:[%s17483_s7 + $0x224] ss:$16 sps:$4 sm:$0xff]   ;;  %v14127_v13 = vld [vmem:[%s17483_s7 + $0x32c] ss:$16 sps:$4 sm:$0xff]  }
 0x483   : > { %5526 = vmatprep.mubr.bf16.mxu0 %v14637_v48  ;;  %v14125_v17 = vld [vmem:[%s17483_s7 + $0x328] ss:$16 sps:$4 sm:$0xff]   ;;  %v14130_v18 = vld [vmem:[%s17483_s7 + $0x244] ss:$16 sps:$4 sm:$0xff]  }
 0x484   : > { %5497 = vmatpush1.bf16.msra.mxu0 %v14049_v20  ;;  %v14133_v20 = vld [vmem:[%s17483_s7 + $0x34c] ss:$16 sps:$4 sm:$0xff]   ;;  %v14131_v0 = vld [vmem:[%s17483_s7 + $0x348] ss:$16 sps:$4 sm:$0xff]  }
 0x485   : > { %4890 = vmatpush1.bf16.msra.mxu1 %v14046_v19  ;;  %5636 = vmatprep.subr.bf16.mxu0 %v14058_v22  ;;  %v6256_v19 = vshrl.u32 %v15999_v5, 16 }
 0x486   : > { %5028 = vmatprep.subr.bf16.mxu1 %v14054_v21  ;;  %v14128_v21 = vld [vmem:[%s17483_s7 + $0x240] ss:$16 sps:$4 sm:$0xff]  }
 0x487   : > { %12402 = vmatmul.mubr.msk.bf16.vlgmr.msra.gmra.mrb[196].mxu0 %vm2878_vm6, %v5409_v26  ;;  %v16046_v22 = vrot.slane %v6256_v19, 3  ;;  %v14214_v19 = vld [vmem:[%s17483_s7 + $0x4ec] ss:$16 sps:$4 sm:$0xff]  }
 0x488   : > { %12359 = vmatmul.mubr.msk.bf16.vlgmr.msra.gmra.mrb[176].mxu1 %vm2878_vm6, %v4843_v16  ;;  %5637 = vmatpush1.bf16.msra.mxu0 %v14056_v24  ;;  %v15863_v16 = vld [vmem:[#allocation6 + $0x4] ss:$0 sps:$4 sm:$0x22]   ;;  %v14139_v24 = vld [vmem:[%s17483_s7 + $0x36c] ss:$16 sps:$4 sm:$0xff]  }
 0x489   : > { %5029 = vmatpush1.bf16.msra.mxu1 %v14052_v23  ;;  %5638 = vmatprep.subr.bf16.mxu0 %v14064_v27  ;;  %v5551_v34 = vrot.slane %v15863_v16, 1  ;;  %v14136_v23 = vld [vmem:[%s17483_s7 + $0x264] ss:$16 sps:$4 sm:$0xff]  }
 0x48a   : > { %5030 = vmatprep.subr.bf16.mxu1 %v14061_v25  ;;  %5060 = vmatprep.mubr.bf16.mxu1 %v14637_v48  ;;  %v14134_v25 = vld [vmem:[%s17483_s7 + $0x260] ss:$16 sps:$4 sm:$0xff]   ;;  %v14142_v27 = vld [vmem:[%s17483_s7 + $0x284] ss:$16 sps:$4 sm:$0xff]  }
 0x48b   : > { %5668 = vmatprep.mubr.bf16.mxu0 %v14637_v48 }
 0x48c   : > { %5639 = vmatpush1.bf16.msra.mxu0 %v14062_v29  ;;  %v14140_v29 = vld [vmem:[%s17483_s7 + $0x280] ss:$16 sps:$4 sm:$0xff]  }
 0x48d   : > { %5031 = vmatpush1.bf16.msra.mxu1 %v14059_v28  ;;  %5777 = vmatprep.subr.bf16.mxu0 %v14071_v30  ;;  %v14145_v28 = vld [vmem:[%s17483_s7 + $0x38c] ss:$16 sps:$4 sm:$0xff]  }
 0x48e   : > { %5170 = vmatprep.subr.bf16.mxu1 %v14067_v6  ;;  %v14143_v6 = vld [vmem:[%s17483_s7 + $0x388] ss:$16 sps:$4 sm:$0xff]   ;;  %v14151_v30 = vld [vmem:[%s17483_s7 + $0x3ac] ss:$16 sps:$4 sm:$0xff]  }
 0x48f   : > { %12413 = vmatmul.mubr.msk.bf16.vlgmr.msra.gmra.mrb[200].mxu0 %vm2878_vm6, %v5551_v34 }
 0x490   : > { %12369 = vmatmul.mubr.msk.bf16.vlgmr.msra.gmra.mrb[180].mxu1 %vm2878_vm6, %v15729_v33  ;;  %5778 = vmatpush1.bf16.msra.mxu0 %v14069_v32  ;;  %v5690_v33 = vshrl.u32 %v15863_v16, 16  ;;  %v14148_v16 = vld [vmem:[%s17483_s7 + $0x2a4] ss:$16 sps:$4 sm:$0xff]   ;;  %v14146_v32 = vld [vmem:[%s17483_s7 + $0x2a0] ss:$16 sps:$4 sm:$0xff]  }
 0x491   : > { %5171 = vmatpush1.bf16.msra.mxu1 %v14065_v41  ;;  %5779 = vmatprep.subr.bf16.mxu0 %v14077_v36  ;;  %v16084_v41 = vld [vmem:[#allocation6 + $0x8] sm:$0x1] }
 0x492   : > { %5172 = vmatprep.subr.bf16.mxu1 %v14074_v35  ;;  %5202 = vmatprep.mubr.bf16.mxu1 %v14637_v48  ;;  %v15909_v43 = vrot.slane %v5690_v33, 1  ;;  %v14154_v35 = vld [vmem:[%s17483_s7 + $0x2c4] ss:$16 sps:$4 sm:$0xff]  }
 0x493   : > { %5809 = vmatprep.mubr.bf16.mxu0 %v14637_v48  ;;  %v16100_v36 = vld [vmem:[#allocation6 + $0x8] ss:$0 sps:$4 sm:$0x44]  }
 0x494   : > { %5780 = vmatpush1.bf16.msra.mxu0 %v14075_v38  ;;  %v14152_v38 = vld [vmem:[%s17483_s7 + $0x2c0] ss:$16 sps:$4 sm:$0xff]   ;;  %v6538_v33 = vrot.slane %v16100_v36, 2 }
 0x495   : > { %5173 = vmatpush1.bf16.msra.mxu1 %v14072_v37  ;;  %5919 = vmatprep.subr.bf16.mxu0 %v14083_v12  ;;  %v14158_v37 = vld [vmem:[%s17483_s7 + $0x3cc] ss:$16 sps:$4 sm:$0xff]   ;;  %v14161_v12 = vld [vmem:[%s17483_s7 + $0x2e4] ss:$16 sps:$4 sm:$0xff]  }
 0x496   : > { %5311 = vmatprep.subr.bf16.mxu1 %v14080_v39  ;;  %v14156_v39 = vld [vmem:[%s17483_s7 + $0x3c8] ss:$16 sps:$4 sm:$0xff]  }
 0x497   : > { %12423 = vmatmul.mubr.msk.bf16.vlgmr.msra.gmra.mrb[204].mxu0 %vm2878_vm6, %v15909_v43 }
 0x498   : > { %12380 = vmatmul.mubr.msk.bf16.vlgmr.msra.gmra.mrb[184].mxu1 %vm2878_vm6, %v5126_v60  ;;  %5920 = vmatpush1.bf16.msra.mxu0 %v14081_v42  ;;  %v14108_v60 = vld [vmem:[%s17483_s7 + $0x2cc] ss:$16 sps:$4 sm:$0xff]   ;;  %v14159_v42 = vld [vmem:[%s17483_s7 + $0x2e0] ss:$16 sps:$4 sm:$0xff]  }
 0x499   : > { %5312 = vmatpush1.bf16.msra.mxu1 %v14078_v40  ;;  %5921 = vmatprep.subr.bf16.mxu0 %v14089_v45  ;;  %v14164_v40 = vld [vmem:[%s17483_s7 + $0x3ec] ss:$16 sps:$4 sm:$0xff]   ;;  %v6677_v45 = vshrl.u32 %v16100_v36, 16 }
 0x49a   : > { %5313 = vmatprep.subr.bf16.mxu1 %v14086_v44  ;;  %5343 = vmatprep.mubr.bf16.mxu1 %v14637_v48  ;;  %v14167_v44 = vld [vmem:[%s17483_s7 + $0x304] ss:$16 sps:$4 sm:$0xff]  }
 0x49b   : > { %5951 = vmatprep.mubr.bf16.mxu0 %v14637_v48  ;;  %v16146_v49 = vrot.slane %v6677_v45, 2 }
 0x49c   : > { %5922 = vmatpush1.bf16.msra.mxu0 %v14087_v46  ;;  %v14165_v46 = vld [vmem:[%s17483_s7 + $0x300] ss:$16 sps:$4 sm:$0xff]  }
 0x49d   : > { %5314 = vmatpush1.bf16.msra.mxu1 %v14084_v15  ;;  %6060 = vmatprep.subr.bf16.mxu0 %v14096_v50  ;;  %v14170_v15 = vld [vmem:[%s17483_s7 + $0x40c] ss:$16 sps:$4 sm:$0xff]   ;;  %v14173_v50 = vld [vmem:[%s17483_s7 + $0x324] ss:$16 sps:$4 sm:$0xff]  }
 0x49e   : > { %5453 = vmatprep.subr.bf16.mxu1 %v14092_v47  ;;  %v14168_v47 = vld [vmem:[%s17483_s7 + $0x408] ss:$16 sps:$4 sm:$0xff]  }
 0x49f   : > { %12434 = vmatmul.mubr.msk.bf16.vlgmr.msra.gmra.mrb[208].mxu0 %vm2878_vm6, %v5834_v53 }
 0x4a0   : > { %12390 = vmatmul.mubr.msk.bf16.vlgmr.msra.gmra.mrb[188].mxu1 %vm2878_vm6, %v15807_v14  ;;  %6061 = vmatpush1.bf16.msra.mxu0 %v14094_v52  ;;  %v14122_v14 = vld [vmem:[%s17483_s7 + $0x220] ss:$16 sps:$4 sm:$0xff]  }
 0x4a1   : > { %5454 = vmatpush1.bf16.msra.mxu1 %v14090_v51  ;;  %6062 = vmatprep.subr.bf16.mxu0 %v14102_v55  ;;  %v14176_v51 = vld [vmem:[%s17483_s7 + $0x42c] ss:$16 sps:$4 sm:$0xff]   ;;  %v14171_v52 = vld [vmem:[%s17483_s7 + $0x320] ss:$16 sps:$4 sm:$0xff]  }
 0x4a2   : > { %5455 = vmatprep.subr.bf16.mxu1 %v14099_v54  ;;  %5485 = vmatprep.mubr.bf16.mxu1 %v14637_v48  ;;  %v14179_v54 = vld [vmem:[%s17483_s7 + $0x344] ss:$16 sps:$4 sm:$0xff]  }
 0x4a3   : > { %6092 = vmatprep.mubr.bf16.mxu0 %v14637_v48  ;;  %v16168_v55 = vld [vmem:[#allocation6 + $0x8] ss:$0 sps:$4 sm:$0x88]  }
 0x4a4   : > { %6063 = vmatpush1.bf16.msra.mxu0 %v14100_v57  ;;  %v14177_v57 = vld [vmem:[%s17483_s7 + $0x340] ss:$16 sps:$4 sm:$0xff]   ;;  %v6821_v59 = vrot.slane %v16168_v55, 3 }
 0x4a5   : > { %5456 = vmatpush1.bf16.msra.mxu1 %v14097_v56  ;;  %6202 = vmatprep.subr.bf16.mxu0 %v14108_v60  ;;  %v14183_v56 = vld [vmem:[%s17483_s7 + $0x44c] ss:$16 sps:$4 sm:$0xff]   ;;  %v14186_v60 = vld [vmem:[%s17483_s7 + $0x364] ss:$16 sps:$4 sm:$0xff]  }
 0x4a6   : > { %5595 = vmatprep.subr.bf16.mxu1 %v14105_v58  ;;  %v14181_v58 = vld [vmem:[%s17483_s7 + $0x448] ss:$16 sps:$4 sm:$0xff]  }
 0x4a7   : > { %12444 = vmatmul.mubr.msk.bf16.vlgmr.msra.gmra.mrb[212].mxu0 %vm2878_vm6, %v15977_v63 }
 0x4a8   : > { %12401 = vmatmul.mubr.msk.bf16.vlgmr.msra.gmra.mrb[192].mxu1 %vm2878_vm6, %v5409_v26  ;;  %6203 = vmatpush1.bf16.msra.mxu0 %v14106_v62  ;;  %v14137_v26 = vld [vmem:[%s17483_s7 + $0x368] ss:$16 sps:$4 sm:$0xff]   ;;  %v14184_v62 = vld [vmem:[%s17483_s7 + $0x360] ss:$16 sps:$4 sm:$0xff]  }
 0x4a9   : > { %5596 = vmatpush1.bf16.msra.mxu1 %v14103_v61  ;;  %6204 = vmatprep.subr.bf16.mxu0 %v14114_v31  ;;  %v14189_v61 = vld [vmem:[%s17483_s7 + $0x46c] ss:$16 sps:$4 sm:$0xff]   ;;  %v6960_v31 = vshrl.u32 %v16168_v55, 16 }
 0x4aa   : > { %5597 = vmatprep.subr.bf16.mxu1 %v14111_v1  ;;  %5627 = vmatprep.mubr.bf16.mxu1 %v14637_v48  ;;  %v14192_v1 = vld [vmem:[%s17483_s7 + $0x384] ss:$16 sps:$4 sm:$0xff]  }
 0x4ab   : > { %6234 = vmatprep.mubr.bf16.mxu0 %v14637_v48  ;;  %v16214_v5 = vrot.slane %v6960_v31, 3  ;;  %v14276_v31 = vld [vmem:[%s17483_s7 + $0x62c] ss:$16 sps:$4 sm:$0xff]  }
 0x4ac   : > { %6205 = vmatpush1.bf16.msra.mxu0 %v14112_v3  ;;  %v14190_v3 = vld [vmem:[%s17483_s7 + $0x380] ss:$16 sps:$4 sm:$0xff]  }
 0x4ad   : > { %5598 = vmatpush1.bf16.msra.mxu1 %v14109_v2  ;;  %6343 = vmatprep.subr.bf16.mxu0 %v14121_v7  ;;  %v14195_v2 = vld [vmem:[%s17483_s7 + $0x48c] ss:$16 sps:$4 sm:$0xff]   ;;  %v14198_v7 = vld [vmem:[%s17483_s7 + $0x3a4] ss:$16 sps:$4 sm:$0xff]  }
 0x4ae   : > { %5736 = vmatprep.subr.bf16.mxu1 %v14117_v4  ;;  %v14193_v4 = vld [vmem:[%s17483_s7 + $0x488] ss:$16 sps:$4 sm:$0xff]  }
 0x4af   : > { %12455 = vmatmul.mubr.msk.bf16.vlgmr.msra.gmra.mrb[216].mxu0 %vm2878_vm6, %v6117_v10 }
 0x4b0   : > { %12412 = vmatmul.mubr.msk.bf16.vlgmr.msra.gmra.mrb[196].mxu1 %vm2878_vm6, %v5551_v34  ;;  %6344 = vmatpush1.bf16.msra.mxu0 %v14119_v9  ;;  %v14149_v34 = vld [vmem:[%s17483_s7 + $0x3a8] ss:$16 sps:$4 sm:$0xff]   ;;  %v14196_v9 = vld [vmem:[%s17483_s7 + $0x3a0] ss:$16 sps:$4 sm:$0xff]  }
 0x4b1   : > { %5737 = vmatpush1.bf16.msra.mxu1 %v14115_v8  ;;  %6345 = vmatprep.subr.bf16.mxu0 %v14127_v13  ;;  %v14201_v8 = vld [vmem:[%s17483_s7 + $0x4ac] ss:$16 sps:$4 sm:$0xff]  }
 0x4b2   : > { %5738 = vmatprep.subr.bf16.mxu1 %v14124_v11  ;;  %5768 = vmatprep.mubr.bf16.mxu1 %v14637_v48  ;;  %v14204_v11 = vld [vmem:[%s17483_s7 + $0x3c4] ss:$16 sps:$4 sm:$0xff]   ;;  %v14208_v13 = vld [vmem:[%s17483_s7 + $0x4cc] ss:$16 sps:$4 sm:$0xff]  }
 0x4b3   : > { %6375 = vmatprep.mubr.bf16.mxu0 %v14637_v48 }
 0x4b4   : > { %6346 = vmatpush1.bf16.msra.mxu0 %v14125_v17  ;;  %v14206_v17 = vld [vmem:[%s17483_s7 + $0x4c8] ss:$16 sps:$4 sm:$0xff]  }
 0x4b5   : > { %5739 = vmatpush1.bf16.msra.mxu1 %v14122_v14  ;;  %6481 = vmatprep.subr.bf16.mxu0 %v14133_v20  ;;  %v14202_v14 = vld [vmem:[%s17483_s7 + $0x3c0] ss:$16 sps:$4 sm:$0xff]   ;;  %v16252_v20 = vld [vmem:[#allocation6 + $0xc] sm:$0x1] }
 0x4b6   : > { %5878 = vmatprep.subr.bf16.mxu1 %v14130_v18  ;;  %v14211_v18 = vld [vmem:[%s17483_s7 + $0x3e4] ss:$16 sps:$4 sm:$0xff]  }
 0x4b7   : > { %12465 = vmatmul.mubr.msk.bf16.vlgmr.msra.gmra.mrb[220].mxu0 %vm2878_vm6, %v16046_v22 }
 0x4b8   : > { %12422 = vmatmul.mubr.msk.bf16.vlgmr.msra.gmra.mrb[200].mxu1 %vm2878_vm6, %v15909_v43  ;;  %6482 = vmatpush1.bf16.msra.mxu0 %v14131_v0  ;;  %v14162_v43 = vld [vmem:[%s17483_s7 + $0x3e8] ss:$16 sps:$4 sm:$0xff]  }
 0x4b9   : > { %5879 = vmatpush1.bf16.msra.mxu1 %v14128_v21  ;;  %6483 = vmatprep.subr.bf16.mxu0 %v14139_v24  ;;  %v14209_v21 = vld [vmem:[%s17483_s7 + $0x3e0] ss:$16 sps:$4 sm:$0xff]   ;;  %v14212_v0 = vld [vmem:[%s17483_s7 + $0x4e8] ss:$16 sps:$4 sm:$0xff]   ;;  %v14220_v24 = vld [vmem:[%s17483_s7 + $0x50c] ss:$16 sps:$4 sm:$0xff]  }
 0x4ba   : > { %5880 = vmatprep.subr.bf16.mxu1 %v14136_v23  ;;  %5910 = vmatprep.mubr.bf16.mxu1 %v14637_v48  ;;  %v14217_v23 = vld [vmem:[%s17483_s7 + $0x404] ss:$16 sps:$4 sm:$0xff]  }
 0x4bb   : > { %6513 = vmatprep.mubr.bf16.mxu0 %v14637_v48 }
 0x4bc   : > { %6484 = vmatpush1.bf16.msra.mxu0 %v14137_v26  ;;  %v14218_v26 = vld [vmem:[%s17483_s7 + $0x508] ss:$16 sps:$4 sm:$0xff]  }
 0x4bd   : > { %5881 = vmatpush1.bf16.msra.mxu1 %v14134_v25  ;;  %6623 = vmatprep.subr.bf16.mxu0 %v14145_v28  ;;  %v14215_v25 = vld [vmem:[%s17483_s7 + $0x400] ss:$16 sps:$4 sm:$0xff]   ;;  %v14223_v28 = vld [vmem:[%s17483_s7 + $0x424] ss:$16 sps:$4 sm:$0xff]  }
 0x4be   : > { %6019 = vmatprep.subr.bf16.mxu1 %v14142_v27 }
 0x4bf   : > { %12475 = vmatmul.mubr.msk.bf16.vlgmr.msra.gmra.mrb[224].mxu0 %vm2878_vm6, %v16084_v41 }
 0x4c0   : > { %12433 = vmatmul.mubr.msk.bf16.vlgmr.msra.gmra.mrb[204].mxu1 %vm2878_vm6, %v5834_v53  ;;  %6624 = vmatpush1.bf16.msra.mxu0 %v14143_v6  ;;  %v14174_v53 = vld [vmem:[%s17483_s7 + $0x428] ss:$16 sps:$4 sm:$0xff]   ;;  %v14221_v6 = vld [vmem:[%s17483_s7 + $0x420] ss:$16 sps:$4 sm:$0xff]  }
 0x4c1   : > { %6020 = vmatpush1.bf16.msra.mxu1 %v14140_v29  ;;  %6625 = vmatprep.subr.bf16.mxu0 %v14151_v30  ;;  %v14226_v29 = vld [vmem:[%s17483_s7 + $0x52c] ss:$16 sps:$4 sm:$0xff]   ;;  %v14229_v30 = vld [vmem:[%s17483_s7 + $0x444] ss:$16 sps:$4 sm:$0xff]  }
 0x4c2   : > { %6021 = vmatprep.subr.bf16.mxu1 %v14148_v16  ;;  %6051 = vmatprep.mubr.bf16.mxu1 %v14637_v48  ;;  %v14224_v16 = vld [vmem:[%s17483_s7 + $0x528] ss:$16 sps:$4 sm:$0xff]  }
 0x4c3   : > { %6655 = vmatprep.mubr.bf16.mxu0 %v14637_v48 }
 0x4c4   : > { %6626 = vmatpush1.bf16.msra.mxu0 %v14149_v34  ;;  %v14227_v34 = vld [vmem:[%s17483_s7 + $0x440] ss:$16 sps:$4 sm:$0xff]  }
 0x4c5   : > { %6022 = vmatpush1.bf16.msra.mxu1 %v14146_v32  ;;  %6764 = vmatprep.subr.bf16.mxu0 %v14158_v37  ;;  %v14233_v32 = vld [vmem:[%s17483_s7 + $0x54c] ss:$16 sps:$4 sm:$0xff]   ;;  %v14236_v37 = vld [vmem:[%s17483_s7 + $0x464] ss:$16 sps:$4 sm:$0xff]  }
 0x4c6   : > { %6161 = vmatprep.subr.bf16.mxu1 %v14154_v35  ;;  %v14231_v35 = vld [vmem:[%s17483_s7 + $0x548] ss:$16 sps:$4 sm:$0xff]  }
 0x4c7   : > { %12486 = vmatmul.mubr.msk.bf16.vlgmr.msra.gmra.mrb[228].mxu0 %vm2878_vm6, %v6538_v33 }
 0x4c8   : > { %12443 = vmatmul.mubr.msk.bf16.vlgmr.msra.gmra.mrb[208].mxu1 %vm2878_vm6, %v15977_v63  ;;  %6765 = vmatpush1.bf16.msra.mxu0 %v14156_v39  ;;  %v14187_v63 = vld [vmem:[%s17483_s7 + $0x468] ss:$16 sps:$4 sm:$0xff]  }
 0x4c9   : > { %6162 = vmatpush1.bf16.msra.mxu1 %v14152_v38  ;;  %6766 = vmatprep.subr.bf16.mxu0 %v14164_v40  ;;  %v14239_v38 = vld [vmem:[%s17483_s7 + $0x56c] ss:$16 sps:$4 sm:$0xff]   ;;  %v16322_v39 = vld [vmem:[#allocation6 + $0xc] ss:$0 sps:$4 sm:$0x88]  }
 0x4ca   : > { %6163 = vmatprep.subr.bf16.mxu1 %v14161_v12  ;;  %6193 = vmatprep.mubr.bf16.mxu1 %v14637_v48  ;;  %v14237_v12 = vld [vmem:[%s17483_s7 + $0x568] ss:$16 sps:$4 sm:$0xff]   ;;  %v14242_v40 = vld [vmem:[%s17483_s7 + $0x484] ss:$16 sps:$4 sm:$0xff]   ;;  %v7527_v45 = vrot.slane %v16322_v39, 3 }
 0x4cb   : > { %6796 = vmatprep.mubr.bf16.mxu0 %v14637_v48 }
 0x4cc   : > { %6767 = vmatpush1.bf16.msra.mxu0 %v14162_v43  ;;  %v14240_v43 = vld [vmem:[%s17483_s7 + $0x480] ss:$16 sps:$4 sm:$0xff]  }
 0x4cd   : > { %6164 = vmatpush1.bf16.msra.mxu1 %v14159_v42  ;;  %6906 = vmatprep.subr.bf16.mxu0 %v14170_v15  ;;  %v14245_v42 = vld [vmem:[%s17483_s7 + $0x58c] ss:$16 sps:$4 sm:$0xff]   ;;  %v14248_v15 = vld [vmem:[%s17483_s7 + $0x4a4] ss:$16 sps:$4 sm:$0xff]  }
 0x4ce   : > { %6302 = vmatprep.subr.bf16.mxu1 %v14167_v44  ;;  %v14243_v44 = vld [vmem:[%s17483_s7 + $0x588] ss:$16 sps:$4 sm:$0xff]  }
 0x4cf   : > { %12496 = vmatmul.mubr.msk.bf16.vlgmr.msra.gmra.mrb[232].mxu0 %vm2878_vm6, %v16146_v49 }
 0x4d0   : > { %12454 = vmatmul.mubr.msk.bf16.vlgmr.msra.gmra.mrb[212].mxu1 %vm2878_vm6, %v6117_v10  ;;  %6907 = vmatpush1.bf16.msra.mxu0 %v14168_v47  ;;  %v14199_v10 = vld [vmem:[%s17483_s7 + $0x4a8] ss:$16 sps:$4 sm:$0xff]   ;;  %v14246_v47 = vld [vmem:[%s17483_s7 + $0x4a0] ss:$16 sps:$4 sm:$0xff]  }
 0x4d1   : > { %6303 = vmatpush1.bf16.msra.mxu1 %v14165_v46  ;;  %6908 = vmatprep.subr.bf16.mxu0 %v14176_v51  ;;  %v14251_v46 = vld [vmem:[%s17483_s7 + $0x5ac] ss:$16 sps:$4 sm:$0xff]   ;;  %v14254_v51 = vld [vmem:[%s17483_s7 + $0x4c4] ss:$16 sps:$4 sm:$0xff]  }
 0x4d2   : > { %6304 = vmatprep.subr.bf16.mxu1 %v14173_v50  ;;  %6334 = vmatprep.mubr.bf16.mxu1 %v14637_v48  ;;  %v7666_v50 = vshrl.u32 %v16322_v39, 16  ;;  %v14318_v39 = vld [vmem:[%s17483_s7 + $0x70c] ss:$16 sps:$4 sm:$0xff]  }
 0x4d3   : > { %6938 = vmatprep.mubr.bf16.mxu0 %v14637_v48 }
 0x4d4   : > { %6909 = vmatpush1.bf16.msra.mxu0 %v14174_v53  ;;  %v14252_v53 = vld [vmem:[%s17483_s7 + $0x4c0] ss:$16 sps:$4 sm:$0xff]   ;;  %v16383_v55 = vrot.slane %v7666_v50, 3  ;;  %v14329_v50 = vld [vmem:[%s17483_s7 + $0x748] ss:$16 sps:$4 sm:$0xff]  }
 0x4d5   : > { %6305 = vmatpush1.bf16.msra.mxu1 %v14171_v52  ;;  %7047 = vmatprep.subr.bf16.mxu0 %v14183_v56  ;;  %v14257_v52 = vld [vmem:[%s17483_s7 + $0x5cc] ss:$16 sps:$4 sm:$0xff]   ;;  %v14260_v56 = vld [vmem:[%s17483_s7 + $0x4e4] ss:$16 sps:$4 sm:$0xff]  }
 0x4d6   : > { %6440 = vmatprep.subr.bf16.mxu1 %v14179_v54  ;;  %v14255_v54 = vld [vmem:[%s17483_s7 + $0x5c8] ss:$16 sps:$4 sm:$0xff]  }
 0x4d7   : > { %12507 = vmatmul.mubr.msk.bf16.vlgmr.msra.gmra.mrb[236].mxu0 %vm2878_vm6, %v6821_v59 }
 0x4d8   : > { %12464 = vmatmul.mubr.msk.bf16.vlgmr.msra.gmra.mrb[216].mxu1 %vm2878_vm6, %v16046_v22  ;;  %7048 = vmatpush1.bf16.msra.mxu0 %v14181_v58  ;;  %v12528_v22 = vcombine.low %v16252_v20, %v16252_v20  ;;  %v14258_v58 = vld [vmem:[%s17483_s7 + $0x4e0] ss:$16 sps:$4 sm:$0xff]  }
 0x4d9   : > { %6441 = vmatpush1.bf16.msra.mxu1 %v14177_v57  ;;  %7049 = vmatprep.subr.bf16.mxu0 %v14189_v61  ;;  %v14263_v57 = vld [vmem:[%s17483_s7 + $0x5ec] ss:$16 sps:$4 sm:$0xff]  }
 0x4da   : > { %6442 = vmatprep.subr.bf16.mxu1 %v14186_v60  ;;  %6472 = vmatprep.mubr.bf16.mxu1 %v14637_v48  ;;  %v16281_v27 = vshrl.u32 %v12528_v22, 16  ;;  %v14266_v60 = vld [vmem:[%s17483_s7 + $0x504] ss:$16 sps:$4 sm:$0xff]   ;;  %v14270_v61 = vld [vmem:[%s17483_s7 + $0x60c] ss:$16 sps:$4 sm:$0xff]  }
 0x4db   : > { %7079 = vmatprep.mubr.bf16.mxu0 %v14637_v48  ;;  %v14292_v22 = vld [vmem:[%s17483_s7 + $0x688] ss:$16 sps:$4 sm:$0xff]  }
 0x4dc   : > { %7050 = vmatpush1.bf16.msra.mxu0 %v14187_v63  ;;  %v14268_v63 = vld [vmem:[%s17483_s7 + $0x608] ss:$16 sps:$4 sm:$0xff]  }
 0x4dd   : > { %6443 = vmatpush1.bf16.msra.mxu1 %v14184_v62  ;;  %7185 = vmatprep.subr.bf16.mxu0 %v14195_v2  ;;  %v14264_v62 = vld [vmem:[%s17483_s7 + $0x500] ss:$16 sps:$4 sm:$0xff]   ;;  %v16421_v2 = vld [vmem:[#allocation6 + $0x10] sm:$0x1] }
 0x4de   : > { %6582 = vmatprep.subr.bf16.mxu1 %v14192_v1  ;;  %v14273_v1 = vld [vmem:[%s17483_s7 + $0x524] ss:$16 sps:$4 sm:$0xff]  }
 0x4df   : > { %12517 = vmatmul.mubr.msk.bf16.vlgmr.msra.gmra.mrb[240].mxu0 %vm2878_vm6, %v16214_v5 }
 0x4e0   : > { %12474 = vmatmul.mubr.msk.bf16.vlgmr.msra.gmra.mrb[220].mxu1 %vm2878_vm6, %v16084_v41  ;;  %7186 = vmatpush1.bf16.msra.mxu0 %v14193_v4  ;;  %v16302_v41 = vld [vmem:[#allocation6 + $0xc] ss:$0 sps:$4 sm:$0x22]  }
 0x4e1   : > { %6583 = vmatpush1.bf16.msra.mxu1 %v14190_v3  ;;  %7187 = vmatprep.subr.bf16.mxu0 %v14201_v8  ;;  %v7385_v36 = vrot.slane %v16302_v41, 1  ;;  %v14271_v3 = vld [vmem:[%s17483_s7 + $0x520] ss:$16 sps:$4 sm:$0xff]   ;;  %v14274_v4 = vld [vmem:[%s17483_s7 + $0x628] ss:$16 sps:$4 sm:$0xff]  }
 0x4e2   : > { %6584 = vmatprep.subr.bf16.mxu1 %v14198_v7  ;;  %6614 = vmatprep.mubr.bf16.mxu1 %v14637_v48  ;;  %v14279_v7 = vld [vmem:[%s17483_s7 + $0x544] ss:$16 sps:$4 sm:$0xff]   ;;  %v14282_v8 = vld [vmem:[%s17483_s7 + $0x64c] ss:$16 sps:$4 sm:$0xff]  }
 0x4e3   : > { %7217 = vmatprep.mubr.bf16.mxu0 %v14637_v48 }
 0x4e4   : > { %7188 = vmatpush1.bf16.msra.mxu0 %v14199_v10  ;;  %v14280_v10 = vld [vmem:[%s17483_s7 + $0x648] ss:$16 sps:$4 sm:$0xff]  }
 0x4e5   : > { %6585 = vmatpush1.bf16.msra.mxu1 %v14196_v9  ;;  %7328 = vmatprep.subr.bf16.mxu0 %v14208_v13  ;;  %v14277_v9 = vld [vmem:[%s17483_s7 + $0x540] ss:$16 sps:$4 sm:$0xff]   ;;  %v14285_v13 = vld [vmem:[%s17483_s7 + $0x564] ss:$16 sps:$4 sm:$0xff]  }
 0x4e6   : > { %6723 = vmatprep.subr.bf16.mxu1 %v14204_v11 }
 0x4e7   : > { %12527 = vmatmul.mubr.msk.bf16.vlgmr.msra.gmra.mrb[244].mxu0 %vm2878_vm6, %v16252_v20 }
 0x4e8   : > { %12485 = vmatmul.mubr.msk.bf16.vlgmr.msra.gmra.mrb[224].mxu1 %vm2878_vm6, %v6538_v33  ;;  %7329 = vmatpush1.bf16.msra.mxu0 %v14206_v17  ;;  %v14234_v33 = vld [vmem:[%s17483_s7 + $0x460] ss:$16 sps:$4 sm:$0xff]   ;;  %v16457_v17 = vld [vmem:[#allocation6 + $0x10] ss:$0 sps:$4 sm:$0x22]  }
 0x4e9   : > { %6724 = vmatpush1.bf16.msra.mxu1 %v14202_v14  ;;  %7330 = vmatprep.subr.bf16.mxu0 %v14214_v19  ;;  %v14288_v14 = vld [vmem:[%s17483_s7 + $0x66c] ss:$16 sps:$4 sm:$0xff]   ;;  %v14286_v19 = vld [vmem:[%s17483_s7 + $0x668] ss:$16 sps:$4 sm:$0xff]  }
 0x4ea   : > { %6725 = vmatprep.subr.bf16.mxu1 %v14211_v18  ;;  %6755 = vmatprep.mubr.bf16.mxu1 %v14637_v48  ;;  %v14283_v18 = vld [vmem:[%s17483_s7 + $0x560] ss:$16 sps:$4 sm:$0xff]  }
 0x4eb   : > { %7360 = vmatprep.mubr.bf16.mxu0 %v14637_v48 }
 0x4ec   : > { %7331 = vmatpush1.bf16.msra.mxu0 %v14212_v0  ;;  %v14289_v0 = vld [vmem:[%s17483_s7 + $0x580] ss:$16 sps:$4 sm:$0xff]  }
 0x4ed   : > { %6726 = vmatpush1.bf16.msra.mxu1 %v14209_v21  ;;  %7470 = vmatprep.subr.bf16.mxu0 %v14220_v24  ;;  %v14294_v21 = vld [vmem:[%s17483_s7 + $0x68c] ss:$16 sps:$4 sm:$0xff]   ;;  %v14297_v24 = vld [vmem:[%s17483_s7 + $0x5a4] ss:$16 sps:$4 sm:$0xff]  }
 0x4ee   : > { %6865 = vmatprep.subr.bf16.mxu1 %v14217_v23  ;;  %v8091_v23 = vrot.slane %v16457_v17, 1 }
 0x4ef   : > { %12538 = vmatmul.mubr.msk.bf16.vlgmr.msra.gmra.mrb[248].mxu0 %vm2878_vm6, %v16281_v27 }
 0x4f0   : > { %12495 = vmatmul.mubr.msk.bf16.vlgmr.msra.gmra.mrb[228].mxu1 %vm2878_vm6, %v16146_v49  ;;  %7471 = vmatpush1.bf16.msra.mxu0 %v14218_v26  ;;  %v14249_v49 = vld [vmem:[%s17483_s7 + $0x5a8] ss:$16 sps:$4 sm:$0xff]   ;;  %v14295_v26 = vld [vmem:[%s17483_s7 + $0x5a0] ss:$16 sps:$4 sm:$0xff]  }
 0x4f1   : > { %6866 = vmatpush1.bf16.msra.mxu1 %v14215_v25  ;;  %7472 = vmatprep.subr.bf16.mxu0 %v14226_v29  ;;  %v14300_v25 = vld [vmem:[%s17483_s7 + $0x6ac] ss:$16 sps:$4 sm:$0xff]   ;;  %v14303_v29 = vld [vmem:[%s17483_s7 + $0x5c4] ss:$16 sps:$4 sm:$0xff]  }
 0x4f2   : > { %6867 = vmatprep.subr.bf16.mxu1 %v14223_v28  ;;  %6897 = vmatprep.mubr.bf16.mxu1 %v14637_v48  ;;  %v8230_v28 = vshrl.u32 %v16457_v17, 16 }
 0x4f3   : > { %7502 = vmatprep.mubr.bf16.mxu0 %v14637_v48 }
 0x4f4   : > { %7473 = vmatpush1.bf16.msra.mxu0 %v14224_v16  ;;  %v14301_v16 = vld [vmem:[%s17483_s7 + $0x5c0] ss:$16 sps:$4 sm:$0xff]   ;;  %v16518_v41 = vrot.slane %v8230_v28, 1 }
 0x4f5   : > { %6868 = vmatpush1.bf16.msra.mxu1 %v14221_v6  ;;  %7612 = vmatprep.subr.bf16.mxu0 %v14233_v32  ;;  %v14306_v6 = vld [vmem:[%s17483_s7 + $0x6cc] ss:$16 sps:$4 sm:$0xff]   ;;  %v14309_v32 = vld [vmem:[%s17483_s7 + $0x5e4] ss:$16 sps:$4 sm:$0xff]  }
 0x4f6   : > { %7006 = vmatprep.subr.bf16.mxu1 %v14229_v30  ;;  %v14304_v30 = vld [vmem:[%s17483_s7 + $0x6c8] ss:$16 sps:$4 sm:$0xff]  }
 0x4f7   : > { %12549 = vmatmul.mubr.msk.bf16.vlgmr.msra.gmra.mrb[252].mxu0 %vm2878_vm6, %v7385_v36 }
 0x4f8   : > { %12506 = vmatmul.mubr.msk.bf16.vlgmr.msra.gmra.mrb[232].mxu1 %vm2878_vm6, %v6821_v59  ;;  %7613 = vmatpush1.bf16.msra.mxu0 %v14231_v35  ;;  %v14261_v59 = vld [vmem:[%s17483_s7 + $0x5e8] ss:$16 sps:$4 sm:$0xff]   ;;  %v16526_v35 = vld [vmem:[#allocation6 + $0x10] ss:$0 sps:$4 sm:$0x44]  }
 0x4f9   : > { %7007 = vmatpush1.bf16.msra.mxu1 %v14227_v34  ;;  %7614 = vmatprep.subr.bf16.mxu0 %v14239_v38  ;;  %v14312_v34 = vld [vmem:[%s17483_s7 + $0x6ec] ss:$16 sps:$4 sm:$0xff]   ;;  %v14315_v38 = vld [vmem:[%s17483_s7 + $0x604] ss:$16 sps:$4 sm:$0xff]  }
 0x4fa   : > { %7008 = vmatprep.subr.bf16.mxu1 %v14236_v37  ;;  %7038 = vmatprep.mubr.bf16.mxu1 %v14637_v48  ;;  %v14310_v37 = vld [vmem:[%s17483_s7 + $0x6e8] ss:$16 sps:$4 sm:$0xff]  }
 0x4fb   : > { %7644 = vmatprep.mubr.bf16.mxu0 %v14637_v48 }
 0x4fc   : > { %7615 = vmatpush1.bf16.msra.mxu0 %v14237_v12  ;;  %v14316_v12 = vld [vmem:[%s17483_s7 + $0x708] ss:$16 sps:$4 sm:$0xff]  }
 0x4fd   : > { %7009 = vmatpush1.bf16.msra.mxu1 %v14234_v33  ;;  %7753 = vmatprep.subr.bf16.mxu0 %v14245_v42  ;;  %v14313_v33 = vld [vmem:[%s17483_s7 + $0x600] ss:$16 sps:$4 sm:$0xff]   ;;  %v14321_v42 = vld [vmem:[%s17483_s7 + $0x624] ss:$16 sps:$4 sm:$0xff]  }
 0x4fe   : > { %7144 = vmatprep.subr.bf16.mxu1 %v14242_v40  ;;  %v8374_v40 = vrot.slane %v16526_v35, 2  ;;  %v14376_v35 = vld [vmem:[%s17483_s7 + $0x744] ss:$16 sps:$4 sm:$0xff]  }
 0x4ff   : > { %12560 = vmatmul.mubr.msk.bf16.vlgmr.msra.gmra.mrb[0].mxu0 %vm2878_vm6, %v7527_v45 }
 0x500   : > { %12516 = vmatmul.mubr.msk.bf16.vlgmr.msra.gmra.mrb[236].mxu1 %vm2878_vm6, %v16214_v5  ;;  %7754 = vmatpush1.bf16.msra.mxu0 %v14243_v44  ;;  %v12581_v5 = vcombine.low %v16421_v2, %v16421_v2  ;;  %v14319_v44 = vld [vmem:[%s17483_s7 + $0x620] ss:$16 sps:$4 sm:$0xff]  }
 0x501   : > { %7145 = vmatpush1.bf16.msra.mxu1 %v14240_v43  ;;  %7755 = vmatprep.subr.bf16.mxu0 %v14251_v46  ;;  %v14324_v43 = vld [vmem:[%s17483_s7 + $0x72c] ss:$16 sps:$4 sm:$0xff]  }
 0x502   : > { %7146 = vmatprep.subr.bf16.mxu1 %v14248_v15  ;;  %7176 = vmatprep.mubr.bf16.mxu1 %v14637_v48  ;;  %v16449_v11 = vshrl.u32 %v12581_v5, 16  ;;  %v14327_v15 = vld [vmem:[%s17483_s7 + $0x644] ss:$16 sps:$4 sm:$0xff]   ;;  %v14331_v46 = vld [vmem:[%s17483_s7 + $0x74c] ss:$16 sps:$4 sm:$0xff]  }
 0x503   : > { %7785 = vmatprep.mubr.bf16.mxu0 %v14637_v48  ;;  %v14346_v5 = vld [vmem:[%s17483_s7 + $0x6a4] ss:$16 sps:$4 sm:$0xff]  }
 0x504   : > { %7756 = vmatpush1.bf16.msra.mxu0 %v14249_v49  ;;  %v16581_v49 = vld [vmem:[#allocation6 + $0x14] sm:$0x1] }
 0x505   : > { %7147 = vmatpush1.bf16.msra.mxu1 %v14246_v47  ;;  %7891 = vmatprep.subr.bf16.mxu0 %v14257_v52  ;;  %v14325_v47 = vld [vmem:[%s17483_s7 + $0x640] ss:$16 sps:$4 sm:$0xff]   ;;  %v14337_v52 = vld [vmem:[%s17483_s7 + $0x76c] ss:$16 sps:$4 sm:$0xff]  }
 0x506   : > { %7287 = vmatprep.subr.bf16.mxu1 %v14254_v51  ;;  %v14334_v51 = vld [vmem:[%s17483_s7 + $0x664] ss:$16 sps:$4 sm:$0xff]  }
 0x507   : > { %12570 = vmatmul.mubr.msk.bf16.vlgmr.msra.gmra.mrb[4].mxu0 %vm2878_vm6, %v16383_v55 }
 0x508   : > { %12526 = vmatmul.mubr.msk.bf16.vlgmr.msra.gmra.mrb[240].mxu1 %vm2878_vm6, %v16252_v20  ;;  %7892 = vmatpush1.bf16.msra.mxu0 %v14255_v54  ;;  %v14291_v20 = vld [vmem:[%s17483_s7 + $0x584] ss:$16 sps:$4 sm:$0xff]   ;;  %v14332_v54 = vld [vmem:[%s17483_s7 + $0x660] ss:$16 sps:$4 sm:$0xff]  }
 0x509   : > { %7288 = vmatpush1.bf16.msra.mxu1 %v14252_v53  ;;  %7893 = vmatprep.subr.bf16.mxu0 %v14263_v57  ;;  %v12634_v53 = vcombine.low %v16581_v49, %v16581_v49  ;;  %v14343_v57 = vld [vmem:[%s17483_s7 + $0x78c] ss:$16 sps:$4 sm:$0xff]  }
 0x50a   : > { %7289 = vmatprep.subr.bf16.mxu1 %v14260_v56  ;;  %7319 = vmatprep.mubr.bf16.mxu1 %v14637_v48  ;;  %v14340_v56 = vld [vmem:[%s17483_s7 + $0x684] ss:$16 sps:$4 sm:$0xff]  }
 0x50b   : > { %7923 = vmatprep.mubr.bf16.mxu0 %v14637_v48 }
 0x50c   : > { %7894 = vmatpush1.bf16.msra.mxu0 %v14261_v59 }
 0x50d   : > { %7290 = vmatpush1.bf16.msra.mxu1 %v14258_v58  ;;  %8034 = vmatprep.subr.bf16.mxu0 %v14270_v61 }
 0x50e   : > { %7429 = vmatprep.subr.bf16.mxu1 %v14266_v60  ;;  %v16616_v60 = vshrl.u32 %v12634_v53, 16 }
 0x50f   : > { %12580 = vmatmul.mubr.msk.bf16.vlgmr.msra.gmra.mrb[8].mxu0 %vm2878_vm6, %v16421_v2 }
 0x510   : > { %12537 = vmatmul.mubr.msk.bf16.vlgmr.msra.gmra.mrb[244].mxu1 %vm2878_vm6, %v16281_v27  ;;  %8035 = vmatpush1.bf16.msra.mxu0 %v14268_v63  ;;  %v14298_v27 = vld [vmem:[%s17483_s7 + $0x6a8] ss:$16 sps:$4 sm:$0xff]  }
 0x511   : > { %7430 = vmatpush1.bf16.msra.mxu1 %v14264_v62  ;;  %8036 = vmatprep.subr.bf16.mxu0 %v14276_v31  ;;  %v14338_v31 = vld [vmem:[%s17483_s7 + $0x680] ss:$16 sps:$4 sm:$0xff]  }
 0x512   : > { %7431 = vmatprep.subr.bf16.mxu1 %v14273_v1  ;;  %7461 = vmatprep.mubr.bf16.mxu1 %v14637_v48 }
 0x513   : > { %8066 = vmatprep.mubr.bf16.mxu0 %v14637_v48 }
 0x514   : > { %8037 = vmatpush1.bf16.msra.mxu0 %v14274_v4 }
 0x515   : > { %7432 = vmatpush1.bf16.msra.mxu1 %v14271_v3  ;;  %8176 = vmatprep.subr.bf16.mxu0 %v14282_v8  ;;  %v16634_v8 = vld [vmem:[#allocation6 + $0x14] ss:$0 sps:$4 sm:$0x22]  }
 0x516   : > { %7571 = vmatprep.subr.bf16.mxu1 %v14279_v7  ;;  %v14349_v7 = vld [vmem:[%s17483_s7 + $0x7ac] ss:$16 sps:$4 sm:$0xff]   ;;  %v8936_v28 = vshrl.u32 %v16634_v8, 16 }
 0x517   : > { %12591 = vmatmul.mubr.msk.bf16.vlgmr.msra.gmra.mrb[12].mxu0 %vm2878_vm6, %v16449_v11 }
 0x518   : > { %12548 = vmatmul.mubr.msk.bf16.vlgmr.msra.gmra.mrb[248].mxu1 %vm2878_vm6, %v7385_v36  ;;  %8177 = vmatpush1.bf16.msra.mxu0 %v14280_v10  ;;  %v14307_v36 = vld [vmem:[%s17483_s7 + $0x5e0] ss:$16 sps:$4 sm:$0xff]   ;;  %v14347_v10 = vld [vmem:[%s17483_s7 + $0x7a8] ss:$16 sps:$4 sm:$0xff]  }
 0x519   : > { %7572 = vmatpush1.bf16.msra.mxu1 %v14277_v9  ;;  %8178 = vmatprep.subr.bf16.mxu0 %v14288_v14  ;;  %v14344_v9 = vld [vmem:[%s17483_s7 + $0x6a0] ss:$16 sps:$4 sm:$0xff]  }
 0x51a   : > { %7573 = vmatprep.subr.bf16.mxu1 %v14285_v13  ;;  %7603 = vmatprep.mubr.bf16.mxu1 %v14637_v48  ;;  %v14355_v13 = vld [vmem:[%s17483_s7 + $0x7cc] ss:$16 sps:$4 sm:$0xff]  }
 0x51b   : > { %8208 = vmatprep.mubr.bf16.mxu0 %v14637_v48 }
 0x51c   : > { %8179 = vmatpush1.bf16.msra.mxu0 %v14286_v19 }
 0x51d   : > { %7574 = vmatpush1.bf16.msra.mxu1 %v14283_v18  ;;  %8317 = vmatprep.subr.bf16.mxu0 %v14294_v21  ;;  %v8797_v18 = vrot.slane %v16634_v8, 1  ;;  %v14412_v8 = vld [vmem:[%s17483_s7 + $0x804] ss:$16 sps:$4 sm:$0xff]  }
 0x51e   : > { %7712 = vmatprep.subr.bf16.mxu1 %v14291_v20 }
 0x51f   : > { %12602 = vmatmul.mubr.msk.bf16.vlgmr.msra.gmra.mrb[16].mxu0 %vm2878_vm6, %v8091_v23 }
 0x520   : > { %12559 = vmatmul.mubr.msk.bf16.vlgmr.msra.gmra.mrb[252].mxu1 %vm2878_vm6, %v7527_v45  ;;  %8318 = vmatpush1.bf16.msra.mxu0 %v14292_v22  ;;  %v14322_v45 = vld [vmem:[%s17483_s7 + $0x728] ss:$16 sps:$4 sm:$0xff]   ;;  %v14350_v22 = vld [vmem:[%s17483_s7 + $0x6c0] ss:$16 sps:$4 sm:$0xff]  }
 0x521   : > { %7713 = vmatpush1.bf16.msra.mxu1 %v14289_v0  ;;  %8319 = vmatprep.subr.bf16.mxu0 %v14300_v25 }
 0x522   : > { %7714 = vmatprep.subr.bf16.mxu1 %v14297_v24  ;;  %7744 = vmatprep.mubr.bf16.mxu1 %v14637_v48 }
 0x523   : > { %8349 = vmatprep.mubr.bf16.mxu0 %v14637_v48 }
 0x524   : > { %8320 = vmatpush1.bf16.msra.mxu0 %v14298_v27  ;;  %v14361_v27 = vld [vmem:[%s17483_s7 + $0x7ec] ss:$16 sps:$4 sm:$0xff]  }
 0x525   : > { %7715 = vmatpush1.bf16.msra.mxu1 %v14295_v26  ;;  %8459 = vmatprep.subr.bf16.mxu0 %v14306_v6  ;;  %v14358_v26 = vld [vmem:[%s17483_s7 + $0x6e4] ss:$16 sps:$4 sm:$0xff]   ;;  %v14359_v6 = vld [vmem:[%s17483_s7 + $0x7e8] ss:$16 sps:$4 sm:$0xff]  }
 0x526   : > { %7850 = vmatprep.subr.bf16.mxu1 %v14303_v29  ;;  %v14356_v29 = vld [vmem:[%s17483_s7 + $0x6e0] ss:$16 sps:$4 sm:$0xff]  }
 0x527   : > { %12612 = vmatmul.mubr.msk.bf16.vlgmr.msra.gmra.mrb[20].mxu0 %vm2878_vm6, %v16518_v41 }
 0x528   : > { %12569 = vmatmul.mubr.msk.bf16.vlgmr.msra.gmra.mrb[0].mxu1 %vm2878_vm6, %v16383_v55  ;;  %8460 = vmatpush1.bf16.msra.mxu0 %v14304_v30  ;;  %v14335_v55 = vld [vmem:[%s17483_s7 + $0x768] ss:$16 sps:$4 sm:$0xff]   ;;  %v14367_v30 = vld [vmem:[%s17483_s7 + $0x80c] ss:$16 sps:$4 sm:$0xff]  }
 0x529   : > { %7851 = vmatpush1.bf16.msra.mxu1 %v14301_v16  ;;  %8461 = vmatprep.subr.bf16.mxu0 %v14312_v34  ;;  %v14364_v16 = vld [vmem:[%s17483_s7 + $0x704] ss:$16 sps:$4 sm:$0xff]  }
 0x52a   : > { %7852 = vmatprep.subr.bf16.mxu1 %v14309_v32  ;;  %7882 = vmatprep.mubr.bf16.mxu1 %v14637_v48 }
 0x52b   : > { %8491 = vmatprep.mubr.bf16.mxu0 %v14637_v48 }
 0x52c   : > { %8462 = vmatpush1.bf16.msra.mxu0 %v14310_v37 }
 0x52d   : > { %7853 = vmatpush1.bf16.msra.mxu1 %v14307_v36  ;;  %8597 = vmatprep.subr.bf16.mxu0 %v14318_v39 }
 0x52e   : > { %7993 = vmatprep.subr.bf16.mxu1 %v14315_v38  ;;  %v16703_v38 = vrot.slane %v8936_v28, 1 }
 0x52f   : > { %12623 = vmatmul.mubr.msk.bf16.vlgmr.msra.gmra.mrb[24].mxu0 %vm2878_vm6, %v8374_v40 }
 0x530   : > { %12579 = vmatmul.mubr.msk.bf16.vlgmr.msra.gmra.mrb[4].mxu1 %vm2878_vm6, %v16421_v2  ;;  %8598 = vmatpush1.bf16.msra.mxu0 %v14316_v12  ;;  %v14341_v2 = vld [vmem:[%s17483_s7 + $0x788] ss:$16 sps:$4 sm:$0xff]  }
 0x531   : > { %7994 = vmatpush1.bf16.msra.mxu1 %v14313_v33  ;;  %8599 = vmatprep.subr.bf16.mxu0 %v14324_v43  ;;  %v14365_v43 = vld [vmem:[%s17483_s7 + $0x808] ss:$16 sps:$4 sm:$0xff]  }
 0x532   : > { %7995 = vmatprep.subr.bf16.mxu1 %v14321_v42  ;;  %8025 = vmatprep.mubr.bf16.mxu1 %v14637_v48  ;;  %v14362_v42 = vld [vmem:[%s17483_s7 + $0x700] ss:$16 sps:$4 sm:$0xff]  }
 0x533   : > { %8629 = vmatprep.mubr.bf16.mxu0 %v14637_v48 }
 0x534   : > { %8600 = vmatpush1.bf16.msra.mxu0 %v14322_v45 }
 0x535   : > { %7996 = vmatpush1.bf16.msra.mxu1 %v14319_v44  ;;  %8740 = vmatprep.subr.bf16.mxu0 %v14331_v46  ;;  %v14373_v46 = vld [vmem:[%s17483_s7 + $0x82c] ss:$16 sps:$4 sm:$0xff]  }
 0x536   : > { %8135 = vmatprep.subr.bf16.mxu1 %v14327_v15  ;;  %v14370_v15 = vld [vmem:[%s17483_s7 + $0x724] ss:$16 sps:$4 sm:$0xff]  }
 0x537   : > { %12633 = vmatmul.mubr.msk.bf16.vlgmr.msra.gmra.mrb[28].mxu0 %vm2878_vm6, %v16581_v49 }
 0x538   : > { %12590 = vmatmul.mubr.msk.bf16.vlgmr.msra.gmra.mrb[8].mxu1 %vm2878_vm6, %v16449_v11  ;;  %8741 = vmatpush1.bf16.msra.mxu0 %v14329_v50  ;;  %v14352_v11 = vld [vmem:[%s17483_s7 + $0x6c4] ss:$16 sps:$4 sm:$0xff]   ;;  %v14368_v50 = vld [vmem:[%s17483_s7 + $0x720] ss:$16 sps:$4 sm:$0xff]  }
 0x539   : > { %8136 = vmatpush1.bf16.msra.mxu1 %v14325_v47  ;;  %8742 = vmatprep.subr.bf16.mxu0 %v14337_v52  ;;  %v16720_v47 = vld [vmem:[#allocation6 + $0x14] ss:$0 sps:$4 sm:$0x44]  }
 0x53a   : > { %8137 = vmatprep.subr.bf16.mxu1 %v14334_v51  ;;  %v16612_v59 = vpop.f32.mrb[180].mxu0  ;;  %8167 = vmatprep.mubr.bf16.mxu1 %v14637_v48  ;;  %v14371_v51 = vld [vmem:[%s17483_s7 + $0x828] ss:$16 sps:$4 sm:$0xff]  }
 0x53b   : > { %v16610_v58 = vpop.f32.mrb[160].mxu1  ;;  %8772 = vmatprep.mubr.bf16.mxu0 %v14637_v48  ;;  %v16620_v62 = vpop.f32.mrb[181].mxu0 }
 0x53c   : > { %v16618_v61 = vpop.f32.mrb[161].mxu1  ;;  %v4966_v1 = vpop.f32.mrb[182].mxu0  ;;  %8743 = vmatpush1.bf16.msra.mxu0 %v14335_v55 }
 0x53d   : > { %v4662_v63 = vpop.f32.mrb[162].mxu1  ;;  %8138 = vmatpush1.bf16.msra.mxu1 %v14332_v54  ;;  %v4967_v4 = vpop.f32.mrb[183].mxu0  ;;  %8882 = vmatprep.subr.bf16.mxu0 %v14343_v57  ;;  %v9080_v54 = vrot.slane %v16720_v47, 2  ;;  %v14374_v1 = vld [vmem:[%s17483_s7 + $0x740] ss:$16 sps:$4 sm:$0xff]  }
 0x53e   : > { %v4663_v3 = vpop.f32.mrb[163].mxu1  ;;  %8276 = vmatprep.subr.bf16.mxu1 %v14340_v56 }
 0x53f   : > { %12644 = vmatmul.mubr.msk.bf16.vlgmr.msra.gmra.mrb[32].mxu0 %vm2878_vm6, %v16616_v60 }
 0x540   : > { %12601 = vmatmul.mubr.msk.bf16.vlgmr.msra.gmra.mrb[12].mxu1 %vm2878_vm6, %v8091_v23  ;;  %8883 = vmatpush1.bf16.msra.mxu0 %v14341_v2  ;;  %v14353_v23 = vld [vmem:[%s17483_s7 + $0x7c8] ss:$16 sps:$4 sm:$0xff]  }
 0x541   : > { %8277 = vmatpush1.bf16.msra.mxu1 %v14338_v31  ;;  %8884 = vmatprep.subr.bf16.mxu0 %v14349_v7  ;;  %v14377_v31 = vld [vmem:[%s17483_s7 + $0x848] ss:$16 sps:$4 sm:$0xff]   ;;  %v14385_v7 = vld [vmem:[%s17483_s7 + $0x86c] ss:$16 sps:$4 sm:$0xff]  }
 0x542   : > { %8278 = vmatprep.subr.bf16.mxu1 %v14346_v5  ;;  %v16655_v17 = vpop.f32.mrb[184].mxu0  ;;  %8308 = vmatprep.mubr.bf16.mxu1 %v14637_v48  ;;  %v14382_v5 = vld [vmem:[%s17483_s7 + $0x764] ss:$16 sps:$4 sm:$0xff]  }
 0x543   : > { %v16653_v14 = vpop.f32.mrb[164].mxu1  ;;  %8914 = vmatprep.mubr.bf16.mxu0 %v14637_v48  ;;  %v16662_v20 = vpop.f32.mrb[185].mxu0 }
 0x544   : > { %v16660_v19 = vpop.f32.mrb[165].mxu1  ;;  %v5107_v0 = vpop.f32.mrb[186].mxu0  ;;  %8885 = vmatpush1.bf16.msra.mxu0 %v14347_v10  ;;  %v9219_v10 = vshrl.u32 %v16720_v47, 16  ;;  %v14436_v47 = vld [vmem:[%s17483_s7 + $0x884] ss:$16 sps:$4 sm:$0xff]  }
 0x545   : > { %v4703_v21 = vpop.f32.mrb[166].mxu1  ;;  %8279 = vmatpush1.bf16.msra.mxu1 %v14344_v9  ;;  %v5108_v25 = vpop.f32.mrb[187].mxu0  ;;  %9023 = vmatprep.subr.bf16.mxu0 %v14355_v13  ;;  %v14380_v13 = vld [vmem:[%s17483_s7 + $0x760] ss:$16 sps:$4 sm:$0xff]  }
 0x546   : > { %v4704_v24 = vpop.f32.mrb[167].mxu1  ;;  %8418 = vmatprep.subr.bf16.mxu1 %v14352_v11  ;;  %v16783_v25 = vrot.slane %v9219_v10, 2 }
 0x547   : > { %12655 = vmatmul.mubr.msk.bf16.vlgmr.msra.gmra.mrb[36].mxu0 %vm2878_vm6, %v8797_v18 }
 0x548   : > { %12611 = vmatmul.mubr.msk.bf16.vlgmr.msra.gmra.mrb[16].mxu1 %vm2878_vm6, %v16518_v41  ;;  %9024 = vmatpush1.bf16.msra.mxu0 %v14353_v23 }
 0x549   : > { %8419 = vmatpush1.bf16.msra.mxu1 %v14350_v22  ;;  %9025 = vmatprep.subr.bf16.mxu0 %v14361_v27 }
 0x54a   : > { %8420 = vmatprep.subr.bf16.mxu1 %v14358_v26  ;;  %v16694_v32 = vpop.f32.mrb[188].mxu0  ;;  %8450 = vmatprep.mubr.bf16.mxu1 %v14637_v48 }
 0x54b   : > { %v4783_v41 = vpop.f32.mrb[168].mxu1  ;;  %9055 = vmatprep.mubr.bf16.mxu0 %v14637_v48  ;;  %v16701_v37 = vpop.f32.mrb[189].mxu0 }
 0x54c   : > { %v16699_v34 = vadd.f32 %v4783_v41, %v16610_v58  ;;  %v4785_v36 = vpop.f32.mrb[169].mxu1  ;;  %v5249_v12 = vpop.f32.mrb[190].mxu0  ;;  %9026 = vmatpush1.bf16.msra.mxu0 %v14359_v6  ;;  %v14386_v6 = vld [vmem:[%s17483_s7 + $0x780] ss:$16 sps:$4 sm:$0xff]  }
 0x54d   : > { %v16706_v39 = vadd.f32 %v4785_v36, %v16618_v61  ;;  %v4787_v33 = vpop.f32.mrb[170].mxu1  ;;  %8421 = vmatpush1.bf16.msra.mxu1 %v14356_v29  ;;  %v5250_v45 = vpop.f32.mrb[191].mxu0  ;;  %9165 = vmatprep.subr.bf16.mxu0 %v14367_v30  ;;  %v14397_v36 = vld [vmem:[%s17483_s7 + $0x8ac] ss:$16 sps:$4 sm:$0xff]   ;;  %v14395_v12 = vld [vmem:[%s17483_s7 + $0x8a8] ss:$16 sps:$4 sm:$0xff]  }
 0x54e   : > { %v4788_v44 = vpop.f32.mrb[171].mxu1  ;;  %8556 = vmatprep.subr.bf16.mxu1 %v14364_v16  ;;  %v14389_v16 = vld [vmem:[%s17483_s7 + $0x888] ss:$16 sps:$4 sm:$0xff]   ;;  %v14392_v33 = vld [vmem:[%s17483_s7 + $0x7a0] ss:$16 sps:$4 sm:$0xff]  }
 0x54f   : > { %12665 = vmatmul.mubr.msk.bf16.vlgmr.msra.gmra.mrb[40].mxu0 %vm2878_vm6, %v16703_v38 }
 0x550   : > { %12622 = vmatmul.mubr.msk.bf16.vlgmr.msra.gmra.mrb[20].mxu1 %vm2878_vm6, %v8374_v40  ;;  %9166 = vmatpush1.bf16.msra.mxu0 %v14365_v43  ;;  %v14379_v40 = vld [vmem:[%s17483_s7 + $0x84c] ss:$16 sps:$4 sm:$0xff]  }
 0x551   : > { %8557 = vmatpush1.bf16.msra.mxu1 %v14362_v42  ;;  %9167 = vmatprep.subr.bf16.mxu0 %v14373_v46  ;;  %v14400_v42 = vld [vmem:[%s17483_s7 + $0x7c4] ss:$16 sps:$4 sm:$0xff]  }
 0x552   : > { %8558 = vmatprep.subr.bf16.mxu1 %v14370_v15  ;;  %v5386_v53 = vpop.f32.mrb[192].mxu0  ;;  %8588 = vmatprep.mubr.bf16.mxu1 %v14637_v48 }
 0x553   : > { %v4824_v52 = vpop.f32.mrb[172].mxu1  ;;  %9197 = vmatprep.mubr.bf16.mxu0 %v14637_v48  ;;  %v5388_v57 = vpop.f32.mrb[193].mxu0 }
 0x554   : > { %v4825_v55 = vadd.f32 %v4824_v52, %v16653_v14  ;;  %v4826_v56 = vpop.f32.mrb[173].mxu1  ;;  %v5390_v63 = vpop.f32.mrb[194].mxu0  ;;  %9168 = vmatpush1.bf16.msra.mxu0 %v14371_v51 }
 0x555   : > { %v4827_v58 = vadd.f32 %v4826_v56, %v16660_v19  ;;  %v4828_v61 = vpop.f32.mrb[174].mxu1  ;;  %8559 = vmatpush1.bf16.msra.mxu1 %v14368_v50  ;;  %v5391_v4 = vpop.f32.mrb[195].mxu0  ;;  %9306 = vmatprep.subr.bf16.mxu0 %v14379_v40  ;;  %v14401_v56 = vld [vmem:[%s17483_s7 + $0x8c8] ss:$16 sps:$4 sm:$0xff]   ;;  %v14409_v63 = vld [vmem:[%s17483_s7 + $0x8ec] ss:$16 sps:$4 sm:$0xff]  }
 0x556   : > { %v4971_v2 = vadd.f32 %v16612_v59, %v4825_v55  ;;  %v4829_v3 = vpop.f32.mrb[175].mxu1  ;;  %8699 = vmatprep.subr.bf16.mxu1 %v14376_v35  ;;  %v14398_v55 = vld [vmem:[%s17483_s7 + $0x7c0] ss:$16 sps:$4 sm:$0xff]   ;;  %v14406_v61 = vld [vmem:[%s17483_s7 + $0x7e4] ss:$16 sps:$4 sm:$0xff]  }
 0x557   : > { %v4972_v9 = vadd.f32 %v16620_v62, %v4827_v58  ;;  %12676 = vmatmul.mubr.msk.bf16.vlgmr.msra.gmra.mrb[44].mxu0 %vm2878_vm6, %v9080_v54  ;;  %v14383_v62 = vld [vmem:[%s17483_s7 + $0x868] ss:$16 sps:$4 sm:$0xff]  }
 0x558   : > { %v5112_v11 = vadd.f32 %v16655_v17, %v4971_v2  ;;  %12632 = vmatmul.mubr.msk.bf16.vlgmr.msra.gmra.mrb[24].mxu1 %vm2878_vm6, %v16581_v49  ;;  %9307 = vmatpush1.bf16.msra.mxu0 %v14377_v31  ;;  %v14388_v49 = vld [vmem:[%s17483_s7 + $0x784] ss:$16 sps:$4 sm:$0xff]   ;;  %v14391_v17 = vld [vmem:[%s17483_s7 + $0x88c] ss:$16 sps:$4 sm:$0xff]   ;;  %v14404_v31 = vld [vmem:[%s17483_s7 + $0x7e0] ss:$16 sps:$4 sm:$0xff]  }
 0x559   : > { %v5113_v59 = vadd.f32 %v16662_v20, %v4972_v9  ;;  %8700 = vmatpush1.bf16.msra.mxu1 %v14374_v1  ;;  %9308 = vmatprep.subr.bf16.mxu0 %v14385_v7  ;;  %v16831_v1 = vld [vmem:[#allocation6 + $0x18] ss:$0 sps:$4 sm:$0x22]   ;;  %v14407_v2 = vld [vmem:[%s17483_s7 + $0x8e8] ss:$16 sps:$4 sm:$0xff]  }
 0x55a   : > { %v5254_v14 = vadd.f32 %v16694_v32, %v5112_v11  ;;  %8701 = vmatprep.subr.bf16.mxu1 %v14382_v5  ;;  %v5528_v21 = vpop.f32.mrb[196].mxu0  ;;  %8731 = vmatprep.mubr.bf16.mxu1 %v14637_v48  ;;  %v9505_v5 = vrot.slane %v16831_v1, 1 }
 0x55b   : > { %v5255_v19 = vadd.f32 %v16701_v37, %v5113_v59  ;;  %v4921_v20 = vpop.f32.mrb[176].mxu1  ;;  %9338 = vmatprep.mubr.bf16.mxu0 %v14637_v48  ;;  %v5530_v24 = vpop.f32.mrb[197].mxu0 }
 0x55c   : > { %v5395_v0 = vadd.f32 %v5386_v53, %v5254_v14  ;;  %v4969_v22 = vadd.f32 %v4921_v20, %v16699_v34  ;;  %v4923_v23 = vpop.f32.mrb[177].mxu1  ;;  %v5532_v29 = vpop.f32.mrb[198].mxu0  ;;  %9309 = vmatpush1.bf16.msra.mxu0 %v14383_v62  ;;  %v14394_v34 = vld [vmem:[%s17483_s7 + $0x7a4] ss:$16 sps:$4 sm:$0xff]  }
 0x55d   : > { %v5396_v26 = vadd.f32 %v5388_v57, %v5255_v19  ;;  %v4970_v27 = vadd.f32 %v4923_v23, %v16706_v39  ;;  %v4925_v28 = vpop.f32.mrb[178].mxu1  ;;  %8702 = vmatpush1.bf16.msra.mxu1 %v14380_v13  ;;  %v5533_v32 = vpop.f32.mrb[199].mxu0  ;;  %9448 = vmatprep.subr.bf16.mxu0 %v14391_v17  ;;  %v16798_v39 = vld [vmem:[#allocation6 + $0x14] ss:$0 sps:$4 sm:$0x88]  }
 0x55e   : > { %v5537_v30 = vadd.f32 %v5528_v21, %v5395_v0  ;;  %v4926_v41 = vpop.f32.mrb[179].mxu1  ;;  %8841 = vmatprep.subr.bf16.mxu1 %v14388_v49  ;;  %v9363_v45 = vrot.slane %v16798_v39, 3  ;;  %v14410_v49 = vld [vmem:[%s17483_s7 + $0x800] ss:$16 sps:$4 sm:$0xff]   ;;  %v14413_v17 = vld [vmem:[%s17483_s7 + $0x908] ss:$16 sps:$4 sm:$0xff]  }
 0x55f   : > { %v5538_v37 = vadd.f32 %v5530_v24, %v5396_v26  ;;  %12686 = vmatmul.mubr.msk.bf16.vlgmr.msra.gmra.mrb[48].mxu0 %vm2878_vm6, %v16783_v25  ;;  %v14418_v21 = vld [vmem:[%s17483_s7 + $0x824] ss:$16 sps:$4 sm:$0xff]   ;;  %v14421_v0 = vld [vmem:[%s17483_s7 + $0x92c] ss:$16 sps:$4 sm:$0xff]   ;;  %v14416_v23 = vld [vmem:[%s17483_s7 + $0x820] ss:$16 sps:$4 sm:$0xff]  }
 0x560   : > { %12643 = vmatmul.mubr.msk.bf16.vlgmr.msra.gmra.mrb[28].mxu1 %vm2878_vm6, %v16616_v60  ;;  %9449 = vmatpush1.bf16.msra.mxu0 %v14389_v16  ;;  %v14403_v60 = vld [vmem:[%s17483_s7 + $0x8cc] ss:$16 sps:$4 sm:$0xff]   ;;  %v14419_v24 = vld [vmem:[%s17483_s7 + $0x928] ss:$16 sps:$4 sm:$0xff]   ;;  %v14460_v39 = vld [vmem:[%s17483_s7 + $0x904] ss:$16 sps:$4 sm:$0xff]  }
 0x561   : > { %8842 = vmatpush1.bf16.msra.mxu1 %v14386_v6  ;;  %9450 = vmatprep.subr.bf16.mxu0 %v14397_v36  ;;  %v14427_v26 = vld [vmem:[%s17483_s7 + $0x94c] ss:$16 sps:$4 sm:$0xff]  }
 0x562   : > { %8843 = vmatprep.subr.bf16.mxu1 %v14394_v34  ;;  %v5670_v44 = vpop.f32.mrb[200].mxu0  ;;  %8873 = vmatprep.mubr.bf16.mxu1 %v14637_v48 }
 0x563   : > { %v5062_v43 = vpop.f32.mrb[180].mxu1  ;;  %9480 = vmatprep.mubr.bf16.mxu0 %v14637_v48  ;;  %v5679_v46 = vadd.f32 %v5670_v44, %v5537_v30  ;;  %v5672_v51 = vpop.f32.mrb[201].mxu0  ;;  %v14433_v44 = vld [vmem:[%s17483_s7 + $0x96c] ss:$16 sps:$4 sm:$0xff]  }
 0x564   : > { %v5110_v15 = vadd.f32 %v5062_v43, %v4969_v22  ;;  %v5064_v50 = vpop.f32.mrb[181].mxu1  ;;  %v5680_v40 = vadd.f32 %v5672_v51, %v5538_v37  ;;  %v5674_v53 = vpop.f32.mrb[202].mxu0  ;;  %9451 = vmatpush1.bf16.msra.mxu0 %v14395_v12  ;;  %v9644_v22 = vshrl.u32 %v16831_v1, 16  ;;  %v14425_v12 = vld [vmem:[%s17483_s7 + $0x948] ss:$16 sps:$4 sm:$0xff]  }
 0x565   : > { %v5111_v35 = vadd.f32 %v5064_v50, %v4970_v27  ;;  %v5066_v52 = vpop.f32.mrb[182].mxu1  ;;  %8844 = vmatpush1.bf16.msra.mxu1 %v14392_v33  ;;  %v5675_v58 = vpop.f32.mrb[203].mxu0  ;;  %9590 = vmatprep.subr.bf16.mxu0 %v14403_v60  ;;  %v14422_v33 = vld [vmem:[%s17483_s7 + $0x840] ss:$16 sps:$4 sm:$0xff]   ;;  %v14430_v43 = vld [vmem:[%s17483_s7 + $0x864] ss:$16 sps:$4 sm:$0xff]  }
 0x566   : > { %v5067_v57 = vpop.f32.mrb[183].mxu1  ;;  %8982 = vmatprep.subr.bf16.mxu1 %v14400_v42  ;;  %v16886_v41 = vrot.slane %v9644_v22, 1  ;;  %v14431_v50 = vld [vmem:[%s17483_s7 + $0x968] ss:$16 sps:$4 sm:$0xff]   ;;  %v14472_v1 = vld [vmem:[%s17483_s7 + $0x944] ss:$16 sps:$4 sm:$0xff]  }
 0x567   : > { %12697 = vmatmul.mubr.msk.bf16.vlgmr.msra.gmra.mrb[52].mxu0 %vm2878_vm6, %v9363_v45 }
 0x568   : > { %12654 = vmatmul.mubr.msk.bf16.vlgmr.msra.gmra.mrb[32].mxu1 %vm2878_vm6, %v8797_v18  ;;  %9591 = vmatpush1.bf16.msra.mxu0 %v14401_v56  ;;  %v14415_v18 = vld [vmem:[%s17483_s7 + $0x90c] ss:$16 sps:$4 sm:$0xff]  }
 0x569   : > { %8983 = vmatpush1.bf16.msra.mxu1 %v14398_v55  ;;  %9592 = vmatprep.subr.bf16.mxu0 %v14409_v63 }
 0x56a   : > { %8984 = vmatprep.subr.bf16.mxu1 %v14406_v61  ;;  %v5811_v4 = vpop.f32.mrb[204].mxu0  ;;  %9014 = vmatprep.mubr.bf16.mxu1 %v14637_v48 }
 0x56b   : > { %v5204_v3 = vpop.f32.mrb[184].mxu1  ;;  %9622 = vmatprep.mubr.bf16.mxu0 %v14637_v48  ;;  %v5820_v9 = vadd.f32 %v5811_v4, %v5679_v46  ;;  %v5813_v11 = vpop.f32.mrb[205].mxu0  ;;  %v14428_v46 = vld [vmem:[%s17483_s7 + $0x860] ss:$16 sps:$4 sm:$0xff]   ;;  %v14445_v4 = vld [vmem:[%s17483_s7 + $0x9ac] ss:$16 sps:$4 sm:$0xff]  }
 0x56c   : > { %v5252_v7 = vadd.f32 %v5204_v3, %v5110_v15  ;;  %v5206_v10 = vpop.f32.mrb[185].mxu1  ;;  %v5821_v13 = vadd.f32 %v5813_v11, %v5680_v40  ;;  %v5815_v14 = vpop.f32.mrb[206].mxu0  ;;  %9593 = vmatpush1.bf16.msra.mxu0 %v14407_v2  ;;  %v16900_v15 = vld [vmem:[#allocation6 + $0x18] ss:$0 sps:$4 sm:$0x44]  }
 0x56d   : > { %v5253_v59 = vadd.f32 %v5206_v10, %v5111_v35  ;;  %v5208_v62 = vpop.f32.mrb[186].mxu1  ;;  %8985 = vmatpush1.bf16.msra.mxu1 %v14404_v31  ;;  %v5816_v20 = vpop.f32.mrb[207].mxu0  ;;  %9731 = vmatprep.subr.bf16.mxu0 %v14415_v18  ;;  %v9788_v40 = vrot.slane %v16900_v15, 2  ;;  %v14434_v31 = vld [vmem:[%s17483_s7 + $0x880] ss:$16 sps:$4 sm:$0xff]  }
 0x56e   : > { %v5209_v19 = vpop.f32.mrb[187].mxu1  ;;  %9124 = vmatprep.subr.bf16.mxu1 %v14412_v8  ;;  %v14437_v2 = vld [vmem:[%s17483_s7 + $0x988] ss:$16 sps:$4 sm:$0xff]   ;;  %v14442_v3 = vld [vmem:[%s17483_s7 + $0x8a4] ss:$16 sps:$4 sm:$0xff]  }
 0x56f   : > { %12708 = vmatmul.mubr.msk.bf16.vlgmr.msra.gmra.mrb[56].mxu0 %vm2878_vm6, %v9505_v5  ;;  %v14443_v10 = vld [vmem:[%s17483_s7 + $0x9a8] ss:$16 sps:$4 sm:$0xff]   ;;  %v14451_v11 = vld [vmem:[%s17483_s7 + $0x9cc] ss:$16 sps:$4 sm:$0xff]  }
 0x570   : > { %12664 = vmatmul.mubr.msk.bf16.vlgmr.msra.gmra.mrb[36].mxu1 %vm2878_vm6, %v16703_v38  ;;  %9732 = vmatpush1.bf16.msra.mxu0 %v14413_v17  ;;  %v14424_v38 = vld [vmem:[%s17483_s7 + $0x844] ss:$16 sps:$4 sm:$0xff]  }
 0x571   : > { %9125 = vmatpush1.bf16.msra.mxu1 %v14410_v49  ;;  %9733 = vmatprep.subr.bf16.mxu0 %v14421_v0 }
 0x572   : > { %9126 = vmatprep.subr.bf16.mxu1 %v14418_v21  ;;  %v5953_v28 = vpop.f32.mrb[208].mxu0  ;;  %9156 = vmatprep.mubr.bf16.mxu1 %v14637_v48 }
 0x573   : > { %v5345_v27 = vpop.f32.mrb[188].mxu1  ;;  %9763 = vmatprep.mubr.bf16.mxu0 %v14637_v48  ;;  %v5962_v6 = vadd.f32 %v5953_v28, %v5820_v9  ;;  %v5955_v30 = vpop.f32.mrb[209].mxu0  ;;  %v14440_v9 = vld [vmem:[%s17483_s7 + $0x8a0] ss:$16 sps:$4 sm:$0xff]   ;;  %v14457_v28 = vld [vmem:[%s17483_s7 + $0x9ec] ss:$16 sps:$4 sm:$0xff]  }
 0x574   : > { %v5393_v29 = vadd.f32 %v5345_v27, %v5252_v7  ;;  %v5347_v16 = vpop.f32.mrb[189].mxu1  ;;  %v5963_v34 = vadd.f32 %v5955_v30, %v5821_v13  ;;  %v5957_v37 = vpop.f32.mrb[210].mxu0  ;;  %9734 = vmatpush1.bf16.msra.mxu0 %v14419_v24  ;;  %v9927_v7 = vshrl.u32 %v16900_v15, 16  ;;  %v14449_v24 = vld [vmem:[%s17483_s7 + $0x9c8] ss:$16 sps:$4 sm:$0xff]  }
 0x575   : > { %v5394_v32 = vadd.f32 %v5347_v16, %v5253_v59  ;;  %v5349_v36 = vpop.f32.mrb[190].mxu1  ;;  %9127 = vmatpush1.bf16.msra.mxu1 %v14416_v23  ;;  %v5958_v60 = vpop.f32.mrb[211].mxu0  ;;  %9873 = vmatprep.subr.bf16.mxu0 %v14427_v26  ;;  %v14446_v23 = vld [vmem:[%s17483_s7 + $0x8c0] ss:$16 sps:$4 sm:$0xff]   ;;  %v14454_v27 = vld [vmem:[%s17483_s7 + $0x8e4] ss:$16 sps:$4 sm:$0xff]  }
 0x576   : > { %v5350_v42 = vpop.f32.mrb[191].mxu1  ;;  %9265 = vmatprep.subr.bf16.mxu1 %v14424_v38  ;;  %v16954_v19 = vrot.slane %v9927_v7, 2  ;;  %v14455_v16 = vld [vmem:[%s17483_s7 + $0x9e8] ss:$16 sps:$4 sm:$0xff]   ;;  %v14470_v7 = vld [vmem:[%s17483_s7 + $0x940] ss:$16 sps:$4 sm:$0xff]  }
 0x577   : > { %12718 = vmatmul.mubr.msk.bf16.vlgmr.msra.gmra.mrb[60].mxu0 %vm2878_vm6, %v16886_v41  ;;  %v14496_v15 = vld [vmem:[%s17483_s7 + $0x9c4] ss:$16 sps:$4 sm:$0xff]  }
 0x578   : > { %12675 = vmatmul.mubr.msk.bf16.vlgmr.msra.gmra.mrb[40].mxu1 %vm2878_vm6, %v9080_v54  ;;  %9874 = vmatpush1.bf16.msra.mxu0 %v14425_v12  ;;  %v14439_v54 = vld [vmem:[%s17483_s7 + $0x98c] ss:$16 sps:$4 sm:$0xff]  }
 0x579   : > { %9266 = vmatpush1.bf16.msra.mxu1 %v14422_v33  ;;  %9875 = vmatprep.subr.bf16.mxu0 %v14433_v44 }
 0x57a   : > { %9267 = vmatprep.subr.bf16.mxu1 %v14430_v43  ;;  %v6094_v35 = vpop.f32.mrb[212].mxu0  ;;  %9297 = vmatprep.mubr.bf16.mxu1 %v14637_v48 }
 0x57b   : > { %v5487_v51 = vpop.f32.mrb[192].mxu1  ;;  %9905 = vmatprep.mubr.bf16.mxu0 %v14637_v48  ;;  %v6103_v53 = vadd.f32 %v6094_v35, %v5962_v6  ;;  %v6096_v56 = vpop.f32.mrb[213].mxu0  ;;  %v14452_v6 = vld [vmem:[%s17483_s7 + $0x8e0] ss:$16 sps:$4 sm:$0xff]   ;;  %v14469_v35 = vld [vmem:[%s17483_s7 + $0xa2c] ss:$16 sps:$4 sm:$0xff]  }
 0x57c   : > { %v5535_v52 = vadd.f32 %v5487_v51, %v5393_v29  ;;  %v5489_v55 = vpop.f32.mrb[193].mxu1  ;;  %v6104_v58 = vadd.f32 %v6096_v56, %v5963_v34  ;;  %v6098_v63 = vpop.f32.mrb[214].mxu0  ;;  %9876 = vmatpush1.bf16.msra.mxu0 %v14431_v50  ;;  %v16968_v29 = vld [vmem:[#allocation6 + $0x18] ss:$0 sps:$4 sm:$0x88]  }
 0x57d   : > { %v5536_v57 = vadd.f32 %v5489_v55, %v5394_v32  ;;  %v5491_v61 = vpop.f32.mrb[194].mxu1  ;;  %9268 = vmatpush1.bf16.msra.mxu1 %v14428_v46  ;;  %v6099_v18 = vpop.f32.mrb[215].mxu0  ;;  %10014 = vmatprep.subr.bf16.mxu0 %v14439_v54  ;;  %v10071_v34 = vrot.slane %v16968_v29, 3  ;;  %v14458_v46 = vld [vmem:[%s17483_s7 + $0x900] ss:$16 sps:$4 sm:$0xff]  }
 0x57e   : > { %v5492_v8 = vpop.f32.mrb[195].mxu1  ;;  %9407 = vmatprep.subr.bf16.mxu1 %v14436_v47  ;;  %v14461_v50 = vld [vmem:[%s17483_s7 + $0xa08] ss:$16 sps:$4 sm:$0xff]   ;;  %v14466_v51 = vld [vmem:[%s17483_s7 + $0x924] ss:$16 sps:$4 sm:$0xff]  }
 0x57f   : > { %12729 = vmatmul.mubr.msk.bf16.vlgmr.msra.gmra.mrb[64].mxu0 %vm2878_vm6, %v9788_v40  ;;  %v14467_v55 = vld [vmem:[%s17483_s7 + $0xa28] ss:$16 sps:$4 sm:$0xff]  }
 0x580   : > { %12685 = vmatmul.mubr.msk.bf16.vlgmr.msra.gmra.mrb[44].mxu1 %vm2878_vm6, %v16783_v25  ;;  %10015 = vmatpush1.bf16.msra.mxu0 %v14437_v2  ;;  %v14448_v25 = vld [vmem:[%s17483_s7 + $0x8c4] ss:$16 sps:$4 sm:$0xff]  }
 0x581   : > { %9408 = vmatpush1.bf16.msra.mxu1 %v14434_v31  ;;  %10016 = vmatprep.subr.bf16.mxu0 %v14445_v4 }
 0x582   : > { %9409 = vmatprep.subr.bf16.mxu1 %v14442_v3  ;;  %v6236_v13 = vpop.f32.mrb[216].mxu0  ;;  %9439 = vmatprep.mubr.bf16.mxu1 %v14637_v48 }
 0x583   : > { %v5629_v59 = vpop.f32.mrb[196].mxu1  ;;  %10046 = vmatprep.mubr.bf16.mxu0 %v14637_v48  ;;  %v6245_v14 = vadd.f32 %v6236_v13, %v6103_v53  ;;  %v6238_v17 = vpop.f32.mrb[217].mxu0  ;;  %v14464_v53 = vld [vmem:[%s17483_s7 + $0x920] ss:$16 sps:$4 sm:$0xff]  }
 0x584   : > { %v5677_v62 = vadd.f32 %v5629_v59, %v5535_v52  ;;  %v5631_v49 = vpop.f32.mrb[197].mxu1  ;;  %v6246_v21 = vadd.f32 %v6238_v17, %v6104_v58  ;;  %v6240_v22 = vpop.f32.mrb[218].mxu0  ;;  %10017 = vmatpush1.bf16.msra.mxu0 %v14443_v10  ;;  %v10210_v52 = vshrl.u32 %v16968_v29, 16  ;;  %v14481_v59 = vld [vmem:[%s17483_s7 + $0xa6c] ss:$16 sps:$4 sm:$0xff]  }
 0x585   : > { %v5678_v20 = vadd.f32 %v5631_v49, %v5536_v57  ;;  %v5633_v0 = vpop.f32.mrb[198].mxu1  ;;  %9410 = vmatpush1.bf16.msra.mxu1 %v14440_v9  ;;  %v6241_v26 = vpop.f32.mrb[219].mxu0  ;;  %10156 = vmatprep.subr.bf16.mxu0 %v14451_v11  ;;  %v14473_v9 = vld [vmem:[%s17483_s7 + $0xa48] ss:$16 sps:$4 sm:$0xff]   ;;  %v14478_v11 = vld [vmem:[%s17483_s7 + $0x964] ss:$16 sps:$4 sm:$0xff]  }
 0x586   : > { %v5634_v38 = vpop.f32.mrb[199].mxu1  ;;  %9549 = vmatprep.subr.bf16.mxu1 %v14448_v25  ;;  %v17023_v2 = vrot.slane %v10210_v52, 3  ;;  %v14476_v13 = vld [vmem:[%s17483_s7 + $0x960] ss:$16 sps:$4 sm:$0xff]   ;;  %v14497_v52 = vld [vmem:[%s17483_s7 + $0xac8] ss:$16 sps:$4 sm:$0xff]  }
 0x587   : > { %12739 = vmatmul.mubr.msk.bf16.vlgmr.msra.gmra.mrb[68].mxu0 %vm2878_vm6, %v16954_v19  ;;  %v14520_v29 = vld [vmem:[%s17483_s7 + $0xa44] ss:$16 sps:$4 sm:$0xff]  }
 0x588   : > { %12696 = vmatmul.mubr.msk.bf16.vlgmr.msra.gmra.mrb[48].mxu1 %vm2878_vm6, %v9363_v45  ;;  %10157 = vmatpush1.bf16.msra.mxu0 %v14449_v24  ;;  %v14463_v45 = vld [vmem:[%s17483_s7 + $0xa0c] ss:$16 sps:$4 sm:$0xff]  }
 0x589   : > { %9550 = vmatpush1.bf16.msra.mxu1 %v14446_v23  ;;  %10158 = vmatprep.subr.bf16.mxu0 %v14457_v28  ;;  %v14485_v28 = vld [vmem:[%s17483_s7 + $0xa88] ss:$16 sps:$4 sm:$0xff]  }
 0x58a   : > { %9551 = vmatprep.subr.bf16.mxu1 %v14454_v27  ;;  %v6377_v32 = vpop.f32.mrb[220].mxu0  ;;  %9581 = vmatprep.mubr.bf16.mxu1 %v14637_v48  ;;  %v14482_v27 = vld [vmem:[%s17483_s7 + $0x980] ss:$16 sps:$4 sm:$0xff]  }
 0x58b   : > { %v5770_v30 = vpop.f32.mrb[200].mxu1  ;;  %10188 = vmatprep.mubr.bf16.mxu0 %v14637_v48  ;;  %v6386_v37 = vadd.f32 %v6377_v32, %v6245_v14  ;;  %v6379_v12 = vpop.f32.mrb[221].mxu0  ;;  %v14484_v14 = vld [vmem:[%s17483_s7 + $0x984] ss:$16 sps:$4 sm:$0xff]  }
 0x58c   : > { %v5818_v36 = vadd.f32 %v5770_v30, %v5677_v62  ;;  %v5772_v33 = vpop.f32.mrb[201].mxu1  ;;  %v6387_v60 = vadd.f32 %v6379_v12, %v6246_v21  ;;  %v6381_v44 = vpop.f32.mrb[222].mxu0  ;;  %10159 = vmatpush1.bf16.msra.mxu0 %v14455_v16  ;;  %v14479_v62 = vld [vmem:[%s17483_s7 + $0xa68] ss:$16 sps:$4 sm:$0xff]  }
 0x58d   : > { %v5819_v42 = vadd.f32 %v5772_v33, %v5678_v20  ;;  %v5774_v43 = vpop.f32.mrb[202].mxu1  ;;  %9552 = vmatpush1.bf16.msra.mxu1 %v14452_v6  ;;  %v6382_v54 = vpop.f32.mrb[223].mxu0  ;;  %10297 = vmatprep.subr.bf16.mxu0 %v14463_v45  ;;  %v14493_v45 = vld [vmem:[%s17483_s7 + $0xaac] ss:$16 sps:$4 sm:$0xff]   ;;  %v17067_v30 = vld [vmem:[#allocation6 + $0x1c] sm:$0x1] }
 0x58e   : > { %v5775_v47 = vpop.f32.mrb[203].mxu1  ;;  %9690 = vmatprep.subr.bf16.mxu1 %v14460_v39  ;;  %v14490_v39 = vld [vmem:[%s17483_s7 + $0x9a4] ss:$16 sps:$4 sm:$0xff]   ;;  %v17069_v32 = vld [vmem:[#allocation6 + $0x1c] ss:$0 sps:$4 sm:$0x44]  }
 0x58f   : > { %12750 = vmatmul.mubr.msk.bf16.vlgmr.msra.gmra.mrb[72].mxu0 %vm2878_vm6, %v10071_v34 }
 0x590   : > { %12707 = vmatmul.mubr.msk.bf16.vlgmr.msra.gmra.mrb[52].mxu1 %vm2878_vm6, %v9505_v5  ;;  %10298 = vmatpush1.bf16.msra.mxu0 %v14461_v50  ;;  %v14475_v5 = vld [vmem:[%s17483_s7 + $0xa4c] ss:$16 sps:$4 sm:$0xff]  }
 0x591   : > { %9691 = vmatpush1.bf16.msra.mxu1 %v14458_v46  ;;  %10299 = vmatprep.subr.bf16.mxu0 %v14469_v35  ;;  %v14494_v35 = vld [vmem:[%s17483_s7 + $0x9c0] ss:$16 sps:$4 sm:$0xff]  }
 0x592   : > { %9692 = vmatprep.subr.bf16.mxu1 %v14466_v51  ;;  %v6515_v57 = vpop.f32.mrb[224].mxu0  ;;  %9722 = vmatprep.mubr.bf16.mxu1 %v14637_v48 }
 0x593   : > { %v5912_v56 = vpop.f32.mrb[204].mxu1  ;;  %10329 = vmatprep.mubr.bf16.mxu0 %v14637_v48  ;;  %v6524_v61 = vadd.f32 %v6515_v57, %v6386_v37  ;;  %v6517_v31 = vpop.f32.mrb[225].mxu0  ;;  %v14491_v37 = vld [vmem:[%s17483_s7 + $0xaa8] ss:$16 sps:$4 sm:$0xff]   ;;  %v14500_v57 = vld [vmem:[%s17483_s7 + $0x9e0] ss:$16 sps:$4 sm:$0xff]  }
 0x594   : > { %v5960_v58 = vadd.f32 %v5912_v56, %v5818_v36  ;;  %v5914_v63 = vpop.f32.mrb[205].mxu1  ;;  %v6525_v18 = vadd.f32 %v6517_v31, %v6387_v60  ;;  %v6519_v4 = vpop.f32.mrb[226].mxu0  ;;  %10300 = vmatpush1.bf16.msra.mxu0 %v14467_v55  ;;  %v14488_v36 = vld [vmem:[%s17483_s7 + $0x9a0] ss:$16 sps:$4 sm:$0xff]   ;;  %v10631_v56 = vshrl.u32 %v17069_v32, 16 }
 0x595   : > { %v5961_v8 = vadd.f32 %v5914_v63, %v5819_v42  ;;  %v5916_v3 = vpop.f32.mrb[206].mxu1  ;;  %9693 = vmatpush1.bf16.msra.mxu1 %v14464_v53  ;;  %v6520_v25 = vpop.f32.mrb[227].mxu0  ;;  %10435 = vmatprep.subr.bf16.mxu0 %v14475_v5  ;;  %v10492_v42 = vrot.slane %v17069_v32, 2  ;;  %v14505_v5 = vld [vmem:[%s17483_s7 + $0xaec] ss:$16 sps:$4 sm:$0xff]  }
 0x596   : > { %v5917_v10 = vpop.f32.mrb[207].mxu1  ;;  %9832 = vmatprep.subr.bf16.mxu1 %v14472_v1  ;;  %v14502_v1 = vld [vmem:[%s17483_s7 + $0x9e4] ss:$16 sps:$4 sm:$0xff]  }
 0x597   : > { %12760 = vmatmul.mubr.msk.bf16.vlgmr.msra.gmra.mrb[76].mxu0 %vm2878_vm6, %v17023_v2  ;;  %v14557_v32 = vld [vmem:[%s17483_s7 + $0xb04] ss:$16 sps:$4 sm:$0xff]  }
 0x598   : > { %12717 = vmatmul.mubr.msk.bf16.vlgmr.msra.gmra.mrb[56].mxu1 %vm2878_vm6, %v16886_v41  ;;  %10436 = vmatpush1.bf16.msra.mxu0 %v14473_v9  ;;  %v14487_v41 = vld [vmem:[%s17483_s7 + $0xa8c] ss:$16 sps:$4 sm:$0xff]  }
 0x599   : > { %9833 = vmatpush1.bf16.msra.mxu1 %v14470_v7  ;;  %10437 = vmatprep.subr.bf16.mxu0 %v14481_v59  ;;  %v17123_v7 = vrot.slane %v10631_v56, 2  ;;  %v14506_v59 = vld [vmem:[%s17483_s7 + $0xa00] ss:$16 sps:$4 sm:$0xff]  }
 0x59a   : > { %9834 = vmatprep.subr.bf16.mxu1 %v14478_v11  ;;  %v6657_v17 = vpop.f32.mrb[228].mxu0  ;;  %9864 = vmatprep.mubr.bf16.mxu1 %v14637_v48  ;;  %v14530_v56 = vld [vmem:[%s17483_s7 + $0xa80] ss:$16 sps:$4 sm:$0xff]  }
 0x59b   : > { %v6053_v49 = vpop.f32.mrb[208].mxu1  ;;  %10467 = vmatprep.mubr.bf16.mxu0 %v14637_v48  ;;  %v6666_v21 = vadd.f32 %v6657_v17, %v6524_v61  ;;  %v6659_v22 = vpop.f32.mrb[229].mxu0  ;;  %v14511_v61 = vld [vmem:[%s17483_s7 + $0xb0c] ss:$16 sps:$4 sm:$0xff]  }
 0x59c   : > { %v6101_v20 = vadd.f32 %v6053_v49, %v5960_v58  ;;  %v6055_v0 = vpop.f32.mrb[209].mxu1  ;;  %v6667_v24 = vadd.f32 %v6659_v22, %v6525_v18  ;;  %v6661_v26 = vpop.f32.mrb[230].mxu0  ;;  %10438 = vmatpush1.bf16.msra.mxu0 %v14479_v62  ;;  %v14503_v58 = vld [vmem:[%s17483_s7 + $0xae8] ss:$16 sps:$4 sm:$0xff]   ;;  %v14517_v49 = vld [vmem:[%s17483_s7 + $0xb2c] ss:$16 sps:$4 sm:$0xff]  }
 0x59d   : > { %v6102_v23 = vadd.f32 %v6055_v0, %v5961_v8  ;;  %v6057_v38 = vpop.f32.mrb[210].mxu1  ;;  %9835 = vmatpush1.bf16.msra.mxu1 %v14476_v13  ;;  %v6662_v16 = vpop.f32.mrb[231].mxu0  ;;  %10577 = vmatprep.subr.bf16.mxu0 %v14487_v41  ;;  %v14509_v13 = vld [vmem:[%s17483_s7 + $0xb08] ss:$16 sps:$4 sm:$0xff]   ;;  %v14514_v41 = vld [vmem:[%s17483_s7 + $0xa24] ss:$16 sps:$4 sm:$0xff]  }
 0x59e   : > { %v6058_v6 = vpop.f32.mrb[211].mxu1  ;;  %9973 = vmatprep.subr.bf16.mxu1 %v14484_v14  ;;  %v17137_v17 = vld [vmem:[#allocation6 + $0x1c] ss:$0 sps:$4 sm:$0x88]  }
 0x59f   : > { %12770 = vmatmul.mubr.msk.bf16.vlgmr.msra.gmra.mrb[80].mxu0 %vm2878_vm6, %v17067_v30 }
 0x5a0   : > { %12728 = vmatmul.mubr.msk.bf16.vlgmr.msra.gmra.mrb[60].mxu1 %vm2878_vm6, %v9788_v40  ;;  %10578 = vmatpush1.bf16.msra.mxu0 %v14485_v28  ;;  %v14499_v40 = vld [vmem:[%s17483_s7 + $0xacc] ss:$16 sps:$4 sm:$0xff]  }
 0x5a1   : > { %9974 = vmatpush1.bf16.msra.mxu1 %v14482_v27  ;;  %10579 = vmatprep.subr.bf16.mxu0 %v14493_v45  ;;  %v14518_v45 = vld [vmem:[%s17483_s7 + $0xa40] ss:$16 sps:$4 sm:$0xff]  }
 0x5a2   : > { %9975 = vmatprep.subr.bf16.mxu1 %v14490_v39  ;;  %v6798_v12 = vpop.f32.mrb[232].mxu0  ;;  %10005 = vmatprep.mubr.bf16.mxu1 %v14637_v48 }
 0x5a3   : > { %v6195_v33 = vpop.f32.mrb[212].mxu1  ;;  %10609 = vmatprep.mubr.bf16.mxu0 %v14637_v48  ;;  %v6807_v43 = vadd.f32 %v6798_v12, %v6666_v21  ;;  %v6800_v46 = vpop.f32.mrb[233].mxu0  ;;  %v14515_v21 = vld [vmem:[%s17483_s7 + $0xb28] ss:$16 sps:$4 sm:$0xff]   ;;  %v10914_v12 = vshrl.u32 %v17137_v17, 16 }
 0x5a4   : > { %v6243_v60 = vadd.f32 %v6195_v33, %v6101_v20  ;;  %v6197_v44 = vpop.f32.mrb[213].mxu1  ;;  %v6808_v47 = vadd.f32 %v6800_v46, %v6667_v24  ;;  %v6802_v51 = vpop.f32.mrb[234].mxu0  ;;  %10580 = vmatpush1.bf16.msra.mxu0 %v14491_v37  ;;  %v14512_v20 = vld [vmem:[%s17483_s7 + $0xa20] ss:$16 sps:$4 sm:$0xff]   ;;  %v14529_v33 = vld [vmem:[%s17483_s7 + $0xb6c] ss:$16 sps:$4 sm:$0xff]  }
 0x5a5   : > { %v6244_v50 = vadd.f32 %v6197_v44, %v6102_v23  ;;  %v6199_v54 = vpop.f32.mrb[214].mxu1  ;;  %9976 = vmatpush1.bf16.msra.mxu1 %v14488_v36  ;;  %v6803_v55 = vpop.f32.mrb[235].mxu0  ;;  %10718 = vmatprep.subr.bf16.mxu0 %v14499_v40  ;;  %v10775_v23 = vrot.slane %v17137_v17, 3  ;;  %v14521_v36 = vld [vmem:[%s17483_s7 + $0xb48] ss:$16 sps:$4 sm:$0xff]  }
 0x5a6   : > { %v6200_v53 = vpop.f32.mrb[215].mxu1  ;;  %10115 = vmatprep.subr.bf16.mxu1 %v14496_v15  ;;  %v14526_v40 = vld [vmem:[%s17483_s7 + $0xa64] ss:$16 sps:$4 sm:$0xff]   ;;  %v14535_v44 = vld [vmem:[%s17483_s7 + $0xb8c] ss:$16 sps:$4 sm:$0xff]  }
 0x5a7   : > { %12781 = vmatmul.mubr.msk.bf16.vlgmr.msra.gmra.mrb[84].mxu0 %vm2878_vm6, %v10492_v42 }
 0x5a8   : > { %12738 = vmatmul.mubr.msk.bf16.vlgmr.msra.gmra.mrb[64].mxu1 %vm2878_vm6, %v16954_v19  ;;  %10719 = vmatpush1.bf16.msra.mxu0 %v14497_v52  ;;  %v14508_v19 = vld [vmem:[%s17483_s7 + $0xa04] ss:$16 sps:$4 sm:$0xff]   ;;  %v17191_v52 = vrot.slane %v10914_v12, 3  ;;  %v14558_v12 = vld [vmem:[%s17483_s7 + $0xc08] ss:$16 sps:$4 sm:$0xff]  }
 0x5a9   : > { %10116 = vmatpush1.bf16.msra.mxu1 %v14494_v35  ;;  %10720 = vmatprep.subr.bf16.mxu0 %v14505_v5 }
 0x5aa   : > { %10117 = vmatprep.subr.bf16.mxu1 %v14502_v1  ;;  %v6940_v31 = vpop.f32.mrb[236].mxu0  ;;  %10147 = vmatprep.mubr.bf16.mxu1 %v14637_v48 }
 0x5ab   : > { %v6336_v63 = vpop.f32.mrb[216].mxu1  ;;  %10750 = vmatprep.mubr.bf16.mxu0 %v14637_v48  ;;  %v6949_v18 = vadd.f32 %v6940_v31, %v6807_v43  ;;  %v6942_v4 = vpop.f32.mrb[237].mxu0  ;;  %v14527_v43 = vld [vmem:[%s17483_s7 + $0xb68] ss:$16 sps:$4 sm:$0xff]   ;;  %v14536_v31 = vld [vmem:[%s17483_s7 + $0xaa0] ss:$16 sps:$4 sm:$0xff]  }
 0x5ac   : > { %v6384_v8 = vadd.f32 %v6336_v63, %v6243_v60  ;;  %v6338_v3 = vpop.f32.mrb[217].mxu1  ;;  %v6950_v10 = vadd.f32 %v6942_v4, %v6808_v47  ;;  %v6944_v11 = vpop.f32.mrb[238].mxu0  ;;  %10721 = vmatpush1.bf16.msra.mxu0 %v14503_v58  ;;  %v14524_v60 = vld [vmem:[%s17483_s7 + $0xa60] ss:$16 sps:$4 sm:$0xff]   ;;  %v14541_v63 = vld [vmem:[%s17483_s7 + $0xbac] ss:$16 sps:$4 sm:$0xff]  }
 0x5ad   : > { %v6385_v9 = vadd.f32 %v6338_v3, %v6244_v50  ;;  %v6340_v25 = vpop.f32.mrb[218].mxu1  ;;  %10118 = vmatpush1.bf16.msra.mxu1 %v14500_v57  ;;  %v6945_v14 = vpop.f32.mrb[239].mxu0  ;;  %10860 = vmatprep.subr.bf16.mxu0 %v14511_v61  ;;  %v14533_v57 = vld [vmem:[%s17483_s7 + $0xb88] ss:$16 sps:$4 sm:$0xff]   ;;  %v14538_v61 = vld [vmem:[%s17483_s7 + $0xaa4] ss:$16 sps:$4 sm:$0xff]  }
 0x5ae   : > { %v6341_v62 = vpop.f32.mrb[219].mxu1  ;;  %10256 = vmatprep.subr.bf16.mxu1 %v14508_v19 }
 0x5af   : > { %12791 = vmatmul.mubr.msk.bf16.vlgmr.msra.gmra.mrb[88].mxu0 %vm2878_vm6, %v17123_v7 }
 0x5b0   : > { %12749 = vmatmul.mubr.msk.bf16.vlgmr.msra.gmra.mrb[68].mxu1 %vm2878_vm6, %v10071_v34  ;;  %10861 = vmatpush1.bf16.msra.mxu0 %v14509_v13  ;;  %v14523_v34 = vld [vmem:[%s17483_s7 + $0xb4c] ss:$16 sps:$4 sm:$0xff]  }
 0x5b1   : > { %10257 = vmatpush1.bf16.msra.mxu1 %v14506_v59  ;;  %10862 = vmatprep.subr.bf16.mxu0 %v14517_v49  ;;  %v17223_v59 = vld [vmem:[#allocation6 + $0x20] sm:$0x1]  ;;  %v14542_v49 = vld [vmem:[%s17483_s7 + $0xac0] ss:$16 sps:$4 sm:$0xff]  }
 0x5b2   : > { %10258 = vmatprep.subr.bf16.mxu1 %v14514_v41  ;;  %v7081_v22 = vpop.f32.mrb[240].mxu0  ;;  %10288 = vmatprep.mubr.bf16.mxu1 %v14637_v48 }
 0x5b3   : > { %v6474_v0 = vpop.f32.mrb[220].mxu1  ;;  %10892 = vmatprep.mubr.bf16.mxu0 %v14637_v48  ;;  %v7090_v38 = vadd.f32 %v7081_v22, %v6949_v18  ;;  %v7083_v27 = vpop.f32.mrb[241].mxu0  ;;  %v14544_v18 = vld [vmem:[%s17483_s7 + $0xac4] ss:$16 sps:$4 sm:$0xff]   ;;  %v12823_v22 = vcombine.low %v17223_v59, %v17223_v59 }
 0x5b4   : > { %v6522_v24 = vadd.f32 %v6474_v0, %v6384_v8  ;;  %v6476_v26 = vpop.f32.mrb[221].mxu1  ;;  %v7091_v6 = vadd.f32 %v7083_v27, %v6950_v10  ;;  %v7085_v39 = vpop.f32.mrb[242].mxu0  ;;  %10863 = vmatpush1.bf16.msra.mxu0 %v14515_v21  ;;  %v14539_v8 = vld [vmem:[%s17483_s7 + $0xba8] ss:$16 sps:$4 sm:$0xff]   ;;  %v14554_v0 = vld [vmem:[%s17483_s7 + $0xbec] ss:$16 sps:$4 sm:$0xff]  }
 0x5b5   : > { %v6523_v28 = vadd.f32 %v6476_v26, %v6385_v9  ;;  %v6478_v16 = vpop.f32.mrb[222].mxu1  ;;  %10259 = vmatpush1.bf16.msra.mxu1 %v14512_v20  ;;  %v7086_v15 = vpop.f32.mrb[243].mxu0  ;;  %11001 = vmatprep.subr.bf16.mxu0 %v14523_v34  ;;  %v14546_v20 = vld [vmem:[%s17483_s7 + $0xbc8] ss:$16 sps:$4 sm:$0xff]   ;;  %v14551_v34 = vld [vmem:[%s17483_s7 + $0xae4] ss:$16 sps:$4 sm:$0xff]  }
 0x5b6   : > { %v6479_v37 = vpop.f32.mrb[223].mxu1  ;;  %10394 = vmatprep.subr.bf16.mxu1 %v14520_v29 }
 0x5b7   : > { %12802 = vmatmul.mubr.msk.bf16.vlgmr.msra.gmra.mrb[92].mxu0 %vm2878_vm6, %v10775_v23 }
 0x5b8   : > { %12759 = vmatmul.mubr.msk.bf16.vlgmr.msra.gmra.mrb[72].mxu1 %vm2878_vm6, %v17023_v2  ;;  %11002 = vmatpush1.bf16.msra.mxu0 %v14521_v36  ;;  %v14532_v2 = vld [vmem:[%s17483_s7 + $0xa84] ss:$16 sps:$4 sm:$0xff]  }
 0x5b9   : > { %10395 = vmatpush1.bf16.msra.mxu1 %v14518_v45  ;;  %11003 = vmatprep.subr.bf16.mxu0 %v14529_v33  ;;  %v14555_v33 = vld [vmem:[%s17483_s7 + $0xb00] ss:$16 sps:$4 sm:$0xff]  }
 0x5ba   : > { %10396 = vmatprep.subr.bf16.mxu1 %v14526_v40  ;;  %v7219_v50 = vpop.f32.mrb[244].mxu0  ;;  %10426 = vmatprep.mubr.bf16.mxu1 %v14637_v48 }
 0x5bb   : > { %v6616_v46 = vpop.f32.mrb[224].mxu1  ;;  %11033 = vmatprep.mubr.bf16.mxu0 %v14637_v48  ;;  %v7228_v54 = vadd.f32 %v7219_v50, %v7090_v38  ;;  %v7221_v35 = vpop.f32.mrb[245].mxu0  ;;  %v14552_v38 = vld [vmem:[%s17483_s7 + $0xbe8] ss:$16 sps:$4 sm:$0xff]  }
 0x5bc   : > { %v6664_v47 = vadd.f32 %v6616_v46, %v6522_v24  ;;  %v6618_v51 = vpop.f32.mrb[225].mxu1  ;;  %v7229_v55 = vadd.f32 %v7221_v35, %v7091_v6  ;;  %v7223_v5 = vpop.f32.mrb[246].mxu0  ;;  %11004 = vmatpush1.bf16.msra.mxu0 %v14527_v43  ;;  %v14549_v24 = vld [vmem:[%s17483_s7 + $0xae0] ss:$16 sps:$4 sm:$0xff]   ;;  %v14564_v50 = vld [vmem:[%s17483_s7 + $0xc28] ss:$16 sps:$4 sm:$0xff]  }
 0x5bd   : > { %v6665_v53 = vadd.f32 %v6618_v51, %v6523_v28  ;;  %v6620_v1 = vpop.f32.mrb[226].mxu1  ;;  %10397 = vmatpush1.bf16.msra.mxu1 %v14524_v60  ;;  %v7224_v19 = vpop.f32.mrb[247].mxu0  ;;  %11139 = vmatprep.subr.bf16.mxu0 %v14535_v44  ;;  %v17258_v28 = vshrl.u32 %v12823_v22, 16  ;;  %v14566_v44 = vld [vmem:[%s17483_s7 + $0xc2c] ss:$16 sps:$4 sm:$0xff]  }
 0x5be   : > { %v6621_v58 = vpop.f32.mrb[227].mxu1  ;;  %10536 = vmatprep.subr.bf16.mxu1 %v14532_v2  ;;  %v14563_v2 = vld [vmem:[%s17483_s7 + $0xb24] ss:$16 sps:$4 sm:$0xff]   ;;  %v14561_v46 = vld [vmem:[%s17483_s7 + $0xb20] ss:$16 sps:$4 sm:$0xff]  }
 0x5bf   : > { %12812 = vmatmul.mubr.msk.bf16.vlgmr.msra.gmra.mrb[96].mxu0 %vm2878_vm6, %v17191_v52  ;;  %v14567_v19 = vld [vmem:[%s17483_s7 + $0xb40] ss:$16 sps:$4 sm:$0xff]  }
 0x5c0   : > { %12769 = vmatmul.mubr.msk.bf16.vlgmr.msra.gmra.mrb[76].mxu1 %vm2878_vm6, %v17067_v30  ;;  %11140 = vmatpush1.bf16.msra.mxu0 %v14533_v57  ;;  %v14548_v30 = vld [vmem:[%s17483_s7 + $0xbcc] ss:$16 sps:$4 sm:$0xff]  }
 0x5c1   : > { %10537 = vmatpush1.bf16.msra.mxu1 %v14530_v56  ;;  %11141 = vmatprep.subr.bf16.mxu0 %v14541_v63 }
 0x5c2   : > { %10538 = vmatprep.subr.bf16.mxu1 %v14538_v61  ;;  %v7362_v4 = vpop.f32.mrb[248].mxu0  ;;  %10568 = vmatprep.mubr.bf16.mxu1 %v14637_v48 }
 0x5c3   : > { %v6757_v3 = vpop.f32.mrb[228].mxu1  ;;  %11171 = vmatprep.mubr.bf16.mxu0 %v14637_v48  ;;  %v7371_v10 = vadd.f32 %v7362_v4, %v7228_v54  ;;  %v7364_v11 = vpop.f32.mrb[249].mxu0 }
 0x5c4   : > { %v6805_v9 = vadd.f32 %v6757_v3, %v6664_v47  ;;  %v6759_v25 = vpop.f32.mrb[229].mxu1  ;;  %v7372_v62 = vadd.f32 %v7364_v11, %v7229_v55  ;;  %v7366_v41 = vpop.f32.mrb[250].mxu0  ;;  %11142 = vmatpush1.bf16.msra.mxu0 %v14539_v8  ;;  %v14569_v47 = vld [vmem:[%s17483_s7 + $0xb44] ss:$16 sps:$4 sm:$0xff]  }
 0x5c5   : > { %v6806_v13 = vadd.f32 %v6759_v25, %v6665_v53  ;;  %v6761_v14 = vpop.f32.mrb[230].mxu1  ;;  %10539 = vmatpush1.bf16.msra.mxu1 %v14536_v31  ;;  %v7367_v29 = vpop.f32.mrb[251].mxu0  ;;  %11282 = vmatprep.subr.bf16.mxu0 %v14548_v30  ;;  %v14573_v8 = vld [vmem:[%s17483_s7 + $0xb64] ss:$16 sps:$4 sm:$0xff]  }
 0x5c6   : > { %v6762_v21 = vpop.f32.mrb[231].mxu1  ;;  %10677 = vmatprep.subr.bf16.mxu1 %v14544_v18  ;;  %v14571_v18 = vld [vmem:[%s17483_s7 + $0xb60] ss:$16 sps:$4 sm:$0xff]   ;;  %v14576_v30 = vld [vmem:[%s17483_s7 + $0xb84] ss:$16 sps:$4 sm:$0xff]  }
 0x5c7   : > { %12822 = vmatmul.mubr.msk.bf16.vlgmr.msra.gmra.mrb[100].mxu0 %vm2878_vm6, %v17223_v59  ;;  %v14574_v14 = vld [vmem:[%s17483_s7 + $0xb80] ss:$16 sps:$4 sm:$0xff]   ;;  %v14582_v29 = vld [vmem:[%s17483_s7 + $0xbc4] ss:$16 sps:$4 sm:$0xff]  }
 0x5c8   : > { %12780 = vmatmul.mubr.msk.bf16.vlgmr.msra.gmra.mrb[80].mxu1 %vm2878_vm6, %v10492_v42  ;;  %11283 = vmatpush1.bf16.msra.mxu0 %v14546_v20  ;;  %v14560_v42 = vld [vmem:[%s17483_s7 + $0xc0c] ss:$16 sps:$4 sm:$0xff]   ;;  %v14579_v20 = vld [vmem:[%s17483_s7 + $0xba4] ss:$16 sps:$4 sm:$0xff]   ;;  %v14577_v21 = vld [vmem:[%s17483_s7 + $0xba0] ss:$16 sps:$4 sm:$0xff]  }
 0x5c9   : > { %10678 = vmatpush1.bf16.msra.mxu1 %v14542_v49  ;;  %11284 = vmatprep.subr.bf16.mxu0 %v14554_v0 }
 0x5ca   : > { %10679 = vmatprep.subr.bf16.mxu1 %v14551_v34  ;;  %v7504_v27 = vpop.f32.mrb[252].mxu0  ;;  %10709 = vmatprep.mubr.bf16.mxu1 %v14637_v48 }
 0x5cb   : > { %v6899_v26 = vpop.f32.mrb[232].mxu1  ;;  %11314 = vmatprep.mubr.bf16.mxu0 %v14637_v48  ;;  %v7513_v16 = vadd.f32 %v7504_v27, %v7371_v10  ;;  %v7506_v45 = vpop.f32.mrb[253].mxu0 }
 0x5cc   : > { %v6947_v6 = vadd.f32 %v6899_v26, %v6805_v9  ;;  %v6901_v39 = vpop.f32.mrb[233].mxu1  ;;  %v7514_v37 = vadd.f32 %v7506_v45, %v7372_v62  ;;  %v7508_v40 = vpop.f32.mrb[254].mxu0  ;;  %11285 = vmatpush1.bf16.msra.mxu0 %v14552_v38  ;;  %v14585_v45 = vld [vmem:[%s17483_s7 + $0xbe4] ss:$16 sps:$4 sm:$0xff]  }
 0x5cd   : > { %v6948_v36 = vadd.f32 %v6901_v39, %v6806_v13  ;;  %v6903_v15 = vpop.f32.mrb[234].mxu1  ;;  %10680 = vmatpush1.bf16.msra.mxu1 %v14549_v24  ;;  %v7509_v43 = vpop.f32.mrb[255].mxu0  ;;  %11424 = vmatprep.subr.bf16.mxu0 %v14560_v42 }
 0x5ce   : > { %v6904_v60 = vpop.f32.mrb[235].mxu1  ;;  %10819 = vmatprep.subr.bf16.mxu1 %v14557_v32 }
 0x5cf   : > { %12833 = vmatmul.mubr.msk.bf16.vlgmr.msra.gmra.mrb[104].mxu0 %vm2878_vm6, %v17258_v28 }
 0x5d0   : > { %12790 = vmatmul.mubr.msk.bf16.vlgmr.msra.gmra.mrb[84].mxu1 %vm2878_vm6, %v17123_v7  ;;  %11425 = vmatpush1.bf16.msra.mxu0 %v14558_v12  ;;  %v17285_v7 = vld [vmem:[#allocation6 + $0x20] ss:$0 sps:$4 sm:$0x22]  }
 0x5d1   : > { %10820 = vmatpush1.bf16.msra.mxu1 %v14555_v33  ;;  %11426 = vmatprep.subr.bf16.mxu0 %v14566_v44  ;;  %v11339_v31 = vrot.slane %v17285_v7, 1 }
 0x5d2   : > { %10821 = vmatprep.subr.bf16.mxu1 %v14563_v2  ;;  %v7646_v51 = vpop.f32.mrb[0].mxu0  ;;  %10851 = vmatprep.mubr.bf16.mxu1 %v14637_v48 }
 0x5d3   : > { %v7040_v54 = vpop.f32.mrb[236].mxu1  ;;  %11456 = vmatprep.mubr.bf16.mxu0 %v14637_v48  ;;  %v7655_v53 = vadd.f32 %v7646_v51, %v7513_v16  ;;  %v7648_v1 = vpop.f32.mrb[1].mxu0  ;;  %v14591_v51 = vld [vmem:[%s17483_s7 + $0xc24] ss:$16 sps:$4 sm:$0xff]  }
 0x5d4   : > { %v7088_v35 = vadd.f32 %v7040_v54, %v6947_v6  ;;  %v7042_v55 = vpop.f32.mrb[237].mxu1  ;;  %v7656_v56 = vadd.f32 %v7648_v1, %v7514_v37  ;;  %v7650_v58 = vpop.f32.mrb[2].mxu0  ;;  %11427 = vmatpush1.bf16.msra.mxu0 %v14564_v50  ;;  %v14580_v6 = vld [vmem:[%s17483_s7 + $0xbc0] ss:$16 sps:$4 sm:$0xff]   ;;  %v14588_v37 = vld [vmem:[%s17483_s7 + $0xc04] ss:$16 sps:$4 sm:$0xff]  }
 0x5d5   : > { %v7089_v5 = vadd.f32 %v7042_v55, %v6948_v36  ;;  %v7044_v57 = vpop.f32.mrb[238].mxu1  ;;  %10822 = vmatpush1.bf16.msra.mxu1 %v14561_v46  ;;  %v7651_v63 = vpop.f32.mrb[3].mxu0  ;;  %v14583_v36 = vld [vmem:[%s17483_s7 + $0xbe0] ss:$16 sps:$4 sm:$0xff]  }
 0x5d6   : > { %v7045_v61 = vpop.f32.mrb[239].mxu1  ;;  %10960 = vmatprep.subr.bf16.mxu1 %v14569_v47  ;;  %v14586_v50 = vld [vmem:[%s17483_s7 + $0xc00] ss:$16 sps:$4 sm:$0xff]  }
 0x5d7   : > { %12844 = vmatmul.mubr.msk.bf16.vlgmr.msra.gmra.mrb[108].mxu0 %vm2878_vm6, %v11339_v31 }
 0x5d8   : > { %12801 = vmatmul.mubr.msk.bf16.vlgmr.msra.gmra.mrb[88].mxu1 %vm2878_vm6, %v10775_v23 }
 0x5d9   : > { %10961 = vmatpush1.bf16.msra.mxu1 %v14567_v19  ;;  %10992 = vmatprep.mubr.bf16.mxu1 %v14637_v48 }
 0x5da   : > { %10962 = vmatprep.subr.bf16.mxu1 %v14573_v8  ;;  %v7787_v17 = vpop.f32.mrb[4].mxu0 }
 0x5db   : > { %v7178_v3 = vpop.f32.mrb[240].mxu1  ;;  %v7796_v23 = vadd.f32 %v7787_v17, %v7655_v53  ;;  %v7789_v10 = vpop.f32.mrb[5].mxu0 }
 0x5dc   : > { %v7226_v4 = vadd.f32 %v7178_v3, %v7088_v35  ;;  %v7180_v9 = vpop.f32.mrb[241].mxu1  ;;  %v7797_v11 = vadd.f32 %v7789_v10, %v7656_v56  ;;  %v7791_v62 = vpop.f32.mrb[6].mxu0  ;;  %v14589_v35 = vld [vmem:[%s17483_s7 + $0xc20] ss:$16 sps:$4 sm:$0xff]  }
 0x5dd   : > { %v7227_v25 = vadd.f32 %v7180_v9, %v7089_v5  ;;  %v7182_v13 = vpop.f32.mrb[242].mxu1  ;;  %10963 = vmatpush1.bf16.msra.mxu1 %v14571_v18  ;;  %v7792_v49 = vpop.f32.mrb[7].mxu0 }
 0x5de   : > { %v7183_v41 = vpop.f32.mrb[243].mxu1  ;;  %11098 = vmatprep.subr.bf16.mxu1 %v14576_v30 }
 0x5e0   : > { %12811 = vmatmul.mubr.msk.bf16.vlgmr.msra.gmra.mrb[92].mxu1 %vm2878_vm6, %v17191_v52 }
 0x5e1   : > { %11099 = vmatpush1.bf16.msra.mxu1 %v14574_v14  ;;  %11130 = vmatprep.mubr.bf16.mxu1 %v14637_v48 }
 0x5e2   : > { %11100 = vmatprep.subr.bf16.mxu1 %v14579_v20  ;;  %v7925_v0 = vpop.f32.mrb[8].mxu0 }
 0x5e3   : > { %v7321_v34 = vpop.f32.mrb[244].mxu1  ;;  %v7934_v24 = vadd.f32 %v7925_v0, %v7796_v23  ;;  %v7927_v32 = vpop.f32.mrb[9].mxu0 }
 0x5e4   : > { %v7369_v22 = vadd.f32 %v7321_v34, %v7226_v4  ;;  %v7323_v38 = vpop.f32.mrb[245].mxu1  ;;  %v7935_v52 = vadd.f32 %v7927_v32, %v7797_v11  ;;  %v7929_v27 = vpop.f32.mrb[10].mxu0 }
 0x5e5   : > { %v7370_v42 = vadd.f32 %v7323_v38, %v7227_v25  ;;  %v7325_v26 = vpop.f32.mrb[246].mxu1  ;;  %11101 = vmatpush1.bf16.msra.mxu1 %v14577_v21  ;;  %v7930_v39 = vpop.f32.mrb[11].mxu0 }
 0x5e6   : > { %v7326_v16 = vpop.f32.mrb[247].mxu1  ;;  %11241 = vmatprep.subr.bf16.mxu1 %v14582_v29 }
 0x5e8   : > { %12821 = vmatmul.mubr.msk.bf16.vlgmr.msra.gmra.mrb[96].mxu1 %vm2878_vm6, %v17223_v59 }
 0x5e9   : > { %11242 = vmatpush1.bf16.msra.mxu1 %v14580_v6  ;;  %11273 = vmatprep.mubr.bf16.mxu1 %v14637_v48 }
 0x5ea   : > { %11243 = vmatprep.subr.bf16.mxu1 %v14585_v45  ;;  %v8068_v40 = vpop.f32.mrb[12].mxu0 }
 0x5eb   : > { %v7463_v15 = vpop.f32.mrb[248].mxu1  ;;  %v8077_v12 = vadd.f32 %v8068_v40, %v7934_v24  ;;  %v8070_v43 = vpop.f32.mrb[13].mxu0 }
 0x5ec   : > { %v7511_v33 = vadd.f32 %v7463_v15, %v7369_v22  ;;  %v7465_v60 = vpop.f32.mrb[249].mxu1  ;;  %v8078_v59 = vadd.f32 %v8070_v43, %v7935_v52  ;;  %v8072_v46 = vpop.f32.mrb[14].mxu0 }
 0x5ed   : > { %v7512_v2 = vadd.f32 %v7465_v60, %v7370_v42  ;;  %v7467_v44 = vpop.f32.mrb[250].mxu1  ;;  %11244 = vmatpush1.bf16.msra.mxu1 %v14583_v36  ;;  %v8073_v54 = vpop.f32.mrb[15].mxu0 }
 0x5ee   : > { %v7468_v47 = vpop.f32.mrb[251].mxu1  ;;  %11383 = vmatprep.subr.bf16.mxu1 %v14588_v37  ;;  %v14593_v54 = vld [vmem:[%s17485_s9 + $0x80] sm:$0xff]  }
 0x5ef   : > { %v14592_v47 = vld [vmem:[%s17485_s9 + $0xc0] sm:$0xff]  }
 0x5f0   : > { %12832 = vmatmul.mubr.msk.bf16.vlgmr.msra.gmra.mrb[100].mxu1 %vm2878_vm6, %v17258_v28  ;;  %13343 = vmatprep.subr.bf16.mxu0 %v14592_v47  ;;  %v14609_v47 = vld [vmem:[%s17485_s9] sm:$0xff]  }
 0x5f1   : > { %11384 = vmatpush1.bf16.msra.mxu1 %v14586_v50  ;;  %11415 = vmatprep.mubr.bf16.mxu1 %v14637_v48 }
 0x5f2   : > { %11385 = vmatprep.subr.bf16.mxu1 %v14591_v51  ;;  %v8210_v55 = vpop.f32.mrb[16].mxu0  ;;  %v14594_v51 = vld [vmem:[%s17485_s9 + $0xc8] sm:$0xff]   ;;  %13344 = vmatpush3.bf16.msra.mxu0 %v14593_v54 }
 0x5f3   : > { %v7605_v53 = vpop.f32.mrb[252].mxu1  ;;  %v8219_v5 = vadd.f32 %v8210_v55, %v8077_v12  ;;  %v8212_v57 = vpop.f32.mrb[17].mxu0  ;;  %13345 = vmatprep.subr.bf16.mxu0 %v14594_v51  ;;  %v14610_v54 = vld [vmem:[%s17485_s9 + $0x48] sm:$0xff]   ;;  %v14607_v51 = vld [vmem:[%s17485_s9 + $0xb8] sm:$0xff]  }
 0x5f4   : > { %v7653_v1 = vadd.f32 %v7605_v53, %v7511_v33  ;;  %v7607_v56 = vpop.f32.mrb[253].mxu1  ;;  %v8220_v19 = vadd.f32 %v8212_v57, %v8078_v59  ;;  %v8214_v63 = vpop.f32.mrb[18].mxu0  ;;  %v14595_v57 = vld [vmem:[%s17485_s9 + $0x88] sm:$0xff]  }
 0x5f5   : > { %v7654_v58 = vadd.f32 %v7607_v56, %v7512_v2  ;;  %v7609_v61 = vpop.f32.mrb[254].mxu1  ;;  %11386 = vmatpush1.bf16.msra.mxu1 %v14589_v35  ;;  %v8215_v8 = vpop.f32.mrb[19].mxu0 }
 0x5f6   : > { %v7610_v28 = vpop.f32.mrb[255].mxu1  ;;  %13346 = vmatpush3.bf16.msra.mxu0 %v14595_v57  ;;  %v14611_v57 = vld [vmem:[%s17485_s9 + $0x8] sm:$0xff]  }
 0x5f8   : > { %12843 = vmatmul.mubr.msk.bf16.vlgmr.msra.gmra.mrb[104].mxu1 %vm2878_vm6, %v11339_v31 }
 0x5fa   : > { %v8351_v48 = vpop.f32.mrb[20].mxu0 }
 0x5fb   : > { %v7746_v18 = vpop.f32.mrb[0].mxu1  ;;  %v8360_v3 = vadd.f32 %v8351_v48, %v8219_v5  ;;  %v8353_v4 = vpop.f32.mrb[21].mxu0  ;;  %v14597_v48 = vld [vmem:[%s17485_s9 + $0x90] sm:$0xff]  }
 0x5fc   : > { %v7794_v30 = vadd.f32 %v7746_v18, %v7653_v1  ;;  %v7748_v17 = vpop.f32.mrb[1].mxu1  ;;  %v8361_v9 = vadd.f32 %v8353_v4, %v8220_v19  ;;  %v8355_v25 = vpop.f32.mrb[22].mxu0  ;;  %v14596_v18 = vld [vmem:[%s17485_s9 + $0xd0] sm:$0xff]  }
 0x5fd   : > { %v7795_v23 = vadd.f32 %v7748_v17, %v7654_v58  ;;  %v7750_v10 = vpop.f32.mrb[2].mxu1  ;;  %v8356_v13 = vpop.f32.mrb[23].mxu0  ;;  %13347 = vmatprep.subr.bf16.mxu0 %v14596_v18  ;;  %v14599_v25 = vld [vmem:[%s17485_s9 + $0x98] sm:$0xff]   ;;  %v14612_v18 = vld [vmem:[%s17485_s9 + $0x50] sm:$0xff]  }
 0x5fe   : > { %v7751_v11 = vpop.f32.mrb[3].mxu1  ;;  %13348 = vmatpush3.bf16.msra.mxu0 %v14597_v48  ;;  %v14613_v48 = vld [vmem:[%s17485_s9 + $0x10] sm:$0xff]  }
 0x602   : > { %v8493_v14 = vpop.f32.mrb[24].mxu0 }
 0x603   : > { %v7884_v62 = vpop.f32.mrb[4].mxu1  ;;  %v8502_v49 = vadd.f32 %v8493_v14, %v8360_v3  ;;  %v8495_v7 = vpop.f32.mrb[25].mxu0 }
 0x604   : > { %v7932_v41 = vadd.f32 %v7884_v62, %v7794_v30  ;;  %v7886_v20 = vpop.f32.mrb[5].mxu1  ;;  %v8503_v31 = vadd.f32 %v8495_v7, %v8361_v9  ;;  %v8497_v34 = vpop.f32.mrb[26].mxu0  ;;  %v14598_v30 = vld [vmem:[%s17485_s9 + $0xd8] sm:$0xff]   ;;  %v14601_v7 = vld [vmem:[%s17485_s9 + $0xa0] sm:$0xff]  }
 0x605   : > { %v7933_v21 = vadd.f32 %v7886_v20, %v7795_v23  ;;  %v7888_v29 = vpop.f32.mrb[6].mxu1  ;;  %v8498_v22 = vpop.f32.mrb[27].mxu0  ;;  %13349 = vmatprep.subr.bf16.mxu0 %v14598_v30  ;;  %v14600_v20 = vld [vmem:[%s17485_s9 + $0xe0] sm:$0xff]   ;;  %v14614_v30 = vld [vmem:[%s17485_s9 + $0x58] sm:$0xff]  }
 0x606   : > { %v7889_v0 = vpop.f32.mrb[7].mxu1  ;;  %13350 = vmatpush3.bf16.msra.mxu0 %v14599_v25  ;;  %v14615_v25 = vld [vmem:[%s17485_s9 + $0x18] sm:$0xff]  }
 0x607   : > { %13351 = vmatprep.subr.bf16.mxu0 %v14600_v20  ;;  %v14616_v20 = vld [vmem:[%s17485_s9 + $0x60] sm:$0xff]  }
 0x60a   : > { %v8631_v38 = vpop.f32.mrb[28].mxu0  ;;  %13352 = vmatpush3.bf16.msra.mxu0 %v14601_v7  ;;  %v14617_v7 = vld [vmem:[%s17485_s9 + $0x20] sm:$0xff]  }
 0x60b   : > { %v8027_v24 = vpop.f32.mrb[8].mxu1  ;;  %v8640_v42 = vadd.f32 %v8631_v38, %v8502_v49  ;;  %v8633_v26 = vpop.f32.mrb[29].mxu0 }
 0x60c   : > { %v8075_v32 = vadd.f32 %v8027_v24, %v7932_v41  ;;  %v8029_v52 = vpop.f32.mrb[9].mxu1  ;;  %v8641_v6 = vadd.f32 %v8633_v26, %v8503_v31  ;;  %v8635_v39 = vpop.f32.mrb[30].mxu0 }
 0x60d   : > { %v8076_v27 = vadd.f32 %v8029_v52, %v7933_v21  ;;  %v8031_v16 = vpop.f32.mrb[10].mxu1  ;;  %v8636_v36 = vpop.f32.mrb[31].mxu0  ;;  %v14602_v21 = vld [vmem:[%s17485_s9 + $0xe8] sm:$0xff]  }
 0x60e   : > { %v8032_v45 = vpop.f32.mrb[11].mxu1  ;;  %13353 = vmatprep.subr.bf16.mxu0 %v14602_v21  ;;  %v14618_v21 = vld [vmem:[%s17485_s9 + $0x68] sm:$0xff]  }
 0x612   : > { %v8774_v15 = vpop.f32.mrb[32].mxu0 }
 0x613   : > { %v8169_v37 = vpop.f32.mrb[12].mxu1  ;;  %v8783_v33 = vadd.f32 %v8774_v15, %v8640_v42  ;;  %v8776_v60 = vpop.f32.mrb[33].mxu0 }
 0x614   : > { %v8217_v40 = vadd.f32 %v8169_v37, %v8075_v32  ;;  %v8171_v12 = vpop.f32.mrb[13].mxu1  ;;  %v8784_v2 = vadd.f32 %v8776_v60, %v8641_v6  ;;  %v8778_v44 = vpop.f32.mrb[34].mxu0  ;;  %v14603_v6 = vld [vmem:[%s17485_s9 + $0xa8] sm:$0xff]  }
 0x615   : > { %v8218_v43 = vadd.f32 %v8171_v12, %v8076_v27  ;;  %v8173_v59 = vpop.f32.mrb[14].mxu1  ;;  %v8779_v50 = vpop.f32.mrb[35].mxu0  ;;  %13354 = vmatpush3.bf16.msra.mxu0 %v14603_v6  ;;  %v14619_v6 = vld [vmem:[%s17485_s9 + $0x28] sm:$0xff]  }
 0x616   : > { %v8174_v46 = vpop.f32.mrb[15].mxu1  ;;  %v14606_v59 = vld [vmem:[%s17485_s9 + $0xf8] sm:$0xff]   ;;  %v14608_v50 = vld [vmem:[%s17485_s9 + $0x40] sm:$0xff]  }
 0x617   : > { %13321 = vmatprep.subr.bf16.mxu1 %v14608_v50  ;;  %v14621_v50 = vld [vmem:[%s17485_s9 + $0x30] sm:$0xff]  }
 0x618   : > { %13322 = vmatpush3.bf16.msra.mxu1 %v14609_v47  ;;  %v14622_v47 = vld [vmem:[%s17485_s9 + $0x78] sm:$0xff]  }
 0x619   : > { %13323 = vmatprep.subr.bf16.mxu1 %v14610_v54 }
 0x61a   : > { %v8916_v53 = vpop.f32.mrb[36].mxu0 }
 0x61b   : > { %v8310_v35 = vpop.f32.mrb[16].mxu1  ;;  %v8925_v1 = vadd.f32 %v8916_v53, %v8783_v33  ;;  %v8918_v56 = vpop.f32.mrb[37].mxu0 }
 0x61c   : > { %v8358_v55 = vadd.f32 %v8310_v35, %v8217_v40  ;;  %v8312_v5 = vpop.f32.mrb[17].mxu1  ;;  %v8926_v19 = vadd.f32 %v8918_v56, %v8784_v2  ;;  %v8920_v63 = vpop.f32.mrb[38].mxu0  ;;  %v14605_v2 = vld [vmem:[%s17485_s9 + $0xb0] sm:$0xff]   ;;  %13324 = vmatpush3.bf16.msra.mxu1 %v14611_v57 }
 0x61d   : > { %v8359_v58 = vadd.f32 %v8312_v5, %v8218_v43  ;;  %v8314_v61 = vpop.f32.mrb[18].mxu1  ;;  %v8921_v8 = vpop.f32.mrb[39].mxu0  ;;  %v14604_v43 = vld [vmem:[%s17485_s9 + $0xf0] sm:$0xff]   ;;  %13325 = vmatprep.subr.bf16.mxu1 %v14612_v18 }
 0x61e   : > { %v8315_v28 = vpop.f32.mrb[19].mxu1  ;;  %13355 = vmatprep.subr.bf16.mxu0 %v14604_v43 }
 0x61f   : > { %13356 = vmatpush3.bf16.msra.mxu0 %v14605_v2 }
 0x620   : > { %13357 = vmatprep.subr.bf16.mxu0 %v14606_v59  ;;  %13326 = vmatpush3.bf16.msra.mxu1 %v14613_v48 }
 0x621   : > { %13327 = vmatprep.subr.bf16.mxu1 %v14614_v30 }
 0x622   : > { %v9057_v17 = vpop.f32.mrb[40].mxu0 }
 0x623   : > { %v8452_v3 = vpop.f32.mrb[20].mxu1  ;;  %v9066_v23 = vadd.f32 %v9057_v17, %v8925_v1  ;;  %v9059_v10 = vpop.f32.mrb[41].mxu0  ;;  %13358 = vmatpush3.bf16.msra.mxu0 %v14607_v51 }
 0x624   : > { %v8500_v4 = vadd.f32 %v8452_v3, %v8358_v55  ;;  %v8454_v9 = vpop.f32.mrb[21].mxu1  ;;  %v9067_v13 = vadd.f32 %v9059_v10, %v8926_v19  ;;  %v9061_v14 = vpop.f32.mrb[42].mxu0  ;;  %13328 = vmatpush3.bf16.msra.mxu1 %v14615_v25 }
 0x625   : > { %v8501_v11 = vadd.f32 %v8454_v9, %v8359_v58  ;;  %v8456_v62 = vpop.f32.mrb[22].mxu1  ;;  %v9062_v49 = vpop.f32.mrb[43].mxu0  ;;  %13329 = vmatprep.subr.bf16.mxu1 %v14616_v20 }
 0x626   : > { %v8457_v41 = vpop.f32.mrb[23].mxu1 }
 0x628   : > { %13330 = vmatpush3.bf16.msra.mxu1 %v14617_v7 }
 0x629   : > { %13331 = vmatprep.subr.bf16.mxu1 %v14618_v21 }
 0x62a   : > { %v9199_v29 = vpop.f32.mrb[44].mxu0 }
 0x62b   : > { %v8590_v31 = vpop.f32.mrb[24].mxu1  ;;  %v9208_v0 = vadd.f32 %v9199_v29, %v9066_v23  ;;  %v9201_v24 = vpop.f32.mrb[45].mxu0 }
 0x62c   : > { %v8638_v34 = vadd.f32 %v8590_v31, %v8500_v4  ;;  %v8592_v22 = vpop.f32.mrb[25].mxu1  ;;  %v9209_v32 = vadd.f32 %v9201_v24, %v9067_v13  ;;  %v9203_v52 = vpop.f32.mrb[46].mxu0  ;;  %13332 = vmatpush3.bf16.msra.mxu1 %v14619_v6 }
 0x62d   : > { %v8639_v38 = vadd.f32 %v8592_v22, %v8501_v11  ;;  %v8594_v42 = vpop.f32.mrb[26].mxu1  ;;  %v9204_v27 = vpop.f32.mrb[47].mxu0 }
 0x62e   : > { %v8595_v26 = vpop.f32.mrb[27].mxu1 }
 0x632   : > { %v9340_v39 = vpop.f32.mrb[48].mxu0 }
 0x633   : > { %v8733_v16 = vpop.f32.mrb[28].mxu1  ;;  %v9349_v36 = vadd.f32 %v9340_v39, %v9208_v0  ;;  %v9342_v15 = vpop.f32.mrb[49].mxu0 }
 0x634   : > { %v8781_v45 = vadd.f32 %v8733_v16, %v8638_v34  ;;  %v8735_v37 = vpop.f32.mrb[29].mxu1  ;;  %v9350_v33 = vadd.f32 %v9342_v15, %v9209_v32  ;;  %v9344_v60 = vpop.f32.mrb[50].mxu0 }
 0x635   : > { %v8782_v40 = vadd.f32 %v8735_v37, %v8639_v38  ;;  %v8737_v12 = vpop.f32.mrb[30].mxu1  ;;  %v9345_v46 = vpop.f32.mrb[51].mxu0 }
 0x636   : > { %v8738_v44 = vpop.f32.mrb[31].mxu1  ;;  %v14620_v46 = vld [vmem:[%s17485_s9 + $0x70] sm:$0xff]  }
 0x637   : > { %13333 = vmatprep.subr.bf16.mxu1 %v14620_v46 }
 0x638   : > { %13334 = vmatpush3.bf16.msra.mxu1 %v14621_v50 }
 0x639   : > { %13335 = vmatprep.subr.bf16.mxu1 %v14622_v47 }
 0x63a   : > { %v9482_v53 = vpop.f32.mrb[52].mxu0 }
 0x63b   : > { %v8875_v35 = vpop.f32.mrb[32].mxu1  ;;  %v9491_v1 = vadd.f32 %v9482_v53, %v9349_v36  ;;  %v9484_v56 = vpop.f32.mrb[53].mxu0 }
 0x63c   : > { %v8923_v55 = vadd.f32 %v8875_v35, %v8781_v45  ;;  %v8877_v5 = vpop.f32.mrb[33].mxu1  ;;  %v9492_v19 = vadd.f32 %v9484_v56, %v9350_v33  ;;  %v9486_v63 = vpop.f32.mrb[54].mxu0 }
 0x63d   : > { %v8924_v58 = vadd.f32 %v8877_v5, %v8782_v40  ;;  %v8879_v61 = vpop.f32.mrb[34].mxu1  ;;  %v9487_v8 = vpop.f32.mrb[55].mxu0 }
 0x63e   : > { %v8880_v28 = vpop.f32.mrb[35].mxu1 }
 0x642   : > { %v9624_v17 = vpop.f32.mrb[56].mxu0 }
 0x643   : > { %v9016_v3 = vpop.f32.mrb[36].mxu1  ;;  %v9633_v23 = vadd.f32 %v9624_v17, %v9491_v1  ;;  %v9626_v10 = vpop.f32.mrb[57].mxu0 }
 0x644   : > { %v9064_v4 = vadd.f32 %v9016_v3, %v8923_v55  ;;  %v9018_v9 = vpop.f32.mrb[37].mxu1  ;;  %v9634_v13 = vadd.f32 %v9626_v10, %v9492_v19  ;;  %v9628_v14 = vpop.f32.mrb[58].mxu0  ;;  %v14623_v19 = vld [vmem:[%s17485_s9 + $0x38] sm:$0xff]  }
 0x645   : > { %v9065_v11 = vadd.f32 %v9018_v9, %v8924_v58  ;;  %v9020_v62 = vpop.f32.mrb[38].mxu1  ;;  %v9629_v49 = vpop.f32.mrb[59].mxu0  ;;  %13336 = vmatpush3.bf16.msra.mxu1 %v14623_v19 }
 0x646   : > { %v9021_v41 = vpop.f32.mrb[39].mxu1 }
 0x64a   : > { %v9765_v29 = vpop.f32.mrb[60].mxu0 }
 0x64b   : > { %v9158_v31 = vpop.f32.mrb[40].mxu1  ;;  %v9774_v0 = vadd.f32 %v9765_v29, %v9633_v23  ;;  %v9767_v24 = vpop.f32.mrb[61].mxu0 }
 0x64c   : > { %v9206_v34 = vadd.f32 %v9158_v31, %v9064_v4  ;;  %v9160_v22 = vpop.f32.mrb[41].mxu1  ;;  %v9775_v32 = vadd.f32 %v9767_v24, %v9634_v13  ;;  %v9769_v52 = vpop.f32.mrb[62].mxu0 }
 0x64d   : > { %v9207_v38 = vadd.f32 %v9160_v22, %v9065_v11  ;;  %v9162_v42 = vpop.f32.mrb[42].mxu1  ;;  %v9770_v27 = vpop.f32.mrb[63].mxu0 }
 0x64e   : > { %v9163_v26 = vpop.f32.mrb[43].mxu1 }
 0x652   : > { %v9907_v39 = vpop.f32.mrb[64].mxu0 }
 0x653   : > { %v9299_v16 = vpop.f32.mrb[44].mxu1  ;;  %v9916_v36 = vadd.f32 %v9907_v39, %v9774_v0  ;;  %v9909_v15 = vpop.f32.mrb[65].mxu0 }
 0x654   : > { %v9347_v45 = vadd.f32 %v9299_v16, %v9206_v34  ;;  %v9301_v37 = vpop.f32.mrb[45].mxu1  ;;  %v9917_v33 = vadd.f32 %v9909_v15, %v9775_v32  ;;  %v9911_v60 = vpop.f32.mrb[66].mxu0 }
 0x655   : > { %v9348_v40 = vadd.f32 %v9301_v37, %v9207_v38  ;;  %v9303_v12 = vpop.f32.mrb[46].mxu1  ;;  %v9912_v2 = vpop.f32.mrb[67].mxu0 }
 0x656   : > { %v9304_v43 = vpop.f32.mrb[47].mxu1 }
 0x65a   : > { %v10048_v44 = vpop.f32.mrb[68].mxu0 }
 0x65b   : > { %v9441_v59 = vpop.f32.mrb[48].mxu1  ;;  %v10057_v51 = vadd.f32 %v10048_v44, %v9916_v36  ;;  %v10050_v53 = vpop.f32.mrb[69].mxu0 }
 0x65c   : > { %v9489_v54 = vadd.f32 %v9441_v59, %v9347_v45  ;;  %v9443_v35 = vpop.f32.mrb[49].mxu1  ;;  %v10058_v1 = vadd.f32 %v10050_v53, %v9917_v33  ;;  %v10052_v56 = vpop.f32.mrb[70].mxu0 }
 0x65d   : > { %v9490_v55 = vadd.f32 %v9443_v35, %v9348_v40  ;;  %v9445_v5 = vpop.f32.mrb[50].mxu1  ;;  %v10053_v58 = vpop.f32.mrb[71].mxu0 }
 0x65e   : > { %v9446_v57 = vpop.f32.mrb[51].mxu1 }
 0x662   : > { %v10190_v63 = vpop.f32.mrb[72].mxu0 }
 0x663   : > { %v9583_v61 = vpop.f32.mrb[52].mxu1  ;;  %v10199_v8 = vadd.f32 %v10190_v63, %v10057_v51  ;;  %v10192_v48 = vpop.f32.mrb[73].mxu0 }
 0x664   : > { %v9631_v28 = vadd.f32 %v9583_v61, %v9489_v54  ;;  %v9585_v18 = vpop.f32.mrb[53].mxu1  ;;  %v10200_v3 = vadd.f32 %v10192_v48, %v10058_v1  ;;  %v10194_v4 = vpop.f32.mrb[74].mxu0 }
 0x665   : > { %v9632_v30 = vadd.f32 %v9585_v18, %v9490_v55  ;;  %v9587_v17 = vpop.f32.mrb[54].mxu1  ;;  %v10195_v9 = vpop.f32.mrb[75].mxu0 }
 0x666   : > { %v9588_v23 = vpop.f32.mrb[55].mxu1 }
 0x66a   : > { %v10331_v25 = vpop.f32.mrb[76].mxu0 }
 0x66b   : > { %v9724_v10 = vpop.f32.mrb[56].mxu1  ;;  %v10340_v13 = vadd.f32 %v10331_v25, %v10199_v8  ;;  %v10333_v14 = vpop.f32.mrb[77].mxu0 }
 0x66c   : > { %v9772_v11 = vadd.f32 %v9724_v10, %v9631_v28  ;;  %v9726_v62 = vpop.f32.mrb[57].mxu1  ;;  %v10341_v49 = vadd.f32 %v10333_v14, %v10200_v3  ;;  %v10335_v7 = vpop.f32.mrb[78].mxu0 }
 0x66d   : > { %v9773_v41 = vadd.f32 %v9726_v62, %v9632_v30  ;;  %v9728_v20 = vpop.f32.mrb[58].mxu1  ;;  %v10336_v31 = vpop.f32.mrb[79].mxu0 }
 0x66e   : > { %v9729_v21 = vpop.f32.mrb[59].mxu1 }
 0x672   : > { %v10469_v34 = vpop.f32.mrb[80].mxu0 }
 0x673   : > { %v9866_v29 = vpop.f32.mrb[60].mxu1  ;;  %v10478_v22 = vadd.f32 %v10469_v34, %v10340_v13  ;;  %v10471_v38 = vpop.f32.mrb[81].mxu0 }
 0x674   : > { %v9914_v0 = vadd.f32 %v9866_v29, %v9772_v11  ;;  %v9868_v24 = vpop.f32.mrb[61].mxu1  ;;  %v10479_v42 = vadd.f32 %v10471_v38, %v10341_v49  ;;  %v10473_v26 = vpop.f32.mrb[82].mxu0 }
 0x675   : > { %v9915_v32 = vadd.f32 %v9868_v24, %v9773_v41  ;;  %v9870_v52 = vpop.f32.mrb[62].mxu1  ;;  %v10474_v6 = vpop.f32.mrb[83].mxu0 }
 0x676   : > { %v9871_v27 = vpop.f32.mrb[63].mxu1  ;;  %v11471_v52 = vlaneseq }
 0x678   : > { %v17451_v26 = vshrl.u32 %v11471_v52, 7  ;;  %vm11530_vm1 = vcmp.lt.s32.totalorder %v11471_v52, 512 }
 0x67a   : > { %v10611_v39 = vpop.f32.mrb[84].mxu0 }
 0x67b   : > { %v10007_v16 = vpop.f32.mrb[64].mxu1  ;;  %v10620_v36 = vadd.f32 %v10611_v39, %v10478_v22  ;;  %v10613_v15 = vpop.f32.mrb[85].mxu0 }
 0x67c   : > { %v10055_v45 = vadd.f32 %v10007_v16, %v9914_v0  ;;  %v10009_v37 = vpop.f32.mrb[65].mxu1  ;;  %v10621_v33 = vadd.f32 %v10613_v15, %v10479_v42  ;;  %v10615_v60 = vpop.f32.mrb[86].mxu0 }
 0x67d   : > { %v10056_v40 = vadd.f32 %v10009_v37, %v9915_v32  ;;  %v10011_v12 = vpop.f32.mrb[66].mxu1  ;;  %v10616_v2 = vpop.f32.mrb[87].mxu0 }
 0x67e   : > { %v10012_v43 = vpop.f32.mrb[67].mxu1  ;;  %v11469_v2 = vld [vmem:[%s17484_s8] sm:$0xf] }
 0x67f   : > { %v11481_v43 = vsub.s32 2, %v17451_v26 }
 0x682   : > { %v10752_v44 = vpop.f32.mrb[88].mxu0 }
 0x683   : > { %v10149_v59 = vpop.f32.mrb[68].mxu1  ;;  %v10761_v50 = vadd.f32 %v10752_v44, %v10620_v36  ;;  %v10754_v54 = vpop.f32.mrb[89].mxu0  ;;  %v11482_v44 = vrot.slane %v11469_v2, %v11481_v43 }
 0x684   : > { %v10197_v46 = vadd.f32 %v10149_v59, %v10055_v45  ;;  %v10151_v47 = vpop.f32.mrb[69].mxu1  ;;  %v10762_v35 = vadd.f32 %v10754_v54, %v10621_v33  ;;  %v10756_v55 = vpop.f32.mrb[90].mxu0  ;;  %v11485_v59 = vsub.s32 3, %v17451_v26 }
 0x685   : > { %v10198_v51 = vadd.f32 %v10151_v47, %v10056_v40  ;;  %v10153_v53 = vpop.f32.mrb[70].mxu1  ;;  %v10757_v5 = vpop.f32.mrb[91].mxu0 }
 0x686   : > { %v10154_v1 = vpop.f32.mrb[71].mxu1  ;;  %v11486_v47 = vrot.slane %v11469_v2, %v11485_v59 }
 0x68a   : > { %v10894_v57 = vpop.f32.mrb[92].mxu0 }
 0x68b   : > { %v10290_v56 = vpop.f32.mrb[72].mxu1  ;;  %v10903_v19 = vadd.f32 %v10894_v57, %v10761_v50  ;;  %v10896_v63 = vpop.f32.mrb[93].mxu0 }
 0x68c   : > { %v10338_v58 = vadd.f32 %v10290_v56, %v10197_v46  ;;  %v10292_v61 = vpop.f32.mrb[73].mxu1  ;;  %v10904_v8 = vadd.f32 %v10896_v63, %v10762_v35  ;;  %v10898_v48 = vpop.f32.mrb[94].mxu0 }
 0x68d   : > { %v10339_v28 = vadd.f32 %v10292_v61, %v10198_v51  ;;  %v10294_v18 = vpop.f32.mrb[74].mxu1  ;;  %v10899_v3 = vpop.f32.mrb[95].mxu0 }
 0x68e   : > { %v10295_v30 = vpop.f32.mrb[75].mxu1 }
 0x692   : > { %v11035_v4 = vpop.f32.mrb[96].mxu0 }
 0x693   : > { %v10428_v17 = vpop.f32.mrb[76].mxu1  ;;  %v11044_v9 = vadd.f32 %v11035_v4, %v10903_v19  ;;  %v11037_v25 = vpop.f32.mrb[97].mxu0 }
 0x694   : > { %v10476_v23 = vadd.f32 %v10428_v17, %v10338_v58  ;;  %v10430_v10 = vpop.f32.mrb[77].mxu1  ;;  %v11045_v13 = vadd.f32 %v11037_v25, %v10904_v8  ;;  %v11039_v14 = vpop.f32.mrb[98].mxu0 }
 0x695   : > { %v10477_v11 = vadd.f32 %v10430_v10, %v10339_v28  ;;  %v10432_v62 = vpop.f32.mrb[78].mxu1  ;;  %v11040_v49 = vpop.f32.mrb[99].mxu0 }
 0x696   : > { %v10433_v41 = vpop.f32.mrb[79].mxu1 }
 0x69a   : > { %v11173_v7 = vpop.f32.mrb[100].mxu0 }
 0x69b   : > { %v10570_v20 = vpop.f32.mrb[80].mxu1  ;;  %v11182_v31 = vadd.f32 %v11173_v7, %v11044_v9  ;;  %v11175_v34 = vpop.f32.mrb[101].mxu0 }
 0x69c   : > { %v10618_v21 = vadd.f32 %v10570_v20, %v10476_v23  ;;  %v10572_v29 = vpop.f32.mrb[81].mxu1  ;;  %v11183_v22 = vadd.f32 %v11175_v34, %v11045_v13  ;;  %v11177_v38 = vpop.f32.mrb[102].mxu0  ;;  %v11477_v34 = vsub.s32 1, %v17451_v26 }
 0x69d   : > { %v10619_v0 = vadd.f32 %v10572_v29, %v10477_v11  ;;  %v10574_v24 = vpop.f32.mrb[82].mxu1  ;;  %v11178_v42 = vpop.f32.mrb[103].mxu0  ;;  %v11473_v29 = vsub.s32 0, %v17451_v26 }
 0x69e   : > { %v10575_v32 = vpop.f32.mrb[83].mxu1 }
 0x69f   : > { %v11474_v24 = vrot.slane %v11469_v2, %v11473_v29  ;;  %v11478_v32 = vrot.slane %v11469_v2, %v11477_v34 }
 0x6a2   : > { %v11316_v6 = vpop.f32.mrb[104].mxu0 }
 0x6a3   : > { %v10711_v27 = vpop.f32.mrb[84].mxu1  ;;  %v11325_v39 = vadd.f32 %v11316_v6, %v11182_v31  ;;  %v11318_v36 = vpop.f32.mrb[105].mxu0 }
 0x6a4   : > { %v10759_v16 = vadd.f32 %v10711_v27, %v10618_v21  ;;  %v10713_v45 = vpop.f32.mrb[85].mxu1  ;;  %v11326_v15 = vadd.f32 %v11318_v36, %v11183_v22  ;;  %v11320_v33 = vpop.f32.mrb[106].mxu0 }
 0x6a5   : > { %v10760_v37 = vadd.f32 %v10713_v45, %v10619_v0  ;;  %v10715_v40 = vpop.f32.mrb[86].mxu1  ;;  %v11321_v60 = vpop.f32.mrb[107].mxu0  ;;  %v14638_v0 = vmov 1966171168  }
 0x6a6   : > { %v10716_v12 = vpop.f32.mrb[87].mxu1  ;;  %v11506_v22 = vunpack.c.l.s4 %v14638_v0 }
 0x6a8   : > { %v11507_v6 = vunpack.c.0.s8 %v11506_v22 }
 0x6aa   : > { %v11458_v50 = vpop.f32.mrb[108].mxu0  ;;  %v11510_v40 = vsub.s32 %v11507_v6, %v17451_v26 }
 0x6ab   : > { %v10853_v46 = vpop.f32.mrb[88].mxu1  ;;  %v11467_v51 = vadd.f32 %v11458_v50, %v11325_v39  ;;  %v11460_v53 = vpop.f32.mrb[109].mxu0 }
 0x6ac   : > { %v10901_v54 = vadd.f32 %v10853_v46, %v10759_v16  ;;  %v10855_v35 = vpop.f32.mrb[89].mxu1  ;;  %v11468_v1 = vadd.f32 %v11460_v53, %v11326_v15  ;;  %v11462_v56 = vpop.f32.mrb[110].mxu0  ;;  %v11601_v53 = vld [vmem:[%s17486_s10] sm:$0x1] }
 0x6ad   : > { %v10902_v55 = vadd.f32 %v10855_v35, %v10760_v37  ;;  %v10857_v5 = vpop.f32.mrb[90].mxu1  ;;  %v11493_v57 = vadd.f32 %v11482_v44, %v11467_v51  ;;  %v11463_v19 = vpop.f32.mrb[111].mxu0 }
 0x6ae   : > { %v10858_v58 = vpop.f32.mrb[91].mxu1  ;;  %v11494_v61 = vadd.f32 %v11486_v47, %v11468_v1 }
 0x6af   : > { %v11497_v63 = vmax.f32 %v11493_v57, 0.0 }
 0x6b0   : > { %v11498_v28 = vmax.f32 %v11494_v61, 0.0 }
 0x6b1   : > { %v11535_v30 = vpack.c.bf16 %v11497_v63, %v11497_v63 }
 0x6b2   : > { %v11504_v8 = vcombine.low %v11497_v63, %v11498_v28  ;;  %v11536_v48 = vpack.c.bf16 %v11498_v28, %v11498_v28 }
 0x6b3   : > { %v10994_v18 = vpop.f32.mrb[92].mxu1 }
 0x6b4   : > { %v11042_v3 = vadd.f32 %v10994_v18, %v10901_v54  ;;  %v10996_v17 = vpop.f32.mrb[93].mxu1  ;;  %11866 = vmatprep.mubr.bf16.mxu0 %v11536_v48  ;;  %v11518_v59 = vrot.slane %v11504_v8, %v11510_v40 }
 0x6b5   : > { %v11043_v4 = vadd.f32 %v10996_v17, %v10902_v55  ;;  %v10998_v23 = vpop.f32.mrb[94].mxu1  ;;  %11867 = vmatmul.mubr.bf16.vlgmr.msra.gmra.mrb[112].mxu0 %v11535_v30 }
 0x6b6   : > { %v10999_v9 = vpop.f32.mrb[95].mxu1 }
 0x6bb   : > { %v11132_v10 = vpop.f32.mrb[96].mxu1 }
 0x6bc   : > { %v11180_v25 = vadd.f32 %v11132_v10, %v11042_v3  ;;  %v11134_v11 = vpop.f32.mrb[97].mxu1 }
 0x6bd   : > { %v11181_v13 = vadd.f32 %v11134_v11, %v11043_v4  ;;  %v11136_v62 = vpop.f32.mrb[98].mxu1 }
 0x6be   : > { %v11137_v14 = vpop.f32.mrb[99].mxu1 }
 0x6c3   : > { %v11275_v41 = vpop.f32.mrb[100].mxu1 }
 0x6c4   : > { %v11323_v49 = vadd.f32 %v11275_v41, %v11180_v25  ;;  %v11277_v20 = vpop.f32.mrb[101].mxu1 }
 0x6c5   : > { %v11324_v7 = vadd.f32 %v11277_v20, %v11181_v13  ;;  %v11279_v21 = vpop.f32.mrb[102].mxu1 }
 0x6c6   : > { %v11280_v31 = vpop.f32.mrb[103].mxu1 }
 0x6cb   : > { %v11417_v38 = vpop.f32.mrb[104].mxu1 }
 0x6cc   : > { %v11465_v42 = vadd.f32 %v11417_v38, %v11323_v49  ;;  %v11419_v27 = vpop.f32.mrb[105].mxu1 }
 0x6cd   : > { %v11466_v16 = vadd.f32 %v11419_v27, %v11324_v7  ;;  %v11421_v39 = vpop.f32.mrb[106].mxu1 }
 0x6ce   : > { %v11491_v45 = vadd.f32 %v11474_v24, %v11465_v42  ;;  %v11422_v36 = vpop.f32.mrb[107].mxu1 }
 0x6cf   : > { %v11492_v37 = vadd.f32 %v11478_v32, %v11466_v16 }
 0x6d0   : > { %v11495_v15 = vmax.f32 %v11491_v45, 0.0 }
 0x6d1   : > { %v11496_v33 = vmax.f32 %v11492_v37, 0.0 }
 0x6d2   : > { %v11533_v43 = vpack.c.bf16 %v11495_v15, %v11495_v15 }
 0x6d3   : > { %v11503_v12 = vcombine.low %v11495_v15, %v11496_v33  ;;  %v11534_v60 = vpack.c.bf16 %v11496_v33, %v11496_v33 }
 0x6d5   : > { %v11511_v44 = vrot.slane %v11503_v12, %v11510_v40  ;;  %11826 = vmatprep.mubr.bf16.mxu1 %v11534_v60 }
 0x6d6   : > { %11827 = vmatmul.mubr.bf16.vlgmr.msra.gmra.mrb[108].mxu1 %v11533_v43 }
 0x6d7   : > { %v11519_v2 = vcombine.low %v11511_v44, %v11518_v59 }
 0x6d9   : > { %v11526_v46 = vrot.slane %v11519_v2, %v11510_v40 }
 0x6db   : > { %11532 = vst.msk [vmem:[%s417_s18] sm:$0xf] %vm11530_vm1, %v11526_v46 }
 0x788   : > { %v13359_v26 = vpop.f32.mrb[112].mxu0 }
 0x789   : > { %v13360_v50 = vpop.f32.mrb[113].mxu0 }
 0x78a   : > { %v13361_v47 = vadd.f32 %v13360_v50, %v13359_v26  ;;  %v13362_v54 = vpop.f32.mrb[114].mxu0 }
 0x78b   : > { %v13363_v51 = vpop.f32.mrb[115].mxu0 }
 0x7a9   : > { %v13337_v35 = vpop.f32.mrb[108].mxu1 }
 0x7aa   : > { %v13338_v55 = vpop.f32.mrb[109].mxu1 }
 0x7ab   : > { %v13339_v1 = vadd.f32 %v13338_v55, %v13337_v35  ;;  %v13340_v5 = vpop.f32.mrb[110].mxu1 }
 0x7ac   : > { %v13341_v56 = vpop.f32.mrb[111].mxu1 }
 0x7ad   : > { %v11829_v57 = vadd.f32 %v13339_v1, %v11601_v53 }
 0x7af   : > { %v11869_v52 = vadd.f32 %v13361_v47, %v11829_v57 }
 0x7b1   : > { %11874 = vst [vmem:[%s420_s23] sm:$0x1] %v11869_v52 }
 0x7b2 PF: > { %s23_s21 = sadd.s32 1, %s14630_s21  }
 0x7b3   : > { %p20_p4 = scmp.ge.s32.totalorder %s23_s21, 4  }
 0x7b5   :  { %22 = sbr.rel (!%p20_p4) target bundleno = 1 (0x1), region = 109 }

</bundles_post_ra>
